<compile_context>
chip_gen: v7x
topology: tpu7x:2x2x1
jax: 0.10.0
libtpu: 0.0.40
codegen_flags: <defaults>
</compile_context>

<pallas_src>
import functools
import math

import jax
import jax.numpy as jnp
from jax import lax
from jax.experimental import pallas as pl
from jax.experimental.pallas import tpu as pltpu


LATENT_DIM = 100
IMG_SHAPE = (1, 28, 28)           # (C, H, W), like MNIST in the reference GAN
HIDDEN = (128, 256, 512, 1024)


def _round_up(x, m):
    return ((x + m - 1) // m) * m


def _cdiv(a, b):
    return -(-a // b)


def _chip_kind():
    try:
        return jax.devices()[0].device_kind.lower()
    except Exception:
        return ""


_KIND = _chip_kind()
# bf16 VPU exists on v6e/v7x -> do the post-matmul epilogue in bf16 there.
_BF16_EPILOGUE = ("v6" in _KIND) or ("v7" in _KIND) or ("7x" in _KIND)
# v7x has 2 TensorCores per chip -> make sure the batch grid has >= 2 steps.
_NUM_TC = 2 if ("v7" in _KIND or "7x" in _KIND) else 1
# v5e: bigger batch tiles amortize the ~0.35us per-grid-step overhead.
_TB_MAX = 512 if "v5" in _KIND else 256


def _leaky_relu(x, slope=0.2):
    # slope < 1  =>  leaky_relu(x) == max(x, slope * x); mul+max, no select.
    return jnp.maximum(x, slope * x)


def generator_kernel(z_ref,
                     w1_ref, b1_ref,
                     w2_ref, b2_ref,
                     w3_ref, b3_ref,
                     w4_ref, b4_ref,
                     w5_ref, b5_ref,
                     out_ref,
                     *, sub_rows, nsub, bf16_epilogue):
    """Fused MLP: 4 x (Linear + LeakyReLU(0.2)) -> Linear -> Tanh.

    The (TB, 128) batch tile is processed as `nsub` independent row sub-tiles
    of `sub_rows` rows each (unrolled fori_loop) so one sub-tile's VPU/EUP
    epilogue overlaps the next sub-tile's MXU matmuls. Matmuls are bf16 with
    f32 accumulation; the bias/LeakyReLU epilogue runs in bf16 on chips with a
    bf16 VPU, otherwise in f32. tanh + final store are f32.
    """
    act_dtype = jnp.bfloat16 if bf16_epilogue else jnp.float32

    def hidden(h, w_ref, b_ref):
        acc = jnp.dot(h.astype(jnp.bfloat16), w_ref[...],
                      preferred_element_type=jnp.float32)
        return _leaky_relu((acc + b_ref[...]).astype(act_dtype))

    def sub_tile(r, carry):
        row = pl.multiple_of(r * sub_rows, 8)          # sublane-aligned offset
        h = z_ref[pl.ds(row, sub_rows), :]             # (sub_rows, 128) bf16
        h = hidden(h, w1_ref, b1_ref)                  # (sub_rows, 128)
        h = hidden(h, w2_ref, b2_ref)                  # (sub_rows, 256)
        h = hidden(h, w3_ref, b3_ref)                  # (sub_rows, 512)
        h = hidden(h, w4_ref, b4_ref)                  # (sub_rows, 1024)
        acc = jnp.dot(h.astype(jnp.bfloat16), w5_ref[...],
                      preferred_element_type=jnp.float32) + b5_ref[...]
        out_ref[pl.ds(row, sub_rows), :] = jnp.tanh(acc)   # (sub_rows, 896) f32
        return carry

    lax.fori_loop(0, nsub, sub_tile, 0, unroll=True)


def init_generator_params(key, latent_dim=LATENT_DIM, img_shape=IMG_SHAPE):
    """PyTorch nn.Linear-style init U(-1/sqrt(fan_in), 1/sqrt(fan_in)).

    Weights stored (in, out), zero-padded to multiples of 128 on both axes and
    cast to bf16. Biases are (1, out_pad) f32 (zero in padded columns). The
    zero padding keeps the math identical to the unpadded PyTorch layers.
    """
    out_dim = int(img_shape[0] * img_shape[1] * img_shape[2])
    dims = (latent_dim,) + HIDDEN + (out_dim,)
    pad_dims = tuple(_round_up(d, 128) for d in dims)

    params = []
    for i in range(len(dims) - 1):
        fan_in, fan_out = dims[i], dims[i + 1]
        p_in, p_out = pad_dims[i], pad_dims[i + 1]
        key, kw, kb = jax.random.split(key, 3)
        bound = 1.0 / math.sqrt(fan_in)
        w = jax.random.uniform(kw, (fan_in, fan_out), jnp.float32, -bound, bound)
        b = jax.random.uniform(kb, (1, fan_out), jnp.float32, -bound, bound)
        w = jnp.pad(w, ((0, p_in - fan_in), (0, p_out - fan_out))).astype(jnp.bfloat16)
        b = jnp.pad(b, ((0, 0), (0, p_out - fan_out)))
        params.append((w, b))
    return params


@functools.partial(jax.jit, static_argnames=("img_shape", "single_buffer_weights"))
def generator_forward(z, params, img_shape=IMG_SHAPE, single_buffer_weights=True):
    """Pallas-backed forward. z: (B, latent_dim) f32 -> (B, C, H, W) f32."""
    batch = z.shape[0]
    out_dim = int(img_shape[0] * img_shape[1] * img_shape[2])
    lat_pad = params[0][0].shape[0]        # 128
    out_pad = params[-1][0].shape[1]       # 896

    # ---- batch tiling: minimize padding; keep both v7x TCs busy -------------
    n_tiles = _cdiv(batch, _TB_MAX)
    if _NUM_TC > 1 and batch >= 128:
        n_tiles = _round_up(max(n_tiles, _NUM_TC), _NUM_TC)
    rows = _cdiv(batch, n_tiles)
    tb = _round_up(rows, 8) if rows <= 32 else _round_up(rows, 32)
    b_pad = tb * n_tiles
    nsub = max(1, min(4, tb // 32))        # row sub-tiles inside the kernel
    sub_rows = tb // nsub                  # always a multiple of 8

    # z padded to (b_pad, 128) and cast to bf16 in the wrapper (halves z DMA).
    z_p = jnp.pad(z, ((0, b_pad - batch),
                      (0, lat_pad - z.shape[1]))).astype(jnp.bfloat16)

    wb_kwargs = dict(pipeline_mode=pl.Buffered(1)) if single_buffer_weights else {}
    flat_args = [z_p]
    in_specs = [pl.BlockSpec((tb, lat_pad), lambda i: (i, 0))]
    for w, b in params:
        flat_args += [w, b]
        # Constant block index -> weights/biases stay resident in VMEM.
        in_specs.append(pl.BlockSpec(w.shape, lambda i: (0, 0), **wb_kwargs))
        in_specs.append(pl.BlockSpec(b.shape, lambda i: (0, 0), **wb_kwargs))

    # Advisory cost hint for XLA scheduling around the custom call.
    dims = (lat_pad,) + tuple(w.shape[1] for w, _ in params)
    flops = 2 * b_pad * sum(dims[i] * dims[i + 1] for i in range(len(dims) - 1))
    weight_bytes = sum(w.size * w.dtype.itemsize + b.size * b.dtype.itemsize
                       for w, b in params)
    bytes_accessed = weight_bytes + z_p.size * 2 + b_pad * out_pad * 4
    cost = pl.CostEstimate(flops=int(flops),
                           transcendentals=int(b_pad * out_pad),
                           bytes_accessed=int(bytes_accessed))

    kernel = functools.partial(generator_kernel, sub_rows=sub_rows, nsub=nsub,
                               bf16_epilogue=_BF16_EPILOGUE)

    img_flat = pl.pallas_call(
        kernel,
        out_shape=jax.ShapeDtypeStruct((b_pad, out_pad), jnp.float32),
        grid=(n_tiles,),
        in_specs=in_specs,
        out_specs=pl.BlockSpec((tb, out_pad), lambda i: (i, 0)),
        compiler_params=pltpu.CompilerParams(
            dimension_semantics=("parallel",) if n_tiles > 1 else ("arbitrary",),
            vmem_limit_bytes=32 << 20,
        ),
        cost_estimate=cost,
    )(*flat_args)

    # Drop batch/lane padding, then match `img.view(B, *img_shape)` (NCHW).
    return img_flat[:batch, :out_dim].reshape((batch,) + tuple(img_shape))


def generator_reference(z, params, img_shape=IMG_SHAPE):
    """Pure-JAX reference mirroring the kernel's mixed-precision scheme."""
    out_dim = int(img_shape[0] * img_shape[1] * img_shape[2])
    lat_pad = params[0][0].shape[0]
    act_dtype = jnp.bfloat16 if _BF16_EPILOGUE else jnp.float32
    h = jnp.pad(z, ((0, 0), (0, lat_pad - z.shape[1]))).astype(jnp.bfloat16)
    for i, (w, b) in enumerate(params):
        acc = jnp.dot(h.astype(jnp.bfloat16), w,
                      preferred_element_type=jnp.float32) + b
        if i < len(params) - 1:
            h = _leaky_relu(acc.astype(act_dtype))
        else:
            h = jnp.tanh(acc)
    return h[:, :out_dim].reshape((z.shape[0],) + tuple(img_shape))


if __name__ == "__main__":
    key = jax.random.PRNGKey(0)
    k_params, k_z1, k_z2 = jax.random.split(key, 3)

    params = init_generator_params(k_params)

    def run_and_check(z, single_buffer):
        img = jax.block_until_ready(
            generator_forward(z, params, single_buffer_weights=single_buffer))
        assert img.shape == (z.shape[0],) + IMG_SHAPE, img.shape
        assert img.dtype == jnp.float32
        ref = generator_reference(z, params)
        max_err = float(jnp.max(jnp.abs(img - ref)))
        assert max_err < 2e-3, f"max abs error {max_err}"
        return img

    # Small batch (single grid step, tb=8, nsub=1). Also used as the feature
    # probe for single-buffered (pl.Buffered(1)) resident weights; fall back to
    # default double-buffered specs if the installed Pallas rejects it.
    batch = 2
    z = jax.random.normal(k_z1, (batch, LATENT_DIM), dtype=jnp.float32)
    try:
        run_and_check(z, single_buffer=True)
        use_single_buffer = True
    except Exception:
        use_single_buffer = False
        run_and_check(z, single_buffer=False)

    # Larger, awkward batch: exercises the multi-step grid, the low-padding tb
    # heuristic (300 -> 2 tiles of 160), in-kernel sub-tiling and batch slicing.
    batch2 = 300
    z2 = jax.random.normal(k_z2, (batch2, LATENT_DIM), dtype=jnp.float32)
    run_and_check(z2, single_buffer=use_single_buffer)

    print("KERNEL_OK")
</pallas_src>

<mosaic_0001>
module attributes {stable_mosaic.version = 11 : i64} {
  func.func @generator_kernel(%arg0: i32, %arg1: memref<8x128xbf16, #tpu.memory_space<vmem>>, %arg2: memref<128x128xbf16, #tpu.memory_space<vmem>>, %arg3: memref<1x128xf32, #tpu.memory_space<vmem>>, %arg4: memref<128x256xbf16, #tpu.memory_space<vmem>>, %arg5: memref<1x256xf32, #tpu.memory_space<vmem>>, %arg6: memref<256x512xbf16, #tpu.memory_space<vmem>>, %arg7: memref<1x512xf32, #tpu.memory_space<vmem>>, %arg8: memref<512x1024xbf16, #tpu.memory_space<vmem>>, %arg9: memref<1x1024xf32, #tpu.memory_space<vmem>>, %arg10: memref<1024x896xbf16, #tpu.memory_space<vmem>>, %arg11: memref<1x896xf32, #tpu.memory_space<vmem>>, %arg12: memref<8x896xf32, #tpu.memory_space<vmem>>) attributes {dimension_semantics = [#tpu.dimension_semantics<arbitrary>], iteration_bounds = array<i64: 1>, scalar_prefetch = 0 : i64, scratch_operands = 0 : i64, tpu.core_type = #tpu.core_type<tc>, window_params = [{transform_indices = @transform_0, window_bounds = array<i64: 8, 128>}, {pipeline_mode = #tpu.pipeline_mode<synchronous>, transform_indices = @transform_1, window_bounds = array<i64: 128, 128>}, {pipeline_mode = #tpu.pipeline_mode<synchronous>, transform_indices = @transform_2, window_bounds = array<i64: 1, 128>}, {pipeline_mode = #tpu.pipeline_mode<synchronous>, transform_indices = @transform_3, window_bounds = array<i64: 128, 256>}, {pipeline_mode = #tpu.pipeline_mode<synchronous>, transform_indices = @transform_4, window_bounds = array<i64: 1, 256>}, {pipeline_mode = #tpu.pipeline_mode<synchronous>, transform_indices = @transform_5, window_bounds = array<i64: 256, 512>}, {pipeline_mode = #tpu.pipeline_mode<synchronous>, transform_indices = @transform_6, window_bounds = array<i64: 1, 512>}, {pipeline_mode = #tpu.pipeline_mode<synchronous>, transform_indices = @transform_7, window_bounds = array<i64: 512, 1024>}, {pipeline_mode = #tpu.pipeline_mode<synchronous>, transform_indices = @transform_8, window_bounds = array<i64: 1, 1024>}, {pipeline_mode = #tpu.pipeline_mode<synchronous>, transform_indices = @transform_9, window_bounds = array<i64: 1024, 896>}, {pipeline_mode = #tpu.pipeline_mode<synchronous>, transform_indices = @transform_10, window_bounds = array<i64: 1, 896>}, {transform_indices = @transform_11, window_bounds = array<i64: 8, 896>}]} {
    %c0_i32 = arith.constant 0 : i32
    %c8_i32 = arith.constant 8 : i32
    %0 = arith.muli %c0_i32, %c8_i32 : i32
    %1 = tpu.assume_multiple %0, 8 : i32
    %2 = arith.index_cast %1 : i32 to index
    %c0 = arith.constant 0 : index
    %3 = vector.load %arg1[%2, %c0] : memref<8x128xbf16, #tpu.memory_space<vmem>>, vector<8x128xbf16>
    %c0_0 = arith.constant 0 : index
    %c0_1 = arith.constant 0 : index
    %4 = vector.load %arg2[%c0_0, %c0_1] : memref<128x128xbf16, #tpu.memory_space<vmem>>, vector<128x128xbf16>
    %cst = arith.constant dense<0.000000e+00> : vector<8x128xf32>
    %5 = tpu.matmul %3, %4, %cst {dimension_numbers = #tpu.dot_dimension_numbers<[1], [0], [0], [1], [0, 0, 1, 1], [], []>} : vector<8x128xbf16>, vector<128x128xbf16>, vector<8x128xf32> -> vector<8x128xf32>
    %c0_2 = arith.constant 0 : index
    %c0_3 = arith.constant 0 : index
    %6 = vector.load %arg3[%c0_2, %c0_3] : memref<1x128xf32, #tpu.memory_space<vmem>>, vector<1x128xf32>
    %7 = vector.broadcast %6 : vector<1x128xf32> to vector<8x128xf32>
    %8 = arith.addf %5, %7 : vector<8x128xf32>
    %cst_4 = arith.constant 2.000000e-01 : f32
    %9 = vector.broadcast %cst_4 : f32 to vector<8x128xf32>
    %10 = arith.mulf %9, %8 : vector<8x128xf32>
    %11 = arith.maximumf %8, %10 : vector<8x128xf32>
    %12 = arith.truncf %11 : vector<8x128xf32> to vector<8x128xbf16>
    %c0_5 = arith.constant 0 : index
    %c0_6 = arith.constant 0 : index
    %13 = vector.load %arg4[%c0_5, %c0_6] : memref<128x256xbf16, #tpu.memory_space<vmem>>, vector<128x256xbf16>
    %cst_7 = arith.constant dense<0.000000e+00> : vector<8x256xf32>
    %14 = tpu.matmul %12, %13, %cst_7 {dimension_numbers = #tpu.dot_dimension_numbers<[1], [0], [0], [1], [0, 0, 1, 1], [], []>} : vector<8x128xbf16>, vector<128x256xbf16>, vector<8x256xf32> -> vector<8x256xf32>
    %c0_8 = arith.constant 0 : index
    %c0_9 = arith.constant 0 : index
    %15 = vector.load %arg5[%c0_8, %c0_9] : memref<1x256xf32, #tpu.memory_space<vmem>>, vector<1x256xf32>
    %16 = vector.broadcast %15 : vector<1x256xf32> to vector<8x256xf32>
    %17 = arith.addf %14, %16 : vector<8x256xf32>
    %cst_10 = arith.constant 2.000000e-01 : f32
    %18 = vector.broadcast %cst_10 : f32 to vector<8x256xf32>
    %19 = arith.mulf %18, %17 : vector<8x256xf32>
    %20 = arith.maximumf %17, %19 : vector<8x256xf32>
    %21 = arith.truncf %20 : vector<8x256xf32> to vector<8x256xbf16>
    %c0_11 = arith.constant 0 : index
    %c0_12 = arith.constant 0 : index
    %22 = vector.load %arg6[%c0_11, %c0_12] : memref<256x512xbf16, #tpu.memory_space<vmem>>, vector<256x512xbf16>
    %cst_13 = arith.constant dense<0.000000e+00> : vector<8x512xf32>
    %23 = tpu.matmul %21, %22, %cst_13 {dimension_numbers = #tpu.dot_dimension_numbers<[1], [0], [0], [1], [0, 0, 1, 1], [], []>} : vector<8x256xbf16>, vector<256x512xbf16>, vector<8x512xf32> -> vector<8x512xf32>
    %c0_14 = arith.constant 0 : index
    %c0_15 = arith.constant 0 : index
    %24 = vector.load %arg7[%c0_14, %c0_15] : memref<1x512xf32, #tpu.memory_space<vmem>>, vector<1x512xf32>
    %25 = vector.broadcast %24 : vector<1x512xf32> to vector<8x512xf32>
    %26 = arith.addf %23, %25 : vector<8x512xf32>
    %cst_16 = arith.constant 2.000000e-01 : f32
    %27 = vector.broadcast %cst_16 : f32 to vector<8x512xf32>
    %28 = arith.mulf %27, %26 : vector<8x512xf32>
    %29 = arith.maximumf %26, %28 : vector<8x512xf32>
    %30 = arith.truncf %29 : vector<8x512xf32> to vector<8x512xbf16>
    %c0_17 = arith.constant 0 : index
    %c0_18 = arith.constant 0 : index
    %31 = vector.load %arg8[%c0_17, %c0_18] : memref<512x1024xbf16, #tpu.memory_space<vmem>>, vector<512x1024xbf16>
    %cst_19 = arith.constant dense<0.000000e+00> : vector<8x1024xf32>
    %32 = tpu.matmul %30, %31, %cst_19 {dimension_numbers = #tpu.dot_dimension_numbers<[1], [0], [0], [1], [0, 0, 1, 1], [], []>} : vector<8x512xbf16>, vector<512x1024xbf16>, vector<8x1024xf32> -> vector<8x1024xf32>
    %c0_20 = arith.constant 0 : index
    %c0_21 = arith.constant 0 : index
    %33 = vector.load %arg9[%c0_20, %c0_21] : memref<1x1024xf32, #tpu.memory_space<vmem>>, vector<1x1024xf32>
    %34 = vector.broadcast %33 : vector<1x1024xf32> to vector<8x1024xf32>
    %35 = arith.addf %32, %34 : vector<8x1024xf32>
    %cst_22 = arith.constant 2.000000e-01 : f32
    %36 = vector.broadcast %cst_22 : f32 to vector<8x1024xf32>
    %37 = arith.mulf %36, %35 : vector<8x1024xf32>
    %38 = arith.maximumf %35, %37 : vector<8x1024xf32>
    %39 = arith.truncf %38 : vector<8x1024xf32> to vector<8x1024xbf16>
    %c0_23 = arith.constant 0 : index
    %c0_24 = arith.constant 0 : index
    %40 = vector.load %arg10[%c0_23, %c0_24] : memref<1024x896xbf16, #tpu.memory_space<vmem>>, vector<1024x896xbf16>
    %cst_25 = arith.constant dense<0.000000e+00> : vector<8x896xf32>
    %41 = tpu.matmul %39, %40, %cst_25 {dimension_numbers = #tpu.dot_dimension_numbers<[1], [0], [0], [1], [0, 0, 1, 1], [], []>} : vector<8x1024xbf16>, vector<1024x896xbf16>, vector<8x896xf32> -> vector<8x896xf32>
    %c0_26 = arith.constant 0 : index
    %c0_27 = arith.constant 0 : index
    %42 = vector.load %arg11[%c0_26, %c0_27] : memref<1x896xf32, #tpu.memory_space<vmem>>, vector<1x896xf32>
    %43 = vector.broadcast %42 : vector<1x896xf32> to vector<8x896xf32>
    %44 = arith.addf %41, %43 : vector<8x896xf32>
    %45 = math.tanh %44 : vector<8x896xf32>
    %46 = arith.index_cast %1 : i32 to index
    %c0_28 = arith.constant 0 : index
    %47 = vector.load %arg12[%46, %c0_28] : memref<8x896xf32, #tpu.memory_space<vmem>>, vector<8x896xf32>
    tpu.vector_store %arg12[%46, %c0_28], %45 {strides = array<i32>} : memref<8x896xf32, #tpu.memory_space<vmem>>, vector<8x896xf32>,
    %c1_i32 = arith.constant 1 : i32
    return
  }
  func.func @transform_0(%arg0: i32) -> (i32, i32) {
    %c0_i32 = arith.constant 0 : i32
    %c0_i32_0 = arith.constant 0 : i32
    return %arg0, %c0_i32 : i32, i32
  }
  func.func @transform_1(%arg0: i32) -> (i32, i32) {
    %c0_i32 = arith.constant 0 : i32
    %c0_i32_0 = arith.constant 0 : i32
    %c0_i32_1 = arith.constant 0 : i32
    return %c0_i32, %c0_i32_0 : i32, i32
  }
  func.func @transform_2(%arg0: i32) -> (i32, i32) {
    %c0_i32 = arith.constant 0 : i32
    %c0_i32_0 = arith.constant 0 : i32
    %c0_i32_1 = arith.constant 0 : i32
    return %c0_i32, %c0_i32_0 : i32, i32
  }
  func.func @transform_3(%arg0: i32) -> (i32, i32) {
    %c0_i32 = arith.constant 0 : i32
    %c0_i32_0 = arith.constant 0 : i32
    %c0_i32_1 = arith.constant 0 : i32
    return %c0_i32, %c0_i32_0 : i32, i32
  }
  func.func @transform_4(%arg0: i32) -> (i32, i32) {
    %c0_i32 = arith.constant 0 : i32
    %c0_i32_0 = arith.constant 0 : i32
    %c0_i32_1 = arith.constant 0 : i32
    return %c0_i32, %c0_i32_0 : i32, i32
  }
  func.func @transform_5(%arg0: i32) -> (i32, i32) {
    %c0_i32 = arith.constant 0 : i32
    %c0_i32_0 = arith.constant 0 : i32
    %c0_i32_1 = arith.constant 0 : i32
    return %c0_i32, %c0_i32_0 : i32, i32
  }
  func.func @transform_6(%arg0: i32) -> (i32, i32) {
    %c0_i32 = arith.constant 0 : i32
    %c0_i32_0 = arith.constant 0 : i32
    %c0_i32_1 = arith.constant 0 : i32
    return %c0_i32, %c0_i32_0 : i32, i32
  }
  func.func @transform_7(%arg0: i32) -> (i32, i32) {
    %c0_i32 = arith.constant 0 : i32
    %c0_i32_0 = arith.constant 0 : i32
    %c0_i32_1 = arith.constant 0 : i32
    return %c0_i32, %c0_i32_0 : i32, i32
  }
  func.func @transform_8(%arg0: i32) -> (i32, i32) {
    %c0_i32 = arith.constant 0 : i32
    %c0_i32_0 = arith.constant 0 : i32
    %c0_i32_1 = arith.constant 0 : i32
    return %c0_i32, %c0_i32_0 : i32, i32
  }
  func.func @transform_9(%arg0: i32) -> (i32, i32) {
    %c0_i32 = arith.constant 0 : i32
    %c0_i32_0 = arith.constant 0 : i32
    %c0_i32_1 = arith.constant 0 : i32
    return %c0_i32, %c0_i32_0 : i32, i32
  }
  func.func @transform_10(%arg0: i32) -> (i32, i32) {
    %c0_i32 = arith.constant 0 : i32
    %c0_i32_0 = arith.constant 0 : i32
    %c0_i32_1 = arith.constant 0 : i32
    return %c0_i32, %c0_i32_0 : i32, i32
  }
  func.func @transform_11(%arg0: i32) -> (i32, i32) {
    %c0_i32 = arith.constant 0 : i32
    %c0_i32_0 = arith.constant 0 : i32
    return %arg0, %c0_i32 : i32, i32
  }
}

module attributes {stable_mosaic.version = 11 : i64} {
  func.func @generator_kernel(%arg0: i32, %arg1: memref<8x128xbf16, #tpu.memory_space<vmem>>, %arg2: memref<128x128xbf16, #tpu.memory_space<vmem>>, %arg3: memref<1x128xf32, #tpu.memory_space<vmem>>, %arg4: memref<128x256xbf16, #tpu.memory_space<vmem>>, %arg5: memref<1x256xf32, #tpu.memory_space<vmem>>, %arg6: memref<256x512xbf16, #tpu.memory_space<vmem>>, %arg7: memref<1x512xf32, #tpu.memory_space<vmem>>, %arg8: memref<512x1024xbf16, #tpu.memory_space<vmem>>, %arg9: memref<1x1024xf32, #tpu.memory_space<vmem>>, %arg10: memref<1024x896xbf16, #tpu.memory_space<vmem>>, %arg11: memref<1x896xf32, #tpu.memory_space<vmem>>, %arg12: memref<8x896xf32, #tpu.memory_space<vmem>>) attributes {dimension_semantics = [#tpu.dimension_semantics<arbitrary>], iteration_bounds = array<i64: 1>, scalar_prefetch = 0 : i64, scratch_operands = 0 : i64, tpu.core_type = #tpu.core_type<tc>, window_params = [{transform_indices = @transform_0, window_bounds = array<i64: 8, 128>}, {pipeline_mode = #tpu.pipeline_mode<synchronous>, transform_indices = @transform_1, window_bounds = array<i64: 128, 128>}, {pipeline_mode = #tpu.pipeline_mode<synchronous>, transform_indices = @transform_2, window_bounds = array<i64: 1, 128>}, {pipeline_mode = #tpu.pipeline_mode<synchronous>, transform_indices = @transform_3, window_bounds = array<i64: 128, 256>}, {pipeline_mode = #tpu.pipeline_mode<synchronous>, transform_indices = @transform_4, window_bounds = array<i64: 1, 256>}, {pipeline_mode = #tpu.pipeline_mode<synchronous>, transform_indices = @transform_5, window_bounds = array<i64: 256, 512>}, {pipeline_mode = #tpu.pipeline_mode<synchronous>, transform_indices = @transform_6, window_bounds = array<i64: 1, 512>}, {pipeline_mode = #tpu.pipeline_mode<synchronous>, transform_indices = @transform_7, window_bounds = array<i64: 512, 1024>}, {pipeline_mode = #tpu.pipeline_mode<synchronous>, transform_indices = @transform_8, window_bounds = array<i64: 1, 1024>}, {pipeline_mode = #tpu.pipeline_mode<synchronous>, transform_indices = @transform_9, window_bounds = array<i64: 1024, 896>}, {pipeline_mode = #tpu.pipeline_mode<synchronous>, transform_indices = @transform_10, window_bounds = array<i64: 1, 896>}, {transform_indices = @transform_11, window_bounds = array<i64: 8, 896>}]} {
    %c0_i32 = arith.constant 0 : i32
    %c8_i32 = arith.constant 8 : i32
    %0 = arith.muli %c0_i32, %c8_i32 : i32
    %1 = tpu.assume_multiple %0, 8 : i32
    %2 = arith.index_cast %1 : i32 to index
    %c0 = arith.constant 0 : index
    %3 = vector.load %arg1[%2, %c0] : memref<8x128xbf16, #tpu.memory_space<vmem>>, vector<8x128xbf16>
    %c0_0 = arith.constant 0 : index
    %c0_1 = arith.constant 0 : index
    %4 = vector.load %arg2[%c0_0, %c0_1] : memref<128x128xbf16, #tpu.memory_space<vmem>>, vector<128x128xbf16>
    %cst = arith.constant dense<0.000000e+00> : vector<8x128xf32>
    %5 = tpu.matmul %3, %4, %cst {dimension_numbers = #tpu.dot_dimension_numbers<[1], [0], [0], [1], [0, 0, 1, 1], [], []>} : vector<8x128xbf16>, vector<128x128xbf16>, vector<8x128xf32> -> vector<8x128xf32>
    %c0_2 = arith.constant 0 : index
    %c0_3 = arith.constant 0 : index
    %6 = vector.load %arg3[%c0_2, %c0_3] : memref<1x128xf32, #tpu.memory_space<vmem>>, vector<1x128xf32>
    %7 = vector.broadcast %6 : vector<1x128xf32> to vector<8x128xf32>
    %8 = arith.addf %5, %7 : vector<8x128xf32>
    %cst_4 = arith.constant 2.000000e-01 : f32
    %9 = vector.broadcast %cst_4 : f32 to vector<8x128xf32>
    %10 = arith.mulf %9, %8 : vector<8x128xf32>
    %11 = arith.maximumf %8, %10 : vector<8x128xf32>
    %12 = arith.truncf %11 : vector<8x128xf32> to vector<8x128xbf16>
    %c0_5 = arith.constant 0 : index
    %c0_6 = arith.constant 0 : index
    %13 = vector.load %arg4[%c0_5, %c0_6] : memref<128x256xbf16, #tpu.memory_space<vmem>>, vector<128x256xbf16>
    %cst_7 = arith.constant dense<0.000000e+00> : vector<8x256xf32>
    %14 = tpu.matmul %12, %13, %cst_7 {dimension_numbers = #tpu.dot_dimension_numbers<[1], [0], [0], [1], [0, 0, 1, 1], [], []>} : vector<8x128xbf16>, vector<128x256xbf16>, vector<8x256xf32> -> vector<8x256xf32>
    %c0_8 = arith.constant 0 : index
    %c0_9 = arith.constant 0 : index
    %15 = vector.load %arg5[%c0_8, %c0_9] : memref<1x256xf32, #tpu.memory_space<vmem>>, vector<1x256xf32>
    %16 = vector.broadcast %15 : vector<1x256xf32> to vector<8x256xf32>
    %17 = arith.addf %14, %16 : vector<8x256xf32>
    %cst_10 = arith.constant 2.000000e-01 : f32
    %18 = vector.broadcast %cst_10 : f32 to vector<8x256xf32>
    %19 = arith.mulf %18, %17 : vector<8x256xf32>
    %20 = arith.maximumf %17, %19 : vector<8x256xf32>
    %21 = arith.truncf %20 : vector<8x256xf32> to vector<8x256xbf16>
    %c0_11 = arith.constant 0 : index
    %c0_12 = arith.constant 0 : index
    %22 = vector.load %arg6[%c0_11, %c0_12] : memref<256x512xbf16, #tpu.memory_space<vmem>>, vector<256x512xbf16>
    %cst_13 = arith.constant dense<0.000000e+00> : vector<8x512xf32>
    %23 = tpu.matmul %21, %22, %cst_13 {dimension_numbers = #tpu.dot_dimension_numbers<[1], [0], [0], [1], [0, 0, 1, 1], [], []>} : vector<8x256xbf16>, vector<256x512xbf16>, vector<8x512xf32> -> vector<8x512xf32>
    %c0_14 = arith.constant 0 : index
    %c0_15 = arith.constant 0 : index
    %24 = vector.load %arg7[%c0_14, %c0_15] : memref<1x512xf32, #tpu.memory_space<vmem>>, vector<1x512xf32>
    %25 = vector.broadcast %24 : vector<1x512xf32> to vector<8x512xf32>
    %26 = arith.addf %23, %25 : vector<8x512xf32>
    %cst_16 = arith.constant 2.000000e-01 : f32
    %27 = vector.broadcast %cst_16 : f32 to vector<8x512xf32>
    %28 = arith.mulf %27, %26 : vector<8x512xf32>
    %29 = arith.maximumf %26, %28 : vector<8x512xf32>
    %30 = arith.truncf %29 : vector<8x512xf32> to vector<8x512xbf16>
    %c0_17 = arith.constant 0 : index
    %c0_18 = arith.constant 0 : index
    %31 = vector.load %arg8[%c0_17, %c0_18] : memref<512x1024xbf16, #tpu.memory_space<vmem>>, vector<512x1024xbf16>
    %cst_19 = arith.constant dense<0.000000e+00> : vector<8x1024xf32>
    %32 = tpu.matmul %30, %31, %cst_19 {dimension_numbers = #tpu.dot_dimension_numbers<[1], [0], [0], [1], [0, 0, 1, 1], [], []>} : vector<8x512xbf16>, vector<512x1024xbf16>, vector<8x1024xf32> -> vector<8x1024xf32>
    %c0_20 = arith.constant 0 : index
    %c0_21 = arith.constant 0 : index
    %33 = vector.load %arg9[%c0_20, %c0_21] : memref<1x1024xf32, #tpu.memory_space<vmem>>, vector<1x1024xf32>
    %34 = vector.broadcast %33 : vector<1x1024xf32> to vector<8x1024xf32>
    %35 = arith.addf %32, %34 : vector<8x1024xf32>
    %cst_22 = arith.constant 2.000000e-01 : f32
    %36 = vector.broadcast %cst_22 : f32 to vector<8x1024xf32>
    %37 = arith.mulf %36, %35 : vector<8x1024xf32>
    %38 = arith.maximumf %35, %37 : vector<8x1024xf32>
    %39 = arith.truncf %38 : vector<8x1024xf32> to vector<8x1024xbf16>
    %c0_23 = arith.constant 0 : index
    %c0_24 = arith.constant 0 : index
    %40 = vector.load %arg10[%c0_23, %c0_24] : memref<1024x896xbf16, #tpu.memory_space<vmem>>, vector<1024x896xbf16>
    %cst_25 = arith.constant dense<0.000000e+00> : vector<8x896xf32>
    %41 = tpu.matmul %39, %40, %cst_25 {dimension_numbers = #tpu.dot_dimension_numbers<[1], [0], [0], [1], [0, 0, 1, 1], [], []>} : vector<8x1024xbf16>, vector<1024x896xbf16>, vector<8x896xf32> -> vector<8x896xf32>
    %c0_26 = arith.constant 0 : index
    %c0_27 = arith.constant 0 : index
    %42 = vector.load %arg11[%c0_26, %c0_27] : memref<1x896xf32, #tpu.memory_space<vmem>>, vector<1x896xf32>
    %43 = vector.broadcast %42 : vector<1x896xf32> to vector<8x896xf32>
    %44 = arith.addf %41, %43 : vector<8x896xf32>
    %45 = math.tanh %44 : vector<8x896xf32>
    %46 = arith.index_cast %1 : i32 to index
    %c0_28 = arith.constant 0 : index
    %47 = vector.load %arg12[%46, %c0_28] : memref<8x896xf32, #tpu.memory_space<vmem>>, vector<8x896xf32>
    tpu.vector_store %arg12[%46, %c0_28], %45 {strides = array<i32>} : memref<8x896xf32, #tpu.memory_space<vmem>>, vector<8x896xf32>,
    %c1_i32 = arith.constant 1 : i32
    return
  }
  func.func @transform_0(%arg0: i32) -> (i32, i32) {
    %c0_i32 = arith.constant 0 : i32
    %c0_i32_0 = arith.constant 0 : i32
    return %arg0, %c0_i32 : i32, i32
  }
  func.func @transform_1(%arg0: i32) -> (i32, i32) {
    %c0_i32 = arith.constant 0 : i32
    %c0_i32_0 = arith.constant 0 : i32
    %c0_i32_1 = arith.constant 0 : i32
    return %c0_i32, %c0_i32_0 : i32, i32
  }
  func.func @transform_2(%arg0: i32) -> (i32, i32) {
    %c0_i32 = arith.constant 0 : i32
    %c0_i32_0 = arith.constant 0 : i32
    %c0_i32_1 = arith.constant 0 : i32
    return %c0_i32, %c0_i32_0 : i32, i32
  }
  func.func @transform_3(%arg0: i32) -> (i32, i32) {
    %c0_i32 = arith.constant 0 : i32
    %c0_i32_0 = arith.constant 0 : i32
    %c0_i32_1 = arith.constant 0 : i32
    return %c0_i32, %c0_i32_0 : i32, i32
  }
  func.func @transform_4(%arg0: i32) -> (i32, i32) {
    %c0_i32 = arith.constant 0 : i32
    %c0_i32_0 = arith.constant 0 : i32
    %c0_i32_1 = arith.constant 0 : i32
    return %c0_i32, %c0_i32_0 : i32, i32
  }
  func.func @transform_5(%arg0: i32) -> (i32, i32) {
    %c0_i32 = arith.constant 0 : i32
    %c0_i32_0 = arith.constant 0 : i32
    %c0_i32_1 = arith.constant 0 : i32
    return %c0_i32, %c0_i32_0 : i32, i32
  }
  func.func @transform_6(%arg0: i32) -> (i32, i32) {
    %c0_i32 = arith.constant 0 : i32
    %c0_i32_0 = arith.constant 0 : i32
    %c0_i32_1 = arith.constant 0 : i32
    return %c0_i32, %c0_i32_0 : i32, i32
  }
  func.func @transform_7(%arg0: i32) -> (i32, i32) {
    %c0_i32 = arith.constant 0 : i32
    %c0_i32_0 = arith.constant 0 : i32
    %c0_i32_1 = arith.constant 0 : i32
    return %c0_i32, %c0_i32_0 : i32, i32
  }
  func.func @transform_8(%arg0: i32) -> (i32, i32) {
    %c0_i32 = arith.constant 0 : i32
    %c0_i32_0 = arith.constant 0 : i32
    %c0_i32_1 = arith.constant 0 : i32
    return %c0_i32, %c0_i32_0 : i32, i32
  }
  func.func @transform_9(%arg0: i32) -> (i32, i32) {
    %c0_i32 = arith.constant 0 : i32
    %c0_i32_0 = arith.constant 0 : i32
    %c0_i32_1 = arith.constant 0 : i32
    return %c0_i32, %c0_i32_0 : i32, i32
  }
  func.func @transform_10(%arg0: i32) -> (i32, i32) {
    %c0_i32 = arith.constant 0 : i32
    %c0_i32_0 = arith.constant 0 : i32
    %c0_i32_1 = arith.constant 0 : i32
    return %c0_i32, %c0_i32_0 : i32, i32
  }
  func.func @transform_11(%arg0: i32) -> (i32, i32) {
    %c0_i32 = arith.constant 0 : i32
    %c0_i32_0 = arith.constant 0 : i32
    return %arg0, %c0_i32 : i32, i32
  }
}

</mosaic_0001>

<bundles_post_ra>
// kernel: generator_forward.1
= control target key start
LH: loop header
LB: loop body
LE: loop exit
PB: predicated region body
PF: predicated region fallthrough
CT: control target
= control target key end

     0   :  { %16 = vsyncpa [#allocation3], 0  ;;  %s8810_s0 = inlined_call_operand.vmem [shape: bf16[8,128], index: 0, kind: input, shape index: {}]   ;;  %s8811_s1 = inlined_call_operand.hbm [shape: bf16[128,128], index: 1, kind: input, shape index: {}]   ;;  %s8812_s2 = inlined_call_operand.hbm [shape: f32[1,128], index: 2, kind: input, shape index: {}]   ;;  %s8813_s3 = inlined_call_operand.hbm [shape: bf16[128,256], index: 3, kind: input, shape index: {}]   ;;  %s8814_s4 = inlined_call_operand.hbm [shape: f32[1,256], index: 4, kind: input, shape index: {}]   ;;  %s8815_s5 = inlined_call_operand.hbm [shape: bf16[256,512], index: 5, kind: input, shape index: {}]   ;;  %s8816_s6 = inlined_call_operand.hbm [shape: f32[1,512], index: 6, kind: input, shape index: {}]   ;;  %s8817_s7 = inlined_call_operand.hbm [shape: bf16[512,1024], index: 7, kind: input, shape index: {}]   ;;  %s8818_s8 = inlined_call_operand.hbm [shape: f32[1,1024], index: 8, kind: input, shape index: {}]   ;;  %s8819_s9 = inlined_call_operand.hbm [shape: bf16[1024,896], index: 9, kind: input, shape index: {}]   ;;  %s8820_s10 = inlined_call_operand.hbm [shape: f32[1,896], index: 10, kind: input, shape index: {}]   ;;  %s8821_s11 = inlined_call_operand.vmem [shape: f32[8,896], index: 11, kind: output, shape index: {}]  }
   0x1   :  { %17 = vsyncpa [#allocation5], 0 }
   0x2   :  { %18 = vsyncpa [#allocation8], 0 }
   0x3   :  { %19 = vsyncpa [#allocation11], 0 }
   0x4   :  { %20 = vsyncpa [#allocation14], 0 }
   0x5   :  { %21 = vsyncpa [#allocation17], 0  ;;  %s8410_s17 = smov [#allocation4]   ;;  %s8411_s19 = smov [#allocation7]  }
   0x6   :  { %s42_s18 = sshll.u32 %s8410_s17, 4  ;;  %s64_s20 = sshll.u32 %s8411_s19, 4  ;;  %s43_s18 = int_to_ptr.vmem [resolvable:$true] %s42_s18  ;;  %s65_s20 = int_to_ptr.vmem [resolvable:$true] %s64_s20 }
   0x7   :  { %s8178_s23 = scalar_lea.hbm %s8812_s2, 16 }
   0x8   :  { %p8179_p0 = scmp.ne.s32.totalorder %s8812_s2, %s8178_s23  ;;  %p8182_p1 = scmp.lt.u32.totalorder %s8178_s23, %s8812_s2 }
   0xa   :  { %p8184_p2 = pnand %p8182_p1, %p8179_p0 }
   0xc   :  { %8187 = shalt.err (!%p8184_p2)
}
   0xd   :  { %s8188_s28 = scalar_lea.vmem %s43_s18, 16  ;;  %s8192_s29 = scalar_lea.vmem %s43_s18, 32 }
   0xe   :  { %p8189_p3 = scmp.ne.s32.totalorder %s43_s18, %s8188_s28  ;;  %p8193_p4 = scmp.lt.s32.totalorder %s43_s18, %s43_s18 }
   0xf   :  { %p8194_p5 = scmp.lt.s32.totalorder %s8192_s29, %s8188_s28 }
  0x11   :  { %p8195_p6 = por %p8194_p5, %p8193_p4 }
  0x13   :  { %p8196_p7 = pnand %p8195_p6, %p8189_p3 }
  0x15   :  { %8199 = shalt.err (!%p8196_p7)
}
  0x16   :  { %45 = dma.hbm_to_vmem [thread:$0]  %s8812_s2, 16, %s43_s18, [#allocation5]  }
  0x17   :  { %s8200_s15 = scalar_lea.hbm %s8814_s4, 32 }
  0x18   :  { %p8201_p8 = scmp.ne.s32.totalorder %s8814_s4, %s8200_s15  ;;  %p8204_p9 = scmp.lt.u32.totalorder %s8200_s15, %s8814_s4 }
  0x1a   :  { %p8206_p10 = pnand %p8204_p9, %p8201_p8 }
  0x1c   :  { %8209 = shalt.err (!%p8206_p10)
}
  0x1d   :  { %s8210_s22 = scalar_lea.vmem %s65_s20, 32  ;;  %p8215_p12 = scmp.lt.s32.totalorder %s65_s20, %s65_s20 }
  0x1e   :  { %p8211_p11 = scmp.ne.s32.totalorder %s65_s20, %s8210_s22  ;;  %p8216_p13 = scmp.lt.s32.totalorder %s8210_s22, %s8210_s22 }
  0x20   :  { %p8217_p0 = por %p8216_p13, %p8215_p12 }
  0x22   :  { %p8218_p1 = pnand %p8217_p0, %p8211_p11 }
  0x24   :  { %8221 = shalt.err (!%p8218_p1)
}
  0x25   :  { %67 = dma.hbm_to_vmem [thread:$0]  %s8814_s4, 32, %s65_s20, [#allocation8]  }
  0x26   :  { %s8412_s23 = smov [#allocation10]   ;;  %s8413_s25 = smov [#allocation13]  }
  0x27   :  { %s86_s24 = sshll.u32 %s8412_s23, 4  ;;  %s108_s26 = sshll.u32 %s8413_s25, 4  ;;  %s87_s24 = int_to_ptr.vmem [resolvable:$true] %s86_s24  ;;  %s109_s26 = int_to_ptr.vmem [resolvable:$true] %s108_s26 }
  0x28   :  { %s8222_s29 = scalar_lea.hbm %s8816_s6, 64 }
  0x29   :  { %p8223_p2 = scmp.ne.s32.totalorder %s8816_s6, %s8222_s29  ;;  %p8226_p3 = scmp.lt.u32.totalorder %s8222_s29, %s8816_s6 }
  0x2b   :  { %p8228_p4 = pnand %p8226_p3, %p8223_p2 }
  0x2d   :  { %8231 = shalt.err (!%p8228_p4)
}
  0x2e   :  { %s8232_s4 = scalar_lea.vmem %s87_s24, 64  ;;  %p8237_p6 = scmp.lt.s32.totalorder %s87_s24, %s87_s24 }
  0x2f   :  { %p8233_p5 = scmp.ne.s32.totalorder %s87_s24, %s8232_s4  ;;  %p8238_p7 = scmp.lt.s32.totalorder %s8232_s4, %s8232_s4 }
  0x31   :  { %p8239_p8 = por %p8238_p7, %p8237_p6 }
  0x33   :  { %p8240_p9 = pnand %p8239_p8, %p8233_p5 }
  0x35   :  { %8243 = shalt.err (!%p8240_p9)
}
  0x36   :  { %89 = dma.hbm_to_vmem [thread:$0]  %s8816_s6, 64, %s87_s24, [#allocation11]  }
  0x37   :  { %s8244_s19 = scalar_lea.hbm %s8818_s8, 128 }
  0x38   :  { %p8245_p10 = scmp.ne.s32.totalorder %s8818_s8, %s8244_s19  ;;  %p8248_p11 = scmp.lt.u32.totalorder %s8244_s19, %s8818_s8 }
  0x3a   :  { %p8250_p12 = pnand %p8248_p11, %p8245_p10 }
  0x3c   :  { %8253 = shalt.err (!%p8250_p12)
}
  0x3d   :  { %s8254_s23 = scalar_lea.vmem %s109_s26, 128  ;;  %p8259_p0 = scmp.lt.s32.totalorder %s109_s26, %s109_s26 }
  0x3e   :  { %p8255_p13 = scmp.ne.s32.totalorder %s109_s26, %s8254_s23  ;;  %p8260_p1 = scmp.lt.s32.totalorder %s8254_s23, %s8254_s23 }
  0x40   :  { %p8261_p2 = por %p8260_p1, %p8259_p0 }
  0x42   :  { %p8262_p3 = pnand %p8261_p2, %p8255_p13 }
  0x44   :  { %8265 = shalt.err (!%p8262_p3)
}
  0x45   :  { %111 = dma.hbm_to_vmem [thread:$0]  %s8818_s8, 128, %s109_s26, [#allocation14]  }
  0x46   :  { %s8414_s25 = smov [#allocation2]   ;;  %s8266_s30 = scalar_lea.hbm %s8811_s1, 1024 }
  0x47   :  { %s29_s27 = sshll.u32 %s8414_s25, 4  ;;  %p8267_p4 = scmp.ne.s32.totalorder %s8811_s1, %s8266_s30  ;;  %s30_s27 = int_to_ptr.vmem [resolvable:$true] %s29_s27 }
  0x48   :  { %p8270_p5 = scmp.lt.u32.totalorder %s8266_s30, %s8811_s1 }
  0x4a   :  { %p8272_p6 = pnand %p8270_p5, %p8267_p4 }
  0x4c   :  { %8275 = shalt.err (!%p8272_p6)
}
  0x4d   :  { %s8276_s20 = scalar_lea.vmem %s30_s27, 1024  ;;  %p8281_p8 = scmp.lt.s32.totalorder %s30_s27, %s30_s27 }
  0x4e   :  { %p8277_p7 = scmp.ne.s32.totalorder %s30_s27, %s8276_s20  ;;  %p8282_p9 = scmp.lt.s32.totalorder %s8276_s20, %s8276_s20 }
  0x50   :  { %p8283_p10 = por %p8282_p9, %p8281_p8 }
  0x52   :  { %p8284_p11 = pnand %p8283_p10, %p8277_p7 }
  0x54   :  { %8287 = shalt.err (!%p8284_p11)
}
  0x55   :  { %s8415_s8 = smov 64   ;;  %s8416_s26 = smov 4  }
  0x56   :  { %35 = dma.hbm_to_vmem [thread:$0]  %s8811_s1, 1024, %s30_s27, [#allocation3], %s8415_s8, %s8415_s8, %s8416_s26  }
  0x57   :  { %s8417_s17 = smov [#allocation6]   ;;  %s8288_s2 = scalar_lea.hbm %s8813_s3, 2048 }
  0x58   :  { %s51_s19 = sshll.u32 %s8417_s17, 4  ;;  %p8289_p12 = scmp.ne.s32.totalorder %s8813_s3, %s8288_s2  ;;  %s52_s19 = int_to_ptr.vmem [resolvable:$true] %s51_s19 }
  0x59   :  { %p8292_p13 = scmp.lt.u32.totalorder %s8288_s2, %s8813_s3 }
  0x5b   :  { %p8294_p0 = pnand %p8292_p13, %p8289_p12 }
  0x5d   :  { %8297 = shalt.err (!%p8294_p0)
}
  0x5e   :  { %s8298_s25 = scalar_lea.vmem %s52_s19, 2048  ;;  %p8303_p2 = scmp.lt.s32.totalorder %s52_s19, %s52_s19 }
  0x5f   :  { %p8299_p1 = scmp.ne.s32.totalorder %s52_s19, %s8298_s25  ;;  %p8304_p3 = scmp.lt.s32.totalorder %s8298_s25, %s8298_s25 }
  0x61   :  { %p8305_p4 = por %p8304_p3, %p8303_p2 }
  0x63   :  { %p8306_p5 = pnand %p8305_p4, %p8299_p1 }
  0x65   :  { %8309 = shalt.err (!%p8306_p5)
}
  0x66   :  { %s8418_s1 = smov 128   ;;  %s8419_s27 = smov 8  }
  0x67   :  { %57 = dma.hbm_to_vmem [thread:$0]  %s8813_s3, 2048, %s52_s19, [#allocation5], %s8418_s1, %s8418_s1, %s8419_s27  }
  0x68   :  { %s8420_s30 = smov [#allocation9]   ;;  %s8310_s4 = scalar_lea.hbm %s8815_s5, 8192 }
  0x69   :  { %s73_s12 = sshll.u32 %s8420_s30, 4  ;;  %p8311_p6 = scmp.ne.s32.totalorder %s8815_s5, %s8310_s4  ;;  %s74_s12 = int_to_ptr.vmem [resolvable:$true] %s73_s12 }
  0x6a   :  { %p8314_p7 = scmp.lt.u32.totalorder %s8310_s4, %s8815_s5 }
  0x6c   :  { %p8316_p8 = pnand %p8314_p7, %p8311_p6 }
  0x6e   :  { %8319 = shalt.err (!%p8316_p8)
}
  0x6f   :  { %s8320_s16 = scalar_lea.vmem %s74_s12, 8192  ;;  %p8325_p10 = scmp.lt.s32.totalorder %s74_s12, %s74_s12 }
  0x70   :  { %p8321_p9 = scmp.ne.s32.totalorder %s74_s12, %s8320_s16  ;;  %p8326_p11 = scmp.lt.s32.totalorder %s8320_s16, %s8320_s16 }
  0x72   :  { %p8327_p12 = por %p8326_p11, %p8325_p10 }
  0x74   :  { %p8328_p13 = pnand %p8327_p12, %p8321_p9 }
  0x76   :  { %8331 = shalt.err (!%p8328_p13)
}
  0x77   :  { %s8421_s3 = smov 256   ;;  %s8422_s17 = smov 16  }
  0x78   :  { %79 = dma.hbm_to_vmem [thread:$0]  %s8815_s5, 8192, %s74_s12, [#allocation8], %s8421_s3, %s8421_s3, %s8422_s17  }
  0x79   :  { %s8423_s22 = smov [#allocation12]   ;;  %s8332_s6 = scalar_lea.hbm %s8817_s7, 32768 }
  0x7a   :  { %s95_s2 = sshll.u32 %s8423_s22, 4  ;;  %p8333_p0 = scmp.ne.s32.totalorder %s8817_s7, %s8332_s6  ;;  %s96_s2 = int_to_ptr.vmem [resolvable:$true] %s95_s2 }
  0x7b   :  { %p8336_p1 = scmp.lt.u32.totalorder %s8332_s6, %s8817_s7 }
  0x7d   :  { %p8338_p2 = pnand %p8336_p1, %p8333_p0 }
  0x7f   :  { %8341 = shalt.err (!%p8338_p2)
}
  0x80   :  { %s8342_s28 = scalar_lea.vmem %s96_s2, 32768  ;;  %p8347_p4 = scmp.lt.s32.totalorder %s96_s2, %s96_s2 }
  0x81   :  { %p8343_p3 = scmp.ne.s32.totalorder %s96_s2, %s8342_s28  ;;  %p8348_p5 = scmp.lt.s32.totalorder %s8342_s28, %s8342_s28 }
  0x83   :  { %p8349_p6 = por %p8348_p5, %p8347_p4 }
  0x85   :  { %p8350_p7 = pnand %p8349_p6, %p8343_p3 }
  0x87   :  { %8353 = shalt.err (!%p8350_p7)
}
  0x88   :  { %s8424_s5 = smov 512   ;;  %s8425_s29 = smov 32  }
  0x89   :  { %101 = dma.hbm_to_vmem [thread:$0]  %s8817_s7, 32768, %s96_s2, [#allocation11], %s8424_s5, %s8424_s5, %s8425_s29  }
  0x8a   :  { %s8426_s13 = smov [#allocation15]   ;;  %s8354_s8 = scalar_lea.hbm %s8819_s9, 57344 }
  0x8b   :  { %s117_s14 = sshll.u32 %s8426_s13, 4  ;;  %p8355_p8 = scmp.ne.s32.totalorder %s8819_s9, %s8354_s8  ;;  %s118_s14 = int_to_ptr.vmem [resolvable:$true] %s117_s14 }
  0x8c   :  { %p8358_p9 = scmp.lt.u32.totalorder %s8354_s8, %s8819_s9 }
  0x8e   :  { %p8360_p10 = pnand %p8358_p9, %p8355_p8 }
  0x90   :  { %8363 = shalt.err (!%p8360_p10)
}
  0x91   :  { %s8364_s17 = scalar_lea.vmem %s118_s14, 57344  ;;  %p8369_p12 = scmp.lt.s32.totalorder %s118_s14, %s118_s14 }
  0x92   :  { %p8365_p11 = scmp.ne.s32.totalorder %s118_s14, %s8364_s17  ;;  %p8370_p13 = scmp.lt.s32.totalorder %s8364_s17, %s8364_s17 }
  0x94   :  { %p8371_p0 = por %p8370_p13, %p8369_p12 }
  0x96   :  { %p8372_p1 = pnand %p8371_p0, %p8365_p11 }
  0x98   :  { %8375 = shalt.err (!%p8372_p1)
}
  0x99   :  { %s8427_s7 = smov 448   ;;  %s8428_s19 = smov 28  }
  0x9a   :  { %123 = dma.hbm_to_vmem [thread:$0]  %s8819_s9, 57344, %s118_s14, [#allocation14], %s8427_s7, %s8427_s7, %s8428_s19  }
  0x9b   :  { %s8429_s2 = smov [#allocation16]   ;;  %s8376_s24 = scalar_lea.hbm %s8820_s10, 112 }
  0x9c   :  { %s130_s18 = sshll.u32 %s8429_s2, 4  ;;  %p8377_p2 = scmp.ne.s32.totalorder %s8820_s10, %s8376_s24  ;;  %s131_s18 = int_to_ptr.vmem [resolvable:$true] %s130_s18 }
  0x9d   :  { %p8380_p3 = scmp.lt.u32.totalorder %s8376_s24, %s8820_s10 }
  0x9f   :  { %p8382_p4 = pnand %p8380_p3, %p8377_p2 }
  0xa1   :  { %8385 = shalt.err (!%p8382_p4)
}
  0xa2   :  { %s8386_s5 = scalar_lea.vmem %s131_s18, 112  ;;  %s8390_s9 = scalar_lea.vmem %s131_s18, 128 }
  0xa3   :  { %p8387_p5 = scmp.ne.s32.totalorder %s131_s18, %s8386_s5  ;;  %p8391_p6 = scmp.lt.s32.totalorder %s131_s18, %s131_s18 }
  0xa4   :  { %p8392_p7 = scmp.lt.s32.totalorder %s8390_s9, %s8386_s5 }
  0xa6   :  { %p8393_p8 = por %p8392_p7, %p8391_p6 }
  0xa8   :  { %p8394_p9 = pnand %p8393_p8, %p8387_p5 }
  0xaa   :  { %8397 = shalt.err (!%p8394_p9)
}
  0xab   :  { %133 = dma.hbm_to_vmem [thread:$0]  %s8820_s10, 112, %s131_s18, [#allocation17]  }
  0xac   :  { %8398 = dma.done.wait [#allocation3], 1024  }
  0xad   :  { %8399 = vsyncadd [#allocation3], 4294966272 }
  0xae   :  { %8400 = dma.done.wait [#allocation5], 2064  }
  0xaf   :  { %8401 = vsyncadd [#allocation5], 4294965232 }
  0xb0   :  { %8402 = dma.done.wait [#allocation8], 8224  }
  0xb1   :  { %8403 = vsyncadd [#allocation8], 4294959072 }
  0xb2   :  { %8404 = dma.done.wait [#allocation11], 32832  }
  0xb3   :  { %8405 = vsyncadd [#allocation11], 4294934464 }
  0xb4   :  { %8406 = dma.done.wait [#allocation14], 57472  }
  0xb5   :  { %8407 = vsyncadd [#allocation14], 4294909824 }
  0xb6   :  { %8408 = dma.done.wait [#allocation17], 112  }
  0xb7   :  { %8409 = vsyncadd [#allocation17], 4294967184  ;;  %v8430_v0 = vmov 0.0   ;;  %vm8431_vm0 = vmmov 0   ;;  %v7396_v1 = vld [vmem:[#allocation2] sm:$0xff]   ;;  %v7397_v2 = vld [vmem:[#allocation2 + $0x8] sm:$0xff]  }
  0xb8   :  { %7287 = vmatprep.subr.bf16.mxu0 %v8430_v0  ;;  %7303 = vmatprep.mubr.msk.bf16.mxu0 %vm8431_vm0, %v8430_v0  ;;  %v7398_v3 = vld [vmem:[#allocation2 + $0x10] sm:$0xff]   ;;  %v7406_v5 = vld [vmem:[#allocation6] ss:$8 sps:$4 sm:$0xff]   ;;  %v7399_v6 = vld [vmem:[#allocation2 + $0x18] sm:$0xff]   ;;  %v8432_v26 = vmov 0  }
  0xb9   :  { %7288 = vmatpush3.bf16.msra.mxu0 %v7396_v1  ;;  %v7404_v4 = vld [vmem:[#allocation6 + $0x4] ss:$8 sps:$4 sm:$0xff]   ;;  %v7407_v7 = vld [vmem:[#allocation6 + $0x14] ss:$8 sps:$4 sm:$0xff]   ;;  %v7409_v8 = vld [vmem:[#allocation6 + $0x10] ss:$8 sps:$4 sm:$0xff]   ;;  %420 = vmatprep.mubr.bf16.mxu1 %v8432_v26 }
  0xba   :  { %7289 = vmatprep.subr.bf16.mxu0 %v8430_v0  ;;  %388 = vmatprep.subr.bf16.mxu1 %v7404_v4  ;;  %v7410_v9 = vld [vmem:[#allocation6 + $0x24] ss:$8 sps:$4 sm:$0xff]   ;;  %v7412_v12 = vld [vmem:[#allocation6 + $0x20] ss:$8 sps:$4 sm:$0xff]   ;;  %v7413_v13 = vld [vmem:[#allocation6 + $0x34] ss:$8 sps:$4 sm:$0xff]  }
  0xbb   :  { %389 = vmatpush1.bf16.msra.mxu1 %v7406_v5  ;;  %v7400_v10 = vld [vmem:[#allocation2 + $0x20] sm:$0xff]   ;;  %v7401_v11 = vld [vmem:[#allocation2 + $0x28] sm:$0xff]   ;;  %v7415_v14 = vld [vmem:[#allocation6 + $0x30] ss:$8 sps:$4 sm:$0xff]  }
  0xbc   :  { %390 = vmatprep.subr.bf16.mxu1 %v7407_v7  ;;  %v7416_v15 = vld [vmem:[#allocation6 + $0x44] ss:$8 sps:$4 sm:$0xff]   ;;  %v7418_v17 = vld [vmem:[#allocation6 + $0x40] ss:$8 sps:$4 sm:$0xff]   ;;  %v7419_v18 = vld [vmem:[#allocation6 + $0x54] ss:$8 sps:$4 sm:$0xff]  }
  0xbd   :  { %7290 = vmatpush3.bf16.msra.mxu0 %v7397_v2  ;;  %v7402_v16 = vld [vmem:[#allocation2 + $0x30] sm:$0xff]   ;;  %v7403_v19 = vld [vmem:[#allocation2 + $0x38] sm:$0xff]   ;;  %v165_v21 = vld [vmem:[%s8810_s0] sm:$0xf] }
  0xbe   :  { %7291 = vmatprep.subr.bf16.mxu0 %v8430_v0  ;;  %v7421_v20 = vld [vmem:[#allocation6 + $0x50] ss:$8 sps:$4 sm:$0xff]   ;;  %v7422_v22 = vld [vmem:[#allocation6 + $0x64] ss:$8 sps:$4 sm:$0xff]   ;;  %v7424_v23 = vld [vmem:[#allocation6 + $0x60] ss:$8 sps:$4 sm:$0xff]  }
  0xbf   :  { %391 = vmatpush1.bf16.msra.mxu1 %v7409_v8  ;;  %v7425_v24 = vld [vmem:[#allocation6 + $0x74] ss:$8 sps:$4 sm:$0xff]   ;;  %v7427_v25 = vld [vmem:[#allocation6 + $0x70] ss:$8 sps:$4 sm:$0xff]   ;;  %v935_v5 = vld [vmem:[#allocation12] sm:$0xff] }
  0xc0   :  { %392 = vmatprep.subr.bf16.mxu1 %v7410_v9  ;;  %v7430_v27 = vld [vmem:[#allocation9 + $0x4] ss:$16 sps:$4 sm:$0xff]   ;;  %v6397_v28 = vld [vmem:[#allocation4] ss:$0 sm:$0xff]  ;;  %v7428_v36 = vld [vmem:[#allocation9] ss:$16 sps:$4 sm:$0xff]  }
  0xc1   :  { %7292 = vmatpush3.bf16.msra.mxu0 %v7398_v3  ;;  %v7433_v38 = vld [vmem:[#allocation9 + $0x24] ss:$16 sps:$4 sm:$0xff]   ;;  %v7431_v39 = vld [vmem:[#allocation9 + $0x20] ss:$16 sps:$4 sm:$0xff]   ;;  %v7478_v4 = vld [vmem:[#allocation9 + $0xc] ss:$16 sps:$4 sm:$0xff]  }
  0xc2   :  { %7293 = vmatprep.subr.bf16.mxu0 %v8430_v0  ;;  %v7436_v40 = vld [vmem:[#allocation9 + $0x44] ss:$16 sps:$4 sm:$0xff]   ;;  %v7434_v41 = vld [vmem:[#allocation9 + $0x40] ss:$16 sps:$4 sm:$0xff]  }
  0xc3   :  { %393 = vmatpush1.bf16.msra.mxu1 %v7412_v12  ;;  %v7439_v42 = vld [vmem:[#allocation9 + $0x64] ss:$16 sps:$4 sm:$0xff]   ;;  %v7437_v43 = vld [vmem:[#allocation9 + $0x60] ss:$16 sps:$4 sm:$0xff]  }
  0xc4   :  { %394 = vmatprep.subr.bf16.mxu1 %v7413_v13  ;;  %v7442_v44 = vld [vmem:[#allocation9 + $0x84] ss:$16 sps:$4 sm:$0xff]   ;;  %v7440_v45 = vld [vmem:[#allocation9 + $0x80] ss:$16 sps:$4 sm:$0xff]  }
  0xc5   :  { %7294 = vmatpush3.bf16.msra.mxu0 %v7399_v6  ;;  %v7445_v46 = vld [vmem:[#allocation9 + $0xa4] ss:$16 sps:$4 sm:$0xff]   ;;  %v7443_v47 = vld [vmem:[#allocation9 + $0xa0] ss:$16 sps:$4 sm:$0xff]  }
  0xc6   :  { %7295 = vmatprep.subr.bf16.mxu0 %v8430_v0  ;;  %v7448_v48 = vld [vmem:[#allocation9 + $0xc4] ss:$16 sps:$4 sm:$0xff]   ;;  %v7446_v49 = vld [vmem:[#allocation9 + $0xc0] ss:$16 sps:$4 sm:$0xff]  }
  0xc7   :  { %395 = vmatpush1.bf16.msra.mxu1 %v7415_v14  ;;  %v7451_v50 = vld [vmem:[#allocation9 + $0xe4] ss:$16 sps:$4 sm:$0xff]   ;;  %v7449_v51 = vld [vmem:[#allocation9 + $0xe0] ss:$16 sps:$4 sm:$0xff]  }
  0xc8   :  { %396 = vmatprep.subr.bf16.mxu1 %v7416_v15  ;;  %v7454_v52 = vld [vmem:[#allocation9 + $0x104] ss:$16 sps:$4 sm:$0xff]   ;;  %v7452_v53 = vld [vmem:[#allocation9 + $0x100] ss:$16 sps:$4 sm:$0xff]  }
  0xc9   :  { %7296 = vmatpush3.bf16.msra.mxu0 %v7400_v10  ;;  %v7457_v54 = vld [vmem:[#allocation9 + $0x124] ss:$16 sps:$4 sm:$0xff]   ;;  %v7455_v55 = vld [vmem:[#allocation9 + $0x120] ss:$16 sps:$4 sm:$0xff]  }
  0xca   :  { %7297 = vmatprep.subr.bf16.mxu0 %v8430_v0  ;;  %v7460_v56 = vld [vmem:[#allocation9 + $0x144] ss:$16 sps:$4 sm:$0xff]   ;;  %v7458_v57 = vld [vmem:[#allocation9 + $0x140] ss:$16 sps:$4 sm:$0xff]  }
  0xcb   :  { %397 = vmatpush1.bf16.msra.mxu1 %v7418_v17  ;;  %v7463_v58 = vld [vmem:[#allocation9 + $0x164] ss:$16 sps:$4 sm:$0xff]   ;;  %v7461_v59 = vld [vmem:[#allocation9 + $0x160] ss:$16 sps:$4 sm:$0xff]  }
  0xcc   :  { %398 = vmatprep.subr.bf16.mxu1 %v7419_v18  ;;  %v7466_v60 = vld [vmem:[#allocation9 + $0x184] ss:$16 sps:$4 sm:$0xff]   ;;  %v7464_v61 = vld [vmem:[#allocation9 + $0x180] ss:$16 sps:$4 sm:$0xff]  }
  0xcd   :  { %7298 = vmatpush3.bf16.msra.mxu0 %v7401_v11  ;;  %v7469_v62 = vld [vmem:[#allocation9 + $0x1a4] ss:$16 sps:$4 sm:$0xff]   ;;  %v7467_v63 = vld [vmem:[#allocation9 + $0x1a0] ss:$16 sps:$4 sm:$0xff]  }
  0xce   :  { %7299 = vmatprep.subr.bf16.mxu0 %v8430_v0  ;;  %v7470_v1 = vld [vmem:[#allocation9 + $0x1c0] ss:$16 sps:$4 sm:$0xff]   ;;  %v7475_v2 = vld [vmem:[#allocation9 + $0x1e4] ss:$16 sps:$4 sm:$0xff]  }
  0xcf   :  { %399 = vmatpush1.bf16.msra.mxu1 %v7421_v20  ;;  %v7473_v3 = vld [vmem:[#allocation9 + $0x1e0] ss:$16 sps:$4 sm:$0xff]   ;;  %v939_v6 = vld [vmem:[#allocation12 + $0x20] sm:$0xff] }
  0xd0   :  { %400 = vmatprep.subr.bf16.mxu1 %v7422_v22  ;;  %v6486_v7 = vcombine.low %v935_v5, %v939_v6  ;;  %v6487_v8 = vcombine.high %v935_v5, %v939_v6  ;;  %v943_v9 = vld [vmem:[#allocation12 + $0x40] sm:$0xff] }
  0xd1   :  { %7300 = vmatpush3.bf16.msra.mxu0 %v7402_v16  ;;  %v947_v10 = vld [vmem:[#allocation12 + $0x60] sm:$0xff] }
  0xd2   :  { %7301 = vmatprep.subr.bf16.mxu0 %v8430_v0  ;;  %v7472_v0 = vld [vmem:[#allocation9 + $0x1c4] ss:$16 sps:$4 sm:$0xff]   ;;  %v6495_v11 = vcombine.high %v943_v9, %v947_v10  ;;  %v6494_v12 = vcombine.low %v943_v9, %v947_v10 }
  0xd3   :  { %401 = vmatpush1.bf16.msra.mxu1 %v7424_v23  ;;  %v951_v13 = vld [vmem:[#allocation12 + $0x80] sm:$0xff] }
  0xd4   :  { %402 = vmatprep.subr.bf16.mxu1 %v7425_v24  ;;  %v955_v14 = vld [vmem:[#allocation12 + $0xa0] sm:$0xff] }
  0xd5   :  { %7302 = vmatpush3.bf16.msra.mxu0 %v7403_v19  ;;  %v6503_v15 = vcombine.high %v951_v13, %v955_v14  ;;  %v6502_v16 = vcombine.low %v951_v13, %v955_v14  ;;  %v959_v17 = vld [vmem:[#allocation12 + $0xc0] sm:$0xff] }
  0xd6   :  { %2513 = vmatprep.subr.bf16.mxu0 %v6487_v8  ;;  %v963_v18 = vld [vmem:[#allocation12 + $0xe0] sm:$0xff] }
  0xd7   :  { %403 = vmatpush1.bf16.msra.mxu1 %v7427_v25  ;;  %v6511_v19 = vcombine.high %v959_v17, %v963_v18  ;;  %v6510_v20 = vcombine.low %v959_v17, %v963_v18  ;;  %v971_v22 = vld [vmem:[#allocation12 + $0x120] sm:$0xff]  ;;  %v7481_v17 = vld [vmem:[#allocation9 + $0x2c] ss:$16 sps:$4 sm:$0xff]  }
  0xd8   :  { %7304 = vmatmul.mubr.bf16.vlgmr.msra.gmra.mrb[0].mxu0 %v165_v21  ;;  %841 = vmatprep.subr.bf16.mxu1 %v7430_v27  ;;  %v967_v21 = vld [vmem:[#allocation12 + $0x100] sm:$0xff] }
  0xd9   :  { %2514 = vmatpush1.bf16.msra.mxu0 %v6486_v7  ;;  %v6519_v23 = vcombine.high %v967_v21, %v971_v22  ;;  %v6518_v24 = vcombine.low %v967_v21, %v971_v22  ;;  %v975_v25 = vld [vmem:[#allocation12 + $0x140] sm:$0xff]  ;;  %v7487_v21 = vld [vmem:[#allocation9 + $0x6c] ss:$16 sps:$4 sm:$0xff]  }
  0xda   :  { %2515 = vmatprep.subr.bf16.mxu0 %v6495_v11  ;;  %v979_v26 = vld [vmem:[#allocation12 + $0x160] sm:$0xff] }
  0xdb   :  { %v6527_v27 = vcombine.high %v975_v25, %v979_v26  ;;  %v7479_v18 = vld [vmem:[#allocation9 + $0x28] ss:$16 sps:$4 sm:$0xff]  }
  0xdc   :  { %v7485_v22 = vld [vmem:[#allocation9 + $0x68] ss:$16 sps:$4 sm:$0xff]  }
  0xdd   :  { %2516 = vmatpush1.bf16.msra.mxu0 %v6494_v12 }
  0xde   :  { %2517 = vmatprep.subr.bf16.mxu0 %v6503_v15  ;;  %v7476_v15 = vld [vmem:[#allocation9 + $0x8] ss:$16 sps:$4 sm:$0xff]  }
  0xe1   :  { %2518 = vmatpush1.bf16.msra.mxu0 %v6502_v16 }
  0xe2   :  { %2519 = vmatprep.subr.bf16.mxu0 %v6511_v19  ;;  %v7484_v19 = vld [vmem:[#allocation9 + $0x4c] ss:$16 sps:$4 sm:$0xff]  }
  0xe5   :  { %2520 = vmatpush1.bf16.msra.mxu0 %v6510_v20  ;;  %v7482_v20 = vld [vmem:[#allocation9 + $0x48] ss:$16 sps:$4 sm:$0xff]  }
  0xe6   :  { %2521 = vmatprep.subr.bf16.mxu0 %v6519_v23  ;;  %v7490_v23 = vld [vmem:[#allocation9 + $0x8c] ss:$16 sps:$4 sm:$0xff]  }
  0xe9   :  { %2522 = vmatpush1.bf16.msra.mxu0 %v6518_v24  ;;  %v7488_v24 = vld [vmem:[#allocation9 + $0x88] ss:$16 sps:$4 sm:$0xff]  }
  0xea   :  { %2523 = vmatprep.subr.bf16.mxu0 %v6527_v27  ;;  %v7496_v27 = vld [vmem:[#allocation9 + $0xcc] ss:$16 sps:$4 sm:$0xff]  }
 0x1ab   :  { %v271_v29 = vpop.f32.mrb[0].mxu0 }
 0x1ac   :  { %v272_v30 = vadd.f32 %v6397_v28, %v271_v29  ;;  %v7305_v31 = vpop.f32.mrb[1].mxu0  ;;  %v6526_v28 = vcombine.low %v975_v25, %v979_v26  ;;  %v983_v29 = vld [vmem:[#allocation12 + $0x180] sm:$0xff]  ;;  %v7493_v25 = vld [vmem:[#allocation9 + $0xac] ss:$16 sps:$4 sm:$0xff]  }
 0x1ad   :  { %v274_v32 = vpop.f32.mrb[2].mxu0  ;;  %v7491_v26 = vld [vmem:[#allocation9 + $0xa8] ss:$16 sps:$4 sm:$0xff]  }
 0x1ae   :  { %v277_v33 = vmul.f32 0.2, %v272_v30  ;;  %v7306_v34 = vpop.f32.mrb[3].mxu0  ;;  %2524 = vmatpush1.bf16.msra.mxu0 %v6526_v28  ;;  %v7494_v28 = vld [vmem:[#allocation9 + $0xc8] ss:$16 sps:$4 sm:$0xff]  }
 0x1af   :  { %v995_v34 = vld [vmem:[#allocation12 + $0x1e0] sm:$0xff] }
 0x1b0   :  { %v278_v35 = vmax.f32 %v272_v30, %v277_v33  ;;  %v987_v30 = vld [vmem:[#allocation12 + $0x1a0] sm:$0xff] }
 0x1b1   :  { %v6535_v31 = vcombine.high %v983_v29, %v987_v30  ;;  %v6534_v32 = vcombine.low %v983_v29, %v987_v30  ;;  %v991_v33 = vld [vmem:[#allocation12 + $0x1c0] sm:$0xff]  ;;  %v7499_v29 = vld [vmem:[#allocation9 + $0xec] ss:$16 sps:$4 sm:$0xff]  }
 0x1b2   :  { %v279_v37 = vpack.c.bf16 %v278_v35, %v278_v35  ;;  %v6543_v35 = vcombine.high %v991_v33, %v995_v34  ;;  %v7497_v30 = vld [vmem:[#allocation9 + $0xe8] ss:$16 sps:$4 sm:$0xff]  }
 0x1b3   :  { %2525 = vmatprep.subr.bf16.mxu0 %v6535_v31  ;;  %v7502_v31 = vld [vmem:[#allocation9 + $0x10c] ss:$16 sps:$4 sm:$0xff]  }
 0x1b4   :  { %421 = vmatmul.mubr.bf16.vlgmr.msra.gmra.mrb[0].mxu1 %v279_v37  ;;  %2526 = vmatpush1.bf16.msra.mxu0 %v6534_v32  ;;  %v999_v37 = vld [vmem:[#allocation12 + $0x200] sm:$0xff] }
 0x1b5   :  { %842 = vmatpush1.bf16.msra.mxu1 %v7428_v36  ;;  %v6542_v36 = vcombine.low %v991_v33, %v995_v34  ;;  %2527 = vmatprep.subr.bf16.mxu0 %v6543_v35  ;;  %v7500_v32 = vld [vmem:[#allocation9 + $0x108] ss:$16 sps:$4 sm:$0xff]   ;;  %v7505_v33 = vld [vmem:[#allocation9 + $0x12c] ss:$16 sps:$4 sm:$0xff]  }
 0x1b6   :  { %843 = vmatprep.subr.bf16.mxu1 %v7433_v38  ;;  %v1003_v38 = vld [vmem:[#allocation12 + $0x220] sm:$0xff]  ;;  %v7508_v35 = vld [vmem:[#allocation9 + $0x14c] ss:$16 sps:$4 sm:$0xff]  }
 0x1b7   :  { %v7503_v34 = vld [vmem:[#allocation9 + $0x128] ss:$16 sps:$4 sm:$0xff]  }
 0x1b8   :  { %2528 = vmatpush1.bf16.msra.mxu0 %v6542_v36  ;;  %v7506_v36 = vld [vmem:[#allocation9 + $0x148] ss:$16 sps:$4 sm:$0xff]  }
 0x1b9   :  { %844 = vmatpush1.bf16.msra.mxu1 %v7431_v39  ;;  %v6551_v39 = vcombine.high %v999_v37, %v1003_v38 }
 0x1ba   :  { %845 = vmatprep.subr.bf16.mxu1 %v7436_v40  ;;  %v6550_v40 = vcombine.low %v999_v37, %v1003_v38  ;;  %v7511_v37 = vld [vmem:[#allocation9 + $0x16c] ss:$16 sps:$4 sm:$0xff]   ;;  %v7509_v38 = vld [vmem:[#allocation9 + $0x168] ss:$16 sps:$4 sm:$0xff]  }
 0x1bb   :  { %2529 = vmatprep.subr.bf16.mxu0 %v6551_v39  ;;  %v7514_v39 = vld [vmem:[#allocation9 + $0x18c] ss:$16 sps:$4 sm:$0xff]  }
 0x1bc   :  { %2530 = vmatpush1.bf16.msra.mxu0 %v6550_v40  ;;  %v7512_v40 = vld [vmem:[#allocation9 + $0x188] ss:$16 sps:$4 sm:$0xff]  }
 0x1bd   :  { %846 = vmatpush1.bf16.msra.mxu1 %v7434_v41  ;;  %v1007_v41 = vld [vmem:[#allocation12 + $0x240] sm:$0xff] }
 0x1be   :  { %847 = vmatprep.subr.bf16.mxu1 %v7439_v42  ;;  %v1011_v42 = vld [vmem:[#allocation12 + $0x260] sm:$0xff] }
 0x1c1   :  { %848 = vmatpush1.bf16.msra.mxu1 %v7437_v43  ;;  %v6559_v43 = vcombine.high %v1007_v41, %v1011_v42 }
 0x1c2   :  { %849 = vmatprep.subr.bf16.mxu1 %v7442_v44  ;;  %v6558_v44 = vcombine.low %v1007_v41, %v1011_v42  ;;  %v7517_v41 = vld [vmem:[#allocation9 + $0x1ac] ss:$16 sps:$4 sm:$0xff]   ;;  %v7515_v42 = vld [vmem:[#allocation9 + $0x1a8] ss:$16 sps:$4 sm:$0xff]  }
 0x1c3   :  { %2531 = vmatprep.subr.bf16.mxu0 %v6559_v43  ;;  %v7520_v43 = vld [vmem:[#allocation9 + $0x1cc] ss:$16 sps:$4 sm:$0xff]  }
 0x1c4   :  { %2532 = vmatpush1.bf16.msra.mxu0 %v6558_v44  ;;  %v7518_v44 = vld [vmem:[#allocation9 + $0x1c8] ss:$16 sps:$4 sm:$0xff]  }
 0x1c5   :  { %850 = vmatpush1.bf16.msra.mxu1 %v7440_v45  ;;  %v1015_v45 = vld [vmem:[#allocation12 + $0x280] sm:$0xff] }
 0x1c6   :  { %851 = vmatprep.subr.bf16.mxu1 %v7445_v46  ;;  %v1019_v46 = vld [vmem:[#allocation12 + $0x2a0] sm:$0xff] }
 0x1c9   :  { %852 = vmatpush1.bf16.msra.mxu1 %v7443_v47  ;;  %v298_v47 = vlaneseq }
 0x1ca   :  { %853 = vmatprep.subr.bf16.mxu1 %v7448_v48  ;;  %v6567_v48 = vcombine.high %v1015_v45, %v1019_v46 }
 0x1cc   :  { %2533 = vmatprep.subr.bf16.mxu0 %v6567_v48  ;;  %v7521_v48 = vld [vmem:[#allocation9 + $0x1e8] ss:$16 sps:$4 sm:$0xff]  }
 0x1cd   :  { %854 = vmatpush1.bf16.msra.mxu1 %v7446_v49  ;;  %v6566_v49 = vcombine.low %v1015_v45, %v1019_v46  ;;  %v7523_v45 = vld [vmem:[#allocation9 + $0x1ec] ss:$16 sps:$4 sm:$0xff]  }
 0x1ce   :  { %855 = vmatprep.subr.bf16.mxu1 %v7451_v50  ;;  %v1023_v50 = vld [vmem:[#allocation12 + $0x2c0] sm:$0xff]  ;;  %v936_v46 = vld [vmem:[#allocation12 + $0x8] sm:$0xff] }
 0x1cf   :  { %2534 = vmatpush1.bf16.msra.mxu0 %v6566_v49 }
 0x1d1   :  { %856 = vmatpush1.bf16.msra.mxu1 %v7449_v51  ;;  %v1027_v51 = vld [vmem:[#allocation12 + $0x2e0] sm:$0xff] }
 0x1d2   :  { %857 = vmatprep.subr.bf16.mxu1 %v7454_v52  ;;  %v8616_v52 = vshrl.u32 %v298_v47, 7  ;;  %v940_v47 = vld [vmem:[#allocation12 + $0x28] sm:$0xff] }
 0x1d3   :  { %v6489_v49 = vcombine.high %v936_v46, %v940_v47 }
 0x1d5   :  { %858 = vmatpush1.bf16.msra.mxu1 %v7452_v53  ;;  %v6575_v53 = vcombine.high %v1023_v50, %v1027_v51 }
 0x1d6   :  { %859 = vmatprep.subr.bf16.mxu1 %v7457_v54  ;;  %v6574_v54 = vcombine.low %v1023_v50, %v1027_v51  ;;  %v944_v50 = vld [vmem:[#allocation12 + $0x48] sm:$0xff] }
 0x1d7   :  { %2535 = vmatprep.subr.bf16.mxu0 %v6575_v53  ;;  %v948_v51 = vld [vmem:[#allocation12 + $0x68] sm:$0xff]  ;;  %v6488_v53 = vcombine.low %v936_v46, %v940_v47 }
 0x1d8   :  { %2536 = vmatpush1.bf16.msra.mxu0 %v6574_v54  ;;  %v6497_v54 = vcombine.high %v944_v50, %v948_v51 }
 0x1d9   :  { %860 = vmatpush1.bf16.msra.mxu1 %v7455_v55  ;;  %v1031_v55 = vld [vmem:[#allocation12 + $0x300] sm:$0xff] }
 0x1da   :  { %861 = vmatprep.subr.bf16.mxu1 %v7460_v56  ;;  %v1035_v56 = vld [vmem:[#allocation12 + $0x320] sm:$0xff] }
 0x1dd   :  { %862 = vmatpush1.bf16.msra.mxu1 %v7458_v57  ;;  %v8619_v57 = vsub.s32 0, %v8616_v52 }
 0x1de   :  { %863 = vmatprep.subr.bf16.mxu1 %v7463_v58  ;;  %v6583_v58 = vcombine.high %v1031_v55, %v1035_v56 }
 0x1e0   :  { %2537 = vmatprep.subr.bf16.mxu0 %v6583_v58  ;;  %v6496_v58 = vcombine.low %v944_v50, %v948_v51 }
 0x1e1   :  { %864 = vmatpush1.bf16.msra.mxu1 %v7461_v59  ;;  %v296_v59 = vld [vmem:[#allocation7] sm:$0x3] }
 0x1e2   :  { %865 = vmatprep.subr.bf16.mxu1 %v7466_v60  ;;  %v8622_v60 = vsub.s32 1, %v8616_v52 }
 0x1e5   :  { %866 = vmatpush1.bf16.msra.mxu1 %v7464_v61  ;;  %v6582_v61 = vcombine.low %v1031_v55, %v1035_v56  ;;  %v952_v55 = vld [vmem:[#allocation12 + $0x88] sm:$0xff] }
 0x1e6   :  { %867 = vmatprep.subr.bf16.mxu1 %v7469_v62  ;;  %v1039_v62 = vld [vmem:[#allocation12 + $0x340] sm:$0xff]  ;;  %v956_v56 = vld [vmem:[#allocation12 + $0xa8] sm:$0xff] }
 0x1e7   :  { %2538 = vmatpush1.bf16.msra.mxu0 %v6582_v61  ;;  %v960_v61 = vld [vmem:[#allocation12 + $0xc8] sm:$0xff] }
 0x1e9   :  { %868 = vmatpush1.bf16.msra.mxu1 %v7467_v63  ;;  %v1043_v63 = vld [vmem:[#allocation12 + $0x360] sm:$0xff] }
 0x1ea   :  { %869 = vmatprep.subr.bf16.mxu1 %v7472_v0  ;;  %v301_v0 = vrot.slane %v296_v59, %v8619_v57 }
 0x1ed   :  { %870 = vmatpush1.bf16.msra.mxu1 %v7470_v1  ;;  %v6591_v1 = vcombine.high %v1039_v62, %v1043_v63 }
 0x1ee   :  { %871 = vmatprep.subr.bf16.mxu1 %v7475_v2  ;;  %v305_v2 = vrot.slane %v296_v59, %v8622_v60  ;;  %v6505_v59 = vcombine.high %v952_v55, %v956_v56 }
 0x1ef   :  { %2539 = vmatprep.subr.bf16.mxu0 %v6591_v1  ;;  %v968_v1 = vld [vmem:[#allocation12 + $0x108] sm:$0xff] }
 0x1f1   :  { %872 = vmatpush1.bf16.msra.mxu1 %v7473_v3  ;;  %v6590_v3 = vcombine.low %v1039_v62, %v1043_v63  ;;  %v964_v62 = vld [vmem:[#allocation12 + $0xe8] sm:$0xff]  ;;  %v6504_v63 = vcombine.low %v952_v55, %v956_v56 }
 0x1f2   :  { %882 = vmatprep.subr.bf16.mxu1 %v7478_v4 }
 0x1f3   :  { %2540 = vmatpush1.bf16.msra.mxu0 %v6590_v3  ;;  %v6512_v3 = vcombine.low %v960_v61, %v964_v62 }
 0x287   :  { %v422_v4 = vpop.f32.mrb[0].mxu1 }
 0x288   :  { %v423_v5 = vadd.f32 %v422_v4, %v301_v0  ;;  %v424_v6 = vpop.f32.mrb[1].mxu1  ;;  %v6513_v0 = vcombine.high %v960_v61, %v964_v62 }
 0x289   :  { %v425_v7 = vadd.f32 %v424_v6, %v305_v2  ;;  %v426_v8 = vpop.f32.mrb[2].mxu1  ;;  %v972_v2 = vld [vmem:[#allocation12 + $0x128] sm:$0xff] }
 0x28a   :  { %v429_v9 = vmul.f32 0.2, %v423_v5  ;;  %v427_v10 = vpop.f32.mrb[3].mxu1  ;;  %v6521_v4 = vcombine.high %v968_v1, %v972_v2  ;;  %v980_v6 = vld [vmem:[#allocation12 + $0x168] sm:$0xff] }
 0x28b   :  { %v430_v11 = vmul.f32 0.2, %v425_v7  ;;  %v988_v10 = vld [vmem:[#allocation12 + $0x1a8] sm:$0xff] }
 0x28c   :  { %v431_v12 = vmax.f32 %v423_v5, %v429_v9  ;;  %v976_v5 = vld [vmem:[#allocation12 + $0x148] sm:$0xff] }
 0x28d   :  { %v432_v13 = vmax.f32 %v425_v7, %v430_v11  ;;  %v6520_v7 = vcombine.low %v968_v1, %v972_v2  ;;  %v6529_v8 = vcombine.high %v976_v5, %v980_v6  ;;  %v984_v9 = vld [vmem:[#allocation12 + $0x188] sm:$0xff]  ;;  %v6528_v11 = vcombine.low %v976_v5, %v980_v6  ;;  %v8646_v5 = vld [vmem:[#allocation10] sm:$0xf] }
 0x28e   :  { %v8626_v16 = vpack.c.bf16 %v431_v12, %v431_v12  ;;  %v6537_v12 = vcombine.high %v984_v9, %v988_v10  ;;  %v504_v6 = vrot.slane %v8646_v5, %v8619_v57 }
 0x28f   :  { %v434_v14 = vpack.c.bf16 %v432_v13, %v432_v13  ;;  %v992_v13 = vld [vmem:[#allocation12 + $0x1c8] sm:$0xff] }
 0x291   :  { %873 = vmatprep.mubr.bf16.mxu1 %v434_v14 }
 0x292   :  { %874 = vmatmul.mubr.bf16.vlgmr.msra.gmra.mrb[4].mxu1 %v8626_v16 }
 0x293   :  { %883 = vmatpush1.bf16.msra.mxu1 %v7476_v15  ;;  %914 = vmatprep.mubr.bf16.mxu1 %v434_v14  ;;  %v996_v14 = vld [vmem:[#allocation12 + $0x1e8] sm:$0xff]  ;;  %v1047_v15 = vld [vmem:[#allocation12 + $0x380] sm:$0xff] }
 0x294   :  { %884 = vmatprep.subr.bf16.mxu1 %v7481_v17 }
 0x297   :  { %885 = vmatpush1.bf16.msra.mxu1 %v7479_v18  ;;  %v6536_v18 = vcombine.low %v984_v9, %v988_v10 }
 0x298   :  { %886 = vmatprep.subr.bf16.mxu1 %v7484_v19 }
 0x29b   :  { %887 = vmatpush1.bf16.msra.mxu1 %v7482_v20  ;;  %v6545_v20 = vcombine.high %v992_v13, %v996_v14 }
 0x29c   :  { %888 = vmatprep.subr.bf16.mxu1 %v7487_v21  ;;  %v1000_v21 = vld [vmem:[#allocation12 + $0x208] sm:$0xff] }
 0x29f   :  { %889 = vmatpush1.bf16.msra.mxu1 %v7485_v22  ;;  %v1004_v22 = vld [vmem:[#allocation12 + $0x228] sm:$0xff] }
 0x2a0   :  { %890 = vmatprep.subr.bf16.mxu1 %v7490_v23  ;;  %v1055_v23 = vld [vmem:[#allocation12 + $0x3c0] sm:$0xff] }
 0x2a3   :  { %891 = vmatpush1.bf16.msra.mxu1 %v7488_v24  ;;  %v1059_v24 = vld [vmem:[#allocation12 + $0x3e0] sm:$0xff] }
 0x2a4   :  { %892 = vmatprep.subr.bf16.mxu1 %v7493_v25  ;;  %v6607_v25 = vcombine.high %v1055_v23, %v1059_v24 }
 0x2a7   :  { %893 = vmatpush1.bf16.msra.mxu1 %v7491_v26  ;;  %v6544_v26 = vcombine.low %v992_v13, %v996_v14 }
 0x2a8   :  { %894 = vmatprep.subr.bf16.mxu1 %v7496_v27  ;;  %v6606_v27 = vcombine.low %v1055_v23, %v1059_v24 }
 0x2ab   :  { %895 = vmatpush1.bf16.msra.mxu1 %v7494_v28  ;;  %v6553_v28 = vcombine.high %v1000_v21, %v1004_v22 }
 0x2ac   :  { %896 = vmatprep.subr.bf16.mxu1 %v7499_v29  ;;  %v1008_v29 = vld [vmem:[#allocation12 + $0x248] sm:$0xff] }
 0x2af   :  { %897 = vmatpush1.bf16.msra.mxu1 %v7497_v30  ;;  %v1012_v30 = vld [vmem:[#allocation12 + $0x268] sm:$0xff] }
 0x2b0   :  { %898 = vmatprep.subr.bf16.mxu1 %v7502_v31  ;;  %v8630_v31 = vld [vmem:[#allocation12 + $0x400] sm:$0xff] }
 0x2b3   :  { %899 = vmatpush1.bf16.msra.mxu1 %v7500_v32  ;;  %v8632_v32 = vld [vmem:[#allocation12 + $0x420] sm:$0xff] }
 0x2b4   :  { %900 = vmatprep.subr.bf16.mxu1 %v7505_v33  ;;  %v8634_v33 = vld [vmem:[#allocation12 + $0x408] sm:$0xff] }
 0x2b7   :  { %901 = vmatpush1.bf16.msra.mxu1 %v7503_v34  ;;  %v6615_v34 = vcombine.high %v8630_v31, %v8632_v32 }
 0x2b8   :  { %902 = vmatprep.subr.bf16.mxu1 %v7508_v35  ;;  %v8638_v35 = vld [vmem:[#allocation12 + $0x428] sm:$0xff] }
 0x2bb   :  { %903 = vmatpush1.bf16.msra.mxu1 %v7506_v36  ;;  %v6552_v36 = vcombine.low %v1000_v21, %v1004_v22  ;;  %v1076_v21 = vld [vmem:[#allocation12 + $0x468] sm:$0xff] }
 0x2bc   :  { %904 = vmatprep.subr.bf16.mxu1 %v7511_v37  ;;  %v6614_v37 = vcombine.low %v8630_v31, %v8632_v32 }
 0x2bf   :  { %905 = vmatpush1.bf16.msra.mxu1 %v7509_v38  ;;  %v6616_v38 = vcombine.low %v8634_v33, %v8638_v35 }
 0x2c0   :  { %906 = vmatprep.subr.bf16.mxu1 %v7514_v39  ;;  %v6561_v39 = vcombine.high %v1008_v29, %v1012_v30 }
 0x2c3   :  { %907 = vmatpush1.bf16.msra.mxu1 %v7512_v40  ;;  %v1016_v40 = vld [vmem:[#allocation12 + $0x288] sm:$0xff] }
 0x2c4   :  { %908 = vmatprep.subr.bf16.mxu1 %v7517_v41  ;;  %v1020_v41 = vld [vmem:[#allocation12 + $0x2a8] sm:$0xff] }
 0x2c5   :  { %v6568_v46 = vcombine.low %v1016_v40, %v1020_v41 }
 0x2c7   :  { %909 = vmatpush1.bf16.msra.mxu1 %v7515_v42  ;;  %v6560_v42 = vcombine.low %v1008_v29, %v1012_v30  ;;  %v1084_v29 = vld [vmem:[#allocation12 + $0x4a8] sm:$0xff] }
 0x2c8   :  { %910 = vmatprep.subr.bf16.mxu1 %v7520_v43  ;;  %v6569_v43 = vcombine.high %v1016_v40, %v1020_v41  ;;  %v1087_v40 = vld [vmem:[#allocation12 + $0x4c0] sm:$0xff] }
 0x2c9   :  { %v1091_v41 = vld [vmem:[#allocation12 + $0x4e0] sm:$0xff] }
 0x2ca   :  { %v6639_v31 = vcombine.high %v1087_v40, %v1091_v41 }
 0x2cb   :  { %911 = vmatpush1.bf16.msra.mxu1 %v7518_v44  ;;  %v1024_v44 = vld [vmem:[#allocation12 + $0x2c8] sm:$0xff] }
 0x2cc   :  { %912 = vmatprep.subr.bf16.mxu1 %v7523_v45  ;;  %v1028_v45 = vld [vmem:[#allocation12 + $0x2e8] sm:$0xff] }
 0x2cd   :  { %v6577_v47 = vcombine.high %v1024_v44, %v1028_v45  ;;  %v6576_v50 = vcombine.low %v1024_v44, %v1028_v45 }
 0x2cf   :  { %913 = vmatpush1.bf16.msra.mxu1 %v7521_v48  ;;  %v1032_v48 = vld [vmem:[#allocation12 + $0x308] sm:$0xff] }
 0x2d0   :  { %2595 = vmatprep.subr.bf16.mxu1 %v6489_v49  ;;  %v1036_v49 = vld [vmem:[#allocation12 + $0x328] sm:$0xff] }
 0x2d1   :  { %v6585_v51 = vcombine.high %v1032_v48, %v1036_v49  ;;  %v6584_v55 = vcombine.low %v1032_v48, %v1036_v49 }
 0x2d2   :  { %915 = vmatmul.mubr.bf16.vlgmr.msra.gmra.mrb[8].mxu1 %v8626_v16  ;;  %v1051_v16 = vld [vmem:[#allocation12 + $0x3a0] sm:$0xff] }
 0x2d3   :  { %2596 = vmatpush1.bf16.msra.mxu1 %v6488_v53  ;;  %v6599_v17 = vcombine.high %v1047_v15, %v1051_v16  ;;  %v6598_v19 = vcombine.low %v1047_v15, %v1051_v16  ;;  %v1040_v53 = vld [vmem:[#allocation12 + $0x348] sm:$0xff] }
 0x2d4   :  { %2597 = vmatprep.subr.bf16.mxu1 %v6497_v54  ;;  %v1044_v54 = vld [vmem:[#allocation12 + $0x368] sm:$0xff] }
 0x2d5   :  { %2541 = vmatprep.subr.bf16.mxu0 %v6599_v17  ;;  %v6593_v56 = vcombine.high %v1040_v53, %v1044_v54  ;;  %v6592_v61 = vcombine.low %v1040_v53, %v1044_v54  ;;  %v1071_v17 = vld [vmem:[#allocation12 + $0x440] sm:$0xff]  ;;  %v1104_v53 = vld [vmem:[#allocation12 + $0x548] sm:$0xff] }
 0x2d6   :  { %2542 = vmatpush1.bf16.msra.mxu0 %v6598_v19  ;;  %v1075_v19 = vld [vmem:[#allocation12 + $0x460] sm:$0xff]  ;;  %v1108_v54 = vld [vmem:[#allocation12 + $0x568] sm:$0xff] }
 0x2d7   :  { %2598 = vmatpush1.bf16.msra.mxu1 %v6496_v58  ;;  %2543 = vmatprep.subr.bf16.mxu0 %v6607_v25  ;;  %v1048_v58 = vld [vmem:[#allocation12 + $0x388] sm:$0xff]  ;;  %v6623_v24 = vcombine.high %v1071_v17, %v1075_v19  ;;  %v6622_v30 = vcombine.low %v1071_v17, %v1075_v19 }
 0x2d8   :  { %2599 = vmatprep.subr.bf16.mxu1 %v6505_v59  ;;  %v1052_v59 = vld [vmem:[#allocation12 + $0x3a8] sm:$0xff] }
 0x2d9   :  { %v6601_v62 = vcombine.high %v1048_v58, %v1052_v59  ;;  %v6600_v1 = vcombine.low %v1048_v58, %v1052_v59  ;;  %v6657_v59 = vcombine.high %v1104_v53, %v1108_v54  ;;  %v1132_v17 = vld [vmem:[#allocation12 + $0x628] sm:$0xff] }
 0x2da   :  { %2544 = vmatpush1.bf16.msra.mxu0 %v6606_v27  ;;  %v1083_v27 = vld [vmem:[#allocation12 + $0x4a0] sm:$0xff] }
 0x2db   :  { %2600 = vmatpush1.bf16.msra.mxu1 %v6504_v63  ;;  %2554 = vmatprep.subr.bf16.mxu0 %v6615_v34  ;;  %v1056_v63 = vld [vmem:[#allocation12 + $0x3c8] sm:$0xff] }
 0x2dc   :  { %2601 = vmatprep.subr.bf16.mxu1 %v6513_v0  ;;  %v1060_v0 = vld [vmem:[#allocation12 + $0x3e8] sm:$0xff] }
 0x2dd   :  { %v6609_v2 = vcombine.high %v1056_v63, %v1060_v0 }
 0x2df   :  { %2602 = vmatpush1.bf16.msra.mxu1 %v6512_v3  ;;  %v6608_v3 = vcombine.low %v1056_v63, %v1060_v0  ;;  %v1112_v63 = vld [vmem:[#allocation12 + $0x588] sm:$0xff] }
 0x2e0   :  { %2603 = vmatprep.subr.bf16.mxu1 %v6521_v4  ;;  %v6617_v4 = vcombine.high %v8634_v33, %v8638_v35  ;;  %v1095_v33 = vld [vmem:[#allocation12 + $0x500] sm:$0xff]  ;;  %v1116_v0 = vld [vmem:[#allocation12 + $0x5a8] sm:$0xff] }
 0x2e1   :  { %v1099_v35 = vld [vmem:[#allocation12 + $0x520] sm:$0xff] }
 0x2e2   :  { %v6647_v48 = vcombine.high %v1095_v33, %v1099_v35 }
 0x2e3   :  { %2604 = vmatpush1.bf16.msra.mxu1 %v6520_v7  ;;  %v508_v7 = vrot.slane %v8646_v5, %v8622_v60 }
 0x2e4   :  { %2605 = vmatprep.subr.bf16.mxu1 %v6529_v8 }
 0x2e7   :  { %2606 = vmatpush1.bf16.msra.mxu1 %v6528_v11 }
 0x2e8   :  { %2607 = vmatprep.subr.bf16.mxu1 %v6537_v12 }
 0x2eb   :  { %2608 = vmatpush1.bf16.msra.mxu1 %v6536_v18 }
 0x2ec   :  { %2609 = vmatprep.subr.bf16.mxu1 %v6545_v20  ;;  %v1072_v20 = vld [vmem:[#allocation12 + $0x448] sm:$0xff] }
 0x2ed   :  { %v6625_v25 = vcombine.high %v1072_v20, %v1076_v21  ;;  %v6624_v34 = vcombine.low %v1072_v20, %v1076_v21 }
 0x2ef   :  { %2610 = vmatpush1.bf16.msra.mxu1 %v6544_v26  ;;  %v1079_v26 = vld [vmem:[#allocation12 + $0x480] sm:$0xff] }
 0x2f0   :  { %2611 = vmatprep.subr.bf16.mxu1 %v6553_v28  ;;  %v1080_v28 = vld [vmem:[#allocation12 + $0x488] sm:$0xff]  ;;  %v6630_v44 = vcombine.low %v1079_v26, %v1083_v27 }
 0x2f1   :  { %v6632_v45 = vcombine.low %v1080_v28, %v1084_v29 }
 0x2f3   :  { %2612 = vmatpush1.bf16.msra.mxu1 %v6552_v36  ;;  %v6631_v36 = vcombine.high %v1079_v26, %v1083_v27  ;;  %v1136_v26 = vld [vmem:[#allocation12 + $0x648] sm:$0xff] }
 0x2f4   :  { %2613 = vmatprep.subr.bf16.mxu1 %v6561_v39  ;;  %v6633_v39 = vcombine.high %v1080_v28, %v1084_v29  ;;  %v1140_v27 = vld [vmem:[#allocation12 + $0x668] sm:$0xff] }
 0x2f7   :  { %2614 = vmatpush1.bf16.msra.mxu1 %v6560_v42  ;;  %v1088_v42 = vld [vmem:[#allocation12 + $0x4c8] sm:$0xff] }
 0x2f8   :  { %2615 = vmatprep.subr.bf16.mxu1 %v6569_v43  ;;  %v1092_v43 = vld [vmem:[#allocation12 + $0x4e8] sm:$0xff] }
 0x2f9   :  { %v6641_v32 = vcombine.high %v1088_v42, %v1092_v43 }
 0x2fb   :  { %2616 = vmatpush1.bf16.msra.mxu1 %v6568_v46  ;;  %v6638_v46 = vcombine.low %v1087_v40, %v1091_v41  ;;  %v1144_v40 = vld [vmem:[#allocation12 + $0x688] sm:$0xff] }
 0x2fc   :  { %2617 = vmatprep.subr.bf16.mxu1 %v6577_v47  ;;  %v6640_v47 = vcombine.low %v1088_v42, %v1092_v43  ;;  %v1148_v41 = vld [vmem:[#allocation12 + $0x6a8] sm:$0xff]  ;;  %v6688_v43 = vcombine.low %v1136_v26, %v1140_v27 }
 0x2ff   :  { %2618 = vmatpush1.bf16.msra.mxu1 %v6576_v50  ;;  %v1103_v50 = vld [vmem:[#allocation12 + $0x540] sm:$0xff] }
 0x300   :  { %2619 = vmatprep.subr.bf16.mxu1 %v6585_v51  ;;  %v1107_v51 = vld [vmem:[#allocation12 + $0x560] sm:$0xff] }
 0x301   :  { %v6655_v58 = vcombine.high %v1103_v50, %v1107_v51 }
 0x303   :  { %2620 = vmatpush1.bf16.msra.mxu1 %v6584_v55  ;;  %v6646_v55 = vcombine.low %v1095_v33, %v1099_v35  ;;  %v1152_v33 = vld [vmem:[#allocation12 + $0x6c8] sm:$0xff] }
 0x304   :  { %2621 = vmatprep.subr.bf16.mxu1 %v6593_v56  ;;  %v1156_v35 = vld [vmem:[#allocation12 + $0x6e8] sm:$0xff] }
 0x307   :  { %2622 = vmatpush1.bf16.msra.mxu1 %v6592_v61  ;;  %v1111_v61 = vld [vmem:[#allocation12 + $0x580] sm:$0xff] }
 0x308   :  { %2623 = vmatprep.subr.bf16.mxu1 %v6601_v62  ;;  %v1115_v62 = vld [vmem:[#allocation12 + $0x5a0] sm:$0xff] }
 0x30b   :  { %2624 = vmatpush1.bf16.msra.mxu1 %v6600_v1  ;;  %v6654_v1 = vcombine.low %v1103_v50, %v1107_v51  ;;  %v1160_v50 = vld [vmem:[#allocation12 + $0x708] sm:$0xff] }
 0x30c   :  { %2625 = vmatprep.subr.bf16.mxu1 %v6609_v2  ;;  %v6656_v2 = vcombine.low %v1104_v53, %v1108_v54  ;;  %v1164_v51 = vld [vmem:[#allocation12 + $0x728] sm:$0xff]  ;;  %v6704_v54 = vcombine.low %v1152_v33, %v1156_v35 }
 0x30f   :  { %2626 = vmatpush1.bf16.msra.mxu1 %v6608_v3  ;;  %v6663_v3 = vcombine.high %v1111_v61, %v1115_v62 }
 0x310   :  { %2636 = vmatprep.subr.bf16.mxu1 %v6617_v4  ;;  %v6665_v4 = vcombine.high %v1112_v63, %v1116_v0 }
 0x365   :  { %v875_v8 = vpop.f32.mrb[4].mxu1 }
 0x366   :  { %v876_v9 = vadd.f32 %v875_v8, %v504_v6  ;;  %v877_v10 = vpop.f32.mrb[5].mxu1  ;;  %v1119_v6 = vld [vmem:[#allocation12 + $0x5c0] sm:$0xff]  ;;  %v1120_v8 = vld [vmem:[#allocation12 + $0x5c8] sm:$0xff] }
 0x367   :  { %v878_v11 = vadd.f32 %v877_v10, %v508_v7  ;;  %v879_v12 = vpop.f32.mrb[6].mxu1  ;;  %v1123_v7 = vld [vmem:[#allocation12 + $0x5e0] sm:$0xff]  ;;  %v6662_v10 = vcombine.low %v1111_v61, %v1115_v62  ;;  %v1168_v61 = vld [vmem:[#allocation12 + $0x748] sm:$0xff] }
 0x368   :  { %v923_v13 = vmul.f32 0.2, %v876_v9  ;;  %v880_v14 = vpop.f32.mrb[7].mxu1  ;;  %v6671_v12 = vcombine.high %v1119_v6, %v1123_v7  ;;  %v1172_v62 = vld [vmem:[#allocation12 + $0x768] sm:$0xff] }
 0x369   :  { %v924_v15 = vmul.f32 0.2, %v878_v11  ;;  %v1127_v14 = vld [vmem:[#allocation12 + $0x600] sm:$0xff] }
 0x36a   :  { %v927_v16 = vmax.f32 %v876_v9, %v923_v13  ;;  %v1124_v9 = vld [vmem:[#allocation12 + $0x5e8] sm:$0xff] }
 0x36b   :  { %v928_v18 = vmax.f32 %v878_v11, %v924_v15  ;;  %v6664_v11 = vcombine.low %v1112_v63, %v1116_v0  ;;  %v6673_v13 = vcombine.high %v1120_v8, %v1124_v9  ;;  %v1131_v15 = vld [vmem:[#allocation12 + $0x620] sm:$0xff]  ;;  %v6672_v19 = vcombine.low %v1120_v8, %v1124_v9  ;;  %v1176_v8 = vld [vmem:[#allocation12 + $0x788] sm:$0xff] }
 0x36c   :  { %v8654_v23 = vpack.c.bf16 %v927_v16, %v927_v16  ;;  %v1128_v16 = vld [vmem:[#allocation12 + $0x608] sm:$0xff]  ;;  %v6679_v20 = vcombine.high %v1127_v14, %v1131_v15  ;;  %v6678_v28 = vcombine.low %v1127_v14, %v1131_v15  ;;  %v6712_v0 = vcombine.low %v1160_v50, %v1164_v51  ;;  %v1183_v15 = vld [vmem:[#allocation12 + $0x7c0] sm:$0xff] }
 0x36d   :  { %v8652_v22 = vpack.c.bf16 %v928_v18, %v928_v18  ;;  %v6670_v18 = vcombine.low %v1119_v6, %v1123_v7  ;;  %v6681_v21 = vcombine.high %v1128_v16, %v1132_v17  ;;  %v6680_v29 = vcombine.low %v1128_v16, %v1132_v17  ;;  %v1179_v7 = vld [vmem:[#allocation12 + $0x7a0] sm:$0xff]  ;;  %v1180_v9 = vld [vmem:[#allocation12 + $0x7a8] sm:$0xff] }
 0x36e   :  { %v8670_v6 = vsub.s32 3, %v8616_v52  ;;  %v6729_v14 = vcombine.high %v1176_v8, %v1180_v9  ;;  %v1187_v17 = vld [vmem:[#allocation12 + $0x7e0] sm:$0xff] }
 0x36f   :  { %2545 = vmatprep.mubr.bf16.mxu0 %v8652_v22  ;;  %2627 = vmatprep.mubr.bf16.mxu1 %v8652_v22 }
 0x370   :  { %2546 = vmatmul.mubr.bf16.vlgmr.msra.gmra.mrb[4].mxu0 %v8654_v23  ;;  %2628 = vmatmul.mubr.bf16.vlgmr.msra.gmra.mrb[12].mxu1 %v8654_v23  ;;  %v516_v16 = vrot.slane %v8646_v5, %v8670_v6 }
 0x371   :  { %2555 = vmatpush1.bf16.msra.mxu0 %v6614_v37  ;;  %2637 = vmatpush1.bf16.msra.mxu1 %v6616_v38  ;;  %v1096_v37 = vld [vmem:[#allocation12 + $0x508] sm:$0xff] }
 0x372   :  { %2556 = vmatprep.subr.bf16.mxu0 %v6623_v24  ;;  %2638 = vmatprep.subr.bf16.mxu1 %v6625_v25  ;;  %v1100_v38 = vld [vmem:[#allocation12 + $0x528] sm:$0xff]  ;;  %v1135_v24 = vld [vmem:[#allocation12 + $0x640] sm:$0xff] }
 0x373   :  { %v6649_v49 = vcombine.high %v1096_v37, %v1100_v38  ;;  %v6648_v56 = vcombine.low %v1096_v37, %v1100_v38  ;;  %v1139_v25 = vld [vmem:[#allocation12 + $0x660] sm:$0xff]  ;;  %v6696_v38 = vcombine.low %v1144_v40, %v1148_v41 }
 0x374   :  { %v6686_v42 = vcombine.low %v1135_v24, %v1139_v25 }
 0x375   :  { %2557 = vmatpush1.bf16.msra.mxu0 %v6622_v30  ;;  %2639 = vmatpush1.bf16.msra.mxu1 %v6624_v34  ;;  %v6687_v30 = vcombine.high %v1135_v24, %v1139_v25  ;;  %v6689_v34 = vcombine.high %v1136_v26, %v1140_v27  ;;  %v6728_v24 = vcombine.low %v1176_v8, %v1180_v9 }
 0x376   :  { %2558 = vmatprep.subr.bf16.mxu0 %v6631_v36  ;;  %2640 = vmatprep.subr.bf16.mxu1 %v6633_v39  ;;  %v1143_v36 = vld [vmem:[#allocation12 + $0x680] sm:$0xff]  ;;  %v6735_v27 = vcombine.high %v1183_v15, %v1187_v17 }
 0x377   :  { %v1147_v39 = vld [vmem:[#allocation12 + $0x6a0] sm:$0xff] }
 0x378   :  { %v6694_v37 = vcombine.low %v1143_v36, %v1147_v39 }
 0x379   :  { %2559 = vmatpush1.bf16.msra.mxu0 %v6630_v44  ;;  %2641 = vmatpush1.bf16.msra.mxu1 %v6632_v45  ;;  %v6695_v44 = vcombine.high %v1143_v36, %v1147_v39  ;;  %v6697_v45 = vcombine.high %v1144_v40, %v1148_v41  ;;  %v941_v36 = vld [vmem:[#allocation12 + $0x30] sm:$0xff]  ;;  %v938_v39 = vld [vmem:[#allocation12 + $0x18] sm:$0xff] }
 0x37a   :  { %2560 = vmatprep.subr.bf16.mxu0 %v6639_v31  ;;  %2642 = vmatprep.subr.bf16.mxu1 %v6641_v32  ;;  %v1151_v31 = vld [vmem:[#allocation12 + $0x6c0] sm:$0xff] }
 0x37b   :  { %v1155_v32 = vld [vmem:[#allocation12 + $0x6e0] sm:$0xff] }
 0x37c   :  { %v6702_v53 = vcombine.low %v1151_v31, %v1155_v32 }
 0x37d   :  { %2561 = vmatpush1.bf16.msra.mxu0 %v6638_v46  ;;  %2643 = vmatpush1.bf16.msra.mxu1 %v6640_v47  ;;  %v6703_v46 = vcombine.high %v1151_v31, %v1155_v32  ;;  %v6705_v47 = vcombine.high %v1152_v33, %v1156_v35  ;;  %v945_v35 = vld [vmem:[#allocation12 + $0x50] sm:$0xff] }
 0x37e   :  { %2562 = vmatprep.subr.bf16.mxu0 %v6647_v48  ;;  %2644 = vmatprep.subr.bf16.mxu1 %v6649_v49  ;;  %v1159_v48 = vld [vmem:[#allocation12 + $0x700] sm:$0xff] }
 0x37f   :  { %v1163_v49 = vld [vmem:[#allocation12 + $0x720] sm:$0xff] }
 0x380   :  { %v6710_v63 = vcombine.low %v1159_v48, %v1163_v49 }
 0x381   :  { %2563 = vmatpush1.bf16.msra.mxu0 %v6646_v55  ;;  %2645 = vmatpush1.bf16.msra.mxu1 %v6648_v56  ;;  %v6711_v55 = vcombine.high %v1159_v48, %v1163_v49  ;;  %v6713_v56 = vcombine.high %v1160_v50, %v1164_v51 }
 0x382   :  { %2564 = vmatprep.subr.bf16.mxu0 %v6655_v58  ;;  %2646 = vmatprep.subr.bf16.mxu1 %v6657_v59  ;;  %v1167_v58 = vld [vmem:[#allocation12 + $0x740] sm:$0xff] }
 0x383   :  { %v1171_v59 = vld [vmem:[#allocation12 + $0x760] sm:$0xff] }
 0x385   :  { %2565 = vmatpush1.bf16.msra.mxu0 %v6654_v1  ;;  %2647 = vmatpush1.bf16.msra.mxu1 %v6656_v2  ;;  %v6719_v1 = vcombine.high %v1167_v58, %v1171_v59  ;;  %v6721_v2 = vcombine.high %v1168_v61, %v1172_v62 }
 0x386   :  { %2566 = vmatprep.subr.bf16.mxu0 %v6663_v3  ;;  %2648 = vmatprep.subr.bf16.mxu1 %v6665_v4  ;;  %v8667_v3 = vsub.s32 2, %v8616_v52  ;;  %v1175_v4 = vld [vmem:[#allocation12 + $0x780] sm:$0xff] }
 0x389   :  { %2567 = vmatpush1.bf16.msra.mxu0 %v6662_v10  ;;  %2649 = vmatpush1.bf16.msra.mxu1 %v6664_v11  ;;  %v6718_v10 = vcombine.low %v1167_v58, %v1171_v59  ;;  %v6720_v11 = vcombine.low %v1168_v61, %v1172_v62  ;;  %v958_v58 = vld [vmem:[#allocation12 + $0xb8] sm:$0xff] }
 0x38a   :  { %2568 = vmatprep.subr.bf16.mxu0 %v6671_v12  ;;  %2650 = vmatprep.subr.bf16.mxu1 %v6673_v13  ;;  %v512_v12 = vrot.slane %v8646_v5, %v8667_v3  ;;  %v6727_v13 = vcombine.high %v1175_v4, %v1179_v7  ;;  %v942_v5 = vld [vmem:[#allocation12 + $0x38] sm:$0xff] }
 0x38b   :  { %v6493_v32 = vcombine.high %v938_v39, %v942_v5  ;;  %v6492_v50 = vcombine.low %v938_v39, %v942_v5 }
 0x38d   :  { %2569 = vmatpush1.bf16.msra.mxu0 %v6670_v18  ;;  %2651 = vmatpush1.bf16.msra.mxu1 %v6672_v19  ;;  %v1184_v18 = vld [vmem:[#allocation12 + $0x7c8] sm:$0xff] }
 0x38e   :  { %2570 = vmatprep.subr.bf16.mxu0 %v6679_v20  ;;  %2652 = vmatprep.subr.bf16.mxu1 %v6681_v21  ;;  %v1188_v19 = vld [vmem:[#allocation12 + $0x7e8] sm:$0xff]  ;;  %v6726_v21 = vcombine.low %v1175_v4, %v1179_v7  ;;  %v966_v4 = vld [vmem:[#allocation12 + $0xf8] sm:$0xff] }
 0x391   :  { %2571 = vmatpush1.bf16.msra.mxu0 %v6678_v28  ;;  %2653 = vmatpush1.bf16.msra.mxu1 %v6680_v29  ;;  %v6737_v28 = vcombine.high %v1184_v18, %v1188_v19  ;;  %v937_v29 = vld [vmem:[#allocation12 + $0x10] sm:$0xff] }
 0x392   :  { %2572 = vmatprep.subr.bf16.mxu0 %v6687_v30  ;;  %2654 = vmatprep.subr.bf16.mxu1 %v6689_v34  ;;  %v6491_v31 = vcombine.high %v937_v29, %v941_v36  ;;  %v6490_v48 = vcombine.low %v937_v29, %v941_v36  ;;  %v989_v29 = vld [vmem:[#allocation12 + $0x1b0] sm:$0xff] }
 0x395   :  { %2573 = vmatpush1.bf16.msra.mxu0 %v6686_v42  ;;  %2655 = vmatpush1.bf16.msra.mxu1 %v6688_v43  ;;  %v6734_v43 = vcombine.low %v1183_v15, %v1187_v17 }
 0x396   :  { %2574 = vmatprep.subr.bf16.mxu0 %v6695_v44  ;;  %2656 = vmatprep.subr.bf16.mxu1 %v6697_v45  ;;  %v6736_v44 = vcombine.low %v1184_v18, %v1188_v19  ;;  %v977_v18 = vld [vmem:[#allocation12 + $0x150] sm:$0xff] }
 0x397   :  { %v981_v19 = vld [vmem:[#allocation12 + $0x170] sm:$0xff] }
 0x398   :  { %v6530_v36 = vcombine.low %v977_v18, %v981_v19 }
 0x399   :  { %2575 = vmatpush1.bf16.msra.mxu0 %v6694_v37  ;;  %2657 = vmatpush1.bf16.msra.mxu1 %v6696_v38  ;;  %v949_v37 = vld [vmem:[#allocation12 + $0x70] sm:$0xff]  ;;  %v946_v38 = vld [vmem:[#allocation12 + $0x58] sm:$0xff] }
 0x39a   :  { %2576 = vmatprep.subr.bf16.mxu0 %v6703_v46  ;;  %2658 = vmatprep.subr.bf16.mxu1 %v6705_v47  ;;  %v950_v46 = vld [vmem:[#allocation12 + $0x78] sm:$0xff]  ;;  %v6499_v51 = vcombine.high %v945_v35, %v949_v37  ;;  %v6498_v59 = vcombine.low %v945_v35, %v949_v37  ;;  %v1001_v35 = vld [vmem:[#allocation12 + $0x210] sm:$0xff] }
 0x39b   :  { %v6500_v61 = vcombine.low %v946_v38, %v950_v46  ;;  %v1005_v37 = vld [vmem:[#allocation12 + $0x230] sm:$0xff] }
 0x39d   :  { %2577 = vmatpush1.bf16.msra.mxu0 %v6702_v53  ;;  %2659 = vmatpush1.bf16.msra.mxu1 %v6704_v54  ;;  %v6501_v53 = vcombine.high %v946_v38, %v950_v46  ;;  %v953_v54 = vld [vmem:[#allocation12 + $0x90] sm:$0xff]  ;;  %v1002_v38 = vld [vmem:[#allocation12 + $0x218] sm:$0xff] }
 0x39e   :  { %2578 = vmatprep.subr.bf16.mxu0 %v6711_v55  ;;  %2660 = vmatprep.subr.bf16.mxu1 %v6713_v56  ;;  %v957_v55 = vld [vmem:[#allocation12 + $0xb0] sm:$0xff]  ;;  %v954_v56 = vld [vmem:[#allocation12 + $0x98] sm:$0xff] }
 0x39f   :  { %v6507_v62 = vcombine.high %v953_v54, %v957_v55  ;;  %v6506_v7 = vcombine.low %v953_v54, %v957_v55  ;;  %v6508_v8 = vcombine.low %v954_v56, %v958_v58  ;;  %v1006_v46 = vld [vmem:[#allocation12 + $0x238] sm:$0xff]  ;;  %v1009_v54 = vld [vmem:[#allocation12 + $0x250] sm:$0xff] }
 0x3a0   :  { %v1013_v55 = vld [vmem:[#allocation12 + $0x270] sm:$0xff] }
 0x3a1   :  { %2579 = vmatpush1.bf16.msra.mxu0 %v6710_v63  ;;  %2661 = vmatpush1.bf16.msra.mxu1 %v6712_v0  ;;  %v6509_v63 = vcombine.high %v954_v56, %v958_v58  ;;  %v961_v0 = vld [vmem:[#allocation12 + $0xd0] sm:$0xff]  ;;  %v1010_v56 = vld [vmem:[#allocation12 + $0x258] sm:$0xff] }
 0x3a2   :  { %2580 = vmatprep.subr.bf16.mxu0 %v6719_v1  ;;  %2662 = vmatprep.subr.bf16.mxu1 %v6721_v2  ;;  %v965_v1 = vld [vmem:[#allocation12 + $0xf0] sm:$0xff]  ;;  %v962_v2 = vld [vmem:[#allocation12 + $0xd8] sm:$0xff] }
 0x3a3   :  { %v6515_v9 = vcombine.high %v961_v0, %v965_v1  ;;  %v6516_v15 = vcombine.low %v962_v2, %v966_v4  ;;  %v1014_v58 = vld [vmem:[#allocation12 + $0x278] sm:$0xff] }
 0x3a5   :  { %v916_v20 = vpop.f32.mrb[8].mxu1  ;;  %2581 = vmatpush1.bf16.msra.mxu0 %v6718_v10  ;;  %2663 = vmatpush1.bf16.msra.mxu1 %v6720_v11  ;;  %v6517_v10 = vcombine.high %v962_v2, %v966_v4  ;;  %v969_v11 = vld [vmem:[#allocation12 + $0x110] sm:$0xff]  ;;  %v1018_v2 = vld [vmem:[#allocation12 + $0x298] sm:$0xff] }
 0x3a6   :  { %v917_v25 = vadd.f32 %v916_v20, %v512_v12  ;;  %v918_v26 = vpop.f32.mrb[9].mxu1  ;;  %2582 = vmatprep.subr.bf16.mxu0 %v6727_v13  ;;  %2664 = vmatprep.subr.bf16.mxu1 %v6729_v14  ;;  %v973_v12 = vld [vmem:[#allocation12 + $0x130] sm:$0xff]  ;;  %v974_v13 = vld [vmem:[#allocation12 + $0x138] sm:$0xff]  ;;  %v6514_v14 = vcombine.low %v961_v0, %v965_v1 }
 0x3a7   :  { %v919_v30 = vadd.f32 %v918_v26, %v516_v16  ;;  %v920_v34 = vpop.f32.mrb[10].mxu1  ;;  %v6523_v16 = vcombine.high %v969_v11, %v973_v12  ;;  %v978_v20 = vld [vmem:[#allocation12 + $0x158] sm:$0xff]  ;;  %v6531_v26 = vcombine.high %v977_v18, %v981_v19  ;;  %v1017_v0 = vld [vmem:[#allocation12 + $0x290] sm:$0xff] }
 0x3a8   :  { %v925_v40 = vmul.f32 0.2, %v917_v25  ;;  %v921_v41 = vpop.f32.mrb[11].mxu1  ;;  %v990_v34 = vld [vmem:[#allocation12 + $0x1b8] sm:$0xff]  ;;  %v1021_v1 = vld [vmem:[#allocation12 + $0x2b0] sm:$0xff] }
 0x3a9   :  { %v926_v42 = vmul.f32 0.2, %v919_v30  ;;  %2583 = vmatpush1.bf16.msra.mxu0 %v6726_v21  ;;  %2665 = vmatpush1.bf16.msra.mxu1 %v6728_v24  ;;  %v982_v21 = vld [vmem:[#allocation12 + $0x178] sm:$0xff]  ;;  %v6522_v24 = vcombine.low %v969_v11, %v973_v12  ;;  %v993_v41 = vld [vmem:[#allocation12 + $0x1d0] sm:$0xff] }
 0x3aa   :  { %v929_v45 = vmax.f32 %v917_v25, %v925_v40  ;;  %2584 = vmatprep.subr.bf16.mxu0 %v6735_v27  ;;  %2666 = vmatprep.subr.bf16.mxu1 %v6737_v28  ;;  %v6533_v27 = vcombine.high %v978_v20, %v982_v21  ;;  %v985_v28 = vld [vmem:[#allocation12 + $0x190] sm:$0xff]  ;;  %v6532_v39 = vcombine.low %v978_v20, %v982_v21  ;;  %v1022_v4 = vld [vmem:[#allocation12 + $0x2b8] sm:$0xff] }
 0x3ab   :  { %v930_v33 = vmax.f32 %v919_v30, %v926_v42  ;;  %v986_v30 = vld [vmem:[#allocation12 + $0x198] sm:$0xff]  ;;  %v6539_v5 = vcombine.high %v985_v28, %v989_v29  ;;  %v997_v42 = vld [vmem:[#allocation12 + $0x1f0] sm:$0xff] }
 0x3ac   :  { %v8678_v49 = vpack.c.bf16 %v929_v45, %v929_v45  ;;  %v6541_v40 = vcombine.high %v986_v30, %v990_v34  ;;  %v6538_v45 = vcombine.low %v985_v28, %v989_v29  ;;  %v1025_v11 = vld [vmem:[#allocation12 + $0x2d0] sm:$0xff]  ;;  %v1034_v20 = vld [vmem:[#allocation12 + $0x318] sm:$0xff] }
 0x3ad   :  { %v8676_v47 = vpack.c.bf16 %v930_v33, %v930_v33  ;;  %2585 = vmatpush1.bf16.msra.mxu0 %v6734_v43  ;;  %2667 = vmatpush1.bf16.msra.mxu1 %v6736_v44  ;;  %v994_v43 = vld [vmem:[#allocation12 + $0x1d8] sm:$0xff]  ;;  %v1029_v12 = vld [vmem:[#allocation12 + $0x2f0] sm:$0xff] }
 0x3ae   :  { %2677 = vmatprep.subr.bf16.mxu0 %v6491_v31  ;;  %2759 = vmatprep.subr.bf16.mxu1 %v6493_v32  ;;  %v998_v44 = vld [vmem:[#allocation12 + $0x1f8] sm:$0xff]  ;;  %v6540_v31 = vcombine.low %v986_v30, %v990_v34  ;;  %v6547_v32 = vcombine.high %v993_v41, %v997_v42  ;;  %v1033_v18 = vld [vmem:[#allocation12 + $0x310] sm:$0xff] }
 0x3af   :  { %2586 = vmatprep.mubr.bf16.mxu0 %v8676_v47  ;;  %2668 = vmatprep.mubr.bf16.mxu1 %v8676_v47  ;;  %v6549_v33 = vcombine.high %v994_v43, %v998_v44  ;;  %v1037_v19 = vld [vmem:[#allocation12 + $0x330] sm:$0xff]  ;;  %v1038_v21 = vld [vmem:[#allocation12 + $0x338] sm:$0xff] }
 0x3b0   :  { %2587 = vmatmul.mubr.bf16.vlgmr.msra.gmra.mrb[4].mxu0 %v8678_v49  ;;  %2669 = vmatmul.mubr.bf16.vlgmr.msra.gmra.mrb[12].mxu1 %v8678_v49  ;;  %v1041_v28 = vld [vmem:[#allocation12 + $0x350] sm:$0xff]  ;;  %v1042_v30 = vld [vmem:[#allocation12 + $0x358] sm:$0xff] }
 0x3b1   :  { %2678 = vmatpush1.bf16.msra.mxu0 %v6490_v48  ;;  %2709 = vmatprep.mubr.bf16.mxu0 %v8652_v22  ;;  %v6546_v48 = vcombine.low %v993_v41, %v997_v42  ;;  %v1045_v29 = vld [vmem:[#allocation12 + $0x370] sm:$0xff]  ;;  %v1046_v34 = vld [vmem:[#allocation12 + $0x378] sm:$0xff] }
 0x3b2   :  { %2760 = vmatpush1.bf16.msra.mxu1 %v6492_v50  ;;  %2791 = vmatprep.mubr.bf16.mxu1 %v8652_v22  ;;  %v970_v22 = vld [vmem:[#allocation12 + $0x118] sm:$0xff]  ;;  %v6548_v50 = vcombine.low %v994_v43, %v998_v44  ;;  %v1049_v41 = vld [vmem:[#allocation12 + $0x390] sm:$0xff] }
 0x3b3   :  { %2679 = vmatprep.subr.bf16.mxu0 %v6499_v51  ;;  %2761 = vmatprep.subr.bf16.mxu1 %v6501_v53  ;;  %v6525_v17 = vcombine.high %v970_v22, %v974_v13  ;;  %v6524_v25 = vcombine.low %v970_v22, %v974_v13  ;;  %v6555_v51 = vcombine.high %v1001_v35, %v1005_v37  ;;  %v1026_v22 = vld [vmem:[#allocation12 + $0x2d8] sm:$0xff]  ;;  %v1053_v42 = vld [vmem:[#allocation12 + $0x3b0] sm:$0xff] }
 0x3b4   :  { %v6557_v53 = vcombine.high %v1002_v38, %v1006_v46  ;;  %v1030_v13 = vld [vmem:[#allocation12 + $0x2f8] sm:$0xff] }
 0x3b5   :  { %2680 = vmatpush1.bf16.msra.mxu0 %v6498_v59  ;;  %v6554_v59 = vcombine.low %v1001_v35, %v1005_v37  ;;  %v1050_v43 = vld [vmem:[#allocation12 + $0x398] sm:$0xff]  ;;  %v1057_v35 = vld [vmem:[#allocation12 + $0x3d0] sm:$0xff] }
 0x3b6   :  { %2762 = vmatpush1.bf16.msra.mxu1 %v6500_v61  ;;  %2681 = vmatprep.subr.bf16.mxu0 %v6507_v62  ;;  %v6556_v61 = vcombine.low %v1002_v38, %v1006_v46  ;;  %v6563_v62 = vcombine.high %v1009_v54, %v1013_v55  ;;  %v1054_v44 = vld [vmem:[#allocation12 + $0x3b8] sm:$0xff]  ;;  %v1061_v37 = vld [vmem:[#allocation12 + $0x3f0] sm:$0xff] }
 0x3b7   :  { %2763 = vmatprep.subr.bf16.mxu1 %v6509_v63  ;;  %v6565_v63 = vcombine.high %v1010_v56, %v1014_v58  ;;  %v1058_v38 = vld [vmem:[#allocation12 + $0x3d8] sm:$0xff] }
 0x3b8   :  { %v1062_v46 = vld [vmem:[#allocation12 + $0x3f8] sm:$0xff] }
 0x3b9   :  { %2682 = vmatpush1.bf16.msra.mxu0 %v6506_v7  ;;  %v6562_v7 = vcombine.low %v1009_v54, %v1013_v55  ;;  %v1065_v54 = vld [vmem:[#allocation12 + $0x410] sm:$0xff] }
 0x3ba   :  { %2764 = vmatpush1.bf16.msra.mxu1 %v6508_v8  ;;  %2683 = vmatprep.subr.bf16.mxu0 %v6515_v9  ;;  %v6564_v8 = vcombine.low %v1010_v56, %v1014_v58  ;;  %v6571_v9 = vcombine.high %v1017_v0, %v1021_v1  ;;  %v1069_v55 = vld [vmem:[#allocation12 + $0x430] sm:$0xff]  ;;  %v1066_v56 = vld [vmem:[#allocation12 + $0x418] sm:$0xff] }
 0x3bb   :  { %2765 = vmatprep.subr.bf16.mxu1 %v6517_v10  ;;  %v6573_v10 = vcombine.high %v1018_v2, %v1022_v4  ;;  %v1070_v58 = vld [vmem:[#allocation12 + $0x438] sm:$0xff] }
 0x3bd   :  { %2684 = vmatpush1.bf16.msra.mxu0 %v6514_v14  ;;  %v6570_v14 = vcombine.low %v1017_v0, %v1021_v1  ;;  %v1073_v0 = vld [vmem:[#allocation12 + $0x450] sm:$0xff] }
 0x3be   :  { %2766 = vmatpush1.bf16.msra.mxu1 %v6516_v15  ;;  %2685 = vmatprep.subr.bf16.mxu0 %v6523_v16  ;;  %v6572_v15 = vcombine.low %v1018_v2, %v1022_v4  ;;  %v6579_v16 = vcombine.high %v1025_v11, %v1029_v12  ;;  %v1077_v1 = vld [vmem:[#allocation12 + $0x470] sm:$0xff]  ;;  %v6618_v2 = vcombine.low %v1065_v54, %v1069_v55  ;;  %v1074_v4 = vld [vmem:[#allocation12 + $0x458] sm:$0xff] }
 0x3bf   :  { %2767 = vmatprep.subr.bf16.mxu1 %v6525_v17  ;;  %v6581_v17 = vcombine.high %v1026_v22, %v1030_v13 }
 0x3c1   :  { %2686 = vmatpush1.bf16.msra.mxu0 %v6522_v24  ;;  %v6578_v24 = vcombine.low %v1025_v11, %v1029_v12  ;;  %v1085_v11 = vld [vmem:[#allocation12 + $0x4b0] sm:$0xff] }
 0x3c2   :  { %2768 = vmatpush1.bf16.msra.mxu1 %v6524_v25  ;;  %2687 = vmatprep.subr.bf16.mxu0 %v6531_v26  ;;  %v6580_v25 = vcombine.low %v1026_v22, %v1030_v13  ;;  %v6587_v26 = vcombine.high %v1033_v18, %v1037_v19  ;;  %v1082_v22 = vld [vmem:[#allocation12 + $0x498] sm:$0xff] }
 0x3c3   :  { %2769 = vmatprep.subr.bf16.mxu1 %v6533_v27  ;;  %v6589_v27 = vcombine.high %v1034_v20, %v1038_v21  ;;  %v1086_v13 = vld [vmem:[#allocation12 + $0x4b8] sm:$0xff] }
 0x3c5   :  { %2688 = vmatpush1.bf16.msra.mxu0 %v6530_v36  ;;  %v6586_v36 = vcombine.low %v1033_v18, %v1037_v19  ;;  %v1089_v18 = vld [vmem:[#allocation12 + $0x4d0] sm:$0xff] }
 0x3c6   :  { %2770 = vmatpush1.bf16.msra.mxu1 %v6532_v39  ;;  %2689 = vmatprep.subr.bf16.mxu0 %v6539_v5  ;;  %v6588_v39 = vcombine.low %v1034_v20, %v1038_v21  ;;  %v6595_v5 = vcombine.high %v1041_v28, %v1045_v29  ;;  %v1093_v19 = vld [vmem:[#allocation12 + $0x4f0] sm:$0xff]  ;;  %v1090_v20 = vld [vmem:[#allocation12 + $0x4d8] sm:$0xff] }
 0x3c7   :  { %2771 = vmatprep.subr.bf16.mxu1 %v6541_v40  ;;  %v6597_v40 = vcombine.high %v1042_v30, %v1046_v34  ;;  %v1094_v21 = vld [vmem:[#allocation12 + $0x4f8] sm:$0xff] }
 0x3c9   :  { %2690 = vmatpush1.bf16.msra.mxu0 %v6538_v45  ;;  %v6594_v45 = vcombine.low %v1041_v28, %v1045_v29  ;;  %v1101_v28 = vld [vmem:[#allocation12 + $0x530] sm:$0xff]  ;;  %v1098_v29 = vld [vmem:[#allocation12 + $0x518] sm:$0xff] }
 0x3ca   :  { %2772 = vmatpush1.bf16.msra.mxu1 %v6540_v31  ;;  %2691 = vmatprep.subr.bf16.mxu0 %v6547_v32  ;;  %v6596_v31 = vcombine.low %v1042_v30, %v1046_v34  ;;  %v6603_v32 = vcombine.high %v1049_v41, %v1053_v42  ;;  %v1102_v30 = vld [vmem:[#allocation12 + $0x538] sm:$0xff]  ;;  %v6644_v34 = vcombine.low %v1090_v20, %v1094_v21 }
 0x3cb   :  { %2773 = vmatprep.subr.bf16.mxu1 %v6549_v33  ;;  %v6605_v33 = vcombine.high %v1050_v43, %v1054_v44 }
 0x3cd   :  { %2692 = vmatpush1.bf16.msra.mxu0 %v6546_v48  ;;  %v6602_v48 = vcombine.low %v1049_v41, %v1053_v42  ;;  %v1106_v41 = vld [vmem:[#allocation12 + $0x558] sm:$0xff] }
 0x3ce   :  { %2774 = vmatpush1.bf16.msra.mxu1 %v6548_v50  ;;  %2693 = vmatprep.subr.bf16.mxu0 %v6555_v51  ;;  %v6604_v50 = vcombine.low %v1050_v43, %v1054_v44  ;;  %v6611_v51 = vcombine.high %v1057_v35, %v1061_v37  ;;  %v1110_v42 = vld [vmem:[#allocation12 + $0x578] sm:$0xff]  ;;  %v6652_v44 = vcombine.low %v1098_v29, %v1102_v30 }
 0x3cf   :  { %2775 = vmatprep.subr.bf16.mxu1 %v6557_v53  ;;  %v6613_v53 = vcombine.high %v1058_v38, %v1062_v46 }
 0x3d1   :  { %2694 = vmatpush1.bf16.msra.mxu0 %v6554_v59  ;;  %v6610_v59 = vcombine.low %v1057_v35, %v1061_v37  ;;  %v1114_v35 = vld [vmem:[#allocation12 + $0x598] sm:$0xff] }
 0x3d2   :  { %2776 = vmatpush1.bf16.msra.mxu1 %v6556_v61  ;;  %2695 = vmatprep.subr.bf16.mxu0 %v6563_v62  ;;  %v6612_v61 = vcombine.low %v1058_v38, %v1062_v46  ;;  %v6619_v62 = vcombine.high %v1065_v54, %v1069_v55  ;;  %v1118_v37 = vld [vmem:[#allocation12 + $0x5b8] sm:$0xff]  ;;  %v6660_v46 = vcombine.low %v1106_v41, %v1110_v42 }
 0x3d3   :  { %2777 = vmatprep.subr.bf16.mxu1 %v6565_v63  ;;  %v6621_v63 = vcombine.high %v1066_v56, %v1070_v58  ;;  %v1122_v54 = vld [vmem:[#allocation12 + $0x5d8] sm:$0xff] }
 0x3d4   :  { %v1126_v55 = vld [vmem:[#allocation12 + $0x5f8] sm:$0xff] }
 0x3d5   :  { %2696 = vmatpush1.bf16.msra.mxu0 %v6562_v7  ;;  %v1078_v7 = vld [vmem:[#allocation12 + $0x478] sm:$0xff] }
 0x3d6   :  { %2778 = vmatpush1.bf16.msra.mxu1 %v6564_v8  ;;  %2697 = vmatprep.subr.bf16.mxu0 %v6571_v9  ;;  %v6620_v8 = vcombine.low %v1066_v56, %v1070_v58  ;;  %v6627_v9 = vcombine.high %v1073_v0, %v1077_v1  ;;  %v6629_v12 = vcombine.high %v1074_v4, %v1078_v7 }
 0x3d7   :  { %2779 = vmatprep.subr.bf16.mxu1 %v6573_v10  ;;  %v1081_v10 = vld [vmem:[#allocation12 + $0x490] sm:$0xff]  ;;  %v6668_v58 = vcombine.low %v1114_v35, %v1118_v37 }
 0x3d9   :  { %2698 = vmatpush1.bf16.msra.mxu0 %v6570_v14  ;;  %v6626_v14 = vcombine.low %v1073_v0, %v1077_v1  ;;  %v1130_v0 = vld [vmem:[#allocation12 + $0x618] sm:$0xff] }
 0x3da   :  { %2780 = vmatpush1.bf16.msra.mxu1 %v6572_v15  ;;  %2699 = vmatprep.subr.bf16.mxu0 %v6579_v16  ;;  %v6628_v15 = vcombine.low %v1074_v4, %v1078_v7  ;;  %v6635_v16 = vcombine.high %v1081_v10, %v1085_v11  ;;  %v1134_v1 = vld [vmem:[#allocation12 + $0x638] sm:$0xff]  ;;  %v6676_v4 = vcombine.low %v1122_v54, %v1126_v55 }
 0x3db   :  { %2781 = vmatprep.subr.bf16.mxu1 %v6581_v17  ;;  %v6637_v17 = vcombine.high %v1082_v22, %v1086_v13 }
 0x3dd   :  { %2700 = vmatpush1.bf16.msra.mxu0 %v6578_v24  ;;  %v6634_v24 = vcombine.low %v1081_v10, %v1085_v11  ;;  %v1141_v10 = vld [vmem:[#allocation12 + $0x670] sm:$0xff]  ;;  %v1138_v11 = vld [vmem:[#allocation12 + $0x658] sm:$0xff] }
 0x3de   :  { %2782 = vmatpush1.bf16.msra.mxu1 %v6580_v25  ;;  %2701 = vmatprep.subr.bf16.mxu0 %v6587_v26  ;;  %v6643_v25 = vcombine.high %v1089_v18, %v1093_v19  ;;  %v6645_v26 = vcombine.high %v1090_v20, %v1094_v21 }
 0x3df   :  { %2783 = vmatprep.subr.bf16.mxu1 %v6589_v27  ;;  %v1097_v27 = vld [vmem:[#allocation12 + $0x510] sm:$0xff] }
 0x3e0   :  { %v6650_v43 = vcombine.low %v1097_v27, %v1101_v28 }
 0x3e1   :  { %2702 = vmatpush1.bf16.msra.mxu0 %v6586_v36  ;;  %v6651_v36 = vcombine.high %v1097_v27, %v1101_v28  ;;  %v1154_v27 = vld [vmem:[#allocation12 + $0x6d8] sm:$0xff] }
 0x3e2   :  { %2784 = vmatpush1.bf16.msra.mxu1 %v6588_v39  ;;  %2703 = vmatprep.subr.bf16.mxu0 %v6595_v5  ;;  %v6653_v39 = vcombine.high %v1098_v29, %v1102_v30  ;;  %v1105_v5 = vld [vmem:[#allocation12 + $0x550] sm:$0xff]  ;;  %v1158_v28 = vld [vmem:[#allocation12 + $0x6f8] sm:$0xff] }
 0x3e3   :  { %2785 = vmatprep.subr.bf16.mxu1 %v6597_v40  ;;  %v1109_v40 = vld [vmem:[#allocation12 + $0x570] sm:$0xff] }
 0x3e4   :  { %v6658_v38 = vcombine.low %v1105_v5, %v1109_v40 }
 0x3e5   :  { %2704 = vmatpush1.bf16.msra.mxu0 %v6594_v45  ;;  %v6659_v45 = vcombine.high %v1105_v5, %v1109_v40  ;;  %v1162_v5 = vld [vmem:[#allocation12 + $0x718] sm:$0xff] }
 0x3e6   :  { %2786 = vmatpush1.bf16.msra.mxu1 %v6596_v31  ;;  %2705 = vmatprep.subr.bf16.mxu0 %v6603_v32  ;;  %v6661_v31 = vcombine.high %v1106_v41, %v1110_v42  ;;  %v1113_v32 = vld [vmem:[#allocation12 + $0x590] sm:$0xff]  ;;  %v1166_v40 = vld [vmem:[#allocation12 + $0x738] sm:$0xff]  ;;  %v6708_v42 = vcombine.low %v1154_v27, %v1158_v28 }
 0x3e7   :  { %2787 = vmatprep.subr.bf16.mxu1 %v6605_v33  ;;  %v1117_v33 = vld [vmem:[#allocation12 + $0x5b0] sm:$0xff] }
 0x3e8   :  { %v6666_v56 = vcombine.low %v1113_v32, %v1117_v33 }
 0x3e9   :  { %2706 = vmatpush1.bf16.msra.mxu0 %v6602_v48  ;;  %v6667_v48 = vcombine.high %v1113_v32, %v1117_v33  ;;  %v1170_v32 = vld [vmem:[#allocation12 + $0x758] sm:$0xff] }
 0x3ea   :  { %2788 = vmatpush1.bf16.msra.mxu1 %v6604_v50  ;;  %2707 = vmatprep.subr.bf16.mxu0 %v6611_v51  ;;  %v6669_v50 = vcombine.high %v1114_v35, %v1118_v37  ;;  %v1121_v51 = vld [vmem:[#allocation12 + $0x5d0] sm:$0xff]  ;;  %v1174_v33 = vld [vmem:[#allocation12 + $0x778] sm:$0xff]  ;;  %v6716_v37 = vcombine.low %v1162_v5, %v1166_v40 }
 0x3eb   :  { %2789 = vmatprep.subr.bf16.mxu1 %v6613_v53  ;;  %v1125_v53 = vld [vmem:[#allocation12 + $0x5f0] sm:$0xff] }
 0x3ed   :  { %2708 = vmatpush1.bf16.msra.mxu0 %v6610_v59  ;;  %v6675_v59 = vcombine.high %v1121_v51, %v1125_v53 }
 0x3ee   :  { %2790 = vmatpush1.bf16.msra.mxu1 %v6612_v61  ;;  %2718 = vmatprep.subr.bf16.mxu0 %v6619_v62  ;;  %v6677_v61 = vcombine.high %v1122_v54, %v1126_v55  ;;  %v1129_v62 = vld [vmem:[#allocation12 + $0x610] sm:$0xff]  ;;  %v6724_v55 = vcombine.low %v1170_v32, %v1174_v33 }
 0x3ef   :  { %2800 = vmatprep.subr.bf16.mxu1 %v6621_v63  ;;  %v1133_v63 = vld [vmem:[#allocation12 + $0x630] sm:$0xff] }
 0x3f0   :  { %2710 = vmatmul.mubr.bf16.vlgmr.msra.gmra.mrb[8].mxu0 %v8654_v23  ;;  %v6683_v7 = vcombine.high %v1129_v62, %v1133_v63 }
 0x3f1   :  { %2792 = vmatmul.mubr.bf16.vlgmr.msra.gmra.mrb[16].mxu1 %v8654_v23  ;;  %2719 = vmatpush1.bf16.msra.mxu0 %v6618_v2  ;;  %v6636_v23 = vcombine.low %v1082_v22, %v1086_v13  ;;  %v6674_v2 = vcombine.low %v1121_v51, %v1125_v53  ;;  %v6682_v22 = vcombine.low %v1129_v62, %v1133_v63  ;;  %v1178_v51 = vld [vmem:[#allocation12 + $0x798] sm:$0xff] }
 0x3f2   :  { %2750 = vmatprep.mubr.bf16.mxu0 %v8676_v47  ;;  %2801 = vmatpush1.bf16.msra.mxu1 %v6620_v8  ;;  %v6685_v8 = vcombine.high %v1130_v0, %v1134_v1  ;;  %v6684_v13 = vcombine.low %v1130_v0, %v1134_v1  ;;  %v1182_v53 = vld [vmem:[#allocation12 + $0x7b8] sm:$0xff] }
 0x3f3   :  { %2832 = vmatprep.mubr.bf16.mxu1 %v8676_v47  ;;  %2720 = vmatprep.subr.bf16.mxu0 %v6627_v9  ;;  %v6642_v47 = vcombine.low %v1089_v18, %v1093_v19  ;;  %v1137_v9 = vld [vmem:[#allocation12 + $0x650] sm:$0xff]  ;;  %v1146_v18 = vld [vmem:[#allocation12 + $0x698] sm:$0xff]  ;;  %v6732_v1 = vcombine.low %v1178_v51, %v1182_v53 }
 0x3f4   :  { %2802 = vmatprep.subr.bf16.mxu1 %v6629_v12  ;;  %v1142_v12 = vld [vmem:[#allocation12 + $0x678] sm:$0xff]  ;;  %v6690_v20 = vcombine.low %v1137_v9, %v1141_v10 }
 0x3f5   :  { %2721 = vmatpush1.bf16.msra.mxu0 %v6626_v14  ;;  %v6691_v14 = vcombine.high %v1137_v9, %v1141_v10  ;;  %v1150_v19 = vld [vmem:[#allocation12 + $0x6b8] sm:$0xff]  ;;  %v6692_v21 = vcombine.low %v1138_v11, %v1142_v12  ;;  %v7526_v9 = vld [vmem:[#allocation15 + $0x4] ss:$28 sps:$4 sm:$0xff]   ;;  %v7529_v10 = vld [vmem:[#allocation15 + $0xc] ss:$28 sps:$4 sm:$0xff]  }
 0x3f6   :  { %2803 = vmatpush1.bf16.msra.mxu1 %v6628_v15  ;;  %2722 = vmatprep.subr.bf16.mxu0 %v6635_v16  ;;  %v6693_v15 = vcombine.high %v1138_v11, %v1142_v12  ;;  %v1145_v16 = vld [vmem:[#allocation12 + $0x690] sm:$0xff]  ;;  %v6700_v30 = vcombine.low %v1146_v18, %v1150_v19  ;;  %v1186_v62 = vld [vmem:[#allocation12 + $0x7d8] sm:$0xff]  ;;  %v7524_v11 = vld [vmem:[#allocation15] ss:$28 sps:$4 sm:$0xff]  }
 0x3f7   :  { %2804 = vmatprep.subr.bf16.mxu1 %v6637_v17  ;;  %v1149_v17 = vld [vmem:[#allocation12 + $0x6b0] sm:$0xff]  ;;  %v1190_v63 = vld [vmem:[#allocation12 + $0x7f8] sm:$0xff] }
 0x3f8   :  { %v6698_v29 = vcombine.low %v1145_v16, %v1149_v17  ;;  %v7527_v12 = vld [vmem:[#allocation15 + $0x8] ss:$28 sps:$4 sm:$0xff]  }
 0x3f9   :  { %2723 = vmatpush1.bf16.msra.mxu0 %v6634_v24  ;;  %v6699_v24 = vcombine.high %v1145_v16, %v1149_v17  ;;  %v7538_v16 = vld [vmem:[#allocation15 + $0x74] ss:$28 sps:$4 sm:$0xff]   ;;  %v7541_v17 = vld [vmem:[#allocation15 + $0x7c] ss:$28 sps:$4 sm:$0xff]  }
 0x3fa   :  { %2805 = vmatpush1.bf16.msra.mxu1 %v6636_v23  ;;  %2724 = vmatprep.subr.bf16.mxu0 %v6643_v25  ;;  %v6701_v23 = vcombine.high %v1146_v18, %v1150_v19  ;;  %v1153_v25 = vld [vmem:[#allocation12 + $0x6d0] sm:$0xff]  ;;  %v7539_v19 = vld [vmem:[#allocation15 + $0x78] ss:$28 sps:$4 sm:$0xff]  }
 0x3fb   :  { %2806 = vmatprep.subr.bf16.mxu1 %v6645_v26  ;;  %v1157_v26 = vld [vmem:[#allocation12 + $0x6f0] sm:$0xff] }
 0x3fc   :  { %v6706_v41 = vcombine.low %v1153_v25, %v1157_v26  ;;  %v7536_v18 = vld [vmem:[#allocation15 + $0x70] ss:$28 sps:$4 sm:$0xff]  }
 0x3fd   :  { %2725 = vmatpush1.bf16.msra.mxu0 %v6642_v47  ;;  %v6707_v47 = vcombine.high %v1153_v25, %v1157_v26  ;;  %v7553_v25 = vld [vmem:[#allocation15 + $0xec] ss:$28 sps:$4 sm:$0xff]   ;;  %v7548_v26 = vld [vmem:[#allocation15 + $0xe0] ss:$28 sps:$4 sm:$0xff]  }
 0x3fe   :  { %2807 = vmatpush1.bf16.msra.mxu1 %v6644_v34  ;;  %2726 = vmatprep.subr.bf16.mxu0 %v6651_v36  ;;  %v6709_v34 = vcombine.high %v1154_v27, %v1158_v28  ;;  %v1161_v36 = vld [vmem:[#allocation12 + $0x710] sm:$0xff]  ;;  %v7556_v28 = vld [vmem:[#allocation15 + $0x11c] ss:$28 sps:$4 sm:$0xff]  }
 0x3ff   :  { %2808 = vmatprep.subr.bf16.mxu1 %v6653_v39  ;;  %v1165_v39 = vld [vmem:[#allocation12 + $0x730] sm:$0xff] }
 0x400   :  { %v6714_v35 = vcombine.low %v1161_v36, %v1165_v39  ;;  %v7551_v27 = vld [vmem:[#allocation15 + $0xe8] ss:$28 sps:$4 sm:$0xff]  }
 0x401   :  { %2727 = vmatpush1.bf16.msra.mxu0 %v6650_v43  ;;  %v6715_v43 = vcombine.high %v1161_v36, %v1165_v39  ;;  %v7565_v36 = vld [vmem:[#allocation15 + $0x15c] ss:$28 sps:$4 sm:$0xff]   ;;  %v7560_v39 = vld [vmem:[#allocation15 + $0x150] ss:$28 sps:$4 sm:$0xff]  }
 0x402   :  { %2809 = vmatpush1.bf16.msra.mxu1 %v6652_v44  ;;  %2728 = vmatprep.subr.bf16.mxu0 %v6659_v45  ;;  %v6717_v44 = vcombine.high %v1162_v5, %v1166_v40  ;;  %v1169_v45 = vld [vmem:[#allocation12 + $0x750] sm:$0xff]  ;;  %v7563_v5 = vld [vmem:[#allocation15 + $0x158] ss:$28 sps:$4 sm:$0xff]  }
 0x403   :  { %2810 = vmatprep.subr.bf16.mxu1 %v6661_v31  ;;  %v1173_v31 = vld [vmem:[#allocation12 + $0x770] sm:$0xff] }
 0x404   :  { %v6722_v54 = vcombine.low %v1169_v45, %v1173_v31  ;;  %v7568_v40 = vld [vmem:[#allocation15 + $0x18c] ss:$28 sps:$4 sm:$0xff]  }
 0x405   :  { %2729 = vmatpush1.bf16.msra.mxu0 %v6658_v38  ;;  %v6723_v38 = vcombine.high %v1169_v45, %v1173_v31  ;;  %v7577_v45 = vld [vmem:[#allocation15 + $0x1cc] ss:$28 sps:$4 sm:$0xff]   ;;  %v7572_v31 = vld [vmem:[#allocation15 + $0x1c0] ss:$28 sps:$4 sm:$0xff]  }
 0x406   :  { %2811 = vmatpush1.bf16.msra.mxu1 %v6660_v46  ;;  %2730 = vmatprep.subr.bf16.mxu0 %v6667_v48  ;;  %v6725_v46 = vcombine.high %v1170_v32, %v1174_v33  ;;  %v1177_v48 = vld [vmem:[#allocation12 + $0x790] sm:$0xff]  ;;  %v7580_v33 = vld [vmem:[#allocation15 + $0x1fc] ss:$28 sps:$4 sm:$0xff]  }
 0x407   :  { %2812 = vmatprep.subr.bf16.mxu1 %v6669_v50  ;;  %v1181_v50 = vld [vmem:[#allocation12 + $0x7b0] sm:$0xff] }
 0x408   :  { %v6730_v0 = vcombine.low %v1177_v48, %v1181_v50  ;;  %v7575_v32 = vld [vmem:[#allocation15 + $0x1c8] ss:$28 sps:$4 sm:$0xff]  }
 0x409   :  { %2731 = vmatpush1.bf16.msra.mxu0 %v6666_v56  ;;  %v6731_v56 = vcombine.high %v1177_v48, %v1181_v50  ;;  %v7589_v48 = vld [vmem:[#allocation15 + $0x23c] ss:$28 sps:$4 sm:$0xff]   ;;  %v7584_v50 = vld [vmem:[#allocation15 + $0x230] ss:$28 sps:$4 sm:$0xff]  }
 0x40a   :  { %2813 = vmatpush1.bf16.msra.mxu1 %v6668_v58  ;;  %2732 = vmatprep.subr.bf16.mxu0 %v6675_v59  ;;  %v6733_v58 = vcombine.high %v1178_v51, %v1182_v53  ;;  %v1185_v59 = vld [vmem:[#allocation12 + $0x7d0] sm:$0xff]  ;;  %v7587_v51 = vld [vmem:[#allocation15 + $0x238] ss:$28 sps:$4 sm:$0xff]  }
 0x40b   :  { %2814 = vmatprep.subr.bf16.mxu1 %v6677_v61  ;;  %v1189_v61 = vld [vmem:[#allocation12 + $0x7f0] sm:$0xff] }
 0x40c   :  { %v7592_v53 = vld [vmem:[#allocation15 + $0x26c] ss:$28 sps:$4 sm:$0xff]  }
 0x40d   :  { %2733 = vmatpush1.bf16.msra.mxu0 %v6674_v2  ;;  %v6739_v2 = vcombine.high %v1185_v59, %v1189_v61 }
 0x40e   :  { %2815 = vmatpush1.bf16.msra.mxu1 %v6676_v4  ;;  %2734 = vmatprep.subr.bf16.mxu0 %v6683_v7  ;;  %v6741_v4 = vcombine.high %v1186_v62, %v1190_v63  ;;  %v6738_v7 = vcombine.low %v1185_v59, %v1189_v61  ;;  %v7601_v59 = vld [vmem:[#allocation15 + $0x2ac] ss:$28 sps:$4 sm:$0xff]   ;;  %v7596_v61 = vld [vmem:[#allocation15 + $0x2a0] ss:$28 sps:$4 sm:$0xff]  }
 0x40f   :  { %2816 = vmatprep.subr.bf16.mxu1 %v6685_v8  ;;  %v6740_v8 = vcombine.low %v1186_v62, %v1190_v63  ;;  %v7599_v62 = vld [vmem:[#allocation15 + $0x2a8] ss:$28 sps:$4 sm:$0xff]   ;;  %v7604_v63 = vld [vmem:[#allocation15 + $0x2dc] ss:$28 sps:$4 sm:$0xff]  }
 0x411   :  { %2735 = vmatpush1.bf16.msra.mxu0 %v6682_v22  ;;  %v7532_v22 = vld [vmem:[#allocation15 + $0x3c] ss:$28 sps:$4 sm:$0xff]  }
 0x412   :  { %2817 = vmatpush1.bf16.msra.mxu1 %v6684_v13  ;;  %2736 = vmatprep.subr.bf16.mxu0 %v6691_v14  ;;  %v7535_v13 = vld [vmem:[#allocation15 + $0x44] ss:$28 sps:$4 sm:$0xff]   ;;  %v7530_v14 = vld [vmem:[#allocation15 + $0x38] ss:$28 sps:$4 sm:$0xff]  }
 0x413   :  { %2818 = vmatprep.subr.bf16.mxu1 %v6693_v15  ;;  %v7533_v15 = vld [vmem:[#allocation15 + $0x40] ss:$28 sps:$4 sm:$0xff]  }
 0x415   :  { %2737 = vmatpush1.bf16.msra.mxu0 %v6690_v20  ;;  %v7544_v20 = vld [vmem:[#allocation15 + $0xac] ss:$28 sps:$4 sm:$0xff]  }
 0x416   :  { %2819 = vmatpush1.bf16.msra.mxu1 %v6692_v21  ;;  %2738 = vmatprep.subr.bf16.mxu0 %v6699_v24  ;;  %v7547_v21 = vld [vmem:[#allocation15 + $0xb4] ss:$28 sps:$4 sm:$0xff]   ;;  %v7542_v24 = vld [vmem:[#allocation15 + $0xa8] ss:$28 sps:$4 sm:$0xff]  }
 0x417   :  { %2820 = vmatprep.subr.bf16.mxu1 %v6701_v23  ;;  %v7550_v23 = vld [vmem:[#allocation15 + $0xe4] ss:$28 sps:$4 sm:$0xff]  }
 0x419   :  { %2739 = vmatpush1.bf16.msra.mxu0 %v6698_v29  ;;  %v7559_v29 = vld [vmem:[#allocation15 + $0x124] ss:$28 sps:$4 sm:$0xff]  }
 0x41a   :  { %2821 = vmatpush1.bf16.msra.mxu1 %v6700_v30  ;;  %2740 = vmatprep.subr.bf16.mxu0 %v6707_v47  ;;  %v7554_v30 = vld [vmem:[#allocation15 + $0x118] ss:$28 sps:$4 sm:$0xff]   ;;  %v7557_v47 = vld [vmem:[#allocation15 + $0x120] ss:$28 sps:$4 sm:$0xff]  }
 0x41b   :  { %2822 = vmatprep.subr.bf16.mxu1 %v6709_v34  ;;  %v7562_v34 = vld [vmem:[#allocation15 + $0x154] ss:$28 sps:$4 sm:$0xff]  }
 0x41d   :  { %2741 = vmatpush1.bf16.msra.mxu0 %v6706_v41  ;;  %v7571_v41 = vld [vmem:[#allocation15 + $0x194] ss:$28 sps:$4 sm:$0xff]  }
 0x41e   :  { %2823 = vmatpush1.bf16.msra.mxu1 %v6708_v42  ;;  %2742 = vmatprep.subr.bf16.mxu0 %v6715_v43  ;;  %v7566_v42 = vld [vmem:[#allocation15 + $0x188] ss:$28 sps:$4 sm:$0xff]   ;;  %v7569_v43 = vld [vmem:[#allocation15 + $0x190] ss:$28 sps:$4 sm:$0xff]  }
 0x41f   :  { %2824 = vmatprep.subr.bf16.mxu1 %v6717_v44  ;;  %v7574_v44 = vld [vmem:[#allocation15 + $0x1c4] ss:$28 sps:$4 sm:$0xff]  }
 0x421   :  { %2743 = vmatpush1.bf16.msra.mxu0 %v6714_v35  ;;  %v7583_v35 = vld [vmem:[#allocation15 + $0x204] ss:$28 sps:$4 sm:$0xff]  }
 0x422   :  { %2825 = vmatpush1.bf16.msra.mxu1 %v6716_v37  ;;  %2744 = vmatprep.subr.bf16.mxu0 %v6723_v38  ;;  %v7578_v37 = vld [vmem:[#allocation15 + $0x1f8] ss:$28 sps:$4 sm:$0xff]   ;;  %v7581_v38 = vld [vmem:[#allocation15 + $0x200] ss:$28 sps:$4 sm:$0xff]  }
 0x423   :  { %2826 = vmatprep.subr.bf16.mxu1 %v6725_v46  ;;  %v7586_v46 = vld [vmem:[#allocation15 + $0x234] ss:$28 sps:$4 sm:$0xff]  }
 0x425   :  { %2745 = vmatpush1.bf16.msra.mxu0 %v6722_v54  ;;  %v7595_v54 = vld [vmem:[#allocation15 + $0x274] ss:$28 sps:$4 sm:$0xff]  }
 0x426   :  { %2827 = vmatpush1.bf16.msra.mxu1 %v6724_v55  ;;  %2746 = vmatprep.subr.bf16.mxu0 %v6731_v56  ;;  %v7590_v55 = vld [vmem:[#allocation15 + $0x268] ss:$28 sps:$4 sm:$0xff]   ;;  %v7593_v56 = vld [vmem:[#allocation15 + $0x270] ss:$28 sps:$4 sm:$0xff]  }
 0x427   :  { %2828 = vmatprep.subr.bf16.mxu1 %v6733_v58  ;;  %v7598_v58 = vld [vmem:[#allocation15 + $0x2a4] ss:$28 sps:$4 sm:$0xff]  }
 0x429   :  { %2747 = vmatpush1.bf16.msra.mxu0 %v6730_v0  ;;  %v7607_v0 = vld [vmem:[#allocation15 + $0x2e4] ss:$28 sps:$4 sm:$0xff]  }
 0x42a   :  { %2829 = vmatpush1.bf16.msra.mxu1 %v6732_v1  ;;  %2748 = vmatprep.subr.bf16.mxu0 %v6739_v2  ;;  %v7602_v1 = vld [vmem:[#allocation15 + $0x2d8] ss:$28 sps:$4 sm:$0xff]   ;;  %v7605_v2 = vld [vmem:[#allocation15 + $0x2e0] ss:$28 sps:$4 sm:$0xff]  }
 0x42b   :  { %2830 = vmatprep.subr.bf16.mxu1 %v6741_v4  ;;  %v7610_v4 = vld [vmem:[#allocation15 + $0x314] ss:$28 sps:$4 sm:$0xff]  }
 0x42d   :  { %2749 = vmatpush1.bf16.msra.mxu0 %v6738_v7  ;;  %v7613_v7 = vld [vmem:[#allocation15 + $0x31c] ss:$28 sps:$4 sm:$0xff]  }
 0x42e   :  { %2831 = vmatpush1.bf16.msra.mxu1 %v6740_v8  ;;  %5718 = vmatprep.subr.bf16.mxu0 %v7526_v9  ;;  %v7608_v8 = vld [vmem:[#allocation15 + $0x310] ss:$28 sps:$4 sm:$0xff]   ;;  %v7611_v9 = vld [vmem:[#allocation15 + $0x318] ss:$28 sps:$4 sm:$0xff]  }
 0x42f   :  { %5882 = vmatprep.subr.bf16.mxu1 %v7529_v10  ;;  %v7616_v10 = vld [vmem:[#allocation15 + $0x34c] ss:$28 sps:$4 sm:$0xff]  }
 0x430   :  { %2751 = vmatmul.mubr.bf16.vlgmr.msra.gmra.mrb[8].mxu0 %v8678_v49 }
 0x431   :  { %2833 = vmatmul.mubr.bf16.vlgmr.msra.gmra.mrb[16].mxu1 %v8678_v49  ;;  %5719 = vmatpush1.bf16.msra.mxu0 %v7524_v11  ;;  %v7545_v49 = vld [vmem:[#allocation15 + $0xb0] ss:$28 sps:$4 sm:$0xff]  }
 0x432   :  { %5883 = vmatpush1.bf16.msra.mxu1 %v7527_v12  ;;  %5720 = vmatprep.subr.bf16.mxu0 %v7532_v22  ;;  %v7619_v11 = vld [vmem:[#allocation15 + $0x354] ss:$28 sps:$4 sm:$0xff]   ;;  %v7614_v12 = vld [vmem:[#allocation15 + $0x348] ss:$28 sps:$4 sm:$0xff]  }
 0x433   :  { %5884 = vmatprep.subr.bf16.mxu1 %v7535_v13  ;;  %v7617_v22 = vld [vmem:[#allocation15 + $0x350] ss:$28 sps:$4 sm:$0xff]   ;;  %v7622_v13 = vld [vmem:[#allocation15 + $0x384] ss:$28 sps:$4 sm:$0xff]  }
 0x435   :  { %5721 = vmatpush1.bf16.msra.mxu0 %v7530_v14  ;;  %v7625_v14 = vld [vmem:[#allocation15 + $0x38c] ss:$28 sps:$4 sm:$0xff]  }
 0x436   :  { %5885 = vmatpush1.bf16.msra.mxu1 %v7533_v15  ;;  %5722 = vmatprep.subr.bf16.mxu0 %v7538_v16  ;;  %v8692_v15 = vld [vmem:[#allocation13] sm:$0xff] }
 0x437   :  { %5886 = vmatprep.subr.bf16.mxu1 %v7541_v17  ;;  %v1196_v16 = vrot.slane %v8692_v15, %v8619_v57  ;;  %v1200_v17 = vrot.slane %v8692_v15, %v8622_v60 }
 0x439   :  { %5723 = vmatpush1.bf16.msra.mxu0 %v7536_v18  ;;  %v1208_v18 = vrot.slane %v8692_v15, %v8670_v6 }
 0x43a   :  { %5887 = vmatpush1.bf16.msra.mxu1 %v7539_v19  ;;  %5724 = vmatprep.subr.bf16.mxu0 %v7544_v20 }
 0x43b   :  { %5888 = vmatprep.subr.bf16.mxu1 %v7547_v21 }
 0x43d   :  { %5725 = vmatpush1.bf16.msra.mxu0 %v7542_v24 }
 0x43e   :  { %5889 = vmatpush1.bf16.msra.mxu1 %v7545_v49  ;;  %5726 = vmatprep.subr.bf16.mxu0 %v7550_v23 }
 0x43f   :  { %5890 = vmatprep.subr.bf16.mxu1 %v7553_v25 }
 0x441   :  { %5727 = vmatpush1.bf16.msra.mxu0 %v7548_v26 }
 0x442   :  { %5891 = vmatpush1.bf16.msra.mxu1 %v7551_v27  ;;  %5728 = vmatprep.subr.bf16.mxu0 %v7556_v28 }
 0x443   :  { %5892 = vmatprep.subr.bf16.mxu1 %v7559_v29 }
 0x445   :  { %5729 = vmatpush1.bf16.msra.mxu0 %v7554_v30 }
 0x446   :  { %5893 = vmatpush1.bf16.msra.mxu1 %v7557_v47  ;;  %5730 = vmatprep.subr.bf16.mxu0 %v7562_v34 }
 0x447   :  { %5894 = vmatprep.subr.bf16.mxu1 %v7565_v36 }
 0x449   :  { %5731 = vmatpush1.bf16.msra.mxu0 %v7560_v39 }
 0x44a   :  { %5895 = vmatpush1.bf16.msra.mxu1 %v7563_v5  ;;  %5732 = vmatprep.subr.bf16.mxu0 %v7568_v40 }
 0x44b   :  { %5896 = vmatprep.subr.bf16.mxu1 %v7571_v41  ;;  %v7620_v41 = vld [vmem:[#allocation15 + $0x380] ss:$28 sps:$4 sm:$0xff]  }
 0x44d   :  { %5733 = vmatpush1.bf16.msra.mxu0 %v7566_v42  ;;  %v7623_v42 = vld [vmem:[#allocation15 + $0x388] ss:$28 sps:$4 sm:$0xff]  }
 0x44e   :  { %5897 = vmatpush1.bf16.msra.mxu1 %v7569_v43  ;;  %5734 = vmatprep.subr.bf16.mxu0 %v7574_v44  ;;  %v7628_v44 = vld [vmem:[#allocation15 + $0x3bc] ss:$28 sps:$4 sm:$0xff]  }
 0x44f   :  { %5898 = vmatprep.subr.bf16.mxu1 %v7577_v45  ;;  %v7631_v45 = vld [vmem:[#allocation15 + $0x3c4] ss:$28 sps:$4 sm:$0xff]  }
 0x451   :  { %5735 = vmatpush1.bf16.msra.mxu0 %v7572_v31 }
 0x452   :  { %5899 = vmatpush1.bf16.msra.mxu1 %v7575_v32  ;;  %5736 = vmatprep.subr.bf16.mxu0 %v7580_v33  ;;  %v7626_v32 = vld [vmem:[#allocation15 + $0x3b8] ss:$28 sps:$4 sm:$0xff]   ;;  %v7629_v33 = vld [vmem:[#allocation15 + $0x3c0] ss:$28 sps:$4 sm:$0xff]  }
 0x453   :  { %5900 = vmatprep.subr.bf16.mxu1 %v7583_v35  ;;  %v7634_v35 = vld [vmem:[#allocation15 + $0x3f4] ss:$28 sps:$4 sm:$0xff]  }
 0x455   :  { %5737 = vmatpush1.bf16.msra.mxu0 %v7578_v37  ;;  %v7637_v37 = vld [vmem:[#allocation15 + $0x3fc] ss:$28 sps:$4 sm:$0xff]  }
 0x456   :  { %5901 = vmatpush1.bf16.msra.mxu1 %v7581_v38  ;;  %5738 = vmatprep.subr.bf16.mxu0 %v7586_v46  ;;  %v7632_v38 = vld [vmem:[#allocation15 + $0x3f0] ss:$28 sps:$4 sm:$0xff]   ;;  %v7635_v46 = vld [vmem:[#allocation15 + $0x3f8] ss:$28 sps:$4 sm:$0xff]  }
 0x457   :  { %5902 = vmatprep.subr.bf16.mxu1 %v7589_v48  ;;  %v7640_v48 = vld [vmem:[#allocation15 + $0x42c] ss:$28 sps:$4 sm:$0xff]  }
 0x459   :  { %5739 = vmatpush1.bf16.msra.mxu0 %v7584_v50  ;;  %v7643_v50 = vld [vmem:[#allocation15 + $0x434] ss:$28 sps:$4 sm:$0xff]  }
 0x45a   :  { %5903 = vmatpush1.bf16.msra.mxu1 %v7587_v51  ;;  %5740 = vmatprep.subr.bf16.mxu0 %v7592_v53  ;;  %v7638_v51 = vld [vmem:[#allocation15 + $0x428] ss:$28 sps:$4 sm:$0xff]   ;;  %v7641_v53 = vld [vmem:[#allocation15 + $0x430] ss:$28 sps:$4 sm:$0xff]  }
 0x45b   :  { %5904 = vmatprep.subr.bf16.mxu1 %v7595_v54  ;;  %v7646_v54 = vld [vmem:[#allocation15 + $0x464] ss:$28 sps:$4 sm:$0xff]  }
 0x45d   :  { %5741 = vmatpush1.bf16.msra.mxu0 %v7590_v55  ;;  %v7649_v55 = vld [vmem:[#allocation15 + $0x46c] ss:$28 sps:$4 sm:$0xff]  }
 0x45e   :  { %5905 = vmatpush1.bf16.msra.mxu1 %v7593_v56  ;;  %5742 = vmatprep.subr.bf16.mxu0 %v7598_v58  ;;  %v7644_v56 = vld [vmem:[#allocation15 + $0x460] ss:$28 sps:$4 sm:$0xff]   ;;  %v7647_v58 = vld [vmem:[#allocation15 + $0x468] ss:$28 sps:$4 sm:$0xff]  }
 0x45f   :  { %5906 = vmatprep.subr.bf16.mxu1 %v7601_v59  ;;  %v7652_v59 = vld [vmem:[#allocation15 + $0x49c] ss:$28 sps:$4 sm:$0xff]  }
 0x461   :  { %5743 = vmatpush1.bf16.msra.mxu0 %v7596_v61  ;;  %v7655_v61 = vld [vmem:[#allocation15 + $0x4a4] ss:$28 sps:$4 sm:$0xff]  }
 0x462   :  { %5907 = vmatpush1.bf16.msra.mxu1 %v7599_v62  ;;  %5744 = vmatprep.subr.bf16.mxu0 %v7604_v63  ;;  %v7650_v62 = vld [vmem:[#allocation15 + $0x498] ss:$28 sps:$4 sm:$0xff]   ;;  %v7653_v63 = vld [vmem:[#allocation15 + $0x4a0] ss:$28 sps:$4 sm:$0xff]  }
 0x463   :  { %5908 = vmatprep.subr.bf16.mxu1 %v7607_v0  ;;  %v7658_v0 = vld [vmem:[#allocation15 + $0x4d4] ss:$28 sps:$4 sm:$0xff]  }
 0x465   :  { %5745 = vmatpush1.bf16.msra.mxu0 %v7602_v1  ;;  %v7661_v1 = vld [vmem:[#allocation15 + $0x4dc] ss:$28 sps:$4 sm:$0xff]  }
 0x466   :  { %5909 = vmatpush1.bf16.msra.mxu1 %v7605_v2  ;;  %5746 = vmatprep.subr.bf16.mxu0 %v7610_v4  ;;  %v7656_v2 = vld [vmem:[#allocation15 + $0x4d0] ss:$28 sps:$4 sm:$0xff]   ;;  %v7659_v4 = vld [vmem:[#allocation15 + $0x4d8] ss:$28 sps:$4 sm:$0xff]  }
 0x467   :  { %5910 = vmatprep.subr.bf16.mxu1 %v7613_v7  ;;  %v7664_v7 = vld [vmem:[#allocation15 + $0x50c] ss:$28 sps:$4 sm:$0xff]  }
 0x469   :  { %5747 = vmatpush1.bf16.msra.mxu0 %v7608_v8  ;;  %v7667_v8 = vld [vmem:[#allocation15 + $0x514] ss:$28 sps:$4 sm:$0xff]  }
 0x46a   :  { %5911 = vmatpush1.bf16.msra.mxu1 %v7611_v9  ;;  %5748 = vmatprep.subr.bf16.mxu0 %v7616_v10  ;;  %v7662_v9 = vld [vmem:[#allocation15 + $0x508] ss:$28 sps:$4 sm:$0xff]   ;;  %v7665_v10 = vld [vmem:[#allocation15 + $0x510] ss:$28 sps:$4 sm:$0xff]  }
 0x46b   :  { %5912 = vmatprep.subr.bf16.mxu1 %v7619_v11  ;;  %v7670_v11 = vld [vmem:[#allocation15 + $0x544] ss:$28 sps:$4 sm:$0xff]  }
 0x46d   :  { %5749 = vmatpush1.bf16.msra.mxu0 %v7614_v12  ;;  %v7673_v12 = vld [vmem:[#allocation15 + $0x54c] ss:$28 sps:$4 sm:$0xff]  }
 0x46e   :  { %5913 = vmatpush1.bf16.msra.mxu1 %v7617_v22  ;;  %5759 = vmatprep.subr.bf16.mxu0 %v7622_v13  ;;  %v7668_v22 = vld [vmem:[#allocation15 + $0x540] ss:$28 sps:$4 sm:$0xff]   ;;  %v7671_v13 = vld [vmem:[#allocation15 + $0x548] ss:$28 sps:$4 sm:$0xff]  }
 0x46f   :  { %5923 = vmatprep.subr.bf16.mxu1 %v7625_v14  ;;  %v7676_v14 = vld [vmem:[#allocation15 + $0x57c] ss:$28 sps:$4 sm:$0xff]  }
 0x483   :  { %v2588_v19 = vpop.f32.mrb[4].mxu0  ;;  %v8700_v20 = vpop.f32.mrb[12].mxu1 }
 0x484   :  { %v7307_v21 = vadd.f32 %v2588_v19, %v1196_v16  ;;  %v2590_v24 = vpop.f32.mrb[5].mxu0  ;;  %v2672_v49 = vpop.f32.mrb[13].mxu1  ;;  %v7679_v16 = vld [vmem:[#allocation15 + $0x584] ss:$28 sps:$4 sm:$0xff]   ;;  %v7682_v19 = vld [vmem:[#allocation15 + $0x5b4] ss:$28 sps:$4 sm:$0xff]  }
 0x485   :  { %v7308_v23 = vadd.f32 %v2590_v24, %v1200_v17  ;;  %v7310_v25 = vadd.f32 %v2672_v49, %v1208_v18  ;;  %v2592_v26 = vpop.f32.mrb[6].mxu0  ;;  %v2674_v27 = vpop.f32.mrb[14].mxu1  ;;  %v7674_v17 = vld [vmem:[#allocation15 + $0x578] ss:$28 sps:$4 sm:$0xff]   ;;  %v7677_v18 = vld [vmem:[#allocation15 + $0x580] ss:$28 sps:$4 sm:$0xff]  }
 0x486   :  { %v2841_v28 = vmul.f32 0.2, %v7307_v21  ;;  %v2593_v29 = vpop.f32.mrb[7].mxu0  ;;  %v2675_v30 = vpop.f32.mrb[15].mxu1  ;;  %v7680_v24 = vld [vmem:[#allocation15 + $0x5b0] ss:$28 sps:$4 sm:$0xff]  }
 0x487   :  { %v2842_v47 = vmul.f32 0.2, %v7308_v23  ;;  %v2844_v34 = vmul.f32 0.2, %v7310_v25  ;;  %v7683_v49 = vld [vmem:[#allocation15 + $0x5b8] ss:$28 sps:$4 sm:$0xff]  }
 0x488   :  { %v2849_v36 = vmax.f32 %v7307_v21, %v2841_v28  ;;  %v7685_v21 = vld [vmem:[#allocation15 + $0x5bc] ss:$28 sps:$4 sm:$0xff]   ;;  %v7686_v26 = vld [vmem:[#allocation15 + $0x5e8] ss:$28 sps:$4 sm:$0xff]   ;;  %v7689_v27 = vld [vmem:[#allocation15 + $0x5f0] ss:$28 sps:$4 sm:$0xff]  }
 0x489   :  { %v2850_v39 = vmax.f32 %v7308_v23, %v2842_v47  ;;  %v2852_v5 = vmax.f32 %v7310_v25, %v2844_v34  ;;  %v7688_v23 = vld [vmem:[#allocation15 + $0x5ec] ss:$28 sps:$4 sm:$0xff]   ;;  %v7691_v25 = vld [vmem:[#allocation15 + $0x5f4] ss:$28 sps:$4 sm:$0xff]   ;;  %v7694_v28 = vld [vmem:[#allocation15 + $0x624] ss:$28 sps:$4 sm:$0xff]   ;;  %v1204_v34 = vrot.slane %v8692_v15, %v8667_v3 }
 0x48a   :  { %v8704_v43 = vpack.c.bf16 %v2849_v36, %v2849_v36  ;;  %v7697_v29 = vld [vmem:[#allocation15 + $0x62c] ss:$28 sps:$4 sm:$0xff]   ;;  %v7692_v30 = vld [vmem:[#allocation15 + $0x620] ss:$28 sps:$4 sm:$0xff]  }
 0x48b   :  { %v8702_v40 = vpack.c.bf16 %v2850_v39, %v2850_v39  ;;  %v8708_v31 = vpack.c.bf16 %v2852_v5, %v2852_v5  ;;  %v7695_v47 = vld [vmem:[#allocation15 + $0x628] ss:$28 sps:$4 sm:$0xff]   ;;  %v7700_v36 = vld [vmem:[#allocation15 + $0x65c] ss:$28 sps:$4 sm:$0xff]  }
 0x48c   :  { %v7703_v39 = vld [vmem:[#allocation15 + $0x664] ss:$28 sps:$4 sm:$0xff]   ;;  %v7698_v5 = vld [vmem:[#allocation15 + $0x658] ss:$28 sps:$4 sm:$0xff]  }
 0x48d   :  { %5750 = vmatprep.mubr.bf16.mxu0 %v8702_v40  ;;  %5914 = vmatprep.mubr.bf16.mxu1 %v8702_v40 }
 0x48e   :  { %5751 = vmatmul.mubr.bf16.vlgmr.msra.gmra.mrb[12].mxu0 %v8704_v43  ;;  %5915 = vmatmul.mubr.bf16.vlgmr.msra.gmra.mrb[20].mxu1 %v8704_v43 }
 0x48f   :  { %5760 = vmatpush1.bf16.msra.mxu0 %v7620_v41  ;;  %5924 = vmatpush1.bf16.msra.mxu1 %v7623_v42  ;;  %v7701_v41 = vld [vmem:[#allocation15 + $0x660] ss:$28 sps:$4 sm:$0xff]   ;;  %v7309_v42 = vadd.f32 %v8700_v20, %v1204_v34  ;;  %v7770_v34 = vld [vmem:[#allocation15 + $0x8f8] ss:$28 sps:$4 sm:$0xff]  }
 0x490   :  { %5791 = vmatprep.mubr.bf16.mxu0 %v8708_v31  ;;  %5955 = vmatprep.mubr.bf16.mxu1 %v8708_v31  ;;  %v7718_v20 = vld [vmem:[#allocation15 + $0x704] ss:$28 sps:$4 sm:$0xff]  }
 0x491   :  { %5761 = vmatprep.subr.bf16.mxu0 %v7628_v44  ;;  %5925 = vmatprep.subr.bf16.mxu1 %v7631_v45  ;;  %v7706_v44 = vld [vmem:[#allocation15 + $0x694] ss:$28 sps:$4 sm:$0xff]   ;;  %v7709_v45 = vld [vmem:[#allocation15 + $0x69c] ss:$28 sps:$4 sm:$0xff]  }
 0x493   :  { %5762 = vmatpush1.bf16.msra.mxu0 %v7626_v32  ;;  %5926 = vmatpush1.bf16.msra.mxu1 %v7629_v33  ;;  %v7704_v32 = vld [vmem:[#allocation15 + $0x690] ss:$28 sps:$4 sm:$0xff]   ;;  %v7707_v33 = vld [vmem:[#allocation15 + $0x698] ss:$28 sps:$4 sm:$0xff]  }
 0x494   :  { %5763 = vmatprep.subr.bf16.mxu0 %v7634_v35  ;;  %5927 = vmatprep.subr.bf16.mxu1 %v7637_v37  ;;  %v2843_v35 = vmul.f32 0.2, %v7309_v42  ;;  %v7712_v37 = vld [vmem:[#allocation15 + $0x6cc] ss:$28 sps:$4 sm:$0xff]  }
 0x497   :  { %5764 = vmatpush1.bf16.msra.mxu0 %v7632_v38  ;;  %5928 = vmatpush1.bf16.msra.mxu1 %v7635_v46  ;;  %v7715_v38 = vld [vmem:[#allocation15 + $0x6d4] ss:$28 sps:$4 sm:$0xff]   ;;  %v7710_v46 = vld [vmem:[#allocation15 + $0x6c8] ss:$28 sps:$4 sm:$0xff]  }
 0x498   :  { %5765 = vmatprep.subr.bf16.mxu0 %v7640_v48  ;;  %5929 = vmatprep.subr.bf16.mxu1 %v7643_v50  ;;  %v7713_v48 = vld [vmem:[#allocation15 + $0x6d0] ss:$28 sps:$4 sm:$0xff]   ;;  %v2851_v50 = vmax.f32 %v7309_v42, %v2843_v35  ;;  %v7779_v42 = vld [vmem:[#allocation15 + $0x938] ss:$28 sps:$4 sm:$0xff]   ;;  %v7790_v35 = vld [vmem:[#allocation15 + $0x9a4] ss:$28 sps:$4 sm:$0xff]  }
 0x49b   :  { %5766 = vmatpush1.bf16.msra.mxu0 %v7638_v51  ;;  %5930 = vmatpush1.bf16.msra.mxu1 %v7641_v53  ;;  %v7721_v51 = vld [vmem:[#allocation15 + $0x70c] ss:$28 sps:$4 sm:$0xff]   ;;  %v7716_v53 = vld [vmem:[#allocation15 + $0x700] ss:$28 sps:$4 sm:$0xff]  }
 0x49c   :  { %5767 = vmatprep.subr.bf16.mxu0 %v7646_v54  ;;  %5931 = vmatprep.subr.bf16.mxu1 %v7649_v55  ;;  %v7719_v54 = vld [vmem:[#allocation15 + $0x708] ss:$28 sps:$4 sm:$0xff]   ;;  %v8717_v55 = vpack.c.bf16 %v2851_v50, %v2851_v50 }
 0x49d   :  { %v7799_v50 = vld [vmem:[#allocation15 + $0x9e4] ss:$28 sps:$4 sm:$0xff]  }
 0x49f   :  { %5768 = vmatpush1.bf16.msra.mxu0 %v7644_v56  ;;  %5932 = vmatpush1.bf16.msra.mxu1 %v7647_v58  ;;  %v7724_v56 = vld [vmem:[#allocation15 + $0x73c] ss:$28 sps:$4 sm:$0xff]   ;;  %v7727_v58 = vld [vmem:[#allocation15 + $0x744] ss:$28 sps:$4 sm:$0xff]  }
 0x4a0   :  { %5769 = vmatprep.subr.bf16.mxu0 %v7652_v59  ;;  %5933 = vmatprep.subr.bf16.mxu1 %v7655_v61  ;;  %v7722_v59 = vld [vmem:[#allocation15 + $0x738] ss:$28 sps:$4 sm:$0xff]   ;;  %v7725_v61 = vld [vmem:[#allocation15 + $0x740] ss:$28 sps:$4 sm:$0xff]  }
 0x4a3   :  { %5770 = vmatpush1.bf16.msra.mxu0 %v7650_v62  ;;  %5934 = vmatpush1.bf16.msra.mxu1 %v7653_v63  ;;  %v7730_v62 = vld [vmem:[#allocation15 + $0x774] ss:$28 sps:$4 sm:$0xff]   ;;  %v7733_v63 = vld [vmem:[#allocation15 + $0x77c] ss:$28 sps:$4 sm:$0xff]  }
 0x4a4   :  { %5771 = vmatprep.subr.bf16.mxu0 %v7658_v0  ;;  %5935 = vmatprep.subr.bf16.mxu1 %v7661_v1  ;;  %v7728_v0 = vld [vmem:[#allocation15 + $0x770] ss:$28 sps:$4 sm:$0xff]   ;;  %v7731_v1 = vld [vmem:[#allocation15 + $0x778] ss:$28 sps:$4 sm:$0xff]  }
 0x4a7   :  { %5772 = vmatpush1.bf16.msra.mxu0 %v7656_v2  ;;  %5936 = vmatpush1.bf16.msra.mxu1 %v7659_v4  ;;  %v7736_v2 = vld [vmem:[#allocation15 + $0x7ac] ss:$28 sps:$4 sm:$0xff]   ;;  %v7739_v4 = vld [vmem:[#allocation15 + $0x7b4] ss:$28 sps:$4 sm:$0xff]  }
 0x4a8   :  { %5773 = vmatprep.subr.bf16.mxu0 %v7664_v7  ;;  %5937 = vmatprep.subr.bf16.mxu1 %v7667_v8  ;;  %v7734_v7 = vld [vmem:[#allocation15 + $0x7a8] ss:$28 sps:$4 sm:$0xff]   ;;  %v7737_v8 = vld [vmem:[#allocation15 + $0x7b0] ss:$28 sps:$4 sm:$0xff]  }
 0x4ab   :  { %5774 = vmatpush1.bf16.msra.mxu0 %v7662_v9  ;;  %5938 = vmatpush1.bf16.msra.mxu1 %v7665_v10  ;;  %v7742_v9 = vld [vmem:[#allocation15 + $0x7e4] ss:$28 sps:$4 sm:$0xff]   ;;  %v7745_v10 = vld [vmem:[#allocation15 + $0x7ec] ss:$28 sps:$4 sm:$0xff]  }
 0x4ac   :  { %5775 = vmatprep.subr.bf16.mxu0 %v7670_v11  ;;  %5939 = vmatprep.subr.bf16.mxu1 %v7673_v12  ;;  %v7740_v11 = vld [vmem:[#allocation15 + $0x7e0] ss:$28 sps:$4 sm:$0xff]   ;;  %v7743_v12 = vld [vmem:[#allocation15 + $0x7e8] ss:$28 sps:$4 sm:$0xff]  }
 0x4af   :  { %5776 = vmatpush1.bf16.msra.mxu0 %v7668_v22  ;;  %5940 = vmatpush1.bf16.msra.mxu1 %v7671_v13  ;;  %v7748_v22 = vld [vmem:[#allocation15 + $0x81c] ss:$28 sps:$4 sm:$0xff]   ;;  %v7751_v13 = vld [vmem:[#allocation15 + $0x824] ss:$28 sps:$4 sm:$0xff]  }
 0x4b0   :  { %5777 = vmatprep.subr.bf16.mxu0 %v7676_v14  ;;  %5941 = vmatprep.subr.bf16.mxu1 %v7679_v16  ;;  %v7746_v14 = vld [vmem:[#allocation15 + $0x818] ss:$28 sps:$4 sm:$0xff]   ;;  %v7749_v16 = vld [vmem:[#allocation15 + $0x820] ss:$28 sps:$4 sm:$0xff]  }
 0x4b3   :  { %5778 = vmatpush1.bf16.msra.mxu0 %v7674_v17  ;;  %5942 = vmatpush1.bf16.msra.mxu1 %v7677_v18  ;;  %v7754_v17 = vld [vmem:[#allocation15 + $0x854] ss:$28 sps:$4 sm:$0xff]   ;;  %v7757_v18 = vld [vmem:[#allocation15 + $0x85c] ss:$28 sps:$4 sm:$0xff]  }
 0x4b4   :  { %5779 = vmatprep.subr.bf16.mxu0 %v7682_v19  ;;  %5943 = vmatprep.subr.bf16.mxu1 %v7685_v21  ;;  %v7752_v19 = vld [vmem:[#allocation15 + $0x850] ss:$28 sps:$4 sm:$0xff]   ;;  %v7755_v21 = vld [vmem:[#allocation15 + $0x858] ss:$28 sps:$4 sm:$0xff]  }
 0x4b7   :  { %5780 = vmatpush1.bf16.msra.mxu0 %v7680_v24  ;;  %5944 = vmatpush1.bf16.msra.mxu1 %v7683_v49  ;;  %v7760_v24 = vld [vmem:[#allocation15 + $0x88c] ss:$28 sps:$4 sm:$0xff]   ;;  %v7763_v49 = vld [vmem:[#allocation15 + $0x894] ss:$28 sps:$4 sm:$0xff]  }
 0x4b8   :  { %5781 = vmatprep.subr.bf16.mxu0 %v7688_v23  ;;  %5945 = vmatprep.subr.bf16.mxu1 %v7691_v25  ;;  %v7758_v23 = vld [vmem:[#allocation15 + $0x888] ss:$28 sps:$4 sm:$0xff]   ;;  %v7761_v25 = vld [vmem:[#allocation15 + $0x890] ss:$28 sps:$4 sm:$0xff]  }
 0x4bb   :  { %5782 = vmatpush1.bf16.msra.mxu0 %v7686_v26  ;;  %5946 = vmatpush1.bf16.msra.mxu1 %v7689_v27  ;;  %v7766_v26 = vld [vmem:[#allocation15 + $0x8c4] ss:$28 sps:$4 sm:$0xff]   ;;  %v7769_v27 = vld [vmem:[#allocation15 + $0x8cc] ss:$28 sps:$4 sm:$0xff]  }
 0x4bc   :  { %5783 = vmatprep.subr.bf16.mxu0 %v7694_v28  ;;  %5947 = vmatprep.subr.bf16.mxu1 %v7697_v29  ;;  %v7764_v28 = vld [vmem:[#allocation15 + $0x8c0] ss:$28 sps:$4 sm:$0xff]   ;;  %v7767_v29 = vld [vmem:[#allocation15 + $0x8c8] ss:$28 sps:$4 sm:$0xff]  }
 0x4bf   :  { %5784 = vmatpush1.bf16.msra.mxu0 %v7692_v30  ;;  %5948 = vmatpush1.bf16.msra.mxu1 %v7695_v47  ;;  %v7772_v30 = vld [vmem:[#allocation15 + $0x8fc] ss:$28 sps:$4 sm:$0xff]   ;;  %v7775_v47 = vld [vmem:[#allocation15 + $0x904] ss:$28 sps:$4 sm:$0xff]  }
 0x4c0   :  { %5785 = vmatprep.subr.bf16.mxu0 %v7700_v36  ;;  %5949 = vmatprep.subr.bf16.mxu1 %v7703_v39  ;;  %v7773_v36 = vld [vmem:[#allocation15 + $0x900] ss:$28 sps:$4 sm:$0xff]   ;;  %v7778_v39 = vld [vmem:[#allocation15 + $0x934] ss:$28 sps:$4 sm:$0xff]  }
 0x4c3   :  { %5786 = vmatpush1.bf16.msra.mxu0 %v7698_v5  ;;  %5950 = vmatpush1.bf16.msra.mxu1 %v7701_v41  ;;  %v7781_v5 = vld [vmem:[#allocation15 + $0x93c] ss:$28 sps:$4 sm:$0xff]   ;;  %v7776_v41 = vld [vmem:[#allocation15 + $0x930] ss:$28 sps:$4 sm:$0xff]  }
 0x4c4   :  { %5787 = vmatprep.subr.bf16.mxu0 %v7706_v44  ;;  %5951 = vmatprep.subr.bf16.mxu1 %v7709_v45  ;;  %v7784_v44 = vld [vmem:[#allocation15 + $0x96c] ss:$28 sps:$4 sm:$0xff]   ;;  %v7787_v45 = vld [vmem:[#allocation15 + $0x974] ss:$28 sps:$4 sm:$0xff]  }
 0x4c7   :  { %5788 = vmatpush1.bf16.msra.mxu0 %v7704_v32  ;;  %5952 = vmatpush1.bf16.msra.mxu1 %v7707_v33  ;;  %v7782_v32 = vld [vmem:[#allocation15 + $0x968] ss:$28 sps:$4 sm:$0xff]   ;;  %v7785_v33 = vld [vmem:[#allocation15 + $0x970] ss:$28 sps:$4 sm:$0xff]  }
 0x4c8   :  { %5789 = vmatprep.subr.bf16.mxu0 %v7712_v37  ;;  %5953 = vmatprep.subr.bf16.mxu1 %v7715_v38  ;;  %v7793_v37 = vld [vmem:[#allocation15 + $0x9ac] ss:$28 sps:$4 sm:$0xff]   ;;  %v7788_v38 = vld [vmem:[#allocation15 + $0x9a0] ss:$28 sps:$4 sm:$0xff]  }
 0x4cb   :  { %5790 = vmatpush1.bf16.msra.mxu0 %v7710_v46  ;;  %5954 = vmatpush1.bf16.msra.mxu1 %v7713_v48  ;;  %v7791_v46 = vld [vmem:[#allocation15 + $0x9a8] ss:$28 sps:$4 sm:$0xff]   ;;  %v7796_v48 = vld [vmem:[#allocation15 + $0x9dc] ss:$28 sps:$4 sm:$0xff]  }
 0x4cc   :  { %5800 = vmatprep.subr.bf16.mxu0 %v7718_v20  ;;  %5964 = vmatprep.subr.bf16.mxu1 %v7721_v51  ;;  %v1211_v20 = vsub.s32 4, %v8616_v52  ;;  %v1215_v51 = vsub.s32 5, %v8616_v52 }
 0x4ce   :  { %5792 = vmatmul.mubr.bf16.vlgmr.msra.gmra.mrb[12].mxu0 %v8717_v55  ;;  %5956 = vmatmul.mubr.bf16.vlgmr.msra.gmra.mrb[20].mxu1 %v8717_v55 }
 0x4cf   :  { %5801 = vmatpush1.bf16.msra.mxu0 %v7716_v53  ;;  %5965 = vmatpush1.bf16.msra.mxu1 %v7719_v54  ;;  %v1223_v53 = vsub.s32 7, %v8616_v52  ;;  %v7794_v54 = vld [vmem:[#allocation15 + $0x9d8] ss:$28 sps:$4 sm:$0xff]  }
 0x4d0   :  { %5802 = vmatprep.subr.bf16.mxu0 %v7724_v56  ;;  %5966 = vmatprep.subr.bf16.mxu1 %v7727_v58  ;;  %v7797_v56 = vld [vmem:[#allocation15 + $0x9e0] ss:$28 sps:$4 sm:$0xff]   ;;  %v1212_v58 = vrot.slane %v8692_v15, %v1211_v20 }
 0x4d3   :  { %5803 = vmatpush1.bf16.msra.mxu0 %v7722_v59  ;;  %5967 = vmatpush1.bf16.msra.mxu1 %v7725_v61  ;;  %v7802_v59 = vld [vmem:[#allocation15 + $0xa14] ss:$28 sps:$4 sm:$0xff]   ;;  %v7805_v61 = vld [vmem:[#allocation15 + $0xa1c] ss:$28 sps:$4 sm:$0xff]  }
 0x4d4   :  { %5804 = vmatprep.subr.bf16.mxu0 %v7730_v62  ;;  %5968 = vmatprep.subr.bf16.mxu1 %v7733_v63  ;;  %v1216_v62 = vrot.slane %v8692_v15, %v1215_v51  ;;  %v1224_v63 = vrot.slane %v8692_v15, %v1223_v53  ;;  %v7836_v53 = vld [vmem:[#allocation15 + $0xb60] ss:$28 sps:$4 sm:$0xff]  }
 0x4d7   :  { %5805 = vmatpush1.bf16.msra.mxu0 %v7728_v0  ;;  %5969 = vmatpush1.bf16.msra.mxu1 %v7731_v1  ;;  %v7800_v1 = vld [vmem:[#allocation15 + $0xa10] ss:$28 sps:$4 sm:$0xff]  }
 0x4d8   :  { %5806 = vmatprep.subr.bf16.mxu0 %v7736_v2  ;;  %5970 = vmatprep.subr.bf16.mxu1 %v7739_v4  ;;  %v7803_v2 = vld [vmem:[#allocation15 + $0xa18] ss:$28 sps:$4 sm:$0xff]  }
 0x4db   :  { %5807 = vmatpush1.bf16.msra.mxu0 %v7734_v7  ;;  %5971 = vmatpush1.bf16.msra.mxu1 %v7737_v8 }
 0x4dc   :  { %5808 = vmatprep.subr.bf16.mxu0 %v7742_v9  ;;  %5972 = vmatprep.subr.bf16.mxu1 %v7745_v10  ;;  %v7808_v9 = vld [vmem:[#allocation15 + $0xa4c] ss:$28 sps:$4 sm:$0xff]   ;;  %v7811_v10 = vld [vmem:[#allocation15 + $0xa54] ss:$28 sps:$4 sm:$0xff]  }
 0x4df   :  { %5809 = vmatpush1.bf16.msra.mxu0 %v7740_v11  ;;  %5973 = vmatpush1.bf16.msra.mxu1 %v7743_v12 }
 0x4e0   :  { %5810 = vmatprep.subr.bf16.mxu0 %v7748_v22  ;;  %5974 = vmatprep.subr.bf16.mxu1 %v7751_v13 }
 0x4e3   :  { %5811 = vmatpush1.bf16.msra.mxu0 %v7746_v14  ;;  %5975 = vmatpush1.bf16.msra.mxu1 %v7749_v16 }
 0x4e4   :  { %5812 = vmatprep.subr.bf16.mxu0 %v7754_v17  ;;  %5976 = vmatprep.subr.bf16.mxu1 %v7757_v18  ;;  %v7806_v18 = vld [vmem:[#allocation15 + $0xa48] ss:$28 sps:$4 sm:$0xff]  }
 0x4e7   :  { %5813 = vmatpush1.bf16.msra.mxu0 %v7752_v19  ;;  %5977 = vmatpush1.bf16.msra.mxu1 %v7755_v21 }
 0x4e8   :  { %5814 = vmatprep.subr.bf16.mxu0 %v7760_v24  ;;  %5978 = vmatprep.subr.bf16.mxu1 %v7763_v49  ;;  %v7809_v24 = vld [vmem:[#allocation15 + $0xa50] ss:$28 sps:$4 sm:$0xff]  }
 0x4eb   :  { %5815 = vmatpush1.bf16.msra.mxu0 %v7758_v23  ;;  %5979 = vmatpush1.bf16.msra.mxu1 %v7761_v25  ;;  %v7814_v25 = vld [vmem:[#allocation15 + $0xa84] ss:$28 sps:$4 sm:$0xff]  }
 0x4ec   :  { %5816 = vmatprep.subr.bf16.mxu0 %v7766_v26  ;;  %5980 = vmatprep.subr.bf16.mxu1 %v7769_v27  ;;  %v7817_v26 = vld [vmem:[#allocation15 + $0xa8c] ss:$28 sps:$4 sm:$0xff]  }
 0x4ef   :  { %5817 = vmatpush1.bf16.msra.mxu0 %v7764_v28  ;;  %5981 = vmatpush1.bf16.msra.mxu1 %v7767_v29 }
 0x4f0   :  { %5818 = vmatprep.subr.bf16.mxu0 %v7772_v30  ;;  %5982 = vmatprep.subr.bf16.mxu1 %v7775_v47  ;;  %v7812_v30 = vld [vmem:[#allocation15 + $0xa80] ss:$28 sps:$4 sm:$0xff]   ;;  %v7815_v47 = vld [vmem:[#allocation15 + $0xa88] ss:$28 sps:$4 sm:$0xff]  }
 0x4f3   :  { %5819 = vmatpush1.bf16.msra.mxu0 %v7770_v34  ;;  %5983 = vmatpush1.bf16.msra.mxu1 %v7773_v36  ;;  %v7820_v36 = vld [vmem:[#allocation15 + $0xabc] ss:$28 sps:$4 sm:$0xff]  }
 0x4f4   :  { %5820 = vmatprep.subr.bf16.mxu0 %v7778_v39  ;;  %5984 = vmatprep.subr.bf16.mxu1 %v7781_v5  ;;  %v7823_v39 = vld [vmem:[#allocation15 + $0xac4] ss:$28 sps:$4 sm:$0xff]  }
 0x4f7   :  { %5821 = vmatpush1.bf16.msra.mxu0 %v7776_v41  ;;  %5985 = vmatpush1.bf16.msra.mxu1 %v7779_v42  ;;  %v7818_v41 = vld [vmem:[#allocation15 + $0xab8] ss:$28 sps:$4 sm:$0xff]   ;;  %v7821_v42 = vld [vmem:[#allocation15 + $0xac0] ss:$28 sps:$4 sm:$0xff]  }
 0x4f8   :  { %5822 = vmatprep.subr.bf16.mxu0 %v7784_v44  ;;  %5986 = vmatprep.subr.bf16.mxu1 %v7787_v45  ;;  %v7826_v44 = vld [vmem:[#allocation15 + $0xaf4] ss:$28 sps:$4 sm:$0xff]   ;;  %v7829_v45 = vld [vmem:[#allocation15 + $0xafc] ss:$28 sps:$4 sm:$0xff]  }
 0x4fb   :  { %5823 = vmatpush1.bf16.msra.mxu0 %v7782_v32  ;;  %5987 = vmatpush1.bf16.msra.mxu1 %v7785_v33  ;;  %v7824_v32 = vld [vmem:[#allocation15 + $0xaf0] ss:$28 sps:$4 sm:$0xff]   ;;  %v7827_v33 = vld [vmem:[#allocation15 + $0xaf8] ss:$28 sps:$4 sm:$0xff]  }
 0x4fc   :  { %5824 = vmatprep.subr.bf16.mxu0 %v7790_v35  ;;  %5988 = vmatprep.subr.bf16.mxu1 %v7793_v37  ;;  %v7832_v35 = vld [vmem:[#allocation15 + $0xb2c] ss:$28 sps:$4 sm:$0xff]   ;;  %v7835_v37 = vld [vmem:[#allocation15 + $0xb34] ss:$28 sps:$4 sm:$0xff]  }
 0x4ff   :  { %5825 = vmatpush1.bf16.msra.mxu0 %v7788_v38  ;;  %5989 = vmatpush1.bf16.msra.mxu1 %v7791_v46  ;;  %v7830_v38 = vld [vmem:[#allocation15 + $0xb28] ss:$28 sps:$4 sm:$0xff]   ;;  %v7833_v46 = vld [vmem:[#allocation15 + $0xb30] ss:$28 sps:$4 sm:$0xff]  }
 0x500   :  { %5826 = vmatprep.subr.bf16.mxu0 %v7796_v48  ;;  %5990 = vmatprep.subr.bf16.mxu1 %v7799_v50  ;;  %v7838_v48 = vld [vmem:[#allocation15 + $0xb64] ss:$28 sps:$4 sm:$0xff]   ;;  %v7841_v50 = vld [vmem:[#allocation15 + $0xb6c] ss:$28 sps:$4 sm:$0xff]  }
 0x503   :  { %5827 = vmatpush1.bf16.msra.mxu0 %v7794_v54  ;;  %5991 = vmatpush1.bf16.msra.mxu1 %v7797_v56  ;;  %v2752_v0 = vpop.f32.mrb[8].mxu0  ;;  %v7839_v54 = vld [vmem:[#allocation15 + $0xb68] ss:$28 sps:$4 sm:$0xff]   ;;  %v7844_v56 = vld [vmem:[#allocation15 + $0xb9c] ss:$28 sps:$4 sm:$0xff]  }
 0x504   :  { %v7311_v4 = vadd.f32 %v2752_v0, %v1212_v58  ;;  %v8731_v7 = vpop.f32.mrb[16].mxu1  ;;  %v2754_v8 = vpop.f32.mrb[9].mxu0  ;;  %5828 = vmatprep.subr.bf16.mxu0 %v7802_v59  ;;  %5992 = vmatprep.subr.bf16.mxu1 %v7805_v61  ;;  %v7847_v58 = vld [vmem:[#allocation15 + $0xba4] ss:$28 sps:$4 sm:$0xff]   ;;  %v7842_v59 = vld [vmem:[#allocation15 + $0xb98] ss:$28 sps:$4 sm:$0xff]  }
 0x505   :  { %v7312_v11 = vadd.f32 %v2754_v8, %v1216_v62  ;;  %v2836_v12 = vpop.f32.mrb[17].mxu1  ;;  %v2756_v22 = vpop.f32.mrb[10].mxu0  ;;  %v7845_v61 = vld [vmem:[#allocation15 + $0xba0] ss:$28 sps:$4 sm:$0xff]   ;;  %v7850_v62 = vld [vmem:[#allocation15 + $0xbd4] ss:$28 sps:$4 sm:$0xff]  }
 0x506   :  { %v2845_v13 = vmul.f32 0.2, %v7311_v4  ;;  %v7314_v14 = vadd.f32 %v2836_v12, %v1224_v63  ;;  %v2838_v16 = vpop.f32.mrb[18].mxu1  ;;  %v2757_v17 = vpop.f32.mrb[11].mxu0  ;;  %v7853_v63 = vld [vmem:[#allocation15 + $0xbdc] ss:$28 sps:$4 sm:$0xff]  }
 0x507   :  { %v2846_v19 = vmul.f32 0.2, %v7312_v11  ;;  %v2839_v21 = vpop.f32.mrb[19].mxu1  ;;  %5829 = vmatpush1.bf16.msra.mxu0 %v7800_v1  ;;  %5993 = vmatpush1.bf16.msra.mxu1 %v7803_v2  ;;  %v7848_v0 = vld [vmem:[#allocation15 + $0xbd0] ss:$28 sps:$4 sm:$0xff]  }
 0x508   :  { %v2853_v49 = vmax.f32 %v7311_v4, %v2845_v13  ;;  %v2848_v23 = vmul.f32 0.2, %v7314_v14  ;;  %5830 = vmatprep.subr.bf16.mxu0 %v7808_v9  ;;  %5994 = vmatprep.subr.bf16.mxu1 %v7811_v10  ;;  %v7851_v1 = vld [vmem:[#allocation15 + $0xbd8] ss:$28 sps:$4 sm:$0xff]   ;;  %v7856_v2 = vld [vmem:[#allocation15 + $0xc0c] ss:$28 sps:$4 sm:$0xff]  }
 0x509   :  { %v2854_v27 = vmax.f32 %v7312_v11, %v2846_v19  ;;  %v7859_v4 = vld [vmem:[#allocation15 + $0xc14] ss:$28 sps:$4 sm:$0xff]   ;;  %v7854_v8 = vld [vmem:[#allocation15 + $0xc08] ss:$28 sps:$4 sm:$0xff]   ;;  %v7860_v12 = vld [vmem:[#allocation15 + $0xc40] ss:$28 sps:$4 sm:$0xff]  }
 0x50a   :  { %v2856_v28 = vmax.f32 %v7314_v14, %v2848_v23  ;;  %v8735_v34 = vpack.c.bf16 %v2853_v49, %v2853_v49  ;;  %v7857_v9 = vld [vmem:[#allocation15 + $0xc10] ss:$28 sps:$4 sm:$0xff]   ;;  %v7862_v10 = vld [vmem:[#allocation15 + $0xc44] ss:$28 sps:$4 sm:$0xff]   ;;  %v7868_v13 = vld [vmem:[#allocation15 + $0xc7c] ss:$28 sps:$4 sm:$0xff]  }
 0x50b   :  { %v8733_v29 = vpack.c.bf16 %v2854_v27, %v2854_v27  ;;  %5831 = vmatpush1.bf16.msra.mxu0 %v7806_v18  ;;  %5995 = vmatpush1.bf16.msra.mxu1 %v7809_v24  ;;  %v7865_v11 = vld [vmem:[#allocation15 + $0xc4c] ss:$28 sps:$4 sm:$0xff]   ;;  %v7871_v14 = vld [vmem:[#allocation15 + $0xc84] ss:$28 sps:$4 sm:$0xff]   ;;  %v7866_v16 = vld [vmem:[#allocation15 + $0xc78] ss:$28 sps:$4 sm:$0xff]  }
 0x50c   :  { %5841 = vmatprep.subr.bf16.mxu0 %v7814_v25  ;;  %6005 = vmatprep.subr.bf16.mxu1 %v7817_v26  ;;  %v8739_v5 = vpack.c.bf16 %v2856_v28, %v2856_v28  ;;  %v7863_v22 = vld [vmem:[#allocation15 + $0xc48] ss:$28 sps:$4 sm:$0xff]   ;;  %v7869_v17 = vld [vmem:[#allocation15 + $0xc80] ss:$28 sps:$4 sm:$0xff]   ;;  %v7874_v18 = vld [vmem:[#allocation15 + $0xcb4] ss:$28 sps:$4 sm:$0xff]  }
 0x50d   :  { %5832 = vmatprep.mubr.bf16.mxu0 %v8733_v29  ;;  %5996 = vmatprep.mubr.bf16.mxu1 %v8733_v29  ;;  %v7877_v19 = vld [vmem:[#allocation15 + $0xcbc] ss:$28 sps:$4 sm:$0xff]   ;;  %v7872_v21 = vld [vmem:[#allocation15 + $0xcb0] ss:$28 sps:$4 sm:$0xff]   ;;  %v7878_v25 = vld [vmem:[#allocation15 + $0xce8] ss:$28 sps:$4 sm:$0xff]  }
 0x50e   :  { %5833 = vmatmul.mubr.bf16.vlgmr.msra.gmra.mrb[12].mxu0 %v8735_v34  ;;  %5997 = vmatmul.mubr.bf16.vlgmr.msra.gmra.mrb[20].mxu1 %v8735_v34  ;;  %v7875_v24 = vld [vmem:[#allocation15 + $0xcb8] ss:$28 sps:$4 sm:$0xff]   ;;  %v7880_v49 = vld [vmem:[#allocation15 + $0xcec] ss:$28 sps:$4 sm:$0xff]   ;;  %v1219_v27 = vsub.s32 6, %v8616_v52 }
 0x50f   :  { %5842 = vmatpush1.bf16.msra.mxu0 %v7812_v30  ;;  %6006 = vmatpush1.bf16.msra.mxu1 %v7815_v47  ;;  %v7883_v23 = vld [vmem:[#allocation15 + $0xcf4] ss:$28 sps:$4 sm:$0xff]   ;;  %v7886_v28 = vld [vmem:[#allocation15 + $0xd24] ss:$28 sps:$4 sm:$0xff]   ;;  %v7889_v30 = vld [vmem:[#allocation15 + $0xd2c] ss:$28 sps:$4 sm:$0xff]  }
 0x510   :  { %5873 = vmatprep.mubr.bf16.mxu0 %v8739_v5  ;;  %6037 = vmatprep.mubr.bf16.mxu1 %v8739_v5  ;;  %v7881_v26 = vld [vmem:[#allocation15 + $0xcf0] ss:$28 sps:$4 sm:$0xff]   ;;  %v7884_v47 = vld [vmem:[#allocation15 + $0xd20] ss:$28 sps:$4 sm:$0xff]  }
 0x511   :  { %5843 = vmatprep.subr.bf16.mxu0 %v7820_v36  ;;  %6007 = vmatprep.subr.bf16.mxu1 %v7823_v39  ;;  %v7887_v36 = vld [vmem:[#allocation15 + $0xd28] ss:$28 sps:$4 sm:$0xff]   ;;  %v1220_v39 = vrot.slane %v8692_v15, %v1219_v27 }
 0x512   :  { %v7904_v15 = vld [vmem:[#allocation15 + $0xdcc] ss:$28 sps:$4 sm:$0xff]  }
 0x513   :  { %5844 = vmatpush1.bf16.msra.mxu0 %v7818_v41  ;;  %6008 = vmatpush1.bf16.msra.mxu1 %v7821_v42  ;;  %v7892_v41 = vld [vmem:[#allocation15 + $0xd5c] ss:$28 sps:$4 sm:$0xff]   ;;  %v7895_v42 = vld [vmem:[#allocation15 + $0xd64] ss:$28 sps:$4 sm:$0xff]  }
 0x514   :  { %5845 = vmatprep.subr.bf16.mxu0 %v7826_v44  ;;  %6009 = vmatprep.subr.bf16.mxu1 %v7829_v45  ;;  %v7890_v44 = vld [vmem:[#allocation15 + $0xd58] ss:$28 sps:$4 sm:$0xff]   ;;  %v7893_v45 = vld [vmem:[#allocation15 + $0xd60] ss:$28 sps:$4 sm:$0xff]  }
 0x517   :  { %5846 = vmatpush1.bf16.msra.mxu0 %v7824_v32  ;;  %6010 = vmatpush1.bf16.msra.mxu1 %v7827_v33  ;;  %v7313_v32 = vadd.f32 %v8731_v7, %v1220_v39  ;;  %v7898_v33 = vld [vmem:[#allocation15 + $0xd94] ss:$28 sps:$4 sm:$0xff]  }
 0x518   :  { %5847 = vmatprep.subr.bf16.mxu0 %v7832_v35  ;;  %6011 = vmatprep.subr.bf16.mxu1 %v7835_v37  ;;  %v7901_v35 = vld [vmem:[#allocation15 + $0xd9c] ss:$28 sps:$4 sm:$0xff]   ;;  %v7896_v37 = vld [vmem:[#allocation15 + $0xd90] ss:$28 sps:$4 sm:$0xff]  }
 0x519   :  { %v7910_v7 = vld [vmem:[#allocation15 + $0x14] ss:$28 sps:$4 sm:$0xff]  }
 0x51a   :  { %v7951_v39 = vld [vmem:[#allocation15 + $0x558] ss:$28 sps:$4 sm:$0xff]  }
 0x51b   :  { %5848 = vmatpush1.bf16.msra.mxu0 %v7830_v38  ;;  %6012 = vmatpush1.bf16.msra.mxu1 %v7833_v46  ;;  %v7899_v38 = vld [vmem:[#allocation15 + $0xd98] ss:$28 sps:$4 sm:$0xff]   ;;  %v2847_v46 = vmul.f32 0.2, %v7313_v32 }
 0x51c   :  { %5849 = vmatprep.subr.bf16.mxu0 %v7838_v48  ;;  %6013 = vmatprep.subr.bf16.mxu1 %v7841_v50  ;;  %v7907_v48 = vld [vmem:[#allocation15 + $0xdd4] ss:$28 sps:$4 sm:$0xff]   ;;  %v7902_v50 = vld [vmem:[#allocation15 + $0xdc8] ss:$28 sps:$4 sm:$0xff]  }
 0x51f   :  { %5850 = vmatpush1.bf16.msra.mxu0 %v7836_v53  ;;  %6014 = vmatpush1.bf16.msra.mxu1 %v7839_v54  ;;  %v7905_v53 = vld [vmem:[#allocation15 + $0xdd0] ss:$28 sps:$4 sm:$0xff]   ;;  %v2855_v54 = vmax.f32 %v7313_v32, %v2847_v46  ;;  %v7953_v32 = vld [vmem:[#allocation15 + $0x208] ss:$28 sps:$4 sm:$0xff]  }
 0x520   :  { %5851 = vmatprep.subr.bf16.mxu0 %v7844_v56  ;;  %6015 = vmatprep.subr.bf16.mxu1 %v7847_v58  ;;  %v7911_v56 = vld [vmem:[#allocation15 + $0x1d8] ss:$28 sps:$4 sm:$0xff]   ;;  %v7908_v58 = vld [vmem:[#allocation15 + $0x10] ss:$28 sps:$4 sm:$0xff]   ;;  %v7962_v46 = vld [vmem:[#allocation15 + $0x408] ss:$28 sps:$4 sm:$0xff]  }
 0x523   :  { %5852 = vmatpush1.bf16.msra.mxu0 %v7842_v59  ;;  %6016 = vmatpush1.bf16.msra.mxu1 %v7845_v61  ;;  %v8750_v59 = vpack.c.bf16 %v2855_v54, %v2855_v54  ;;  %v7912_v61 = vld [vmem:[#allocation15 + $0x18] ss:$28 sps:$4 sm:$0xff]  }
 0x524   :  { %5853 = vmatprep.subr.bf16.mxu0 %v7850_v62  ;;  %6017 = vmatprep.subr.bf16.mxu1 %v7853_v63  ;;  %v7915_v62 = vld [vmem:[#allocation15 + $0x4c] ss:$28 sps:$4 sm:$0xff]   ;;  %v7970_v54 = vld [vmem:[#allocation15 + $0x2b4] ss:$28 sps:$4 sm:$0xff]  }
 0x525   :  { %v7916_v63 = vld [vmem:[#allocation15 + $0x210] ss:$28 sps:$4 sm:$0xff]  }
 0x527   :  { %5854 = vmatpush1.bf16.msra.mxu0 %v7848_v0  ;;  %6018 = vmatpush1.bf16.msra.mxu1 %v7851_v1  ;;  %v7913_v0 = vld [vmem:[#allocation15 + $0x48] ss:$28 sps:$4 sm:$0xff]   ;;  %v7917_v1 = vld [vmem:[#allocation15 + $0x50] ss:$28 sps:$4 sm:$0xff]  }
 0x528   :  { %5855 = vmatprep.subr.bf16.mxu0 %v7856_v2  ;;  %6019 = vmatprep.subr.bf16.mxu1 %v7859_v4  ;;  %v7920_v2 = vld [vmem:[#allocation15 + $0x84] ss:$28 sps:$4 sm:$0xff]  }
 0x529   :  { %v7921_v4 = vld [vmem:[#allocation15 + $0x248] ss:$28 sps:$4 sm:$0xff]  }
 0x52b   :  { %5856 = vmatpush1.bf16.msra.mxu0 %v7854_v8  ;;  %6020 = vmatpush1.bf16.msra.mxu1 %v7857_v9  ;;  %v7918_v8 = vld [vmem:[#allocation15 + $0x80] ss:$28 sps:$4 sm:$0xff]   ;;  %v7922_v9 = vld [vmem:[#allocation15 + $0x88] ss:$28 sps:$4 sm:$0xff]  }
 0x52c   :  { %5857 = vmatprep.subr.bf16.mxu0 %v7862_v10  ;;  %6021 = vmatprep.subr.bf16.mxu1 %v7865_v11  ;;  %v7925_v10 = vld [vmem:[#allocation15 + $0xbc] ss:$28 sps:$4 sm:$0xff]  }
 0x52d   :  { %v7926_v11 = vld [vmem:[#allocation15 + $0x280] ss:$28 sps:$4 sm:$0xff]  }
 0x52f   :  { %5858 = vmatpush1.bf16.msra.mxu0 %v7860_v12  ;;  %6022 = vmatpush1.bf16.msra.mxu1 %v7863_v22  ;;  %v7923_v12 = vld [vmem:[#allocation15 + $0xb8] ss:$28 sps:$4 sm:$0xff]   ;;  %v7927_v22 = vld [vmem:[#allocation15 + $0xc0] ss:$28 sps:$4 sm:$0xff]  }
 0x530   :  { %5859 = vmatprep.subr.bf16.mxu0 %v7868_v13  ;;  %6023 = vmatprep.subr.bf16.mxu1 %v7871_v14  ;;  %v7930_v13 = vld [vmem:[#allocation15 + $0xf4] ss:$28 sps:$4 sm:$0xff]  }
 0x531   :  { %v7928_v14 = vld [vmem:[#allocation15 + $0xf0] ss:$28 sps:$4 sm:$0xff]  }
 0x533   :  { %5860 = vmatpush1.bf16.msra.mxu0 %v7866_v16  ;;  %6024 = vmatpush1.bf16.msra.mxu1 %v7869_v17  ;;  %v7932_v16 = vld [vmem:[#allocation15 + $0xf8] ss:$28 sps:$4 sm:$0xff]   ;;  %v7935_v17 = vld [vmem:[#allocation15 + $0x12c] ss:$28 sps:$4 sm:$0xff]  }
 0x534   :  { %5861 = vmatprep.subr.bf16.mxu0 %v7874_v18  ;;  %6025 = vmatprep.subr.bf16.mxu1 %v7877_v19  ;;  %v7936_v18 = vld [vmem:[#allocation15 + $0x2f0] ss:$28 sps:$4 sm:$0xff]   ;;  %v7933_v19 = vld [vmem:[#allocation15 + $0x128] ss:$28 sps:$4 sm:$0xff]  }
 0x537   :  { %5862 = vmatpush1.bf16.msra.mxu0 %v7872_v21  ;;  %6026 = vmatpush1.bf16.msra.mxu1 %v7875_v24  ;;  %v7937_v21 = vld [vmem:[#allocation15 + $0x130] ss:$28 sps:$4 sm:$0xff]   ;;  %v7940_v24 = vld [vmem:[#allocation15 + $0x164] ss:$28 sps:$4 sm:$0xff]  }
 0x538   :  { %5863 = vmatprep.subr.bf16.mxu0 %v7880_v49  ;;  %6027 = vmatprep.subr.bf16.mxu1 %v7883_v23  ;;  %v7941_v49 = vld [vmem:[#allocation15 + $0x328] ss:$28 sps:$4 sm:$0xff]   ;;  %v7938_v23 = vld [vmem:[#allocation15 + $0x160] ss:$28 sps:$4 sm:$0xff]  }
 0x53b   :  { %5864 = vmatpush1.bf16.msra.mxu0 %v7878_v25  ;;  %6028 = vmatpush1.bf16.msra.mxu1 %v7881_v26  ;;  %v7942_v25 = vld [vmem:[#allocation15 + $0x168] ss:$28 sps:$4 sm:$0xff]   ;;  %v7945_v26 = vld [vmem:[#allocation15 + $0x19c] ss:$28 sps:$4 sm:$0xff]  }
 0x53c   :  { %5865 = vmatprep.subr.bf16.mxu0 %v7886_v28  ;;  %6029 = vmatprep.subr.bf16.mxu1 %v7889_v30  ;;  %v7946_v28 = vld [vmem:[#allocation15 + $0x360] ss:$28 sps:$4 sm:$0xff]   ;;  %v7943_v30 = vld [vmem:[#allocation15 + $0x198] ss:$28 sps:$4 sm:$0xff]  }
 0x53f   :  { %5866 = vmatpush1.bf16.msra.mxu0 %v7884_v47  ;;  %6030 = vmatpush1.bf16.msra.mxu1 %v7887_v36  ;;  %v7947_v47 = vld [vmem:[#allocation15 + $0x1a0] ss:$28 sps:$4 sm:$0xff]   ;;  %v7950_v36 = vld [vmem:[#allocation15 + $0x1d4] ss:$28 sps:$4 sm:$0xff]  }
 0x540   :  { %5867 = vmatprep.subr.bf16.mxu0 %v7892_v41  ;;  %6031 = vmatprep.subr.bf16.mxu1 %v7895_v42  ;;  %v7948_v41 = vld [vmem:[#allocation15 + $0x1d0] ss:$28 sps:$4 sm:$0xff]   ;;  %v7952_v42 = vld [vmem:[#allocation15 + $0x398] ss:$28 sps:$4 sm:$0xff]  }
 0x543   :  { %5868 = vmatpush1.bf16.msra.mxu0 %v7890_v44  ;;  %6032 = vmatpush1.bf16.msra.mxu1 %v7893_v45  ;;  %v7955_v44 = vld [vmem:[#allocation15 + $0x20c] ss:$28 sps:$4 sm:$0xff]  }
 0x544   :  { %5869 = vmatprep.subr.bf16.mxu0 %v7898_v33  ;;  %6033 = vmatprep.subr.bf16.mxu1 %v7901_v35  ;;  %v7956_v45 = vld [vmem:[#allocation15 + $0x590] ss:$28 sps:$4 sm:$0xff]   ;;  %v7960_v35 = vld [vmem:[#allocation15 + $0x244] ss:$28 sps:$4 sm:$0xff]  }
 0x545   :  { %v7957_v33 = vld [vmem:[#allocation15 + $0x3d0] ss:$28 sps:$4 sm:$0xff]  }
 0x547   :  { %5870 = vmatpush1.bf16.msra.mxu0 %v7896_v37  ;;  %6034 = vmatpush1.bf16.msra.mxu1 %v7899_v38  ;;  %v7961_v37 = vld [vmem:[#allocation15 + $0x5c8] ss:$28 sps:$4 sm:$0xff]   ;;  %v7958_v38 = vld [vmem:[#allocation15 + $0x240] ss:$28 sps:$4 sm:$0xff]  }
 0x548   :  { %5871 = vmatprep.subr.bf16.mxu0 %v7904_v15  ;;  %6035 = vmatprep.subr.bf16.mxu1 %v7907_v48  ;;  %v7965_v15 = vld [vmem:[#allocation15 + $0x27c] ss:$28 sps:$4 sm:$0xff]  }
 0x549   :  { %v7966_v48 = vld [vmem:[#allocation15 + $0x600] ss:$28 sps:$4 sm:$0xff]  }
 0x54b   :  { %5872 = vmatpush1.bf16.msra.mxu0 %v7902_v50  ;;  %6036 = vmatpush1.bf16.msra.mxu1 %v7905_v53  ;;  %v7963_v50 = vld [vmem:[#allocation15 + $0x278] ss:$28 sps:$4 sm:$0xff]   ;;  %v7967_v53 = vld [vmem:[#allocation15 + $0x440] ss:$28 sps:$4 sm:$0xff]  }
 0x54c   :  { %6046 = vmatprep.subr.bf16.mxu0 %v7910_v7  ;;  %7199 = vmatprep.subr.bf16.mxu1 %v7911_v56  ;;  %v7971_v7 = vld [vmem:[#allocation15 + $0x638] ss:$28 sps:$4 sm:$0xff]   ;;  %v7968_v56 = vld [vmem:[#allocation15 + $0x2b0] ss:$28 sps:$4 sm:$0xff]  }
 0x54e   :  { %5874 = vmatmul.mubr.bf16.vlgmr.msra.gmra.mrb[12].mxu0 %v8750_v59  ;;  %6038 = vmatmul.mubr.bf16.vlgmr.msra.gmra.mrb[20].mxu1 %v8750_v59 }
 0x54f   :  { %6047 = vmatpush1.bf16.msra.mxu0 %v7908_v58  ;;  %6078 = vmatprep.mubr.bf16.mxu0 %v8702_v40  ;;  %v7972_v58 = vld [vmem:[#allocation15 + $0x478] ss:$28 sps:$4 sm:$0xff]  }
 0x550   :  { %7200 = vmatpush3.bf16.msra.mxu1 %v7912_v61  ;;  %6242 = vmatprep.mubr.bf16.mxu1 %v8702_v40  ;;  %v7931_v40 = vld [vmem:[#allocation15 + $0x2b8] ss:$28 sps:$4 sm:$0xff]   ;;  %v7975_v61 = vld [vmem:[#allocation15 + $0x2ec] ss:$28 sps:$4 sm:$0xff]  }
 0x551   :  { %6048 = vmatprep.subr.bf16.mxu0 %v7915_v62  ;;  %7201 = vmatprep.subr.bf16.mxu1 %v7916_v63  ;;  %v7976_v62 = vld [vmem:[#allocation15 + $0x670] ss:$28 sps:$4 sm:$0xff]   ;;  %v7973_v63 = vld [vmem:[#allocation15 + $0x2e8] ss:$28 sps:$4 sm:$0xff]  }
 0x553   :  { %6049 = vmatpush1.bf16.msra.mxu0 %v7913_v0  ;;  %v7977_v0 = vld [vmem:[#allocation15 + $0x4b0] ss:$28 sps:$4 sm:$0xff]  }
 0x554   :  { %7202 = vmatpush3.bf16.msra.mxu1 %v7917_v1  ;;  %6050 = vmatprep.subr.bf16.mxu0 %v7920_v2  ;;  %v7980_v1 = vld [vmem:[#allocation15 + $0x324] ss:$28 sps:$4 sm:$0xff]  }
 0x555   :  { %7203 = vmatprep.subr.bf16.mxu1 %v7921_v4  ;;  %v7981_v2 = vld [vmem:[#allocation15 + $0x6a8] ss:$28 sps:$4 sm:$0xff]   ;;  %v7978_v4 = vld [vmem:[#allocation15 + $0x320] ss:$28 sps:$4 sm:$0xff]  }
 0x557   :  { %6051 = vmatpush1.bf16.msra.mxu0 %v7918_v8  ;;  %v7982_v8 = vld [vmem:[#allocation15 + $0x4e8] ss:$28 sps:$4 sm:$0xff]  }
 0x558   :  { %7204 = vmatpush3.bf16.msra.mxu1 %v7922_v9  ;;  %6052 = vmatprep.subr.bf16.mxu0 %v7925_v10  ;;  %v7985_v9 = vld [vmem:[#allocation15 + $0x35c] ss:$28 sps:$4 sm:$0xff]  }
 0x559   :  { %7205 = vmatprep.subr.bf16.mxu1 %v7926_v11  ;;  %v7986_v10 = vld [vmem:[#allocation15 + $0x6e0] ss:$28 sps:$4 sm:$0xff]   ;;  %v7983_v11 = vld [vmem:[#allocation15 + $0x358] ss:$28 sps:$4 sm:$0xff]  }
 0x55b   :  { %6053 = vmatpush1.bf16.msra.mxu0 %v7923_v12  ;;  %v7987_v12 = vld [vmem:[#allocation15 + $0x520] ss:$28 sps:$4 sm:$0xff]  }
 0x55c   :  { %7206 = vmatpush3.bf16.msra.mxu1 %v7927_v22  ;;  %6054 = vmatprep.subr.bf16.mxu0 %v7930_v13  ;;  %v7990_v22 = vld [vmem:[#allocation15 + $0x394] ss:$28 sps:$4 sm:$0xff]  }
 0x55d   :  { %7207 = vmatprep.subr.bf16.mxu1 %v7931_v40  ;;  %v7991_v13 = vld [vmem:[#allocation15 + $0x8d8] ss:$28 sps:$4 sm:$0xff]   ;;  %v7988_v40 = vld [vmem:[#allocation15 + $0x390] ss:$28 sps:$4 sm:$0xff]  }
 0x55f   :  { %6055 = vmatpush1.bf16.msra.mxu0 %v7928_v14  ;;  %v7992_v14 = vld [vmem:[#allocation15 + $0x718] ss:$28 sps:$4 sm:$0xff]  }
 0x560   :  { %7208 = vmatpush3.bf16.msra.mxu1 %v7932_v16  ;;  %6056 = vmatprep.subr.bf16.mxu0 %v7935_v17  ;;  %v7995_v16 = vld [vmem:[#allocation15 + $0x3cc] ss:$28 sps:$4 sm:$0xff]  }
 0x561   :  { %7209 = vmatprep.subr.bf16.mxu1 %v7936_v18  ;;  %v7996_v17 = vld [vmem:[#allocation15 + $0x910] ss:$28 sps:$4 sm:$0xff]   ;;  %v7993_v18 = vld [vmem:[#allocation15 + $0x3c8] ss:$28 sps:$4 sm:$0xff]  }
 0x563   :  { %6057 = vmatpush1.bf16.msra.mxu0 %v7933_v19  ;;  %v7997_v19 = vld [vmem:[#allocation15 + $0x750] ss:$28 sps:$4 sm:$0xff]  }
 0x564   :  { %7210 = vmatpush3.bf16.msra.mxu1 %v7937_v21  ;;  %6058 = vmatprep.subr.bf16.mxu0 %v7940_v24  ;;  %v8000_v21 = vld [vmem:[#allocation15 + $0x404] ss:$28 sps:$4 sm:$0xff]  }
 0x565   :  { %7211 = vmatprep.subr.bf16.mxu1 %v7941_v49  ;;  %v8001_v24 = vld [vmem:[#allocation15 + $0x948] ss:$28 sps:$4 sm:$0xff]   ;;  %v7998_v49 = vld [vmem:[#allocation15 + $0x400] ss:$28 sps:$4 sm:$0xff]  }
 0x567   :  { %6059 = vmatpush1.bf16.msra.mxu0 %v7938_v23  ;;  %v8005_v23 = vld [vmem:[#allocation15 + $0x43c] ss:$28 sps:$4 sm:$0xff]  }
 0x568   :  { %7212 = vmatpush3.bf16.msra.mxu1 %v7942_v25  ;;  %6060 = vmatprep.subr.bf16.mxu0 %v7945_v26  ;;  %v8006_v25 = vld [vmem:[#allocation15 + $0x980] ss:$28 sps:$4 sm:$0xff]   ;;  %v8003_v26 = vld [vmem:[#allocation15 + $0x438] ss:$28 sps:$4 sm:$0xff]  }
 0x569   :  { %7213 = vmatprep.subr.bf16.mxu1 %v7946_v28  ;;  %v8010_v28 = vld [vmem:[#allocation15 + $0x474] ss:$28 sps:$4 sm:$0xff]  }
 0x56b   :  { %6061 = vmatpush1.bf16.msra.mxu0 %v7943_v30  ;;  %v8011_v30 = vld [vmem:[#allocation15 + $0x9b8] ss:$28 sps:$4 sm:$0xff]  }
 0x56c   :  { %7214 = vmatpush3.bf16.msra.mxu1 %v7947_v47  ;;  %6062 = vmatprep.subr.bf16.mxu0 %v7950_v36  ;;  %v8008_v47 = vld [vmem:[#allocation15 + $0x470] ss:$28 sps:$4 sm:$0xff]   ;;  %v8012_v36 = vld [vmem:[#allocation15 + $0x7f8] ss:$28 sps:$4 sm:$0xff]  }
 0x56d   :  { %7221 = vmatprep.subr.bf16.mxu1 %v7951_v39  ;;  %v8015_v39 = vld [vmem:[#allocation15 + $0x4ac] ss:$28 sps:$4 sm:$0xff]  }
 0x56f   :  { %6243 = vmatmul.mubr.bf16.vlgmr.msra.gmra.mrb[24].mxu1 %v8704_v43  ;;  %6063 = vmatpush1.bf16.msra.mxu0 %v7948_v41  ;;  %v8016_v41 = vld [vmem:[#allocation15 + $0x9f0] ss:$28 sps:$4 sm:$0xff]  }
 0x570   :  { %7222 = vmatpush3.bf16.msra.mxu1 %v7952_v42  ;;  %6282 = vmatprep.mubr.bf16.mxu1 %v8708_v31  ;;  %v8013_v42 = vld [vmem:[#allocation15 + $0x4a8] ss:$28 sps:$4 sm:$0xff]  }
 0x571   :  { %6064 = vmatprep.subr.bf16.mxu0 %v7955_v44  ;;  %7223 = vmatprep.subr.bf16.mxu1 %v7956_v45  ;;  %v8017_v44 = vld [vmem:[#allocation15 + $0x830] ss:$28 sps:$4 sm:$0xff]   ;;  %v8020_v45 = vld [vmem:[#allocation15 + $0x4e4] ss:$28 sps:$4 sm:$0xff]  }
 0x573   :  { %6065 = vmatpush1.bf16.msra.mxu0 %v7953_v32  ;;  %v8021_v32 = vld [vmem:[#allocation15 + $0xa28] ss:$28 sps:$4 sm:$0xff]  }
 0x574   :  { %7224 = vmatpush3.bf16.msra.mxu1 %v7957_v33  ;;  %6066 = vmatprep.subr.bf16.mxu0 %v7960_v35  ;;  %v8018_v33 = vld [vmem:[#allocation15 + $0x4e0] ss:$28 sps:$4 sm:$0xff]   ;;  %v8022_v35 = vld [vmem:[#allocation15 + $0x868] ss:$28 sps:$4 sm:$0xff]  }
 0x575   :  { %7225 = vmatprep.subr.bf16.mxu1 %v7961_v37  ;;  %v8025_v37 = vld [vmem:[#allocation15 + $0x51c] ss:$28 sps:$4 sm:$0xff]  }
 0x577   :  { %6067 = vmatpush1.bf16.msra.mxu0 %v7958_v38  ;;  %v8026_v38 = vld [vmem:[#allocation15 + $0xa60] ss:$28 sps:$4 sm:$0xff]  }
 0x578   :  { %7226 = vmatpush3.bf16.msra.mxu1 %v7962_v46  ;;  %6068 = vmatprep.subr.bf16.mxu0 %v7965_v15  ;;  %v8023_v46 = vld [vmem:[#allocation15 + $0x518] ss:$28 sps:$4 sm:$0xff]   ;;  %v8027_v15 = vld [vmem:[#allocation15 + $0x8a0] ss:$28 sps:$4 sm:$0xff]  }
 0x579   :  { %7227 = vmatprep.subr.bf16.mxu1 %v7966_v48  ;;  %v8030_v48 = vld [vmem:[#allocation15 + $0x554] ss:$28 sps:$4 sm:$0xff]  }
 0x57b   :  { %6069 = vmatpush1.bf16.msra.mxu0 %v7963_v50  ;;  %v8031_v50 = vld [vmem:[#allocation15 + $0xc58] ss:$28 sps:$4 sm:$0xff]  }
 0x57c   :  { %7228 = vmatpush3.bf16.msra.mxu1 %v7967_v53  ;;  %6070 = vmatprep.subr.bf16.mxu0 %v7970_v54  ;;  %v8028_v53 = vld [vmem:[#allocation15 + $0x550] ss:$28 sps:$4 sm:$0xff]   ;;  %v8032_v54 = vld [vmem:[#allocation15 + $0xa98] ss:$28 sps:$4 sm:$0xff]  }
 0x57d   :  { %7229 = vmatprep.subr.bf16.mxu1 %v7971_v7  ;;  %v8035_v7 = vld [vmem:[#allocation15 + $0x58c] ss:$28 sps:$4 sm:$0xff]  }
 0x57f   :  { %6071 = vmatpush1.bf16.msra.mxu0 %v7968_v56  ;;  %v8036_v56 = vld [vmem:[#allocation15 + $0xc90] ss:$28 sps:$4 sm:$0xff]  }
 0x580   :  { %7230 = vmatpush3.bf16.msra.mxu1 %v7972_v58  ;;  %6072 = vmatprep.subr.bf16.mxu0 %v7975_v61  ;;  %v8033_v58 = vld [vmem:[#allocation15 + $0x588] ss:$28 sps:$4 sm:$0xff]   ;;  %v8037_v61 = vld [vmem:[#allocation15 + $0xad0] ss:$28 sps:$4 sm:$0xff]  }
 0x581   :  { %7231 = vmatprep.subr.bf16.mxu1 %v7976_v62  ;;  %v8040_v62 = vld [vmem:[#allocation15 + $0x5c4] ss:$28 sps:$4 sm:$0xff]  }
 0x583   :  { %6073 = vmatpush1.bf16.msra.mxu0 %v7973_v63  ;;  %v8041_v63 = vld [vmem:[#allocation15 + $0xcc8] ss:$28 sps:$4 sm:$0xff]  }
 0x584   :  { %7232 = vmatpush3.bf16.msra.mxu1 %v7977_v0  ;;  %6074 = vmatprep.subr.bf16.mxu0 %v7980_v1  ;;  %v8038_v0 = vld [vmem:[#allocation15 + $0x5c0] ss:$28 sps:$4 sm:$0xff]   ;;  %v8042_v1 = vld [vmem:[#allocation15 + $0xb08] ss:$28 sps:$4 sm:$0xff]  }
 0x585   :  { %7233 = vmatprep.subr.bf16.mxu1 %v7981_v2  ;;  %v8045_v2 = vld [vmem:[#allocation15 + $0x5fc] ss:$28 sps:$4 sm:$0xff]  }
 0x587   :  { %6075 = vmatpush1.bf16.msra.mxu0 %v7978_v4  ;;  %v8046_v4 = vld [vmem:[#allocation15 + $0xd00] ss:$28 sps:$4 sm:$0xff]  }
 0x588   :  { %7234 = vmatpush3.bf16.msra.mxu1 %v7982_v8  ;;  %6076 = vmatprep.subr.bf16.mxu0 %v7985_v9  ;;  %v8043_v8 = vld [vmem:[#allocation15 + $0x5f8] ss:$28 sps:$4 sm:$0xff]   ;;  %v8047_v9 = vld [vmem:[#allocation15 + $0xb40] ss:$28 sps:$4 sm:$0xff]  }
 0x589   :  { %7235 = vmatprep.subr.bf16.mxu1 %v7986_v10  ;;  %v8050_v10 = vld [vmem:[#allocation15 + $0x634] ss:$28 sps:$4 sm:$0xff]  }
 0x58b   :  { %6077 = vmatpush1.bf16.msra.mxu0 %v7983_v11  ;;  %v8051_v11 = vld [vmem:[#allocation15 + $0xd38] ss:$28 sps:$4 sm:$0xff]  }
 0x58c   :  { %7236 = vmatpush3.bf16.msra.mxu1 %v7987_v12  ;;  %6087 = vmatprep.subr.bf16.mxu0 %v7990_v22  ;;  %v8048_v12 = vld [vmem:[#allocation15 + $0x630] ss:$28 sps:$4 sm:$0xff]   ;;  %v8052_v22 = vld [vmem:[#allocation15 + $0xb78] ss:$28 sps:$4 sm:$0xff]  }
 0x58d   :  { %7243 = vmatprep.subr.bf16.mxu1 %v7991_v13  ;;  %v8055_v13 = vld [vmem:[#allocation15 + $0x66c] ss:$28 sps:$4 sm:$0xff]  }
 0x58e   :  { %6079 = vmatmul.mubr.bf16.vlgmr.msra.gmra.mrb[16].mxu0 %v8704_v43  ;;  %v8002_v43 = vld [vmem:[#allocation15 + $0x788] ss:$28 sps:$4 sm:$0xff]  }
 0x58f   :  { %6283 = vmatmul.mubr.bf16.vlgmr.msra.gmra.mrb[28].mxu1 %v8717_v55  ;;  %6088 = vmatpush1.bf16.msra.mxu0 %v7988_v40  ;;  %v8056_v40 = vld [vmem:[#allocation15 + $0xd70] ss:$28 sps:$4 sm:$0xff]  }
 0x590   :  { %6119 = vmatprep.mubr.bf16.mxu0 %v8708_v31  ;;  %7244 = vmatpush3.bf16.msra.mxu1 %v7992_v14  ;;  %v8007_v31 = vld [vmem:[#allocation15 + $0x7c0] ss:$28 sps:$4 sm:$0xff]   ;;  %v8053_v14 = vld [vmem:[#allocation15 + $0x668] ss:$28 sps:$4 sm:$0xff]  }
 0x591   :  { %6322 = vmatprep.mubr.bf16.mxu1 %v8733_v29  ;;  %6089 = vmatprep.subr.bf16.mxu0 %v7995_v16  ;;  %v8057_v16 = vld [vmem:[#allocation15 + $0xbb0] ss:$28 sps:$4 sm:$0xff]  }
 0x592   :  { %7245 = vmatprep.subr.bf16.mxu1 %v7996_v17  ;;  %v8060_v17 = vld [vmem:[#allocation15 + $0x6a4] ss:$28 sps:$4 sm:$0xff]  }
 0x593   :  { %6090 = vmatpush1.bf16.msra.mxu0 %v7993_v18  ;;  %v8061_v18 = vld [vmem:[#allocation15 + $0xda8] ss:$28 sps:$4 sm:$0xff]  }
 0x594   :  { %7246 = vmatpush3.bf16.msra.mxu1 %v7997_v19  ;;  %6091 = vmatprep.subr.bf16.mxu0 %v8000_v21  ;;  %v8058_v19 = vld [vmem:[#allocation15 + $0x6a0] ss:$28 sps:$4 sm:$0xff]   ;;  %v8062_v21 = vld [vmem:[#allocation15 + $0xbe8] ss:$28 sps:$4 sm:$0xff]  }
 0x595   :  { %7247 = vmatprep.subr.bf16.mxu1 %v8001_v24  ;;  %v8065_v24 = vld [vmem:[#allocation15 + $0x6dc] ss:$28 sps:$4 sm:$0xff]  }
 0x597   :  { %6092 = vmatpush1.bf16.msra.mxu0 %v7998_v49  ;;  %v8066_v49 = vld [vmem:[#allocation15 + $0xde0] ss:$28 sps:$4 sm:$0xff]  }
 0x598   :  { %7248 = vmatpush3.bf16.msra.mxu1 %v8002_v43  ;;  %6093 = vmatprep.subr.bf16.mxu0 %v8005_v23  ;;  %v8063_v43 = vld [vmem:[#allocation15 + $0x6d8] ss:$28 sps:$4 sm:$0xff]   ;;  %v8067_v23 = vld [vmem:[#allocation15 + $0xc20] ss:$28 sps:$4 sm:$0xff]  }
 0x599   :  { %7249 = vmatprep.subr.bf16.mxu1 %v8006_v25  ;;  %v8070_v25 = vld [vmem:[#allocation15 + $0x714] ss:$28 sps:$4 sm:$0xff]  }
 0x59b   :  { %6094 = vmatpush1.bf16.msra.mxu0 %v8003_v26  ;;  %v8068_v26 = vld [vmem:[#allocation15 + $0x710] ss:$28 sps:$4 sm:$0xff]  }
 0x59c   :  { %7250 = vmatpush3.bf16.msra.mxu1 %v8007_v31  ;;  %6095 = vmatprep.subr.bf16.mxu0 %v8010_v28  ;;  %v8073_v31 = vld [vmem:[#allocation15 + $0x74c] ss:$28 sps:$4 sm:$0xff]  }
 0x59d   :  { %7251 = vmatprep.subr.bf16.mxu1 %v8011_v30  ;;  %v8071_v28 = vld [vmem:[#allocation15 + $0x748] ss:$28 sps:$4 sm:$0xff]  }
 0x59e   :  { %v8076_v30 = vld [vmem:[#allocation15 + $0x784] ss:$28 sps:$4 sm:$0xff]  }
 0x59f   :  { %6096 = vmatpush1.bf16.msra.mxu0 %v8008_v47  ;;  %v8074_v47 = vld [vmem:[#allocation15 + $0x780] ss:$28 sps:$4 sm:$0xff]  }
 0x5a0   :  { %7252 = vmatpush3.bf16.msra.mxu1 %v8012_v36  ;;  %6097 = vmatprep.subr.bf16.mxu0 %v8015_v39  ;;  %v8079_v36 = vld [vmem:[#allocation15 + $0x7bc] ss:$28 sps:$4 sm:$0xff]  }
 0x5a1   :  { %7253 = vmatprep.subr.bf16.mxu1 %v8016_v41  ;;  %v8077_v39 = vld [vmem:[#allocation15 + $0x7b8] ss:$28 sps:$4 sm:$0xff]  }
 0x5a2   :  { %v8082_v41 = vld [vmem:[#allocation15 + $0x7f4] ss:$28 sps:$4 sm:$0xff]  }
 0x5a3   :  { %6098 = vmatpush1.bf16.msra.mxu0 %v8013_v42  ;;  %v8080_v42 = vld [vmem:[#allocation15 + $0x7f0] ss:$28 sps:$4 sm:$0xff]  }
 0x5a4   :  { %7254 = vmatpush3.bf16.msra.mxu1 %v8017_v44  ;;  %6099 = vmatprep.subr.bf16.mxu0 %v8020_v45  ;;  %v8083_v44 = vld [vmem:[#allocation15 + $0x828] ss:$28 sps:$4 sm:$0xff]  }
 0x5a5   :  { %7255 = vmatprep.subr.bf16.mxu1 %v8021_v32  ;;  %v8088_v45 = vld [vmem:[#allocation15 + $0x864] ss:$28 sps:$4 sm:$0xff]   ;;  %v8091_v32 = vld [vmem:[#allocation15 + $0x89c] ss:$28 sps:$4 sm:$0xff]  }
 0x5a7   :  { %6100 = vmatpush1.bf16.msra.mxu0 %v8018_v33  ;;  %v8089_v33 = vld [vmem:[#allocation15 + $0x898] ss:$28 sps:$4 sm:$0xff]  }
 0x5a8   :  { %7256 = vmatpush3.bf16.msra.mxu1 %v8022_v35  ;;  %6101 = vmatprep.subr.bf16.mxu0 %v8025_v37  ;;  %v8094_v35 = vld [vmem:[#allocation15 + $0x8d4] ss:$28 sps:$4 sm:$0xff]  }
 0x5a9   :  { %7257 = vmatprep.subr.bf16.mxu1 %v8026_v38  ;;  %v8092_v37 = vld [vmem:[#allocation15 + $0x8d0] ss:$28 sps:$4 sm:$0xff]  }
 0x5aa   :  { %v8097_v38 = vld [vmem:[#allocation15 + $0x90c] ss:$28 sps:$4 sm:$0xff]  }
 0x5ab   :  { %6102 = vmatpush1.bf16.msra.mxu0 %v8023_v46  ;;  %v8095_v46 = vld [vmem:[#allocation15 + $0x908] ss:$28 sps:$4 sm:$0xff]  }
 0x5ac   :  { %7258 = vmatpush3.bf16.msra.mxu1 %v8027_v15  ;;  %6103 = vmatprep.subr.bf16.mxu0 %v8030_v48  ;;  %v8100_v15 = vld [vmem:[#allocation15 + $0x944] ss:$28 sps:$4 sm:$0xff]  }
 0x5ad   :  { %7265 = vmatprep.subr.bf16.mxu1 %v8031_v50  ;;  %v8098_v48 = vld [vmem:[#allocation15 + $0x940] ss:$28 sps:$4 sm:$0xff]  }
 0x5ae   :  { %v8103_v50 = vld [vmem:[#allocation15 + $0x97c] ss:$28 sps:$4 sm:$0xff]  }
 0x5af   :  { %6323 = vmatmul.mubr.bf16.vlgmr.msra.gmra.mrb[32].mxu1 %v8735_v34  ;;  %6104 = vmatpush1.bf16.msra.mxu0 %v8028_v53  ;;  %v8101_v53 = vld [vmem:[#allocation15 + $0x978] ss:$28 sps:$4 sm:$0xff]  }
 0x5b0   :  { %7266 = vmatpush3.bf16.msra.mxu1 %v8032_v54  ;;  %6362 = vmatprep.mubr.bf16.mxu1 %v8739_v5  ;;  %v8106_v54 = vld [vmem:[#allocation15 + $0x9b4] ss:$28 sps:$4 sm:$0xff]  }
 0x5b1   :  { %6105 = vmatprep.subr.bf16.mxu0 %v8035_v7  ;;  %7267 = vmatprep.subr.bf16.mxu1 %v8036_v56  ;;  %v8104_v7 = vld [vmem:[#allocation15 + $0x9b0] ss:$28 sps:$4 sm:$0xff]  }
 0x5b2   :  { %v8109_v56 = vld [vmem:[#allocation15 + $0x9ec] ss:$28 sps:$4 sm:$0xff]  }
 0x5b3   :  { %6106 = vmatpush1.bf16.msra.mxu0 %v8033_v58  ;;  %v8107_v58 = vld [vmem:[#allocation15 + $0x9e8] ss:$28 sps:$4 sm:$0xff]  }
 0x5b4   :  { %7268 = vmatpush3.bf16.msra.mxu1 %v8037_v61  ;;  %6107 = vmatprep.subr.bf16.mxu0 %v8040_v62  ;;  %v8112_v61 = vld [vmem:[#allocation15 + $0xa24] ss:$28 sps:$4 sm:$0xff]  }
 0x5b5   :  { %7269 = vmatprep.subr.bf16.mxu1 %v8041_v63  ;;  %v8110_v62 = vld [vmem:[#allocation15 + $0xa20] ss:$28 sps:$4 sm:$0xff]  }
 0x5b6   :  { %v8115_v63 = vld [vmem:[#allocation15 + $0xa5c] ss:$28 sps:$4 sm:$0xff]  }
 0x5b7   :  { %6108 = vmatpush1.bf16.msra.mxu0 %v8038_v0  ;;  %v8113_v0 = vld [vmem:[#allocation15 + $0xa58] ss:$28 sps:$4 sm:$0xff]  }
 0x5b8   :  { %7270 = vmatpush3.bf16.msra.mxu1 %v8042_v1  ;;  %6109 = vmatprep.subr.bf16.mxu0 %v8045_v2  ;;  %v8118_v1 = vld [vmem:[#allocation15 + $0xa94] ss:$28 sps:$4 sm:$0xff]  }
 0x5b9   :  { %7271 = vmatprep.subr.bf16.mxu1 %v8046_v4  ;;  %v8116_v2 = vld [vmem:[#allocation15 + $0xa90] ss:$28 sps:$4 sm:$0xff]  }
 0x5ba   :  { %v8121_v4 = vld [vmem:[#allocation15 + $0xacc] ss:$28 sps:$4 sm:$0xff]  }
 0x5bb   :  { %6110 = vmatpush1.bf16.msra.mxu0 %v8043_v8  ;;  %v8119_v8 = vld [vmem:[#allocation15 + $0xac8] ss:$28 sps:$4 sm:$0xff]  }
 0x5bc   :  { %7272 = vmatpush3.bf16.msra.mxu1 %v8047_v9  ;;  %6111 = vmatprep.subr.bf16.mxu0 %v8050_v10  ;;  %v8124_v9 = vld [vmem:[#allocation15 + $0xb04] ss:$28 sps:$4 sm:$0xff]  }
 0x5bd   :  { %7273 = vmatprep.subr.bf16.mxu1 %v8051_v11  ;;  %v8122_v10 = vld [vmem:[#allocation15 + $0xb00] ss:$28 sps:$4 sm:$0xff]  }
 0x5be   :  { %v8127_v11 = vld [vmem:[#allocation15 + $0xb3c] ss:$28 sps:$4 sm:$0xff]  }
 0x5bf   :  { %6112 = vmatpush1.bf16.msra.mxu0 %v8048_v12  ;;  %v8125_v12 = vld [vmem:[#allocation15 + $0xb38] ss:$28 sps:$4 sm:$0xff]  }
 0x5c0   :  { %7274 = vmatpush3.bf16.msra.mxu1 %v8052_v22  ;;  %6113 = vmatprep.subr.bf16.mxu0 %v8055_v13  ;;  %v8130_v22 = vld [vmem:[#allocation15 + $0xb74] ss:$28 sps:$4 sm:$0xff]  }
 0x5c1   :  { %7275 = vmatprep.subr.bf16.mxu1 %v8056_v40  ;;  %v8128_v13 = vld [vmem:[#allocation15 + $0xb70] ss:$28 sps:$4 sm:$0xff]   ;;  %v8769_v40 = vld [vmem:[#allocation16] sm:$0xff] }
 0x5c3   :  { %6114 = vmatpush1.bf16.msra.mxu0 %v8053_v14  ;;  %v3390_v14 = vrot.slane %v8769_v40, %v8667_v3 }
 0x5c4   :  { %7276 = vmatpush3.bf16.msra.mxu1 %v8057_v16  ;;  %6115 = vmatprep.subr.bf16.mxu0 %v8060_v17  ;;  %v3386_v16 = vrot.slane %v8769_v40, %v8622_v60  ;;  %v3394_v17 = vrot.slane %v8769_v40, %v8670_v6  ;;  %v8139_v6 = vld [vmem:[#allocation15 + $0xc1c] ss:$28 sps:$4 sm:$0xff]  }
 0x5c5   :  { %7277 = vmatprep.subr.bf16.mxu1 %v8061_v18  ;;  %v8131_v18 = vld [vmem:[#allocation15 + $0xba8] ss:$28 sps:$4 sm:$0xff]  }
 0x5c7   :  { %6116 = vmatpush1.bf16.msra.mxu0 %v8058_v19  ;;  %v8136_v19 = vld [vmem:[#allocation15 + $0xbe4] ss:$28 sps:$4 sm:$0xff]  }
 0x5c8   :  { %7278 = vmatpush3.bf16.msra.mxu1 %v8062_v21  ;;  %6117 = vmatprep.subr.bf16.mxu0 %v8065_v24 }
 0x5c9   :  { %7279 = vmatprep.subr.bf16.mxu1 %v8066_v49 }
 0x5cb   :  { %6118 = vmatpush1.bf16.msra.mxu0 %v8063_v43 }
 0x5cc   :  { %7280 = vmatpush3.bf16.msra.mxu1 %v8067_v23  ;;  %6128 = vmatprep.subr.bf16.mxu0 %v8070_v25 }
 0x5ce   :  { %6120 = vmatmul.mubr.bf16.vlgmr.msra.gmra.mrb[16].mxu0 %v8717_v55  ;;  %v8085_v55 = vld [vmem:[#allocation15 + $0x82c] ss:$28 sps:$4 sm:$0xff]  }
 0x5cf   :  { %6363 = vmatmul.mubr.bf16.vlgmr.msra.gmra.mrb[36].mxu1 %v8750_v59  ;;  %6129 = vmatpush1.bf16.msra.mxu0 %v8068_v26 }
 0x5d0   :  { %6160 = vmatprep.mubr.bf16.mxu0 %v8733_v29  ;;  %6130 = vmatprep.subr.bf16.mxu0 %v8073_v31  ;;  %v8086_v29 = vld [vmem:[#allocation15 + $0x860] ss:$28 sps:$4 sm:$0xff]  }
 0x5d3   :  { %6131 = vmatpush1.bf16.msra.mxu0 %v8071_v28  ;;  %v8134_v28 = vld [vmem:[#allocation15 + $0xbe0] ss:$28 sps:$4 sm:$0xff]  }
 0x5d4   :  { %6132 = vmatprep.subr.bf16.mxu0 %v8076_v30 }
 0x5d7   :  { %6133 = vmatpush1.bf16.msra.mxu0 %v8074_v47  ;;  %v8137_v47 = vld [vmem:[#allocation15 + $0xc18] ss:$28 sps:$4 sm:$0xff]  }
 0x5d8   :  { %6134 = vmatprep.subr.bf16.mxu0 %v8079_v36  ;;  %v8142_v36 = vld [vmem:[#allocation15 + $0xc54] ss:$28 sps:$4 sm:$0xff]  }
 0x5db   :  { %6135 = vmatpush1.bf16.msra.mxu0 %v8077_v39  ;;  %v8140_v39 = vld [vmem:[#allocation15 + $0xc50] ss:$28 sps:$4 sm:$0xff]  }
 0x5dc   :  { %6136 = vmatprep.subr.bf16.mxu0 %v8082_v41  ;;  %v8145_v41 = vld [vmem:[#allocation15 + $0xc8c] ss:$28 sps:$4 sm:$0xff]  }
 0x5df   :  { %6137 = vmatpush1.bf16.msra.mxu0 %v8080_v42 }
 0x5e0   :  { %6138 = vmatprep.subr.bf16.mxu0 %v8085_v55 }
 0x5e3   :  { %6139 = vmatpush1.bf16.msra.mxu0 %v8083_v44  ;;  %v8143_v44 = vld [vmem:[#allocation15 + $0xc88] ss:$28 sps:$4 sm:$0xff]  }
 0x5e4   :  { %6140 = vmatprep.subr.bf16.mxu0 %v8088_v45 }
 0x5e7   :  { %6141 = vmatpush1.bf16.msra.mxu0 %v8086_v29  ;;  %v8148_v29 = vld [vmem:[#allocation15 + $0xcc4] ss:$28 sps:$4 sm:$0xff]  }
 0x5e8   :  { %6142 = vmatprep.subr.bf16.mxu0 %v8091_v32 }
 0x5eb   :  { %6143 = vmatpush1.bf16.msra.mxu0 %v8089_v33  ;;  %v8146_v33 = vld [vmem:[#allocation15 + $0xcc0] ss:$28 sps:$4 sm:$0xff]  }
 0x5ec   :  { %6144 = vmatprep.subr.bf16.mxu0 %v8094_v35  ;;  %v8151_v35 = vld [vmem:[#allocation15 + $0xcfc] ss:$28 sps:$4 sm:$0xff]  }
 0x5ef   :  { %6145 = vmatpush1.bf16.msra.mxu0 %v8092_v37  ;;  %v8149_v37 = vld [vmem:[#allocation15 + $0xcf8] ss:$28 sps:$4 sm:$0xff]  }
 0x5f0   :  { %6146 = vmatprep.subr.bf16.mxu0 %v8097_v38  ;;  %v8154_v38 = vld [vmem:[#allocation15 + $0xd34] ss:$28 sps:$4 sm:$0xff]  }
 0x5f3   :  { %6147 = vmatpush1.bf16.msra.mxu0 %v8095_v46  ;;  %v8152_v46 = vld [vmem:[#allocation15 + $0xd30] ss:$28 sps:$4 sm:$0xff]  }
 0x5f4   :  { %6148 = vmatprep.subr.bf16.mxu0 %v8100_v15  ;;  %v8157_v15 = vld [vmem:[#allocation15 + $0xd6c] ss:$28 sps:$4 sm:$0xff]  }
 0x5f7   :  { %6149 = vmatpush1.bf16.msra.mxu0 %v8098_v48  ;;  %v8155_v48 = vld [vmem:[#allocation15 + $0xd68] ss:$28 sps:$4 sm:$0xff]  }
 0x5f8   :  { %6150 = vmatprep.subr.bf16.mxu0 %v8103_v50  ;;  %v8160_v50 = vld [vmem:[#allocation15 + $0xda4] ss:$28 sps:$4 sm:$0xff]  }
 0x5fb   :  { %6151 = vmatpush1.bf16.msra.mxu0 %v8101_v53 }
 0x5fc   :  { %6152 = vmatprep.subr.bf16.mxu0 %v8106_v54 }
 0x5ff   :  { %6153 = vmatpush1.bf16.msra.mxu0 %v8104_v7  ;;  %v8158_v7 = vld [vmem:[#allocation15 + $0xda0] ss:$28 sps:$4 sm:$0xff]  }
 0x600   :  { %6154 = vmatprep.subr.bf16.mxu0 %v8109_v56 }
 0x603   :  { %6155 = vmatpush1.bf16.msra.mxu0 %v8107_v58 }
 0x604   :  { %6156 = vmatprep.subr.bf16.mxu0 %v8112_v61  ;;  %v8163_v61 = vld [vmem:[#allocation15 + $0xddc] ss:$28 sps:$4 sm:$0xff]  }
 0x607   :  { %6157 = vmatpush1.bf16.msra.mxu0 %v8110_v62 }
 0x608   :  { %6158 = vmatprep.subr.bf16.mxu0 %v8115_v63  ;;  %v8161_v63 = vld [vmem:[#allocation15 + $0xdd8] ss:$28 sps:$4 sm:$0xff]  }
 0x60b   :  { %6159 = vmatpush1.bf16.msra.mxu0 %v8113_v0  ;;  %v3406_v0 = vrot.slane %v8769_v40, %v1219_v27 }
 0x60c   :  { %6169 = vmatprep.subr.bf16.mxu0 %v8118_v1 }
 0x60e   :  { %6161 = vmatmul.mubr.bf16.vlgmr.msra.gmra.mrb[16].mxu0 %v8735_v34  ;;  %v8133_v34 = vld [vmem:[#allocation15 + $0xbac] ss:$28 sps:$4 sm:$0xff]  }
 0x60f   :  { %6170 = vmatpush1.bf16.msra.mxu0 %v8116_v2  ;;  %6201 = vmatprep.mubr.bf16.mxu0 %v8739_v5  ;;  %v3382_v5 = vrot.slane %v8769_v40, %v8619_v57 }
 0x610   :  { %6171 = vmatprep.subr.bf16.mxu0 %v8121_v4 }
 0x613   :  { %6172 = vmatpush1.bf16.msra.mxu0 %v8119_v8 }
 0x614   :  { %6173 = vmatprep.subr.bf16.mxu0 %v8124_v9 }
 0x617   :  { %6174 = vmatpush1.bf16.msra.mxu0 %v8122_v10 }
 0x618   :  { %6175 = vmatprep.subr.bf16.mxu0 %v8127_v11 }
 0x61b   :  { %6176 = vmatpush1.bf16.msra.mxu0 %v8125_v12 }
 0x61c   :  { %6177 = vmatprep.subr.bf16.mxu0 %v8130_v22 }
 0x61f   :  { %6178 = vmatpush1.bf16.msra.mxu0 %v8128_v13 }
 0x620   :  { %6179 = vmatprep.subr.bf16.mxu0 %v8133_v34 }
 0x621   :  { %v5875_v21 = vpop.f32.mrb[12].mxu0  ;;  %v6039_v24 = vpop.f32.mrb[20].mxu1 }
 0x622   :  { %v7315_v49 = vadd.f32 %v5875_v21, %v3382_v5  ;;  %v7317_v43 = vadd.f32 %v6039_v24, %v3390_v14  ;;  %v5877_v23 = vpop.f32.mrb[13].mxu0  ;;  %v6041_v25 = vpop.f32.mrb[21].mxu1  ;;  %v3398_v24 = vrot.slane %v8769_v40, %v1211_v20 }
 0x623   :  { %v7316_v57 = vadd.f32 %v5877_v23, %v3386_v16  ;;  %v7318_v26 = vadd.f32 %v6041_v25, %v3394_v17  ;;  %v5879_v31 = vpop.f32.mrb[14].mxu0  ;;  %v6043_v3 = vpop.f32.mrb[22].mxu1  ;;  %6180 = vmatpush1.bf16.msra.mxu0 %v8131_v18 }
 0x624   :  { %8164 = vtanh.f32 %v7315_v49  ;;  %v5880_v60 = vpop.f32.mrb[15].mxu0  ;;  %v6044_v30 = vpop.f32.mrb[23].mxu1  ;;  %6181 = vmatprep.subr.bf16.mxu0 %v8136_v19  ;;  %v3402_v49 = vrot.slane %v8769_v40, %v1215_v51 }
 0x625   :  { %8166 = vtanh.f32 %v7317_v43 }
 0x626   :  { %8168 = vtanh.f32 %v7316_v57 }
 0x627   :  { %8170 = vtanh.f32 %v7318_v26  ;;  %6182 = vmatpush1.bf16.msra.mxu0 %v8134_v28 }
 0x628   :  { %6183 = vmatprep.subr.bf16.mxu0 %v8139_v6 }
 0x62b   :  { %6184 = vmatpush1.bf16.msra.mxu0 %v8137_v47 }
 0x62c   :  { %6185 = vmatprep.subr.bf16.mxu0 %v8142_v36 }
 0x62e   :  { %v8165_v42 = vpop.eup %8164 }
 0x62f   :  { %v8167_v55 = vpop.eup %8166  ;;  %6380 = vst [vmem:[%s8821_s11] sm:$0xff] %v8165_v42  ;;  %6186 = vmatpush1.bf16.msra.mxu0 %v8140_v39 }
 0x630   :  { %v8169_v45 = vpop.eup %8168  ;;  %6382 = vst [vmem:[%s8821_s11 + $0x10] sm:$0xff] %v8167_v55  ;;  %6187 = vmatprep.subr.bf16.mxu0 %v8145_v41 }
 0x631   :  { %v8171_v32 = vpop.eup %8170  ;;  %6381 = vst [vmem:[%s8821_s11 + $0x8] sm:$0xff] %v8169_v45 }
 0x632   :  { %6383 = vst [vmem:[%s8821_s11 + $0x18] sm:$0xff] %v8171_v32 }
 0x633   :  { %6188 = vmatpush1.bf16.msra.mxu0 %v8143_v44 }
 0x634   :  { %6189 = vmatprep.subr.bf16.mxu0 %v8148_v29 }
 0x637   :  { %6190 = vmatpush1.bf16.msra.mxu0 %v8146_v33 }
 0x638   :  { %6191 = vmatprep.subr.bf16.mxu0 %v8151_v35 }
 0x63b   :  { %6192 = vmatpush1.bf16.msra.mxu0 %v8149_v37 }
 0x63c   :  { %6193 = vmatprep.subr.bf16.mxu0 %v8154_v38 }
 0x63f   :  { %6194 = vmatpush1.bf16.msra.mxu0 %v8152_v46 }
 0x640   :  { %6195 = vmatprep.subr.bf16.mxu0 %v8157_v15 }
 0x642   :  { %v7215_v53 = vpop.f32.mrb[24].mxu1 }
 0x643   :  { %v7216_v54 = vpop.f32.mrb[25].mxu1  ;;  %6196 = vmatpush1.bf16.msra.mxu0 %v8155_v48 }
 0x644   :  { %v7217_v56 = vadd.f32 %v7216_v54, %v7215_v53  ;;  %v7218_v58 = vpop.f32.mrb[26].mxu1  ;;  %6197 = vmatprep.subr.bf16.mxu0 %v8160_v50 }
 0x645   :  { %v7219_v62 = vpop.f32.mrb[27].mxu1 }
 0x646   :  { %v6245_v4 = vadd.f32 %v7217_v56, %v3406_v0 }
 0x647   :  { %6198 = vmatpush1.bf16.msra.mxu0 %v8158_v7 }
 0x648   :  { %6199 = vmatprep.subr.bf16.mxu0 %v8163_v61 }
 0x64b   :  { %6200 = vmatpush1.bf16.msra.mxu0 %v8161_v63 }
 0x64e   :  { %6202 = vmatmul.mubr.bf16.vlgmr.msra.gmra.mrb[16].mxu0 %v8750_v59 }
 0x662   :  { %v7237_v1 = vpop.f32.mrb[28].mxu1 }
 0x663   :  { %v7238_v2 = vpop.f32.mrb[29].mxu1 }
 0x664   :  { %v7239_v8 = vadd.f32 %v7238_v2, %v7237_v1  ;;  %v7240_v9 = vpop.f32.mrb[30].mxu1 }
 0x665   :  { %v7241_v10 = vpop.f32.mrb[31].mxu1 }
 0x666   :  { %v6285_v11 = vadd.f32 %v7239_v8, %v6245_v4 }
 0x682   :  { %v7259_v12 = vpop.f32.mrb[32].mxu1 }
 0x683   :  { %v7260_v22 = vpop.f32.mrb[33].mxu1 }
 0x684   :  { %v7261_v13 = vadd.f32 %v7260_v22, %v7259_v12  ;;  %v7262_v34 = vpop.f32.mrb[34].mxu1 }
 0x685   :  { %v7263_v5 = vpop.f32.mrb[35].mxu1 }
 0x686   :  { %v6325_v14 = vadd.f32 %v7261_v13, %v6285_v11 }
 0x6a2   :  { %v7281_v16 = vpop.f32.mrb[36].mxu1 }
 0x6a3   :  { %v7282_v17 = vpop.f32.mrb[37].mxu1 }
 0x6a4   :  { %v7283_v59 = vadd.f32 %v7282_v17, %v7281_v16  ;;  %v7284_v18 = vpop.f32.mrb[38].mxu1 }
 0x6a5   :  { %v7285_v19 = vpop.f32.mrb[39].mxu1 }
 0x6a6   :  { %v6365_v21 = vadd.f32 %v7283_v59, %v6325_v14 }
 0x6a8   :  { %8172 = vtanh.f32 %v6365_v21 }
 0x6b2   :  { %v8173_v27 = vpop.eup %8172 }
 0x6b3   :  { %6386 = vst [vmem:[%s8821_s11 + $0x30] sm:$0xff] %v8173_v27 }
 0x721   :  { %v6203_v43 = vpop.f32.mrb[16].mxu0 }
 0x722   :  { %v7319_v23 = vadd.f32 %v6203_v43, %v3398_v24  ;;  %v6205_v25 = vpop.f32.mrb[17].mxu0 }
 0x723   :  { %v7320_v57 = vadd.f32 %v6205_v25, %v3402_v49  ;;  %v6207_v26 = vpop.f32.mrb[18].mxu0 }
 0x724   :  { %8174 = vtanh.f32 %v7319_v23  ;;  %v6208_v31 = vpop.f32.mrb[19].mxu0 }
 0x725   :  { %8176 = vtanh.f32 %v7320_v57 }
 0x72e   :  { %v8175_v3 = vpop.eup %8174 }
 0x72f   :  { %v8177_v28 = vpop.eup %8176  ;;  %6384 = vst [vmem:[%s8821_s11 + $0x20] sm:$0xff] %v8175_v3 }
 0x730   :  { %6385 = vst [vmem:[%s8821_s11 + $0x28] sm:$0xff] %v8177_v28 }
 0x731   :  { %6391 = vsyncpa [#allocation3], 1 }
 0x732   :  { %6392 = vsyncpa [#allocation5], 1 }
 0x733   :  { %6393 = vsyncpa [#allocation8], 1 }
 0x734   :  { %6394 = vsyncpa [#allocation11], 1 }
 0x735   :  { %6395 = vsyncpa [#allocation14], 1 }
 0x736   :  { %6396 = vsyncpa [#allocation17], 1 }

// kernel: generator_forward.1
= control target key start
LH: loop header
LB: loop body
LE: loop exit
PB: predicated region body
PF: predicated region fallthrough
CT: control target
= control target key end

     0   :  { %16 = vsyncpa [#allocation3], 0  ;;  %s8810_s0 = inlined_call_operand.vmem [shape: bf16[8,128], index: 0, kind: input, shape index: {}]   ;;  %s8811_s1 = inlined_call_operand.hbm [shape: bf16[128,128], index: 1, kind: input, shape index: {}]   ;;  %s8812_s2 = inlined_call_operand.hbm [shape: f32[1,128], index: 2, kind: input, shape index: {}]   ;;  %s8813_s3 = inlined_call_operand.hbm [shape: bf16[128,256], index: 3, kind: input, shape index: {}]   ;;  %s8814_s4 = inlined_call_operand.hbm [shape: f32[1,256], index: 4, kind: input, shape index: {}]   ;;  %s8815_s5 = inlined_call_operand.hbm [shape: bf16[256,512], index: 5, kind: input, shape index: {}]   ;;  %s8816_s6 = inlined_call_operand.hbm [shape: f32[1,512], index: 6, kind: input, shape index: {}]   ;;  %s8817_s7 = inlined_call_operand.hbm [shape: bf16[512,1024], index: 7, kind: input, shape index: {}]   ;;  %s8818_s8 = inlined_call_operand.hbm [shape: f32[1,1024], index: 8, kind: input, shape index: {}]   ;;  %s8819_s9 = inlined_call_operand.hbm [shape: bf16[1024,896], index: 9, kind: input, shape index: {}]   ;;  %s8820_s10 = inlined_call_operand.hbm [shape: f32[1,896], index: 10, kind: input, shape index: {}]   ;;  %s8821_s11 = inlined_call_operand.vmem [shape: f32[8,896], index: 11, kind: output, shape index: {}]  }
   0x1   :  { %17 = vsyncpa [#allocation5], 0 }
   0x2   :  { %18 = vsyncpa [#allocation8], 0 }
   0x3   :  { %19 = vsyncpa [#allocation11], 0 }
   0x4   :  { %20 = vsyncpa [#allocation14], 0 }
   0x5   :  { %21 = vsyncpa [#allocation17], 0  ;;  %s8410_s17 = smov [#allocation4]   ;;  %s8411_s19 = smov [#allocation7]  }
   0x6   :  { %s42_s18 = sshll.u32 %s8410_s17, 4  ;;  %s64_s20 = sshll.u32 %s8411_s19, 4  ;;  %s43_s18 = int_to_ptr.vmem [resolvable:$true] %s42_s18  ;;  %s65_s20 = int_to_ptr.vmem [resolvable:$true] %s64_s20 }
   0x7   :  { %s8178_s23 = scalar_lea.hbm %s8812_s2, 16 }
   0x8   :  { %p8179_p0 = scmp.ne.s32.totalorder %s8812_s2, %s8178_s23  ;;  %p8182_p1 = scmp.lt.u32.totalorder %s8178_s23, %s8812_s2 }
   0xa   :  { %p8184_p2 = pnand %p8182_p1, %p8179_p0 }
   0xc   :  { %8187 = shalt.err (!%p8184_p2)
}
   0xd   :  { %s8188_s28 = scalar_lea.vmem %s43_s18, 16  ;;  %s8192_s29 = scalar_lea.vmem %s43_s18, 32 }
   0xe   :  { %p8189_p3 = scmp.ne.s32.totalorder %s43_s18, %s8188_s28  ;;  %p8193_p4 = scmp.lt.s32.totalorder %s43_s18, %s43_s18 }
   0xf   :  { %p8194_p5 = scmp.lt.s32.totalorder %s8192_s29, %s8188_s28 }
  0x11   :  { %p8195_p6 = por %p8194_p5, %p8193_p4 }
  0x13   :  { %p8196_p7 = pnand %p8195_p6, %p8189_p3 }
  0x15   :  { %8199 = shalt.err (!%p8196_p7)
}
  0x16   :  { %45 = dma.hbm_to_vmem [thread:$0]  %s8812_s2, 16, %s43_s18, [#allocation5]  }
  0x17   :  { %s8200_s15 = scalar_lea.hbm %s8814_s4, 32 }
  0x18   :  { %p8201_p8 = scmp.ne.s32.totalorder %s8814_s4, %s8200_s15  ;;  %p8204_p9 = scmp.lt.u32.totalorder %s8200_s15, %s8814_s4 }
  0x1a   :  { %p8206_p10 = pnand %p8204_p9, %p8201_p8 }
  0x1c   :  { %8209 = shalt.err (!%p8206_p10)
}
  0x1d   :  { %s8210_s22 = scalar_lea.vmem %s65_s20, 32  ;;  %p8215_p12 = scmp.lt.s32.totalorder %s65_s20, %s65_s20 }
  0x1e   :  { %p8211_p11 = scmp.ne.s32.totalorder %s65_s20, %s8210_s22  ;;  %p8216_p13 = scmp.lt.s32.totalorder %s8210_s22, %s8210_s22 }
  0x20   :  { %p8217_p0 = por %p8216_p13, %p8215_p12 }
  0x22   :  { %p8218_p1 = pnand %p8217_p0, %p8211_p11 }
  0x24   :  { %8221 = shalt.err (!%p8218_p1)
}
  0x25   :  { %67 = dma.hbm_to_vmem [thread:$0]  %s8814_s4, 32, %s65_s20, [#allocation8]  }
  0x26   :  { %s8412_s23 = smov [#allocation10]   ;;  %s8413_s25 = smov [#allocation13]  }
  0x27   :  { %s86_s24 = sshll.u32 %s8412_s23, 4  ;;  %s108_s26 = sshll.u32 %s8413_s25, 4  ;;  %s87_s24 = int_to_ptr.vmem [resolvable:$true] %s86_s24  ;;  %s109_s26 = int_to_ptr.vmem [resolvable:$true] %s108_s26 }
  0x28   :  { %s8222_s29 = scalar_lea.hbm %s8816_s6, 64 }
  0x29   :  { %p8223_p2 = scmp.ne.s32.totalorder %s8816_s6, %s8222_s29  ;;  %p8226_p3 = scmp.lt.u32.totalorder %s8222_s29, %s8816_s6 }
  0x2b   :  { %p8228_p4 = pnand %p8226_p3, %p8223_p2 }
  0x2d   :  { %8231 = shalt.err (!%p8228_p4)
}
  0x2e   :  { %s8232_s4 = scalar_lea.vmem %s87_s24, 64  ;;  %p8237_p6 = scmp.lt.s32.totalorder %s87_s24, %s87_s24 }
  0x2f   :  { %p8233_p5 = scmp.ne.s32.totalorder %s87_s24, %s8232_s4  ;;  %p8238_p7 = scmp.lt.s32.totalorder %s8232_s4, %s8232_s4 }
  0x31   :  { %p8239_p8 = por %p8238_p7, %p8237_p6 }
  0x33   :  { %p8240_p9 = pnand %p8239_p8, %p8233_p5 }
  0x35   :  { %8243 = shalt.err (!%p8240_p9)
}
  0x36   :  { %89 = dma.hbm_to_vmem [thread:$0]  %s8816_s6, 64, %s87_s24, [#allocation11]  }
  0x37   :  { %s8244_s19 = scalar_lea.hbm %s8818_s8, 128 }
  0x38   :  { %p8245_p10 = scmp.ne.s32.totalorder %s8818_s8, %s8244_s19  ;;  %p8248_p11 = scmp.lt.u32.totalorder %s8244_s19, %s8818_s8 }
  0x3a   :  { %p8250_p12 = pnand %p8248_p11, %p8245_p10 }
  0x3c   :  { %8253 = shalt.err (!%p8250_p12)
}
  0x3d   :  { %s8254_s23 = scalar_lea.vmem %s109_s26, 128  ;;  %p8259_p0 = scmp.lt.s32.totalorder %s109_s26, %s109_s26 }
  0x3e   :  { %p8255_p13 = scmp.ne.s32.totalorder %s109_s26, %s8254_s23  ;;  %p8260_p1 = scmp.lt.s32.totalorder %s8254_s23, %s8254_s23 }
  0x40   :  { %p8261_p2 = por %p8260_p1, %p8259_p0 }
  0x42   :  { %p8262_p3 = pnand %p8261_p2, %p8255_p13 }
  0x44   :  { %8265 = shalt.err (!%p8262_p3)
}
  0x45   :  { %111 = dma.hbm_to_vmem [thread:$0]  %s8818_s8, 128, %s109_s26, [#allocation14]  }
  0x46   :  { %s8414_s25 = smov [#allocation2]   ;;  %s8266_s30 = scalar_lea.hbm %s8811_s1, 1024 }
  0x47   :  { %s29_s27 = sshll.u32 %s8414_s25, 4  ;;  %p8267_p4 = scmp.ne.s32.totalorder %s8811_s1, %s8266_s30  ;;  %s30_s27 = int_to_ptr.vmem [resolvable:$true] %s29_s27 }
  0x48   :  { %p8270_p5 = scmp.lt.u32.totalorder %s8266_s30, %s8811_s1 }
  0x4a   :  { %p8272_p6 = pnand %p8270_p5, %p8267_p4 }
  0x4c   :  { %8275 = shalt.err (!%p8272_p6)
}
  0x4d   :  { %s8276_s20 = scalar_lea.vmem %s30_s27, 1024  ;;  %p8281_p8 = scmp.lt.s32.totalorder %s30_s27, %s30_s27 }
  0x4e   :  { %p8277_p7 = scmp.ne.s32.totalorder %s30_s27, %s8276_s20  ;;  %p8282_p9 = scmp.lt.s32.totalorder %s8276_s20, %s8276_s20 }
  0x50   :  { %p8283_p10 = por %p8282_p9, %p8281_p8 }
  0x52   :  { %p8284_p11 = pnand %p8283_p10, %p8277_p7 }
  0x54   :  { %8287 = shalt.err (!%p8284_p11)
}
  0x55   :  { %s8415_s8 = smov 64   ;;  %s8416_s26 = smov 4  }
  0x56   :  { %35 = dma.hbm_to_vmem [thread:$0]  %s8811_s1, 1024, %s30_s27, [#allocation3], %s8415_s8, %s8415_s8, %s8416_s26  }
  0x57   :  { %s8417_s17 = smov [#allocation6]   ;;  %s8288_s2 = scalar_lea.hbm %s8813_s3, 2048 }
  0x58   :  { %s51_s19 = sshll.u32 %s8417_s17, 4  ;;  %p8289_p12 = scmp.ne.s32.totalorder %s8813_s3, %s8288_s2  ;;  %s52_s19 = int_to_ptr.vmem [resolvable:$true] %s51_s19 }
  0x59   :  { %p8292_p13 = scmp.lt.u32.totalorder %s8288_s2, %s8813_s3 }
  0x5b   :  { %p8294_p0 = pnand %p8292_p13, %p8289_p12 }
  0x5d   :  { %8297 = shalt.err (!%p8294_p0)
}
  0x5e   :  { %s8298_s25 = scalar_lea.vmem %s52_s19, 2048  ;;  %p8303_p2 = scmp.lt.s32.totalorder %s52_s19, %s52_s19 }
  0x5f   :  { %p8299_p1 = scmp.ne.s32.totalorder %s52_s19, %s8298_s25  ;;  %p8304_p3 = scmp.lt.s32.totalorder %s8298_s25, %s8298_s25 }
  0x61   :  { %p8305_p4 = por %p8304_p3, %p8303_p2 }
  0x63   :  { %p8306_p5 = pnand %p8305_p4, %p8299_p1 }
  0x65   :  { %8309 = shalt.err (!%p8306_p5)
}
  0x66   :  { %s8418_s1 = smov 128   ;;  %s8419_s27 = smov 8  }
  0x67   :  { %57 = dma.hbm_to_vmem [thread:$0]  %s8813_s3, 2048, %s52_s19, [#allocation5], %s8418_s1, %s8418_s1, %s8419_s27  }
  0x68   :  { %s8420_s30 = smov [#allocation9]   ;;  %s8310_s4 = scalar_lea.hbm %s8815_s5, 8192 }
  0x69   :  { %s73_s12 = sshll.u32 %s8420_s30, 4  ;;  %p8311_p6 = scmp.ne.s32.totalorder %s8815_s5, %s8310_s4  ;;  %s74_s12 = int_to_ptr.vmem [resolvable:$true] %s73_s12 }
  0x6a   :  { %p8314_p7 = scmp.lt.u32.totalorder %s8310_s4, %s8815_s5 }
  0x6c   :  { %p8316_p8 = pnand %p8314_p7, %p8311_p6 }
  0x6e   :  { %8319 = shalt.err (!%p8316_p8)
}
  0x6f   :  { %s8320_s16 = scalar_lea.vmem %s74_s12, 8192  ;;  %p8325_p10 = scmp.lt.s32.totalorder %s74_s12, %s74_s12 }
  0x70   :  { %p8321_p9 = scmp.ne.s32.totalorder %s74_s12, %s8320_s16  ;;  %p8326_p11 = scmp.lt.s32.totalorder %s8320_s16, %s8320_s16 }
  0x72   :  { %p8327_p12 = por %p8326_p11, %p8325_p10 }
  0x74   :  { %p8328_p13 = pnand %p8327_p12, %p8321_p9 }
  0x76   :  { %8331 = shalt.err (!%p8328_p13)
}
  0x77   :  { %s8421_s3 = smov 256   ;;  %s8422_s17 = smov 16  }
  0x78   :  { %79 = dma.hbm_to_vmem [thread:$0]  %s8815_s5, 8192, %s74_s12, [#allocation8], %s8421_s3, %s8421_s3, %s8422_s17  }
  0x79   :  { %s8423_s22 = smov [#allocation12]   ;;  %s8332_s6 = scalar_lea.hbm %s8817_s7, 32768 }
  0x7a   :  { %s95_s2 = sshll.u32 %s8423_s22, 4  ;;  %p8333_p0 = scmp.ne.s32.totalorder %s8817_s7, %s8332_s6  ;;  %s96_s2 = int_to_ptr.vmem [resolvable:$true] %s95_s2 }
  0x7b   :  { %p8336_p1 = scmp.lt.u32.totalorder %s8332_s6, %s8817_s7 }
  0x7d   :  { %p8338_p2 = pnand %p8336_p1, %p8333_p0 }
  0x7f   :  { %8341 = shalt.err (!%p8338_p2)
}
  0x80   :  { %s8342_s28 = scalar_lea.vmem %s96_s2, 32768  ;;  %p8347_p4 = scmp.lt.s32.totalorder %s96_s2, %s96_s2 }
  0x81   :  { %p8343_p3 = scmp.ne.s32.totalorder %s96_s2, %s8342_s28  ;;  %p8348_p5 = scmp.lt.s32.totalorder %s8342_s28, %s8342_s28 }
  0x83   :  { %p8349_p6 = por %p8348_p5, %p8347_p4 }
  0x85   :  { %p8350_p7 = pnand %p8349_p6, %p8343_p3 }
  0x87   :  { %8353 = shalt.err (!%p8350_p7)
}
  0x88   :  { %s8424_s5 = smov 512   ;;  %s8425_s29 = smov 32  }
  0x89   :  { %101 = dma.hbm_to_vmem [thread:$0]  %s8817_s7, 32768, %s96_s2, [#allocation11], %s8424_s5, %s8424_s5, %s8425_s29  }
  0x8a   :  { %s8426_s13 = smov [#allocation15]   ;;  %s8354_s8 = scalar_lea.hbm %s8819_s9, 57344 }
  0x8b   :  { %s117_s14 = sshll.u32 %s8426_s13, 4  ;;  %p8355_p8 = scmp.ne.s32.totalorder %s8819_s9, %s8354_s8  ;;  %s118_s14 = int_to_ptr.vmem [resolvable:$true] %s117_s14 }
  0x8c   :  { %p8358_p9 = scmp.lt.u32.totalorder %s8354_s8, %s8819_s9 }
  0x8e   :  { %p8360_p10 = pnand %p8358_p9, %p8355_p8 }
  0x90   :  { %8363 = shalt.err (!%p8360_p10)
}
  0x91   :  { %s8364_s17 = scalar_lea.vmem %s118_s14, 57344  ;;  %p8369_p12 = scmp.lt.s32.totalorder %s118_s14, %s118_s14 }
  0x92   :  { %p8365_p11 = scmp.ne.s32.totalorder %s118_s14, %s8364_s17  ;;  %p8370_p13 = scmp.lt.s32.totalorder %s8364_s17, %s8364_s17 }
  0x94   :  { %p8371_p0 = por %p8370_p13, %p8369_p12 }
  0x96   :  { %p8372_p1 = pnand %p8371_p0, %p8365_p11 }
  0x98   :  { %8375 = shalt.err (!%p8372_p1)
}
  0x99   :  { %s8427_s7 = smov 448   ;;  %s8428_s19 = smov 28  }
  0x9a   :  { %123 = dma.hbm_to_vmem [thread:$0]  %s8819_s9, 57344, %s118_s14, [#allocation14], %s8427_s7, %s8427_s7, %s8428_s19  }
  0x9b   :  { %s8429_s2 = smov [#allocation16]   ;;  %s8376_s24 = scalar_lea.hbm %s8820_s10, 112 }
  0x9c   :  { %s130_s18 = sshll.u32 %s8429_s2, 4  ;;  %p8377_p2 = scmp.ne.s32.totalorder %s8820_s10, %s8376_s24  ;;  %s131_s18 = int_to_ptr.vmem [resolvable:$true] %s130_s18 }
  0x9d   :  { %p8380_p3 = scmp.lt.u32.totalorder %s8376_s24, %s8820_s10 }
  0x9f   :  { %p8382_p4 = pnand %p8380_p3, %p8377_p2 }
  0xa1   :  { %8385 = shalt.err (!%p8382_p4)
}
  0xa2   :  { %s8386_s5 = scalar_lea.vmem %s131_s18, 112  ;;  %s8390_s9 = scalar_lea.vmem %s131_s18, 128 }
  0xa3   :  { %p8387_p5 = scmp.ne.s32.totalorder %s131_s18, %s8386_s5  ;;  %p8391_p6 = scmp.lt.s32.totalorder %s131_s18, %s131_s18 }
  0xa4   :  { %p8392_p7 = scmp.lt.s32.totalorder %s8390_s9, %s8386_s5 }
  0xa6   :  { %p8393_p8 = por %p8392_p7, %p8391_p6 }
  0xa8   :  { %p8394_p9 = pnand %p8393_p8, %p8387_p5 }
  0xaa   :  { %8397 = shalt.err (!%p8394_p9)
}
  0xab   :  { %133 = dma.hbm_to_vmem [thread:$0]  %s8820_s10, 112, %s131_s18, [#allocation17]  }
  0xac   :  { %8398 = dma.done.wait [#allocation3], 1024  }
  0xad   :  { %8399 = vsyncadd [#allocation3], 4294966272 }
  0xae   :  { %8400 = dma.done.wait [#allocation5], 2064  }
  0xaf   :  { %8401 = vsyncadd [#allocation5], 4294965232 }
  0xb0   :  { %8402 = dma.done.wait [#allocation8], 8224  }
  0xb1   :  { %8403 = vsyncadd [#allocation8], 4294959072 }
  0xb2   :  { %8404 = dma.done.wait [#allocation11], 32832  }
  0xb3   :  { %8405 = vsyncadd [#allocation11], 4294934464 }
  0xb4   :  { %8406 = dma.done.wait [#allocation14], 57472  }
  0xb5   :  { %8407 = vsyncadd [#allocation14], 4294909824 }
  0xb6   :  { %8408 = dma.done.wait [#allocation17], 112  }
  0xb7   :  { %8409 = vsyncadd [#allocation17], 4294967184  ;;  %v8430_v0 = vmov 0.0   ;;  %vm8431_vm0 = vmmov 0   ;;  %v7396_v1 = vld [vmem:[#allocation2] sm:$0xff]   ;;  %v7397_v2 = vld [vmem:[#allocation2 + $0x8] sm:$0xff]  }
  0xb8   :  { %7287 = vmatprep.subr.bf16.mxu0 %v8430_v0  ;;  %7303 = vmatprep.mubr.msk.bf16.mxu0 %vm8431_vm0, %v8430_v0  ;;  %v7398_v3 = vld [vmem:[#allocation2 + $0x10] sm:$0xff]   ;;  %v7406_v5 = vld [vmem:[#allocation6] ss:$8 sps:$4 sm:$0xff]   ;;  %v7399_v6 = vld [vmem:[#allocation2 + $0x18] sm:$0xff]   ;;  %v8432_v26 = vmov 0  }
  0xb9   :  { %7288 = vmatpush3.bf16.msra.mxu0 %v7396_v1  ;;  %v7404_v4 = vld [vmem:[#allocation6 + $0x4] ss:$8 sps:$4 sm:$0xff]   ;;  %v7407_v7 = vld [vmem:[#allocation6 + $0x14] ss:$8 sps:$4 sm:$0xff]   ;;  %v7409_v8 = vld [vmem:[#allocation6 + $0x10] ss:$8 sps:$4 sm:$0xff]   ;;  %420 = vmatprep.mubr.bf16.mxu1 %v8432_v26 }
  0xba   :  { %7289 = vmatprep.subr.bf16.mxu0 %v8430_v0  ;;  %388 = vmatprep.subr.bf16.mxu1 %v7404_v4  ;;  %v7410_v9 = vld [vmem:[#allocation6 + $0x24] ss:$8 sps:$4 sm:$0xff]   ;;  %v7412_v12 = vld [vmem:[#allocation6 + $0x20] ss:$8 sps:$4 sm:$0xff]   ;;  %v7413_v13 = vld [vmem:[#allocation6 + $0x34] ss:$8 sps:$4 sm:$0xff]  }
  0xbb   :  { %389 = vmatpush1.bf16.msra.mxu1 %v7406_v5  ;;  %v7400_v10 = vld [vmem:[#allocation2 + $0x20] sm:$0xff]   ;;  %v7401_v11 = vld [vmem:[#allocation2 + $0x28] sm:$0xff]   ;;  %v7415_v14 = vld [vmem:[#allocation6 + $0x30] ss:$8 sps:$4 sm:$0xff]  }
  0xbc   :  { %390 = vmatprep.subr.bf16.mxu1 %v7407_v7  ;;  %v7416_v15 = vld [vmem:[#allocation6 + $0x44] ss:$8 sps:$4 sm:$0xff]   ;;  %v7418_v17 = vld [vmem:[#allocation6 + $0x40] ss:$8 sps:$4 sm:$0xff]   ;;  %v7419_v18 = vld [vmem:[#allocation6 + $0x54] ss:$8 sps:$4 sm:$0xff]  }
  0xbd   :  { %7290 = vmatpush3.bf16.msra.mxu0 %v7397_v2  ;;  %v7402_v16 = vld [vmem:[#allocation2 + $0x30] sm:$0xff]   ;;  %v7403_v19 = vld [vmem:[#allocation2 + $0x38] sm:$0xff]   ;;  %v165_v21 = vld [vmem:[%s8810_s0] sm:$0xf] }
  0xbe   :  { %7291 = vmatprep.subr.bf16.mxu0 %v8430_v0  ;;  %v7421_v20 = vld [vmem:[#allocation6 + $0x50] ss:$8 sps:$4 sm:$0xff]   ;;  %v7422_v22 = vld [vmem:[#allocation6 + $0x64] ss:$8 sps:$4 sm:$0xff]   ;;  %v7424_v23 = vld [vmem:[#allocation6 + $0x60] ss:$8 sps:$4 sm:$0xff]  }
  0xbf   :  { %391 = vmatpush1.bf16.msra.mxu1 %v7409_v8  ;;  %v7425_v24 = vld [vmem:[#allocation6 + $0x74] ss:$8 sps:$4 sm:$0xff]   ;;  %v7427_v25 = vld [vmem:[#allocation6 + $0x70] ss:$8 sps:$4 sm:$0xff]   ;;  %v935_v5 = vld [vmem:[#allocation12] sm:$0xff] }
  0xc0   :  { %392 = vmatprep.subr.bf16.mxu1 %v7410_v9  ;;  %v7430_v27 = vld [vmem:[#allocation9 + $0x4] ss:$16 sps:$4 sm:$0xff]   ;;  %v6397_v28 = vld [vmem:[#allocation4] ss:$0 sm:$0xff]  ;;  %v7428_v36 = vld [vmem:[#allocation9] ss:$16 sps:$4 sm:$0xff]  }
  0xc1   :  { %7292 = vmatpush3.bf16.msra.mxu0 %v7398_v3  ;;  %v7433_v38 = vld [vmem:[#allocation9 + $0x24] ss:$16 sps:$4 sm:$0xff]   ;;  %v7431_v39 = vld [vmem:[#allocation9 + $0x20] ss:$16 sps:$4 sm:$0xff]   ;;  %v7478_v4 = vld [vmem:[#allocation9 + $0xc] ss:$16 sps:$4 sm:$0xff]  }
  0xc2   :  { %7293 = vmatprep.subr.bf16.mxu0 %v8430_v0  ;;  %v7436_v40 = vld [vmem:[#allocation9 + $0x44] ss:$16 sps:$4 sm:$0xff]   ;;  %v7434_v41 = vld [vmem:[#allocation9 + $0x40] ss:$16 sps:$4 sm:$0xff]  }
  0xc3   :  { %393 = vmatpush1.bf16.msra.mxu1 %v7412_v12  ;;  %v7439_v42 = vld [vmem:[#allocation9 + $0x64] ss:$16 sps:$4 sm:$0xff]   ;;  %v7437_v43 = vld [vmem:[#allocation9 + $0x60] ss:$16 sps:$4 sm:$0xff]  }
  0xc4   :  { %394 = vmatprep.subr.bf16.mxu1 %v7413_v13  ;;  %v7442_v44 = vld [vmem:[#allocation9 + $0x84] ss:$16 sps:$4 sm:$0xff]   ;;  %v7440_v45 = vld [vmem:[#allocation9 + $0x80] ss:$16 sps:$4 sm:$0xff]  }
  0xc5   :  { %7294 = vmatpush3.bf16.msra.mxu0 %v7399_v6  ;;  %v7445_v46 = vld [vmem:[#allocation9 + $0xa4] ss:$16 sps:$4 sm:$0xff]   ;;  %v7443_v47 = vld [vmem:[#allocation9 + $0xa0] ss:$16 sps:$4 sm:$0xff]  }
  0xc6   :  { %7295 = vmatprep.subr.bf16.mxu0 %v8430_v0  ;;  %v7448_v48 = vld [vmem:[#allocation9 + $0xc4] ss:$16 sps:$4 sm:$0xff]   ;;  %v7446_v49 = vld [vmem:[#allocation9 + $0xc0] ss:$16 sps:$4 sm:$0xff]  }
  0xc7   :  { %395 = vmatpush1.bf16.msra.mxu1 %v7415_v14  ;;  %v7451_v50 = vld [vmem:[#allocation9 + $0xe4] ss:$16 sps:$4 sm:$0xff]   ;;  %v7449_v51 = vld [vmem:[#allocation9 + $0xe0] ss:$16 sps:$4 sm:$0xff]  }
  0xc8   :  { %396 = vmatprep.subr.bf16.mxu1 %v7416_v15  ;;  %v7454_v52 = vld [vmem:[#allocation9 + $0x104] ss:$16 sps:$4 sm:$0xff]   ;;  %v7452_v53 = vld [vmem:[#allocation9 + $0x100] ss:$16 sps:$4 sm:$0xff]  }
  0xc9   :  { %7296 = vmatpush3.bf16.msra.mxu0 %v7400_v10  ;;  %v7457_v54 = vld [vmem:[#allocation9 + $0x124] ss:$16 sps:$4 sm:$0xff]   ;;  %v7455_v55 = vld [vmem:[#allocation9 + $0x120] ss:$16 sps:$4 sm:$0xff]  }
  0xca   :  { %7297 = vmatprep.subr.bf16.mxu0 %v8430_v0  ;;  %v7460_v56 = vld [vmem:[#allocation9 + $0x144] ss:$16 sps:$4 sm:$0xff]   ;;  %v7458_v57 = vld [vmem:[#allocation9 + $0x140] ss:$16 sps:$4 sm:$0xff]  }
  0xcb   :  { %397 = vmatpush1.bf16.msra.mxu1 %v7418_v17  ;;  %v7463_v58 = vld [vmem:[#allocation9 + $0x164] ss:$16 sps:$4 sm:$0xff]   ;;  %v7461_v59 = vld [vmem:[#allocation9 + $0x160] ss:$16 sps:$4 sm:$0xff]  }
  0xcc   :  { %398 = vmatprep.subr.bf16.mxu1 %v7419_v18  ;;  %v7466_v60 = vld [vmem:[#allocation9 + $0x184] ss:$16 sps:$4 sm:$0xff]   ;;  %v7464_v61 = vld [vmem:[#allocation9 + $0x180] ss:$16 sps:$4 sm:$0xff]  }
  0xcd   :  { %7298 = vmatpush3.bf16.msra.mxu0 %v7401_v11  ;;  %v7469_v62 = vld [vmem:[#allocation9 + $0x1a4] ss:$16 sps:$4 sm:$0xff]   ;;  %v7467_v63 = vld [vmem:[#allocation9 + $0x1a0] ss:$16 sps:$4 sm:$0xff]  }
  0xce   :  { %7299 = vmatprep.subr.bf16.mxu0 %v8430_v0  ;;  %v7470_v1 = vld [vmem:[#allocation9 + $0x1c0] ss:$16 sps:$4 sm:$0xff]   ;;  %v7475_v2 = vld [vmem:[#allocation9 + $0x1e4] ss:$16 sps:$4 sm:$0xff]  }
  0xcf   :  { %399 = vmatpush1.bf16.msra.mxu1 %v7421_v20  ;;  %v7473_v3 = vld [vmem:[#allocation9 + $0x1e0] ss:$16 sps:$4 sm:$0xff]   ;;  %v939_v6 = vld [vmem:[#allocation12 + $0x20] sm:$0xff] }
  0xd0   :  { %400 = vmatprep.subr.bf16.mxu1 %v7422_v22  ;;  %v6486_v7 = vcombine.low %v935_v5, %v939_v6  ;;  %v6487_v8 = vcombine.high %v935_v5, %v939_v6  ;;  %v943_v9 = vld [vmem:[#allocation12 + $0x40] sm:$0xff] }
  0xd1   :  { %7300 = vmatpush3.bf16.msra.mxu0 %v7402_v16  ;;  %v947_v10 = vld [vmem:[#allocation12 + $0x60] sm:$0xff] }
  0xd2   :  { %7301 = vmatprep.subr.bf16.mxu0 %v8430_v0  ;;  %v7472_v0 = vld [vmem:[#allocation9 + $0x1c4] ss:$16 sps:$4 sm:$0xff]   ;;  %v6495_v11 = vcombine.high %v943_v9, %v947_v10  ;;  %v6494_v12 = vcombine.low %v943_v9, %v947_v10 }
  0xd3   :  { %401 = vmatpush1.bf16.msra.mxu1 %v7424_v23  ;;  %v951_v13 = vld [vmem:[#allocation12 + $0x80] sm:$0xff] }
  0xd4   :  { %402 = vmatprep.subr.bf16.mxu1 %v7425_v24  ;;  %v955_v14 = vld [vmem:[#allocation12 + $0xa0] sm:$0xff] }
  0xd5   :  { %7302 = vmatpush3.bf16.msra.mxu0 %v7403_v19  ;;  %v6503_v15 = vcombine.high %v951_v13, %v955_v14  ;;  %v6502_v16 = vcombine.low %v951_v13, %v955_v14  ;;  %v959_v17 = vld [vmem:[#allocation12 + $0xc0] sm:$0xff] }
  0xd6   :  { %2513 = vmatprep.subr.bf16.mxu0 %v6487_v8  ;;  %v963_v18 = vld [vmem:[#allocation12 + $0xe0] sm:$0xff] }
  0xd7   :  { %403 = vmatpush1.bf16.msra.mxu1 %v7427_v25  ;;  %v6511_v19 = vcombine.high %v959_v17, %v963_v18  ;;  %v6510_v20 = vcombine.low %v959_v17, %v963_v18  ;;  %v971_v22 = vld [vmem:[#allocation12 + $0x120] sm:$0xff]  ;;  %v7481_v17 = vld [vmem:[#allocation9 + $0x2c] ss:$16 sps:$4 sm:$0xff]  }
  0xd8   :  { %7304 = vmatmul.mubr.bf16.vlgmr.msra.gmra.mrb[0].mxu0 %v165_v21  ;;  %841 = vmatprep.subr.bf16.mxu1 %v7430_v27  ;;  %v967_v21 = vld [vmem:[#allocation12 + $0x100] sm:$0xff] }
  0xd9   :  { %2514 = vmatpush1.bf16.msra.mxu0 %v6486_v7  ;;  %v6519_v23 = vcombine.high %v967_v21, %v971_v22  ;;  %v6518_v24 = vcombine.low %v967_v21, %v971_v22  ;;  %v975_v25 = vld [vmem:[#allocation12 + $0x140] sm:$0xff]  ;;  %v7487_v21 = vld [vmem:[#allocation9 + $0x6c] ss:$16 sps:$4 sm:$0xff]  }
  0xda   :  { %2515 = vmatprep.subr.bf16.mxu0 %v6495_v11  ;;  %v979_v26 = vld [vmem:[#allocation12 + $0x160] sm:$0xff] }
  0xdb   :  { %v6527_v27 = vcombine.high %v975_v25, %v979_v26  ;;  %v7479_v18 = vld [vmem:[#allocation9 + $0x28] ss:$16 sps:$4 sm:$0xff]  }
  0xdc   :  { %v7485_v22 = vld [vmem:[#allocation9 + $0x68] ss:$16 sps:$4 sm:$0xff]  }
  0xdd   :  { %2516 = vmatpush1.bf16.msra.mxu0 %v6494_v12 }
  0xde   :  { %2517 = vmatprep.subr.bf16.mxu0 %v6503_v15  ;;  %v7476_v15 = vld [vmem:[#allocation9 + $0x8] ss:$16 sps:$4 sm:$0xff]  }
  0xe1   :  { %2518 = vmatpush1.bf16.msra.mxu0 %v6502_v16 }
  0xe2   :  { %2519 = vmatprep.subr.bf16.mxu0 %v6511_v19  ;;  %v7484_v19 = vld [vmem:[#allocation9 + $0x4c] ss:$16 sps:$4 sm:$0xff]  }
  0xe5   :  { %2520 = vmatpush1.bf16.msra.mxu0 %v6510_v20  ;;  %v7482_v20 = vld [vmem:[#allocation9 + $0x48] ss:$16 sps:$4 sm:$0xff]  }
  0xe6   :  { %2521 = vmatprep.subr.bf16.mxu0 %v6519_v23  ;;  %v7490_v23 = vld [vmem:[#allocation9 + $0x8c] ss:$16 sps:$4 sm:$0xff]  }
  0xe9   :  { %2522 = vmatpush1.bf16.msra.mxu0 %v6518_v24  ;;  %v7488_v24 = vld [vmem:[#allocation9 + $0x88] ss:$16 sps:$4 sm:$0xff]  }
  0xea   :  { %2523 = vmatprep.subr.bf16.mxu0 %v6527_v27  ;;  %v7496_v27 = vld [vmem:[#allocation9 + $0xcc] ss:$16 sps:$4 sm:$0xff]  }
 0x1ab   :  { %v271_v29 = vpop.f32.mrb[0].mxu0 }
 0x1ac   :  { %v272_v30 = vadd.f32 %v6397_v28, %v271_v29  ;;  %v7305_v31 = vpop.f32.mrb[1].mxu0  ;;  %v6526_v28 = vcombine.low %v975_v25, %v979_v26  ;;  %v983_v29 = vld [vmem:[#allocation12 + $0x180] sm:$0xff]  ;;  %v7493_v25 = vld [vmem:[#allocation9 + $0xac] ss:$16 sps:$4 sm:$0xff]  }
 0x1ad   :  { %v274_v32 = vpop.f32.mrb[2].mxu0  ;;  %v7491_v26 = vld [vmem:[#allocation9 + $0xa8] ss:$16 sps:$4 sm:$0xff]  }
 0x1ae   :  { %v277_v33 = vmul.f32 0.2, %v272_v30  ;;  %v7306_v34 = vpop.f32.mrb[3].mxu0  ;;  %2524 = vmatpush1.bf16.msra.mxu0 %v6526_v28  ;;  %v7494_v28 = vld [vmem:[#allocation9 + $0xc8] ss:$16 sps:$4 sm:$0xff]  }
 0x1af   :  { %v995_v34 = vld [vmem:[#allocation12 + $0x1e0] sm:$0xff] }
 0x1b0   :  { %v278_v35 = vmax.f32 %v272_v30, %v277_v33  ;;  %v987_v30 = vld [vmem:[#allocation12 + $0x1a0] sm:$0xff] }
 0x1b1   :  { %v6535_v31 = vcombine.high %v983_v29, %v987_v30  ;;  %v6534_v32 = vcombine.low %v983_v29, %v987_v30  ;;  %v991_v33 = vld [vmem:[#allocation12 + $0x1c0] sm:$0xff]  ;;  %v7499_v29 = vld [vmem:[#allocation9 + $0xec] ss:$16 sps:$4 sm:$0xff]  }
 0x1b2   :  { %v279_v37 = vpack.c.bf16 %v278_v35, %v278_v35  ;;  %v6543_v35 = vcombine.high %v991_v33, %v995_v34  ;;  %v7497_v30 = vld [vmem:[#allocation9 + $0xe8] ss:$16 sps:$4 sm:$0xff]  }
 0x1b3   :  { %2525 = vmatprep.subr.bf16.mxu0 %v6535_v31  ;;  %v7502_v31 = vld [vmem:[#allocation9 + $0x10c] ss:$16 sps:$4 sm:$0xff]  }
 0x1b4   :  { %421 = vmatmul.mubr.bf16.vlgmr.msra.gmra.mrb[0].mxu1 %v279_v37  ;;  %2526 = vmatpush1.bf16.msra.mxu0 %v6534_v32  ;;  %v999_v37 = vld [vmem:[#allocation12 + $0x200] sm:$0xff] }
 0x1b5   :  { %842 = vmatpush1.bf16.msra.mxu1 %v7428_v36  ;;  %v6542_v36 = vcombine.low %v991_v33, %v995_v34  ;;  %2527 = vmatprep.subr.bf16.mxu0 %v6543_v35  ;;  %v7500_v32 = vld [vmem:[#allocation9 + $0x108] ss:$16 sps:$4 sm:$0xff]   ;;  %v7505_v33 = vld [vmem:[#allocation9 + $0x12c] ss:$16 sps:$4 sm:$0xff]  }
 0x1b6   :  { %843 = vmatprep.subr.bf16.mxu1 %v7433_v38  ;;  %v1003_v38 = vld [vmem:[#allocation12 + $0x220] sm:$0xff]  ;;  %v7508_v35 = vld [vmem:[#allocation9 + $0x14c] ss:$16 sps:$4 sm:$0xff]  }
 0x1b7   :  { %v7503_v34 = vld [vmem:[#allocation9 + $0x128] ss:$16 sps:$4 sm:$0xff]  }
 0x1b8   :  { %2528 = vmatpush1.bf16.msra.mxu0 %v6542_v36  ;;  %v7506_v36 = vld [vmem:[#allocation9 + $0x148] ss:$16 sps:$4 sm:$0xff]  }
 0x1b9   :  { %844 = vmatpush1.bf16.msra.mxu1 %v7431_v39  ;;  %v6551_v39 = vcombine.high %v999_v37, %v1003_v38 }
 0x1ba   :  { %845 = vmatprep.subr.bf16.mxu1 %v7436_v40  ;;  %v6550_v40 = vcombine.low %v999_v37, %v1003_v38  ;;  %v7511_v37 = vld [vmem:[#allocation9 + $0x16c] ss:$16 sps:$4 sm:$0xff]   ;;  %v7509_v38 = vld [vmem:[#allocation9 + $0x168] ss:$16 sps:$4 sm:$0xff]  }
 0x1bb   :  { %2529 = vmatprep.subr.bf16.mxu0 %v6551_v39  ;;  %v7514_v39 = vld [vmem:[#allocation9 + $0x18c] ss:$16 sps:$4 sm:$0xff]  }
 0x1bc   :  { %2530 = vmatpush1.bf16.msra.mxu0 %v6550_v40  ;;  %v7512_v40 = vld [vmem:[#allocation9 + $0x188] ss:$16 sps:$4 sm:$0xff]  }
 0x1bd   :  { %846 = vmatpush1.bf16.msra.mxu1 %v7434_v41  ;;  %v1007_v41 = vld [vmem:[#allocation12 + $0x240] sm:$0xff] }
 0x1be   :  { %847 = vmatprep.subr.bf16.mxu1 %v7439_v42  ;;  %v1011_v42 = vld [vmem:[#allocation12 + $0x260] sm:$0xff] }
 0x1c1   :  { %848 = vmatpush1.bf16.msra.mxu1 %v7437_v43  ;;  %v6559_v43 = vcombine.high %v1007_v41, %v1011_v42 }
 0x1c2   :  { %849 = vmatprep.subr.bf16.mxu1 %v7442_v44  ;;  %v6558_v44 = vcombine.low %v1007_v41, %v1011_v42  ;;  %v7517_v41 = vld [vmem:[#allocation9 + $0x1ac] ss:$16 sps:$4 sm:$0xff]   ;;  %v7515_v42 = vld [vmem:[#allocation9 + $0x1a8] ss:$16 sps:$4 sm:$0xff]  }
 0x1c3   :  { %2531 = vmatprep.subr.bf16.mxu0 %v6559_v43  ;;  %v7520_v43 = vld [vmem:[#allocation9 + $0x1cc] ss:$16 sps:$4 sm:$0xff]  }
 0x1c4   :  { %2532 = vmatpush1.bf16.msra.mxu0 %v6558_v44  ;;  %v7518_v44 = vld [vmem:[#allocation9 + $0x1c8] ss:$16 sps:$4 sm:$0xff]  }
 0x1c5   :  { %850 = vmatpush1.bf16.msra.mxu1 %v7440_v45  ;;  %v1015_v45 = vld [vmem:[#allocation12 + $0x280] sm:$0xff] }
 0x1c6   :  { %851 = vmatprep.subr.bf16.mxu1 %v7445_v46  ;;  %v1019_v46 = vld [vmem:[#allocation12 + $0x2a0] sm:$0xff] }
 0x1c9   :  { %852 = vmatpush1.bf16.msra.mxu1 %v7443_v47  ;;  %v298_v47 = vlaneseq }
 0x1ca   :  { %853 = vmatprep.subr.bf16.mxu1 %v7448_v48  ;;  %v6567_v48 = vcombine.high %v1015_v45, %v1019_v46 }
 0x1cc   :  { %2533 = vmatprep.subr.bf16.mxu0 %v6567_v48  ;;  %v7521_v48 = vld [vmem:[#allocation9 + $0x1e8] ss:$16 sps:$4 sm:$0xff]  }
 0x1cd   :  { %854 = vmatpush1.bf16.msra.mxu1 %v7446_v49  ;;  %v6566_v49 = vcombine.low %v1015_v45, %v1019_v46  ;;  %v7523_v45 = vld [vmem:[#allocation9 + $0x1ec] ss:$16 sps:$4 sm:$0xff]  }
 0x1ce   :  { %855 = vmatprep.subr.bf16.mxu1 %v7451_v50  ;;  %v1023_v50 = vld [vmem:[#allocation12 + $0x2c0] sm:$0xff]  ;;  %v936_v46 = vld [vmem:[#allocation12 + $0x8] sm:$0xff] }
 0x1cf   :  { %2534 = vmatpush1.bf16.msra.mxu0 %v6566_v49 }
 0x1d1   :  { %856 = vmatpush1.bf16.msra.mxu1 %v7449_v51  ;;  %v1027_v51 = vld [vmem:[#allocation12 + $0x2e0] sm:$0xff] }
 0x1d2   :  { %857 = vmatprep.subr.bf16.mxu1 %v7454_v52  ;;  %v8616_v52 = vshrl.u32 %v298_v47, 7  ;;  %v940_v47 = vld [vmem:[#allocation12 + $0x28] sm:$0xff] }
 0x1d3   :  { %v6489_v49 = vcombine.high %v936_v46, %v940_v47 }
 0x1d5   :  { %858 = vmatpush1.bf16.msra.mxu1 %v7452_v53  ;;  %v6575_v53 = vcombine.high %v1023_v50, %v1027_v51 }
 0x1d6   :  { %859 = vmatprep.subr.bf16.mxu1 %v7457_v54  ;;  %v6574_v54 = vcombine.low %v1023_v50, %v1027_v51  ;;  %v944_v50 = vld [vmem:[#allocation12 + $0x48] sm:$0xff] }
 0x1d7   :  { %2535 = vmatprep.subr.bf16.mxu0 %v6575_v53  ;;  %v948_v51 = vld [vmem:[#allocation12 + $0x68] sm:$0xff]  ;;  %v6488_v53 = vcombine.low %v936_v46, %v940_v47 }
 0x1d8   :  { %2536 = vmatpush1.bf16.msra.mxu0 %v6574_v54  ;;  %v6497_v54 = vcombine.high %v944_v50, %v948_v51 }
 0x1d9   :  { %860 = vmatpush1.bf16.msra.mxu1 %v7455_v55  ;;  %v1031_v55 = vld [vmem:[#allocation12 + $0x300] sm:$0xff] }
 0x1da   :  { %861 = vmatprep.subr.bf16.mxu1 %v7460_v56  ;;  %v1035_v56 = vld [vmem:[#allocation12 + $0x320] sm:$0xff] }
 0x1dd   :  { %862 = vmatpush1.bf16.msra.mxu1 %v7458_v57  ;;  %v8619_v57 = vsub.s32 0, %v8616_v52 }
 0x1de   :  { %863 = vmatprep.subr.bf16.mxu1 %v7463_v58  ;;  %v6583_v58 = vcombine.high %v1031_v55, %v1035_v56 }
 0x1e0   :  { %2537 = vmatprep.subr.bf16.mxu0 %v6583_v58  ;;  %v6496_v58 = vcombine.low %v944_v50, %v948_v51 }
 0x1e1   :  { %864 = vmatpush1.bf16.msra.mxu1 %v7461_v59  ;;  %v296_v59 = vld [vmem:[#allocation7] sm:$0x3] }
 0x1e2   :  { %865 = vmatprep.subr.bf16.mxu1 %v7466_v60  ;;  %v8622_v60 = vsub.s32 1, %v8616_v52 }
 0x1e5   :  { %866 = vmatpush1.bf16.msra.mxu1 %v7464_v61  ;;  %v6582_v61 = vcombine.low %v1031_v55, %v1035_v56  ;;  %v952_v55 = vld [vmem:[#allocation12 + $0x88] sm:$0xff] }
 0x1e6   :  { %867 = vmatprep.subr.bf16.mxu1 %v7469_v62  ;;  %v1039_v62 = vld [vmem:[#allocation12 + $0x340] sm:$0xff]  ;;  %v956_v56 = vld [vmem:[#allocation12 + $0xa8] sm:$0xff] }
 0x1e7   :  { %2538 = vmatpush1.bf16.msra.mxu0 %v6582_v61  ;;  %v960_v61 = vld [vmem:[#allocation12 + $0xc8] sm:$0xff] }
 0x1e9   :  { %868 = vmatpush1.bf16.msra.mxu1 %v7467_v63  ;;  %v1043_v63 = vld [vmem:[#allocation12 + $0x360] sm:$0xff] }
 0x1ea   :  { %869 = vmatprep.subr.bf16.mxu1 %v7472_v0  ;;  %v301_v0 = vrot.slane %v296_v59, %v8619_v57 }
 0x1ed   :  { %870 = vmatpush1.bf16.msra.mxu1 %v7470_v1  ;;  %v6591_v1 = vcombine.high %v1039_v62, %v1043_v63 }
 0x1ee   :  { %871 = vmatprep.subr.bf16.mxu1 %v7475_v2  ;;  %v305_v2 = vrot.slane %v296_v59, %v8622_v60  ;;  %v6505_v59 = vcombine.high %v952_v55, %v956_v56 }
 0x1ef   :  { %2539 = vmatprep.subr.bf16.mxu0 %v6591_v1  ;;  %v968_v1 = vld [vmem:[#allocation12 + $0x108] sm:$0xff] }
 0x1f1   :  { %872 = vmatpush1.bf16.msra.mxu1 %v7473_v3  ;;  %v6590_v3 = vcombine.low %v1039_v62, %v1043_v63  ;;  %v964_v62 = vld [vmem:[#allocation12 + $0xe8] sm:$0xff]  ;;  %v6504_v63 = vcombine.low %v952_v55, %v956_v56 }
 0x1f2   :  { %882 = vmatprep.subr.bf16.mxu1 %v7478_v4 }
 0x1f3   :  { %2540 = vmatpush1.bf16.msra.mxu0 %v6590_v3  ;;  %v6512_v3 = vcombine.low %v960_v61, %v964_v62 }
 0x287   :  { %v422_v4 = vpop.f32.mrb[0].mxu1 }
 0x288   :  { %v423_v5 = vadd.f32 %v422_v4, %v301_v0  ;;  %v424_v6 = vpop.f32.mrb[1].mxu1  ;;  %v6513_v0 = vcombine.high %v960_v61, %v964_v62 }
 0x289   :  { %v425_v7 = vadd.f32 %v424_v6, %v305_v2  ;;  %v426_v8 = vpop.f32.mrb[2].mxu1  ;;  %v972_v2 = vld [vmem:[#allocation12 + $0x128] sm:$0xff] }
 0x28a   :  { %v429_v9 = vmul.f32 0.2, %v423_v5  ;;  %v427_v10 = vpop.f32.mrb[3].mxu1  ;;  %v6521_v4 = vcombine.high %v968_v1, %v972_v2  ;;  %v980_v6 = vld [vmem:[#allocation12 + $0x168] sm:$0xff] }
 0x28b   :  { %v430_v11 = vmul.f32 0.2, %v425_v7  ;;  %v988_v10 = vld [vmem:[#allocation12 + $0x1a8] sm:$0xff] }
 0x28c   :  { %v431_v12 = vmax.f32 %v423_v5, %v429_v9  ;;  %v976_v5 = vld [vmem:[#allocation12 + $0x148] sm:$0xff] }
 0x28d   :  { %v432_v13 = vmax.f32 %v425_v7, %v430_v11  ;;  %v6520_v7 = vcombine.low %v968_v1, %v972_v2  ;;  %v6529_v8 = vcombine.high %v976_v5, %v980_v6  ;;  %v984_v9 = vld [vmem:[#allocation12 + $0x188] sm:$0xff]  ;;  %v6528_v11 = vcombine.low %v976_v5, %v980_v6  ;;  %v8646_v5 = vld [vmem:[#allocation10] sm:$0xf] }
 0x28e   :  { %v8626_v16 = vpack.c.bf16 %v431_v12, %v431_v12  ;;  %v6537_v12 = vcombine.high %v984_v9, %v988_v10  ;;  %v504_v6 = vrot.slane %v8646_v5, %v8619_v57 }
 0x28f   :  { %v434_v14 = vpack.c.bf16 %v432_v13, %v432_v13  ;;  %v992_v13 = vld [vmem:[#allocation12 + $0x1c8] sm:$0xff] }
 0x291   :  { %873 = vmatprep.mubr.bf16.mxu1 %v434_v14 }
 0x292   :  { %874 = vmatmul.mubr.bf16.vlgmr.msra.gmra.mrb[4].mxu1 %v8626_v16 }
 0x293   :  { %883 = vmatpush1.bf16.msra.mxu1 %v7476_v15  ;;  %914 = vmatprep.mubr.bf16.mxu1 %v434_v14  ;;  %v996_v14 = vld [vmem:[#allocation12 + $0x1e8] sm:$0xff]  ;;  %v1047_v15 = vld [vmem:[#allocation12 + $0x380] sm:$0xff] }
 0x294   :  { %884 = vmatprep.subr.bf16.mxu1 %v7481_v17 }
 0x297   :  { %885 = vmatpush1.bf16.msra.mxu1 %v7479_v18  ;;  %v6536_v18 = vcombine.low %v984_v9, %v988_v10 }
 0x298   :  { %886 = vmatprep.subr.bf16.mxu1 %v7484_v19 }
 0x29b   :  { %887 = vmatpush1.bf16.msra.mxu1 %v7482_v20  ;;  %v6545_v20 = vcombine.high %v992_v13, %v996_v14 }
 0x29c   :  { %888 = vmatprep.subr.bf16.mxu1 %v7487_v21  ;;  %v1000_v21 = vld [vmem:[#allocation12 + $0x208] sm:$0xff] }
 0x29f   :  { %889 = vmatpush1.bf16.msra.mxu1 %v7485_v22  ;;  %v1004_v22 = vld [vmem:[#allocation12 + $0x228] sm:$0xff] }
 0x2a0   :  { %890 = vmatprep.subr.bf16.mxu1 %v7490_v23  ;;  %v1055_v23 = vld [vmem:[#allocation12 + $0x3c0] sm:$0xff] }
 0x2a3   :  { %891 = vmatpush1.bf16.msra.mxu1 %v7488_v24  ;;  %v1059_v24 = vld [vmem:[#allocation12 + $0x3e0] sm:$0xff] }
 0x2a4   :  { %892 = vmatprep.subr.bf16.mxu1 %v7493_v25  ;;  %v6607_v25 = vcombine.high %v1055_v23, %v1059_v24 }
 0x2a7   :  { %893 = vmatpush1.bf16.msra.mxu1 %v7491_v26  ;;  %v6544_v26 = vcombine.low %v992_v13, %v996_v14 }
 0x2a8   :  { %894 = vmatprep.subr.bf16.mxu1 %v7496_v27  ;;  %v6606_v27 = vcombine.low %v1055_v23, %v1059_v24 }
 0x2ab   :  { %895 = vmatpush1.bf16.msra.mxu1 %v7494_v28  ;;  %v6553_v28 = vcombine.high %v1000_v21, %v1004_v22 }
 0x2ac   :  { %896 = vmatprep.subr.bf16.mxu1 %v7499_v29  ;;  %v1008_v29 = vld [vmem:[#allocation12 + $0x248] sm:$0xff] }
 0x2af   :  { %897 = vmatpush1.bf16.msra.mxu1 %v7497_v30  ;;  %v1012_v30 = vld [vmem:[#allocation12 + $0x268] sm:$0xff] }
 0x2b0   :  { %898 = vmatprep.subr.bf16.mxu1 %v7502_v31  ;;  %v8630_v31 = vld [vmem:[#allocation12 + $0x400] sm:$0xff] }
 0x2b3   :  { %899 = vmatpush1.bf16.msra.mxu1 %v7500_v32  ;;  %v8632_v32 = vld [vmem:[#allocation12 + $0x420] sm:$0xff] }
 0x2b4   :  { %900 = vmatprep.subr.bf16.mxu1 %v7505_v33  ;;  %v8634_v33 = vld [vmem:[#allocation12 + $0x408] sm:$0xff] }
 0x2b7   :  { %901 = vmatpush1.bf16.msra.mxu1 %v7503_v34  ;;  %v6615_v34 = vcombine.high %v8630_v31, %v8632_v32 }
 0x2b8   :  { %902 = vmatprep.subr.bf16.mxu1 %v7508_v35  ;;  %v8638_v35 = vld [vmem:[#allocation12 + $0x428] sm:$0xff] }
 0x2bb   :  { %903 = vmatpush1.bf16.msra.mxu1 %v7506_v36  ;;  %v6552_v36 = vcombine.low %v1000_v21, %v1004_v22  ;;  %v1076_v21 = vld [vmem:[#allocation12 + $0x468] sm:$0xff] }
 0x2bc   :  { %904 = vmatprep.subr.bf16.mxu1 %v7511_v37  ;;  %v6614_v37 = vcombine.low %v8630_v31, %v8632_v32 }
 0x2bf   :  { %905 = vmatpush1.bf16.msra.mxu1 %v7509_v38  ;;  %v6616_v38 = vcombine.low %v8634_v33, %v8638_v35 }
 0x2c0   :  { %906 = vmatprep.subr.bf16.mxu1 %v7514_v39  ;;  %v6561_v39 = vcombine.high %v1008_v29, %v1012_v30 }
 0x2c3   :  { %907 = vmatpush1.bf16.msra.mxu1 %v7512_v40  ;;  %v1016_v40 = vld [vmem:[#allocation12 + $0x288] sm:$0xff] }
 0x2c4   :  { %908 = vmatprep.subr.bf16.mxu1 %v7517_v41  ;;  %v1020_v41 = vld [vmem:[#allocation12 + $0x2a8] sm:$0xff] }
 0x2c5   :  { %v6568_v46 = vcombine.low %v1016_v40, %v1020_v41 }
 0x2c7   :  { %909 = vmatpush1.bf16.msra.mxu1 %v7515_v42  ;;  %v6560_v42 = vcombine.low %v1008_v29, %v1012_v30  ;;  %v1084_v29 = vld [vmem:[#allocation12 + $0x4a8] sm:$0xff] }
 0x2c8   :  { %910 = vmatprep.subr.bf16.mxu1 %v7520_v43  ;;  %v6569_v43 = vcombine.high %v1016_v40, %v1020_v41  ;;  %v1087_v40 = vld [vmem:[#allocation12 + $0x4c0] sm:$0xff] }
 0x2c9   :  { %v1091_v41 = vld [vmem:[#allocation12 + $0x4e0] sm:$0xff] }
 0x2ca   :  { %v6639_v31 = vcombine.high %v1087_v40, %v1091_v41 }
 0x2cb   :  { %911 = vmatpush1.bf16.msra.mxu1 %v7518_v44  ;;  %v1024_v44 = vld [vmem:[#allocation12 + $0x2c8] sm:$0xff] }
 0x2cc   :  { %912 = vmatprep.subr.bf16.mxu1 %v7523_v45  ;;  %v1028_v45 = vld [vmem:[#allocation12 + $0x2e8] sm:$0xff] }
 0x2cd   :  { %v6577_v47 = vcombine.high %v1024_v44, %v1028_v45  ;;  %v6576_v50 = vcombine.low %v1024_v44, %v1028_v45 }
 0x2cf   :  { %913 = vmatpush1.bf16.msra.mxu1 %v7521_v48  ;;  %v1032_v48 = vld [vmem:[#allocation12 + $0x308] sm:$0xff] }
 0x2d0   :  { %2595 = vmatprep.subr.bf16.mxu1 %v6489_v49  ;;  %v1036_v49 = vld [vmem:[#allocation12 + $0x328] sm:$0xff] }
 0x2d1   :  { %v6585_v51 = vcombine.high %v1032_v48, %v1036_v49  ;;  %v6584_v55 = vcombine.low %v1032_v48, %v1036_v49 }
 0x2d2   :  { %915 = vmatmul.mubr.bf16.vlgmr.msra.gmra.mrb[8].mxu1 %v8626_v16  ;;  %v1051_v16 = vld [vmem:[#allocation12 + $0x3a0] sm:$0xff] }
 0x2d3   :  { %2596 = vmatpush1.bf16.msra.mxu1 %v6488_v53  ;;  %v6599_v17 = vcombine.high %v1047_v15, %v1051_v16  ;;  %v6598_v19 = vcombine.low %v1047_v15, %v1051_v16  ;;  %v1040_v53 = vld [vmem:[#allocation12 + $0x348] sm:$0xff] }
 0x2d4   :  { %2597 = vmatprep.subr.bf16.mxu1 %v6497_v54  ;;  %v1044_v54 = vld [vmem:[#allocation12 + $0x368] sm:$0xff] }
 0x2d5   :  { %2541 = vmatprep.subr.bf16.mxu0 %v6599_v17  ;;  %v6593_v56 = vcombine.high %v1040_v53, %v1044_v54  ;;  %v6592_v61 = vcombine.low %v1040_v53, %v1044_v54  ;;  %v1071_v17 = vld [vmem:[#allocation12 + $0x440] sm:$0xff]  ;;  %v1104_v53 = vld [vmem:[#allocation12 + $0x548] sm:$0xff] }
 0x2d6   :  { %2542 = vmatpush1.bf16.msra.mxu0 %v6598_v19  ;;  %v1075_v19 = vld [vmem:[#allocation12 + $0x460] sm:$0xff]  ;;  %v1108_v54 = vld [vmem:[#allocation12 + $0x568] sm:$0xff] }
 0x2d7   :  { %2598 = vmatpush1.bf16.msra.mxu1 %v6496_v58  ;;  %2543 = vmatprep.subr.bf16.mxu0 %v6607_v25  ;;  %v1048_v58 = vld [vmem:[#allocation12 + $0x388] sm:$0xff]  ;;  %v6623_v24 = vcombine.high %v1071_v17, %v1075_v19  ;;  %v6622_v30 = vcombine.low %v1071_v17, %v1075_v19 }
 0x2d8   :  { %2599 = vmatprep.subr.bf16.mxu1 %v6505_v59  ;;  %v1052_v59 = vld [vmem:[#allocation12 + $0x3a8] sm:$0xff] }
 0x2d9   :  { %v6601_v62 = vcombine.high %v1048_v58, %v1052_v59  ;;  %v6600_v1 = vcombine.low %v1048_v58, %v1052_v59  ;;  %v6657_v59 = vcombine.high %v1104_v53, %v1108_v54  ;;  %v1132_v17 = vld [vmem:[#allocation12 + $0x628] sm:$0xff] }
 0x2da   :  { %2544 = vmatpush1.bf16.msra.mxu0 %v6606_v27  ;;  %v1083_v27 = vld [vmem:[#allocation12 + $0x4a0] sm:$0xff] }
 0x2db   :  { %2600 = vmatpush1.bf16.msra.mxu1 %v6504_v63  ;;  %2554 = vmatprep.subr.bf16.mxu0 %v6615_v34  ;;  %v1056_v63 = vld [vmem:[#allocation12 + $0x3c8] sm:$0xff] }
 0x2dc   :  { %2601 = vmatprep.subr.bf16.mxu1 %v6513_v0  ;;  %v1060_v0 = vld [vmem:[#allocation12 + $0x3e8] sm:$0xff] }
 0x2dd   :  { %v6609_v2 = vcombine.high %v1056_v63, %v1060_v0 }
 0x2df   :  { %2602 = vmatpush1.bf16.msra.mxu1 %v6512_v3  ;;  %v6608_v3 = vcombine.low %v1056_v63, %v1060_v0  ;;  %v1112_v63 = vld [vmem:[#allocation12 + $0x588] sm:$0xff] }
 0x2e0   :  { %2603 = vmatprep.subr.bf16.mxu1 %v6521_v4  ;;  %v6617_v4 = vcombine.high %v8634_v33, %v8638_v35  ;;  %v1095_v33 = vld [vmem:[#allocation12 + $0x500] sm:$0xff]  ;;  %v1116_v0 = vld [vmem:[#allocation12 + $0x5a8] sm:$0xff] }
 0x2e1   :  { %v1099_v35 = vld [vmem:[#allocation12 + $0x520] sm:$0xff] }
 0x2e2   :  { %v6647_v48 = vcombine.high %v1095_v33, %v1099_v35 }
 0x2e3   :  { %2604 = vmatpush1.bf16.msra.mxu1 %v6520_v7  ;;  %v508_v7 = vrot.slane %v8646_v5, %v8622_v60 }
 0x2e4   :  { %2605 = vmatprep.subr.bf16.mxu1 %v6529_v8 }
 0x2e7   :  { %2606 = vmatpush1.bf16.msra.mxu1 %v6528_v11 }
 0x2e8   :  { %2607 = vmatprep.subr.bf16.mxu1 %v6537_v12 }
 0x2eb   :  { %2608 = vmatpush1.bf16.msra.mxu1 %v6536_v18 }
 0x2ec   :  { %2609 = vmatprep.subr.bf16.mxu1 %v6545_v20  ;;  %v1072_v20 = vld [vmem:[#allocation12 + $0x448] sm:$0xff] }
 0x2ed   :  { %v6625_v25 = vcombine.high %v1072_v20, %v1076_v21  ;;  %v6624_v34 = vcombine.low %v1072_v20, %v1076_v21 }
 0x2ef   :  { %2610 = vmatpush1.bf16.msra.mxu1 %v6544_v26  ;;  %v1079_v26 = vld [vmem:[#allocation12 + $0x480] sm:$0xff] }
 0x2f0   :  { %2611 = vmatprep.subr.bf16.mxu1 %v6553_v28  ;;  %v1080_v28 = vld [vmem:[#allocation12 + $0x488] sm:$0xff]  ;;  %v6630_v44 = vcombine.low %v1079_v26, %v1083_v27 }
 0x2f1   :  { %v6632_v45 = vcombine.low %v1080_v28, %v1084_v29 }
 0x2f3   :  { %2612 = vmatpush1.bf16.msra.mxu1 %v6552_v36  ;;  %v6631_v36 = vcombine.high %v1079_v26, %v1083_v27  ;;  %v1136_v26 = vld [vmem:[#allocation12 + $0x648] sm:$0xff] }
 0x2f4   :  { %2613 = vmatprep.subr.bf16.mxu1 %v6561_v39  ;;  %v6633_v39 = vcombine.high %v1080_v28, %v1084_v29  ;;  %v1140_v27 = vld [vmem:[#allocation12 + $0x668] sm:$0xff] }
 0x2f7   :  { %2614 = vmatpush1.bf16.msra.mxu1 %v6560_v42  ;;  %v1088_v42 = vld [vmem:[#allocation12 + $0x4c8] sm:$0xff] }
 0x2f8   :  { %2615 = vmatprep.subr.bf16.mxu1 %v6569_v43  ;;  %v1092_v43 = vld [vmem:[#allocation12 + $0x4e8] sm:$0xff] }
 0x2f9   :  { %v6641_v32 = vcombine.high %v1088_v42, %v1092_v43 }
 0x2fb   :  { %2616 = vmatpush1.bf16.msra.mxu1 %v6568_v46  ;;  %v6638_v46 = vcombine.low %v1087_v40, %v1091_v41  ;;  %v1144_v40 = vld [vmem:[#allocation12 + $0x688] sm:$0xff] }
 0x2fc   :  { %2617 = vmatprep.subr.bf16.mxu1 %v6577_v47  ;;  %v6640_v47 = vcombine.low %v1088_v42, %v1092_v43  ;;  %v1148_v41 = vld [vmem:[#allocation12 + $0x6a8] sm:$0xff]  ;;  %v6688_v43 = vcombine.low %v1136_v26, %v1140_v27 }
 0x2ff   :  { %2618 = vmatpush1.bf16.msra.mxu1 %v6576_v50  ;;  %v1103_v50 = vld [vmem:[#allocation12 + $0x540] sm:$0xff] }
 0x300   :  { %2619 = vmatprep.subr.bf16.mxu1 %v6585_v51  ;;  %v1107_v51 = vld [vmem:[#allocation12 + $0x560] sm:$0xff] }
 0x301   :  { %v6655_v58 = vcombine.high %v1103_v50, %v1107_v51 }
 0x303   :  { %2620 = vmatpush1.bf16.msra.mxu1 %v6584_v55  ;;  %v6646_v55 = vcombine.low %v1095_v33, %v1099_v35  ;;  %v1152_v33 = vld [vmem:[#allocation12 + $0x6c8] sm:$0xff] }
 0x304   :  { %2621 = vmatprep.subr.bf16.mxu1 %v6593_v56  ;;  %v1156_v35 = vld [vmem:[#allocation12 + $0x6e8] sm:$0xff] }
 0x307   :  { %2622 = vmatpush1.bf16.msra.mxu1 %v6592_v61  ;;  %v1111_v61 = vld [vmem:[#allocation12 + $0x580] sm:$0xff] }
 0x308   :  { %2623 = vmatprep.subr.bf16.mxu1 %v6601_v62  ;;  %v1115_v62 = vld [vmem:[#allocation12 + $0x5a0] sm:$0xff] }
 0x30b   :  { %2624 = vmatpush1.bf16.msra.mxu1 %v6600_v1  ;;  %v6654_v1 = vcombine.low %v1103_v50, %v1107_v51  ;;  %v1160_v50 = vld [vmem:[#allocation12 + $0x708] sm:$0xff] }
 0x30c   :  { %2625 = vmatprep.subr.bf16.mxu1 %v6609_v2  ;;  %v6656_v2 = vcombine.low %v1104_v53, %v1108_v54  ;;  %v1164_v51 = vld [vmem:[#allocation12 + $0x728] sm:$0xff]  ;;  %v6704_v54 = vcombine.low %v1152_v33, %v1156_v35 }
 0x30f   :  { %2626 = vmatpush1.bf16.msra.mxu1 %v6608_v3  ;;  %v6663_v3 = vcombine.high %v1111_v61, %v1115_v62 }
 0x310   :  { %2636 = vmatprep.subr.bf16.mxu1 %v6617_v4  ;;  %v6665_v4 = vcombine.high %v1112_v63, %v1116_v0 }
 0x365   :  { %v875_v8 = vpop.f32.mrb[4].mxu1 }
 0x366   :  { %v876_v9 = vadd.f32 %v875_v8, %v504_v6  ;;  %v877_v10 = vpop.f32.mrb[5].mxu1  ;;  %v1119_v6 = vld [vmem:[#allocation12 + $0x5c0] sm:$0xff]  ;;  %v1120_v8 = vld [vmem:[#allocation12 + $0x5c8] sm:$0xff] }
 0x367   :  { %v878_v11 = vadd.f32 %v877_v10, %v508_v7  ;;  %v879_v12 = vpop.f32.mrb[6].mxu1  ;;  %v1123_v7 = vld [vmem:[#allocation12 + $0x5e0] sm:$0xff]  ;;  %v6662_v10 = vcombine.low %v1111_v61, %v1115_v62  ;;  %v1168_v61 = vld [vmem:[#allocation12 + $0x748] sm:$0xff] }
 0x368   :  { %v923_v13 = vmul.f32 0.2, %v876_v9  ;;  %v880_v14 = vpop.f32.mrb[7].mxu1  ;;  %v6671_v12 = vcombine.high %v1119_v6, %v1123_v7  ;;  %v1172_v62 = vld [vmem:[#allocation12 + $0x768] sm:$0xff] }
 0x369   :  { %v924_v15 = vmul.f32 0.2, %v878_v11  ;;  %v1127_v14 = vld [vmem:[#allocation12 + $0x600] sm:$0xff] }
 0x36a   :  { %v927_v16 = vmax.f32 %v876_v9, %v923_v13  ;;  %v1124_v9 = vld [vmem:[#allocation12 + $0x5e8] sm:$0xff] }
 0x36b   :  { %v928_v18 = vmax.f32 %v878_v11, %v924_v15  ;;  %v6664_v11 = vcombine.low %v1112_v63, %v1116_v0  ;;  %v6673_v13 = vcombine.high %v1120_v8, %v1124_v9  ;;  %v1131_v15 = vld [vmem:[#allocation12 + $0x620] sm:$0xff]  ;;  %v6672_v19 = vcombine.low %v1120_v8, %v1124_v9  ;;  %v1176_v8 = vld [vmem:[#allocation12 + $0x788] sm:$0xff] }
 0x36c   :  { %v8654_v23 = vpack.c.bf16 %v927_v16, %v927_v16  ;;  %v1128_v16 = vld [vmem:[#allocation12 + $0x608] sm:$0xff]  ;;  %v6679_v20 = vcombine.high %v1127_v14, %v1131_v15  ;;  %v6678_v28 = vcombine.low %v1127_v14, %v1131_v15  ;;  %v6712_v0 = vcombine.low %v1160_v50, %v1164_v51  ;;  %v1183_v15 = vld [vmem:[#allocation12 + $0x7c0] sm:$0xff] }
 0x36d   :  { %v8652_v22 = vpack.c.bf16 %v928_v18, %v928_v18  ;;  %v6670_v18 = vcombine.low %v1119_v6, %v1123_v7  ;;  %v6681_v21 = vcombine.high %v1128_v16, %v1132_v17  ;;  %v6680_v29 = vcombine.low %v1128_v16, %v1132_v17  ;;  %v1179_v7 = vld [vmem:[#allocation12 + $0x7a0] sm:$0xff]  ;;  %v1180_v9 = vld [vmem:[#allocation12 + $0x7a8] sm:$0xff] }
 0x36e   :  { %v8670_v6 = vsub.s32 3, %v8616_v52  ;;  %v6729_v14 = vcombine.high %v1176_v8, %v1180_v9  ;;  %v1187_v17 = vld [vmem:[#allocation12 + $0x7e0] sm:$0xff] }
 0x36f   :  { %2545 = vmatprep.mubr.bf16.mxu0 %v8652_v22  ;;  %2627 = vmatprep.mubr.bf16.mxu1 %v8652_v22 }
 0x370   :  { %2546 = vmatmul.mubr.bf16.vlgmr.msra.gmra.mrb[4].mxu0 %v8654_v23  ;;  %2628 = vmatmul.mubr.bf16.vlgmr.msra.gmra.mrb[12].mxu1 %v8654_v23  ;;  %v516_v16 = vrot.slane %v8646_v5, %v8670_v6 }
 0x371   :  { %2555 = vmatpush1.bf16.msra.mxu0 %v6614_v37  ;;  %2637 = vmatpush1.bf16.msra.mxu1 %v6616_v38  ;;  %v1096_v37 = vld [vmem:[#allocation12 + $0x508] sm:$0xff] }
 0x372   :  { %2556 = vmatprep.subr.bf16.mxu0 %v6623_v24  ;;  %2638 = vmatprep.subr.bf16.mxu1 %v6625_v25  ;;  %v1100_v38 = vld [vmem:[#allocation12 + $0x528] sm:$0xff]  ;;  %v1135_v24 = vld [vmem:[#allocation12 + $0x640] sm:$0xff] }
 0x373   :  { %v6649_v49 = vcombine.high %v1096_v37, %v1100_v38  ;;  %v6648_v56 = vcombine.low %v1096_v37, %v1100_v38  ;;  %v1139_v25 = vld [vmem:[#allocation12 + $0x660] sm:$0xff]  ;;  %v6696_v38 = vcombine.low %v1144_v40, %v1148_v41 }
 0x374   :  { %v6686_v42 = vcombine.low %v1135_v24, %v1139_v25 }
 0x375   :  { %2557 = vmatpush1.bf16.msra.mxu0 %v6622_v30  ;;  %2639 = vmatpush1.bf16.msra.mxu1 %v6624_v34  ;;  %v6687_v30 = vcombine.high %v1135_v24, %v1139_v25  ;;  %v6689_v34 = vcombine.high %v1136_v26, %v1140_v27  ;;  %v6728_v24 = vcombine.low %v1176_v8, %v1180_v9 }
 0x376   :  { %2558 = vmatprep.subr.bf16.mxu0 %v6631_v36  ;;  %2640 = vmatprep.subr.bf16.mxu1 %v6633_v39  ;;  %v1143_v36 = vld [vmem:[#allocation12 + $0x680] sm:$0xff]  ;;  %v6735_v27 = vcombine.high %v1183_v15, %v1187_v17 }
 0x377   :  { %v1147_v39 = vld [vmem:[#allocation12 + $0x6a0] sm:$0xff] }
 0x378   :  { %v6694_v37 = vcombine.low %v1143_v36, %v1147_v39 }
 0x379   :  { %2559 = vmatpush1.bf16.msra.mxu0 %v6630_v44  ;;  %2641 = vmatpush1.bf16.msra.mxu1 %v6632_v45  ;;  %v6695_v44 = vcombine.high %v1143_v36, %v1147_v39  ;;  %v6697_v45 = vcombine.high %v1144_v40, %v1148_v41  ;;  %v941_v36 = vld [vmem:[#allocation12 + $0x30] sm:$0xff]  ;;  %v938_v39 = vld [vmem:[#allocation12 + $0x18] sm:$0xff] }
 0x37a   :  { %2560 = vmatprep.subr.bf16.mxu0 %v6639_v31  ;;  %2642 = vmatprep.subr.bf16.mxu1 %v6641_v32  ;;  %v1151_v31 = vld [vmem:[#allocation12 + $0x6c0] sm:$0xff] }
 0x37b   :  { %v1155_v32 = vld [vmem:[#allocation12 + $0x6e0] sm:$0xff] }
 0x37c   :  { %v6702_v53 = vcombine.low %v1151_v31, %v1155_v32 }
 0x37d   :  { %2561 = vmatpush1.bf16.msra.mxu0 %v6638_v46  ;;  %2643 = vmatpush1.bf16.msra.mxu1 %v6640_v47  ;;  %v6703_v46 = vcombine.high %v1151_v31, %v1155_v32  ;;  %v6705_v47 = vcombine.high %v1152_v33, %v1156_v35  ;;  %v945_v35 = vld [vmem:[#allocation12 + $0x50] sm:$0xff] }
 0x37e   :  { %2562 = vmatprep.subr.bf16.mxu0 %v6647_v48  ;;  %2644 = vmatprep.subr.bf16.mxu1 %v6649_v49  ;;  %v1159_v48 = vld [vmem:[#allocation12 + $0x700] sm:$0xff] }
 0x37f   :  { %v1163_v49 = vld [vmem:[#allocation12 + $0x720] sm:$0xff] }
 0x380   :  { %v6710_v63 = vcombine.low %v1159_v48, %v1163_v49 }
 0x381   :  { %2563 = vmatpush1.bf16.msra.mxu0 %v6646_v55  ;;  %2645 = vmatpush1.bf16.msra.mxu1 %v6648_v56  ;;  %v6711_v55 = vcombine.high %v1159_v48, %v1163_v49  ;;  %v6713_v56 = vcombine.high %v1160_v50, %v1164_v51 }
 0x382   :  { %2564 = vmatprep.subr.bf16.mxu0 %v6655_v58  ;;  %2646 = vmatprep.subr.bf16.mxu1 %v6657_v59  ;;  %v1167_v58 = vld [vmem:[#allocation12 + $0x740] sm:$0xff] }
 0x383   :  { %v1171_v59 = vld [vmem:[#allocation12 + $0x760] sm:$0xff] }
 0x385   :  { %2565 = vmatpush1.bf16.msra.mxu0 %v6654_v1  ;;  %2647 = vmatpush1.bf16.msra.mxu1 %v6656_v2  ;;  %v6719_v1 = vcombine.high %v1167_v58, %v1171_v59  ;;  %v6721_v2 = vcombine.high %v1168_v61, %v1172_v62 }
 0x386   :  { %2566 = vmatprep.subr.bf16.mxu0 %v6663_v3  ;;  %2648 = vmatprep.subr.bf16.mxu1 %v6665_v4  ;;  %v8667_v3 = vsub.s32 2, %v8616_v52  ;;  %v1175_v4 = vld [vmem:[#allocation12 + $0x780] sm:$0xff] }
 0x389   :  { %2567 = vmatpush1.bf16.msra.mxu0 %v6662_v10  ;;  %2649 = vmatpush1.bf16.msra.mxu1 %v6664_v11  ;;  %v6718_v10 = vcombine.low %v1167_v58, %v1171_v59  ;;  %v6720_v11 = vcombine.low %v1168_v61, %v1172_v62  ;;  %v958_v58 = vld [vmem:[#allocation12 + $0xb8] sm:$0xff] }
 0x38a   :  { %2568 = vmatprep.subr.bf16.mxu0 %v6671_v12  ;;  %2650 = vmatprep.subr.bf16.mxu1 %v6673_v13  ;;  %v512_v12 = vrot.slane %v8646_v5, %v8667_v3  ;;  %v6727_v13 = vcombine.high %v1175_v4, %v1179_v7  ;;  %v942_v5 = vld [vmem:[#allocation12 + $0x38] sm:$0xff] }
 0x38b   :  { %v6493_v32 = vcombine.high %v938_v39, %v942_v5  ;;  %v6492_v50 = vcombine.low %v938_v39, %v942_v5 }
 0x38d   :  { %2569 = vmatpush1.bf16.msra.mxu0 %v6670_v18  ;;  %2651 = vmatpush1.bf16.msra.mxu1 %v6672_v19  ;;  %v1184_v18 = vld [vmem:[#allocation12 + $0x7c8] sm:$0xff] }
 0x38e   :  { %2570 = vmatprep.subr.bf16.mxu0 %v6679_v20  ;;  %2652 = vmatprep.subr.bf16.mxu1 %v6681_v21  ;;  %v1188_v19 = vld [vmem:[#allocation12 + $0x7e8] sm:$0xff]  ;;  %v6726_v21 = vcombine.low %v1175_v4, %v1179_v7  ;;  %v966_v4 = vld [vmem:[#allocation12 + $0xf8] sm:$0xff] }
 0x391   :  { %2571 = vmatpush1.bf16.msra.mxu0 %v6678_v28  ;;  %2653 = vmatpush1.bf16.msra.mxu1 %v6680_v29  ;;  %v6737_v28 = vcombine.high %v1184_v18, %v1188_v19  ;;  %v937_v29 = vld [vmem:[#allocation12 + $0x10] sm:$0xff] }
 0x392   :  { %2572 = vmatprep.subr.bf16.mxu0 %v6687_v30  ;;  %2654 = vmatprep.subr.bf16.mxu1 %v6689_v34  ;;  %v6491_v31 = vcombine.high %v937_v29, %v941_v36  ;;  %v6490_v48 = vcombine.low %v937_v29, %v941_v36  ;;  %v989_v29 = vld [vmem:[#allocation12 + $0x1b0] sm:$0xff] }
 0x395   :  { %2573 = vmatpush1.bf16.msra.mxu0 %v6686_v42  ;;  %2655 = vmatpush1.bf16.msra.mxu1 %v6688_v43  ;;  %v6734_v43 = vcombine.low %v1183_v15, %v1187_v17 }
 0x396   :  { %2574 = vmatprep.subr.bf16.mxu0 %v6695_v44  ;;  %2656 = vmatprep.subr.bf16.mxu1 %v6697_v45  ;;  %v6736_v44 = vcombine.low %v1184_v18, %v1188_v19  ;;  %v977_v18 = vld [vmem:[#allocation12 + $0x150] sm:$0xff] }
 0x397   :  { %v981_v19 = vld [vmem:[#allocation12 + $0x170] sm:$0xff] }
 0x398   :  { %v6530_v36 = vcombine.low %v977_v18, %v981_v19 }
 0x399   :  { %2575 = vmatpush1.bf16.msra.mxu0 %v6694_v37  ;;  %2657 = vmatpush1.bf16.msra.mxu1 %v6696_v38  ;;  %v949_v37 = vld [vmem:[#allocation12 + $0x70] sm:$0xff]  ;;  %v946_v38 = vld [vmem:[#allocation12 + $0x58] sm:$0xff] }
 0x39a   :  { %2576 = vmatprep.subr.bf16.mxu0 %v6703_v46  ;;  %2658 = vmatprep.subr.bf16.mxu1 %v6705_v47  ;;  %v950_v46 = vld [vmem:[#allocation12 + $0x78] sm:$0xff]  ;;  %v6499_v51 = vcombine.high %v945_v35, %v949_v37  ;;  %v6498_v59 = vcombine.low %v945_v35, %v949_v37  ;;  %v1001_v35 = vld [vmem:[#allocation12 + $0x210] sm:$0xff] }
 0x39b   :  { %v6500_v61 = vcombine.low %v946_v38, %v950_v46  ;;  %v1005_v37 = vld [vmem:[#allocation12 + $0x230] sm:$0xff] }
 0x39d   :  { %2577 = vmatpush1.bf16.msra.mxu0 %v6702_v53  ;;  %2659 = vmatpush1.bf16.msra.mxu1 %v6704_v54  ;;  %v6501_v53 = vcombine.high %v946_v38, %v950_v46  ;;  %v953_v54 = vld [vmem:[#allocation12 + $0x90] sm:$0xff]  ;;  %v1002_v38 = vld [vmem:[#allocation12 + $0x218] sm:$0xff] }
 0x39e   :  { %2578 = vmatprep.subr.bf16.mxu0 %v6711_v55  ;;  %2660 = vmatprep.subr.bf16.mxu1 %v6713_v56  ;;  %v957_v55 = vld [vmem:[#allocation12 + $0xb0] sm:$0xff]  ;;  %v954_v56 = vld [vmem:[#allocation12 + $0x98] sm:$0xff] }
 0x39f   :  { %v6507_v62 = vcombine.high %v953_v54, %v957_v55  ;;  %v6506_v7 = vcombine.low %v953_v54, %v957_v55  ;;  %v6508_v8 = vcombine.low %v954_v56, %v958_v58  ;;  %v1006_v46 = vld [vmem:[#allocation12 + $0x238] sm:$0xff]  ;;  %v1009_v54 = vld [vmem:[#allocation12 + $0x250] sm:$0xff] }
 0x3a0   :  { %v1013_v55 = vld [vmem:[#allocation12 + $0x270] sm:$0xff] }
 0x3a1   :  { %2579 = vmatpush1.bf16.msra.mxu0 %v6710_v63  ;;  %2661 = vmatpush1.bf16.msra.mxu1 %v6712_v0  ;;  %v6509_v63 = vcombine.high %v954_v56, %v958_v58  ;;  %v961_v0 = vld [vmem:[#allocation12 + $0xd0] sm:$0xff]  ;;  %v1010_v56 = vld [vmem:[#allocation12 + $0x258] sm:$0xff] }
 0x3a2   :  { %2580 = vmatprep.subr.bf16.mxu0 %v6719_v1  ;;  %2662 = vmatprep.subr.bf16.mxu1 %v6721_v2  ;;  %v965_v1 = vld [vmem:[#allocation12 + $0xf0] sm:$0xff]  ;;  %v962_v2 = vld [vmem:[#allocation12 + $0xd8] sm:$0xff] }
 0x3a3   :  { %v6515_v9 = vcombine.high %v961_v0, %v965_v1  ;;  %v6516_v15 = vcombine.low %v962_v2, %v966_v4  ;;  %v1014_v58 = vld [vmem:[#allocation12 + $0x278] sm:$0xff] }
 0x3a5   :  { %v916_v20 = vpop.f32.mrb[8].mxu1  ;;  %2581 = vmatpush1.bf16.msra.mxu0 %v6718_v10  ;;  %2663 = vmatpush1.bf16.msra.mxu1 %v6720_v11  ;;  %v6517_v10 = vcombine.high %v962_v2, %v966_v4  ;;  %v969_v11 = vld [vmem:[#allocation12 + $0x110] sm:$0xff]  ;;  %v1018_v2 = vld [vmem:[#allocation12 + $0x298] sm:$0xff] }
 0x3a6   :  { %v917_v25 = vadd.f32 %v916_v20, %v512_v12  ;;  %v918_v26 = vpop.f32.mrb[9].mxu1  ;;  %2582 = vmatprep.subr.bf16.mxu0 %v6727_v13  ;;  %2664 = vmatprep.subr.bf16.mxu1 %v6729_v14  ;;  %v973_v12 = vld [vmem:[#allocation12 + $0x130] sm:$0xff]  ;;  %v974_v13 = vld [vmem:[#allocation12 + $0x138] sm:$0xff]  ;;  %v6514_v14 = vcombine.low %v961_v0, %v965_v1 }
 0x3a7   :  { %v919_v30 = vadd.f32 %v918_v26, %v516_v16  ;;  %v920_v34 = vpop.f32.mrb[10].mxu1  ;;  %v6523_v16 = vcombine.high %v969_v11, %v973_v12  ;;  %v978_v20 = vld [vmem:[#allocation12 + $0x158] sm:$0xff]  ;;  %v6531_v26 = vcombine.high %v977_v18, %v981_v19  ;;  %v1017_v0 = vld [vmem:[#allocation12 + $0x290] sm:$0xff] }
 0x3a8   :  { %v925_v40 = vmul.f32 0.2, %v917_v25  ;;  %v921_v41 = vpop.f32.mrb[11].mxu1  ;;  %v990_v34 = vld [vmem:[#allocation12 + $0x1b8] sm:$0xff]  ;;  %v1021_v1 = vld [vmem:[#allocation12 + $0x2b0] sm:$0xff] }
 0x3a9   :  { %v926_v42 = vmul.f32 0.2, %v919_v30  ;;  %2583 = vmatpush1.bf16.msra.mxu0 %v6726_v21  ;;  %2665 = vmatpush1.bf16.msra.mxu1 %v6728_v24  ;;  %v982_v21 = vld [vmem:[#allocation12 + $0x178] sm:$0xff]  ;;  %v6522_v24 = vcombine.low %v969_v11, %v973_v12  ;;  %v993_v41 = vld [vmem:[#allocation12 + $0x1d0] sm:$0xff] }
 0x3aa   :  { %v929_v45 = vmax.f32 %v917_v25, %v925_v40  ;;  %2584 = vmatprep.subr.bf16.mxu0 %v6735_v27  ;;  %2666 = vmatprep.subr.bf16.mxu1 %v6737_v28  ;;  %v6533_v27 = vcombine.high %v978_v20, %v982_v21  ;;  %v985_v28 = vld [vmem:[#allocation12 + $0x190] sm:$0xff]  ;;  %v6532_v39 = vcombine.low %v978_v20, %v982_v21  ;;  %v1022_v4 = vld [vmem:[#allocation12 + $0x2b8] sm:$0xff] }
 0x3ab   :  { %v930_v33 = vmax.f32 %v919_v30, %v926_v42  ;;  %v986_v30 = vld [vmem:[#allocation12 + $0x198] sm:$0xff]  ;;  %v6539_v5 = vcombine.high %v985_v28, %v989_v29  ;;  %v997_v42 = vld [vmem:[#allocation12 + $0x1f0] sm:$0xff] }
 0x3ac   :  { %v8678_v49 = vpack.c.bf16 %v929_v45, %v929_v45  ;;  %v6541_v40 = vcombine.high %v986_v30, %v990_v34  ;;  %v6538_v45 = vcombine.low %v985_v28, %v989_v29  ;;  %v1025_v11 = vld [vmem:[#allocation12 + $0x2d0] sm:$0xff]  ;;  %v1034_v20 = vld [vmem:[#allocation12 + $0x318] sm:$0xff] }
 0x3ad   :  { %v8676_v47 = vpack.c.bf16 %v930_v33, %v930_v33  ;;  %2585 = vmatpush1.bf16.msra.mxu0 %v6734_v43  ;;  %2667 = vmatpush1.bf16.msra.mxu1 %v6736_v44  ;;  %v994_v43 = vld [vmem:[#allocation12 + $0x1d8] sm:$0xff]  ;;  %v1029_v12 = vld [vmem:[#allocation12 + $0x2f0] sm:$0xff] }
 0x3ae   :  { %2677 = vmatprep.subr.bf16.mxu0 %v6491_v31  ;;  %2759 = vmatprep.subr.bf16.mxu1 %v6493_v32  ;;  %v998_v44 = vld [vmem:[#allocation12 + $0x1f8] sm:$0xff]  ;;  %v6540_v31 = vcombine.low %v986_v30, %v990_v34  ;;  %v6547_v32 = vcombine.high %v993_v41, %v997_v42  ;;  %v1033_v18 = vld [vmem:[#allocation12 + $0x310] sm:$0xff] }
 0x3af   :  { %2586 = vmatprep.mubr.bf16.mxu0 %v8676_v47  ;;  %2668 = vmatprep.mubr.bf16.mxu1 %v8676_v47  ;;  %v6549_v33 = vcombine.high %v994_v43, %v998_v44  ;;  %v1037_v19 = vld [vmem:[#allocation12 + $0x330] sm:$0xff]  ;;  %v1038_v21 = vld [vmem:[#allocation12 + $0x338] sm:$0xff] }
 0x3b0   :  { %2587 = vmatmul.mubr.bf16.vlgmr.msra.gmra.mrb[4].mxu0 %v8678_v49  ;;  %2669 = vmatmul.mubr.bf16.vlgmr.msra.gmra.mrb[12].mxu1 %v8678_v49  ;;  %v1041_v28 = vld [vmem:[#allocation12 + $0x350] sm:$0xff]  ;;  %v1042_v30 = vld [vmem:[#allocation12 + $0x358] sm:$0xff] }
 0x3b1   :  { %2678 = vmatpush1.bf16.msra.mxu0 %v6490_v48  ;;  %2709 = vmatprep.mubr.bf16.mxu0 %v8652_v22  ;;  %v6546_v48 = vcombine.low %v993_v41, %v997_v42  ;;  %v1045_v29 = vld [vmem:[#allocation12 + $0x370] sm:$0xff]  ;;  %v1046_v34 = vld [vmem:[#allocation12 + $0x378] sm:$0xff] }
 0x3b2   :  { %2760 = vmatpush1.bf16.msra.mxu1 %v6492_v50  ;;  %2791 = vmatprep.mubr.bf16.mxu1 %v8652_v22  ;;  %v970_v22 = vld [vmem:[#allocation12 + $0x118] sm:$0xff]  ;;  %v6548_v50 = vcombine.low %v994_v43, %v998_v44  ;;  %v1049_v41 = vld [vmem:[#allocation12 + $0x390] sm:$0xff] }
 0x3b3   :  { %2679 = vmatprep.subr.bf16.mxu0 %v6499_v51  ;;  %2761 = vmatprep.subr.bf16.mxu1 %v6501_v53  ;;  %v6525_v17 = vcombine.high %v970_v22, %v974_v13  ;;  %v6524_v25 = vcombine.low %v970_v22, %v974_v13  ;;  %v6555_v51 = vcombine.high %v1001_v35, %v1005_v37  ;;  %v1026_v22 = vld [vmem:[#allocation12 + $0x2d8] sm:$0xff]  ;;  %v1053_v42 = vld [vmem:[#allocation12 + $0x3b0] sm:$0xff] }
 0x3b4   :  { %v6557_v53 = vcombine.high %v1002_v38, %v1006_v46  ;;  %v1030_v13 = vld [vmem:[#allocation12 + $0x2f8] sm:$0xff] }
 0x3b5   :  { %2680 = vmatpush1.bf16.msra.mxu0 %v6498_v59  ;;  %v6554_v59 = vcombine.low %v1001_v35, %v1005_v37  ;;  %v1050_v43 = vld [vmem:[#allocation12 + $0x398] sm:$0xff]  ;;  %v1057_v35 = vld [vmem:[#allocation12 + $0x3d0] sm:$0xff] }
 0x3b6   :  { %2762 = vmatpush1.bf16.msra.mxu1 %v6500_v61  ;;  %2681 = vmatprep.subr.bf16.mxu0 %v6507_v62  ;;  %v6556_v61 = vcombine.low %v1002_v38, %v1006_v46  ;;  %v6563_v62 = vcombine.high %v1009_v54, %v1013_v55  ;;  %v1054_v44 = vld [vmem:[#allocation12 + $0x3b8] sm:$0xff]  ;;  %v1061_v37 = vld [vmem:[#allocation12 + $0x3f0] sm:$0xff] }
 0x3b7   :  { %2763 = vmatprep.subr.bf16.mxu1 %v6509_v63  ;;  %v6565_v63 = vcombine.high %v1010_v56, %v1014_v58  ;;  %v1058_v38 = vld [vmem:[#allocation12 + $0x3d8] sm:$0xff] }
 0x3b8   :  { %v1062_v46 = vld [vmem:[#allocation12 + $0x3f8] sm:$0xff] }
 0x3b9   :  { %2682 = vmatpush1.bf16.msra.mxu0 %v6506_v7  ;;  %v6562_v7 = vcombine.low %v1009_v54, %v1013_v55  ;;  %v1065_v54 = vld [vmem:[#allocation12 + $0x410] sm:$0xff] }
 0x3ba   :  { %2764 = vmatpush1.bf16.msra.mxu1 %v6508_v8  ;;  %2683 = vmatprep.subr.bf16.mxu0 %v6515_v9  ;;  %v6564_v8 = vcombine.low %v1010_v56, %v1014_v58  ;;  %v6571_v9 = vcombine.high %v1017_v0, %v1021_v1  ;;  %v1069_v55 = vld [vmem:[#allocation12 + $0x430] sm:$0xff]  ;;  %v1066_v56 = vld [vmem:[#allocation12 + $0x418] sm:$0xff] }
 0x3bb   :  { %2765 = vmatprep.subr.bf16.mxu1 %v6517_v10  ;;  %v6573_v10 = vcombine.high %v1018_v2, %v1022_v4  ;;  %v1070_v58 = vld [vmem:[#allocation12 + $0x438] sm:$0xff] }
 0x3bd   :  { %2684 = vmatpush1.bf16.msra.mxu0 %v6514_v14  ;;  %v6570_v14 = vcombine.low %v1017_v0, %v1021_v1  ;;  %v1073_v0 = vld [vmem:[#allocation12 + $0x450] sm:$0xff] }
 0x3be   :  { %2766 = vmatpush1.bf16.msra.mxu1 %v6516_v15  ;;  %2685 = vmatprep.subr.bf16.mxu0 %v6523_v16  ;;  %v6572_v15 = vcombine.low %v1018_v2, %v1022_v4  ;;  %v6579_v16 = vcombine.high %v1025_v11, %v1029_v12  ;;  %v1077_v1 = vld [vmem:[#allocation12 + $0x470] sm:$0xff]  ;;  %v6618_v2 = vcombine.low %v1065_v54, %v1069_v55  ;;  %v1074_v4 = vld [vmem:[#allocation12 + $0x458] sm:$0xff] }
 0x3bf   :  { %2767 = vmatprep.subr.bf16.mxu1 %v6525_v17  ;;  %v6581_v17 = vcombine.high %v1026_v22, %v1030_v13 }
 0x3c1   :  { %2686 = vmatpush1.bf16.msra.mxu0 %v6522_v24  ;;  %v6578_v24 = vcombine.low %v1025_v11, %v1029_v12  ;;  %v1085_v11 = vld [vmem:[#allocation12 + $0x4b0] sm:$0xff] }
 0x3c2   :  { %2768 = vmatpush1.bf16.msra.mxu1 %v6524_v25  ;;  %2687 = vmatprep.subr.bf16.mxu0 %v6531_v26  ;;  %v6580_v25 = vcombine.low %v1026_v22, %v1030_v13  ;;  %v6587_v26 = vcombine.high %v1033_v18, %v1037_v19  ;;  %v1082_v22 = vld [vmem:[#allocation12 + $0x498] sm:$0xff] }
 0x3c3   :  { %2769 = vmatprep.subr.bf16.mxu1 %v6533_v27  ;;  %v6589_v27 = vcombine.high %v1034_v20, %v1038_v21  ;;  %v1086_v13 = vld [vmem:[#allocation12 + $0x4b8] sm:$0xff] }
 0x3c5   :  { %2688 = vmatpush1.bf16.msra.mxu0 %v6530_v36  ;;  %v6586_v36 = vcombine.low %v1033_v18, %v1037_v19  ;;  %v1089_v18 = vld [vmem:[#allocation12 + $0x4d0] sm:$0xff] }
 0x3c6   :  { %2770 = vmatpush1.bf16.msra.mxu1 %v6532_v39  ;;  %2689 = vmatprep.subr.bf16.mxu0 %v6539_v5  ;;  %v6588_v39 = vcombine.low %v1034_v20, %v1038_v21  ;;  %v6595_v5 = vcombine.high %v1041_v28, %v1045_v29  ;;  %v1093_v19 = vld [vmem:[#allocation12 + $0x4f0] sm:$0xff]  ;;  %v1090_v20 = vld [vmem:[#allocation12 + $0x4d8] sm:$0xff] }
 0x3c7   :  { %2771 = vmatprep.subr.bf16.mxu1 %v6541_v40  ;;  %v6597_v40 = vcombine.high %v1042_v30, %v1046_v34  ;;  %v1094_v21 = vld [vmem:[#allocation12 + $0x4f8] sm:$0xff] }
 0x3c9   :  { %2690 = vmatpush1.bf16.msra.mxu0 %v6538_v45  ;;  %v6594_v45 = vcombine.low %v1041_v28, %v1045_v29  ;;  %v1101_v28 = vld [vmem:[#allocation12 + $0x530] sm:$0xff]  ;;  %v1098_v29 = vld [vmem:[#allocation12 + $0x518] sm:$0xff] }
 0x3ca   :  { %2772 = vmatpush1.bf16.msra.mxu1 %v6540_v31  ;;  %2691 = vmatprep.subr.bf16.mxu0 %v6547_v32  ;;  %v6596_v31 = vcombine.low %v1042_v30, %v1046_v34  ;;  %v6603_v32 = vcombine.high %v1049_v41, %v1053_v42  ;;  %v1102_v30 = vld [vmem:[#allocation12 + $0x538] sm:$0xff]  ;;  %v6644_v34 = vcombine.low %v1090_v20, %v1094_v21 }
 0x3cb   :  { %2773 = vmatprep.subr.bf16.mxu1 %v6549_v33  ;;  %v6605_v33 = vcombine.high %v1050_v43, %v1054_v44 }
 0x3cd   :  { %2692 = vmatpush1.bf16.msra.mxu0 %v6546_v48  ;;  %v6602_v48 = vcombine.low %v1049_v41, %v1053_v42  ;;  %v1106_v41 = vld [vmem:[#allocation12 + $0x558] sm:$0xff] }
 0x3ce   :  { %2774 = vmatpush1.bf16.msra.mxu1 %v6548_v50  ;;  %2693 = vmatprep.subr.bf16.mxu0 %v6555_v51  ;;  %v6604_v50 = vcombine.low %v1050_v43, %v1054_v44  ;;  %v6611_v51 = vcombine.high %v1057_v35, %v1061_v37  ;;  %v1110_v42 = vld [vmem:[#allocation12 + $0x578] sm:$0xff]  ;;  %v6652_v44 = vcombine.low %v1098_v29, %v1102_v30 }
 0x3cf   :  { %2775 = vmatprep.subr.bf16.mxu1 %v6557_v53  ;;  %v6613_v53 = vcombine.high %v1058_v38, %v1062_v46 }
 0x3d1   :  { %2694 = vmatpush1.bf16.msra.mxu0 %v6554_v59  ;;  %v6610_v59 = vcombine.low %v1057_v35, %v1061_v37  ;;  %v1114_v35 = vld [vmem:[#allocation12 + $0x598] sm:$0xff] }
 0x3d2   :  { %2776 = vmatpush1.bf16.msra.mxu1 %v6556_v61  ;;  %2695 = vmatprep.subr.bf16.mxu0 %v6563_v62  ;;  %v6612_v61 = vcombine.low %v1058_v38, %v1062_v46  ;;  %v6619_v62 = vcombine.high %v1065_v54, %v1069_v55  ;;  %v1118_v37 = vld [vmem:[#allocation12 + $0x5b8] sm:$0xff]  ;;  %v6660_v46 = vcombine.low %v1106_v41, %v1110_v42 }
 0x3d3   :  { %2777 = vmatprep.subr.bf16.mxu1 %v6565_v63  ;;  %v6621_v63 = vcombine.high %v1066_v56, %v1070_v58  ;;  %v1122_v54 = vld [vmem:[#allocation12 + $0x5d8] sm:$0xff] }
 0x3d4   :  { %v1126_v55 = vld [vmem:[#allocation12 + $0x5f8] sm:$0xff] }
 0x3d5   :  { %2696 = vmatpush1.bf16.msra.mxu0 %v6562_v7  ;;  %v1078_v7 = vld [vmem:[#allocation12 + $0x478] sm:$0xff] }
 0x3d6   :  { %2778 = vmatpush1.bf16.msra.mxu1 %v6564_v8  ;;  %2697 = vmatprep.subr.bf16.mxu0 %v6571_v9  ;;  %v6620_v8 = vcombine.low %v1066_v56, %v1070_v58  ;;  %v6627_v9 = vcombine.high %v1073_v0, %v1077_v1  ;;  %v6629_v12 = vcombine.high %v1074_v4, %v1078_v7 }
 0x3d7   :  { %2779 = vmatprep.subr.bf16.mxu1 %v6573_v10  ;;  %v1081_v10 = vld [vmem:[#allocation12 + $0x490] sm:$0xff]  ;;  %v6668_v58 = vcombine.low %v1114_v35, %v1118_v37 }
 0x3d9   :  { %2698 = vmatpush1.bf16.msra.mxu0 %v6570_v14  ;;  %v6626_v14 = vcombine.low %v1073_v0, %v1077_v1  ;;  %v1130_v0 = vld [vmem:[#allocation12 + $0x618] sm:$0xff] }
 0x3da   :  { %2780 = vmatpush1.bf16.msra.mxu1 %v6572_v15  ;;  %2699 = vmatprep.subr.bf16.mxu0 %v6579_v16  ;;  %v6628_v15 = vcombine.low %v1074_v4, %v1078_v7  ;;  %v6635_v16 = vcombine.high %v1081_v10, %v1085_v11  ;;  %v1134_v1 = vld [vmem:[#allocation12 + $0x638] sm:$0xff]  ;;  %v6676_v4 = vcombine.low %v1122_v54, %v1126_v55 }
 0x3db   :  { %2781 = vmatprep.subr.bf16.mxu1 %v6581_v17  ;;  %v6637_v17 = vcombine.high %v1082_v22, %v1086_v13 }
 0x3dd   :  { %2700 = vmatpush1.bf16.msra.mxu0 %v6578_v24  ;;  %v6634_v24 = vcombine.low %v1081_v10, %v1085_v11  ;;  %v1141_v10 = vld [vmem:[#allocation12 + $0x670] sm:$0xff]  ;;  %v1138_v11 = vld [vmem:[#allocation12 + $0x658] sm:$0xff] }
 0x3de   :  { %2782 = vmatpush1.bf16.msra.mxu1 %v6580_v25  ;;  %2701 = vmatprep.subr.bf16.mxu0 %v6587_v26  ;;  %v6643_v25 = vcombine.high %v1089_v18, %v1093_v19  ;;  %v6645_v26 = vcombine.high %v1090_v20, %v1094_v21 }
 0x3df   :  { %2783 = vmatprep.subr.bf16.mxu1 %v6589_v27  ;;  %v1097_v27 = vld [vmem:[#allocation12 + $0x510] sm:$0xff] }
 0x3e0   :  { %v6650_v43 = vcombine.low %v1097_v27, %v1101_v28 }
 0x3e1   :  { %2702 = vmatpush1.bf16.msra.mxu0 %v6586_v36  ;;  %v6651_v36 = vcombine.high %v1097_v27, %v1101_v28  ;;  %v1154_v27 = vld [vmem:[#allocation12 + $0x6d8] sm:$0xff] }
 0x3e2   :  { %2784 = vmatpush1.bf16.msra.mxu1 %v6588_v39  ;;  %2703 = vmatprep.subr.bf16.mxu0 %v6595_v5  ;;  %v6653_v39 = vcombine.high %v1098_v29, %v1102_v30  ;;  %v1105_v5 = vld [vmem:[#allocation12 + $0x550] sm:$0xff]  ;;  %v1158_v28 = vld [vmem:[#allocation12 + $0x6f8] sm:$0xff] }
 0x3e3   :  { %2785 = vmatprep.subr.bf16.mxu1 %v6597_v40  ;;  %v1109_v40 = vld [vmem:[#allocation12 + $0x570] sm:$0xff] }
 0x3e4   :  { %v6658_v38 = vcombine.low %v1105_v5, %v1109_v40 }
 0x3e5   :  { %2704 = vmatpush1.bf16.msra.mxu0 %v6594_v45  ;;  %v6659_v45 = vcombine.high %v1105_v5, %v1109_v40  ;;  %v1162_v5 = vld [vmem:[#allocation12 + $0x718] sm:$0xff] }
 0x3e6   :  { %2786 = vmatpush1.bf16.msra.mxu1 %v6596_v31  ;;  %2705 = vmatprep.subr.bf16.mxu0 %v6603_v32  ;;  %v6661_v31 = vcombine.high %v1106_v41, %v1110_v42  ;;  %v1113_v32 = vld [vmem:[#allocation12 + $0x590] sm:$0xff]  ;;  %v1166_v40 = vld [vmem:[#allocation12 + $0x738] sm:$0xff]  ;;  %v6708_v42 = vcombine.low %v1154_v27, %v1158_v28 }
 0x3e7   :  { %2787 = vmatprep.subr.bf16.mxu1 %v6605_v33  ;;  %v1117_v33 = vld [vmem:[#allocation12 + $0x5b0] sm:$0xff] }
 0x3e8   :  { %v6666_v56 = vcombine.low %v1113_v32, %v1117_v33 }
 0x3e9   :  { %2706 = vmatpush1.bf16.msra.mxu0 %v6602_v48  ;;  %v6667_v48 = vcombine.high %v1113_v32, %v1117_v33  ;;  %v1170_v32 = vld [vmem:[#allocation12 + $0x758] sm:$0xff] }
 0x3ea   :  { %2788 = vmatpush1.bf16.msra.mxu1 %v6604_v50  ;;  %2707 = vmatprep.subr.bf16.mxu0 %v6611_v51  ;;  %v6669_v50 = vcombine.high %v1114_v35, %v1118_v37  ;;  %v1121_v51 = vld [vmem:[#allocation12 + $0x5d0] sm:$0xff]  ;;  %v1174_v33 = vld [vmem:[#allocation12 + $0x778] sm:$0xff]  ;;  %v6716_v37 = vcombine.low %v1162_v5, %v1166_v40 }
 0x3eb   :  { %2789 = vmatprep.subr.bf16.mxu1 %v6613_v53  ;;  %v1125_v53 = vld [vmem:[#allocation12 + $0x5f0] sm:$0xff] }
 0x3ed   :  { %2708 = vmatpush1.bf16.msra.mxu0 %v6610_v59  ;;  %v6675_v59 = vcombine.high %v1121_v51, %v1125_v53 }
 0x3ee   :  { %2790 = vmatpush1.bf16.msra.mxu1 %v6612_v61  ;;  %2718 = vmatprep.subr.bf16.mxu0 %v6619_v62  ;;  %v6677_v61 = vcombine.high %v1122_v54, %v1126_v55  ;;  %v1129_v62 = vld [vmem:[#allocation12 + $0x610] sm:$0xff]  ;;  %v6724_v55 = vcombine.low %v1170_v32, %v1174_v33 }
 0x3ef   :  { %2800 = vmatprep.subr.bf16.mxu1 %v6621_v63  ;;  %v1133_v63 = vld [vmem:[#allocation12 + $0x630] sm:$0xff] }
 0x3f0   :  { %2710 = vmatmul.mubr.bf16.vlgmr.msra.gmra.mrb[8].mxu0 %v8654_v23  ;;  %v6683_v7 = vcombine.high %v1129_v62, %v1133_v63 }
 0x3f1   :  { %2792 = vmatmul.mubr.bf16.vlgmr.msra.gmra.mrb[16].mxu1 %v8654_v23  ;;  %2719 = vmatpush1.bf16.msra.mxu0 %v6618_v2  ;;  %v6636_v23 = vcombine.low %v1082_v22, %v1086_v13  ;;  %v6674_v2 = vcombine.low %v1121_v51, %v1125_v53  ;;  %v6682_v22 = vcombine.low %v1129_v62, %v1133_v63  ;;  %v1178_v51 = vld [vmem:[#allocation12 + $0x798] sm:$0xff] }
 0x3f2   :  { %2750 = vmatprep.mubr.bf16.mxu0 %v8676_v47  ;;  %2801 = vmatpush1.bf16.msra.mxu1 %v6620_v8  ;;  %v6685_v8 = vcombine.high %v1130_v0, %v1134_v1  ;;  %v6684_v13 = vcombine.low %v1130_v0, %v1134_v1  ;;  %v1182_v53 = vld [vmem:[#allocation12 + $0x7b8] sm:$0xff] }
 0x3f3   :  { %2832 = vmatprep.mubr.bf16.mxu1 %v8676_v47  ;;  %2720 = vmatprep.subr.bf16.mxu0 %v6627_v9  ;;  %v6642_v47 = vcombine.low %v1089_v18, %v1093_v19  ;;  %v1137_v9 = vld [vmem:[#allocation12 + $0x650] sm:$0xff]  ;;  %v1146_v18 = vld [vmem:[#allocation12 + $0x698] sm:$0xff]  ;;  %v6732_v1 = vcombine.low %v1178_v51, %v1182_v53 }
 0x3f4   :  { %2802 = vmatprep.subr.bf16.mxu1 %v6629_v12  ;;  %v1142_v12 = vld [vmem:[#allocation12 + $0x678] sm:$0xff]  ;;  %v6690_v20 = vcombine.low %v1137_v9, %v1141_v10 }
 0x3f5   :  { %2721 = vmatpush1.bf16.msra.mxu0 %v6626_v14  ;;  %v6691_v14 = vcombine.high %v1137_v9, %v1141_v10  ;;  %v1150_v19 = vld [vmem:[#allocation12 + $0x6b8] sm:$0xff]  ;;  %v6692_v21 = vcombine.low %v1138_v11, %v1142_v12  ;;  %v7526_v9 = vld [vmem:[#allocation15 + $0x4] ss:$28 sps:$4 sm:$0xff]   ;;  %v7529_v10 = vld [vmem:[#allocation15 + $0xc] ss:$28 sps:$4 sm:$0xff]  }
 0x3f6   :  { %2803 = vmatpush1.bf16.msra.mxu1 %v6628_v15  ;;  %2722 = vmatprep.subr.bf16.mxu0 %v6635_v16  ;;  %v6693_v15 = vcombine.high %v1138_v11, %v1142_v12  ;;  %v1145_v16 = vld [vmem:[#allocation12 + $0x690] sm:$0xff]  ;;  %v6700_v30 = vcombine.low %v1146_v18, %v1150_v19  ;;  %v1186_v62 = vld [vmem:[#allocation12 + $0x7d8] sm:$0xff]  ;;  %v7524_v11 = vld [vmem:[#allocation15] ss:$28 sps:$4 sm:$0xff]  }
 0x3f7   :  { %2804 = vmatprep.subr.bf16.mxu1 %v6637_v17  ;;  %v1149_v17 = vld [vmem:[#allocation12 + $0x6b0] sm:$0xff]  ;;  %v1190_v63 = vld [vmem:[#allocation12 + $0x7f8] sm:$0xff] }
 0x3f8   :  { %v6698_v29 = vcombine.low %v1145_v16, %v1149_v17  ;;  %v7527_v12 = vld [vmem:[#allocation15 + $0x8] ss:$28 sps:$4 sm:$0xff]  }
 0x3f9   :  { %2723 = vmatpush1.bf16.msra.mxu0 %v6634_v24  ;;  %v6699_v24 = vcombine.high %v1145_v16, %v1149_v17  ;;  %v7538_v16 = vld [vmem:[#allocation15 + $0x74] ss:$28 sps:$4 sm:$0xff]   ;;  %v7541_v17 = vld [vmem:[#allocation15 + $0x7c] ss:$28 sps:$4 sm:$0xff]  }
 0x3fa   :  { %2805 = vmatpush1.bf16.msra.mxu1 %v6636_v23  ;;  %2724 = vmatprep.subr.bf16.mxu0 %v6643_v25  ;;  %v6701_v23 = vcombine.high %v1146_v18, %v1150_v19  ;;  %v1153_v25 = vld [vmem:[#allocation12 + $0x6d0] sm:$0xff]  ;;  %v7539_v19 = vld [vmem:[#allocation15 + $0x78] ss:$28 sps:$4 sm:$0xff]  }
 0x3fb   :  { %2806 = vmatprep.subr.bf16.mxu1 %v6645_v26  ;;  %v1157_v26 = vld [vmem:[#allocation12 + $0x6f0] sm:$0xff] }
 0x3fc   :  { %v6706_v41 = vcombine.low %v1153_v25, %v1157_v26  ;;  %v7536_v18 = vld [vmem:[#allocation15 + $0x70] ss:$28 sps:$4 sm:$0xff]  }
 0x3fd   :  { %2725 = vmatpush1.bf16.msra.mxu0 %v6642_v47  ;;  %v6707_v47 = vcombine.high %v1153_v25, %v1157_v26  ;;  %v7553_v25 = vld [vmem:[#allocation15 + $0xec] ss:$28 sps:$4 sm:$0xff]   ;;  %v7548_v26 = vld [vmem:[#allocation15 + $0xe0] ss:$28 sps:$4 sm:$0xff]  }
 0x3fe   :  { %2807 = vmatpush1.bf16.msra.mxu1 %v6644_v34  ;;  %2726 = vmatprep.subr.bf16.mxu0 %v6651_v36  ;;  %v6709_v34 = vcombine.high %v1154_v27, %v1158_v28  ;;  %v1161_v36 = vld [vmem:[#allocation12 + $0x710] sm:$0xff]  ;;  %v7556_v28 = vld [vmem:[#allocation15 + $0x11c] ss:$28 sps:$4 sm:$0xff]  }
 0x3ff   :  { %2808 = vmatprep.subr.bf16.mxu1 %v6653_v39  ;;  %v1165_v39 = vld [vmem:[#allocation12 + $0x730] sm:$0xff] }
 0x400   :  { %v6714_v35 = vcombine.low %v1161_v36, %v1165_v39  ;;  %v7551_v27 = vld [vmem:[#allocation15 + $0xe8] ss:$28 sps:$4 sm:$0xff]  }
 0x401   :  { %2727 = vmatpush1.bf16.msra.mxu0 %v6650_v43  ;;  %v6715_v43 = vcombine.high %v1161_v36, %v1165_v39  ;;  %v7565_v36 = vld [vmem:[#allocation15 + $0x15c] ss:$28 sps:$4 sm:$0xff]   ;;  %v7560_v39 = vld [vmem:[#allocation15 + $0x150] ss:$28 sps:$4 sm:$0xff]  }
 0x402   :  { %2809 = vmatpush1.bf16.msra.mxu1 %v6652_v44  ;;  %2728 = vmatprep.subr.bf16.mxu0 %v6659_v45  ;;  %v6717_v44 = vcombine.high %v1162_v5, %v1166_v40  ;;  %v1169_v45 = vld [vmem:[#allocation12 + $0x750] sm:$0xff]  ;;  %v7563_v5 = vld [vmem:[#allocation15 + $0x158] ss:$28 sps:$4 sm:$0xff]  }
 0x403   :  { %2810 = vmatprep.subr.bf16.mxu1 %v6661_v31  ;;  %v1173_v31 = vld [vmem:[#allocation12 + $0x770] sm:$0xff] }
 0x404   :  { %v6722_v54 = vcombine.low %v1169_v45, %v1173_v31  ;;  %v7568_v40 = vld [vmem:[#allocation15 + $0x18c] ss:$28 sps:$4 sm:$0xff]  }
 0x405   :  { %2729 = vmatpush1.bf16.msra.mxu0 %v6658_v38  ;;  %v6723_v38 = vcombine.high %v1169_v45, %v1173_v31  ;;  %v7577_v45 = vld [vmem:[#allocation15 + $0x1cc] ss:$28 sps:$4 sm:$0xff]   ;;  %v7572_v31 = vld [vmem:[#allocation15 + $0x1c0] ss:$28 sps:$4 sm:$0xff]  }
 0x406   :  { %2811 = vmatpush1.bf16.msra.mxu1 %v6660_v46  ;;  %2730 = vmatprep.subr.bf16.mxu0 %v6667_v48  ;;  %v6725_v46 = vcombine.high %v1170_v32, %v1174_v33  ;;  %v1177_v48 = vld [vmem:[#allocation12 + $0x790] sm:$0xff]  ;;  %v7580_v33 = vld [vmem:[#allocation15 + $0x1fc] ss:$28 sps:$4 sm:$0xff]  }
 0x407   :  { %2812 = vmatprep.subr.bf16.mxu1 %v6669_v50  ;;  %v1181_v50 = vld [vmem:[#allocation12 + $0x7b0] sm:$0xff] }
 0x408   :  { %v6730_v0 = vcombine.low %v1177_v48, %v1181_v50  ;;  %v7575_v32 = vld [vmem:[#allocation15 + $0x1c8] ss:$28 sps:$4 sm:$0xff]  }
 0x409   :  { %2731 = vmatpush1.bf16.msra.mxu0 %v6666_v56  ;;  %v6731_v56 = vcombine.high %v1177_v48, %v1181_v50  ;;  %v7589_v48 = vld [vmem:[#allocation15 + $0x23c] ss:$28 sps:$4 sm:$0xff]   ;;  %v7584_v50 = vld [vmem:[#allocation15 + $0x230] ss:$28 sps:$4 sm:$0xff]  }
 0x40a   :  { %2813 = vmatpush1.bf16.msra.mxu1 %v6668_v58  ;;  %2732 = vmatprep.subr.bf16.mxu0 %v6675_v59  ;;  %v6733_v58 = vcombine.high %v1178_v51, %v1182_v53  ;;  %v1185_v59 = vld [vmem:[#allocation12 + $0x7d0] sm:$0xff]  ;;  %v7587_v51 = vld [vmem:[#allocation15 + $0x238] ss:$28 sps:$4 sm:$0xff]  }
 0x40b   :  { %2814 = vmatprep.subr.bf16.mxu1 %v6677_v61  ;;  %v1189_v61 = vld [vmem:[#allocation12 + $0x7f0] sm:$0xff] }
 0x40c   :  { %v7592_v53 = vld [vmem:[#allocation15 + $0x26c] ss:$28 sps:$4 sm:$0xff]  }
 0x40d   :  { %2733 = vmatpush1.bf16.msra.mxu0 %v6674_v2  ;;  %v6739_v2 = vcombine.high %v1185_v59, %v1189_v61 }
 0x40e   :  { %2815 = vmatpush1.bf16.msra.mxu1 %v6676_v4  ;;  %2734 = vmatprep.subr.bf16.mxu0 %v6683_v7  ;;  %v6741_v4 = vcombine.high %v1186_v62, %v1190_v63  ;;  %v6738_v7 = vcombine.low %v1185_v59, %v1189_v61  ;;  %v7601_v59 = vld [vmem:[#allocation15 + $0x2ac] ss:$28 sps:$4 sm:$0xff]   ;;  %v7596_v61 = vld [vmem:[#allocation15 + $0x2a0] ss:$28 sps:$4 sm:$0xff]  }
 0x40f   :  { %2816 = vmatprep.subr.bf16.mxu1 %v6685_v8  ;;  %v6740_v8 = vcombine.low %v1186_v62, %v1190_v63  ;;  %v7599_v62 = vld [vmem:[#allocation15 + $0x2a8] ss:$28 sps:$4 sm:$0xff]   ;;  %v7604_v63 = vld [vmem:[#allocation15 + $0x2dc] ss:$28 sps:$4 sm:$0xff]  }
 0x411   :  { %2735 = vmatpush1.bf16.msra.mxu0 %v6682_v22  ;;  %v7532_v22 = vld [vmem:[#allocation15 + $0x3c] ss:$28 sps:$4 sm:$0xff]  }
 0x412   :  { %2817 = vmatpush1.bf16.msra.mxu1 %v6684_v13  ;;  %2736 = vmatprep.subr.bf16.mxu0 %v6691_v14  ;;  %v7535_v13 = vld [vmem:[#allocation15 + $0x44] ss:$28 sps:$4 sm:$0xff]   ;;  %v7530_v14 = vld [vmem:[#allocation15 + $0x38] ss:$28 sps:$4 sm:$0xff]  }
 0x413   :  { %2818 = vmatprep.subr.bf16.mxu1 %v6693_v15  ;;  %v7533_v15 = vld [vmem:[#allocation15 + $0x40] ss:$28 sps:$4 sm:$0xff]  }
 0x415   :  { %2737 = vmatpush1.bf16.msra.mxu0 %v6690_v20  ;;  %v7544_v20 = vld [vmem:[#allocation15 + $0xac] ss:$28 sps:$4 sm:$0xff]  }
 0x416   :  { %2819 = vmatpush1.bf16.msra.mxu1 %v6692_v21  ;;  %2738 = vmatprep.subr.bf16.mxu0 %v6699_v24  ;;  %v7547_v21 = vld [vmem:[#allocation15 + $0xb4] ss:$28 sps:$4 sm:$0xff]   ;;  %v7542_v24 = vld [vmem:[#allocation15 + $0xa8] ss:$28 sps:$4 sm:$0xff]  }
 0x417   :  { %2820 = vmatprep.subr.bf16.mxu1 %v6701_v23  ;;  %v7550_v23 = vld [vmem:[#allocation15 + $0xe4] ss:$28 sps:$4 sm:$0xff]  }
 0x419   :  { %2739 = vmatpush1.bf16.msra.mxu0 %v6698_v29  ;;  %v7559_v29 = vld [vmem:[#allocation15 + $0x124] ss:$28 sps:$4 sm:$0xff]  }
 0x41a   :  { %2821 = vmatpush1.bf16.msra.mxu1 %v6700_v30  ;;  %2740 = vmatprep.subr.bf16.mxu0 %v6707_v47  ;;  %v7554_v30 = vld [vmem:[#allocation15 + $0x118] ss:$28 sps:$4 sm:$0xff]   ;;  %v7557_v47 = vld [vmem:[#allocation15 + $0x120] ss:$28 sps:$4 sm:$0xff]  }
 0x41b   :  { %2822 = vmatprep.subr.bf16.mxu1 %v6709_v34  ;;  %v7562_v34 = vld [vmem:[#allocation15 + $0x154] ss:$28 sps:$4 sm:$0xff]  }
 0x41d   :  { %2741 = vmatpush1.bf16.msra.mxu0 %v6706_v41  ;;  %v7571_v41 = vld [vmem:[#allocation15 + $0x194] ss:$28 sps:$4 sm:$0xff]  }
 0x41e   :  { %2823 = vmatpush1.bf16.msra.mxu1 %v6708_v42  ;;  %2742 = vmatprep.subr.bf16.mxu0 %v6715_v43  ;;  %v7566_v42 = vld [vmem:[#allocation15 + $0x188] ss:$28 sps:$4 sm:$0xff]   ;;  %v7569_v43 = vld [vmem:[#allocation15 + $0x190] ss:$28 sps:$4 sm:$0xff]  }
 0x41f   :  { %2824 = vmatprep.subr.bf16.mxu1 %v6717_v44  ;;  %v7574_v44 = vld [vmem:[#allocation15 + $0x1c4] ss:$28 sps:$4 sm:$0xff]  }
 0x421   :  { %2743 = vmatpush1.bf16.msra.mxu0 %v6714_v35  ;;  %v7583_v35 = vld [vmem:[#allocation15 + $0x204] ss:$28 sps:$4 sm:$0xff]  }
 0x422   :  { %2825 = vmatpush1.bf16.msra.mxu1 %v6716_v37  ;;  %2744 = vmatprep.subr.bf16.mxu0 %v6723_v38  ;;  %v7578_v37 = vld [vmem:[#allocation15 + $0x1f8] ss:$28 sps:$4 sm:$0xff]   ;;  %v7581_v38 = vld [vmem:[#allocation15 + $0x200] ss:$28 sps:$4 sm:$0xff]  }
 0x423   :  { %2826 = vmatprep.subr.bf16.mxu1 %v6725_v46  ;;  %v7586_v46 = vld [vmem:[#allocation15 + $0x234] ss:$28 sps:$4 sm:$0xff]  }
 0x425   :  { %2745 = vmatpush1.bf16.msra.mxu0 %v6722_v54  ;;  %v7595_v54 = vld [vmem:[#allocation15 + $0x274] ss:$28 sps:$4 sm:$0xff]  }
 0x426   :  { %2827 = vmatpush1.bf16.msra.mxu1 %v6724_v55  ;;  %2746 = vmatprep.subr.bf16.mxu0 %v6731_v56  ;;  %v7590_v55 = vld [vmem:[#allocation15 + $0x268] ss:$28 sps:$4 sm:$0xff]   ;;  %v7593_v56 = vld [vmem:[#allocation15 + $0x270] ss:$28 sps:$4 sm:$0xff]  }
 0x427   :  { %2828 = vmatprep.subr.bf16.mxu1 %v6733_v58  ;;  %v7598_v58 = vld [vmem:[#allocation15 + $0x2a4] ss:$28 sps:$4 sm:$0xff]  }
 0x429   :  { %2747 = vmatpush1.bf16.msra.mxu0 %v6730_v0  ;;  %v7607_v0 = vld [vmem:[#allocation15 + $0x2e4] ss:$28 sps:$4 sm:$0xff]  }
 0x42a   :  { %2829 = vmatpush1.bf16.msra.mxu1 %v6732_v1  ;;  %2748 = vmatprep.subr.bf16.mxu0 %v6739_v2  ;;  %v7602_v1 = vld [vmem:[#allocation15 + $0x2d8] ss:$28 sps:$4 sm:$0xff]   ;;  %v7605_v2 = vld [vmem:[#allocation15 + $0x2e0] ss:$28 sps:$4 sm:$0xff]  }
 0x42b   :  { %2830 = vmatprep.subr.bf16.mxu1 %v6741_v4  ;;  %v7610_v4 = vld [vmem:[#allocation15 + $0x314] ss:$28 sps:$4 sm:$0xff]  }
 0x42d   :  { %2749 = vmatpush1.bf16.msra.mxu0 %v6738_v7  ;;  %v7613_v7 = vld [vmem:[#allocation15 + $0x31c] ss:$28 sps:$4 sm:$0xff]  }
 0x42e   :  { %2831 = vmatpush1.bf16.msra.mxu1 %v6740_v8  ;;  %5718 = vmatprep.subr.bf16.mxu0 %v7526_v9  ;;  %v7608_v8 = vld [vmem:[#allocation15 + $0x310] ss:$28 sps:$4 sm:$0xff]   ;;  %v7611_v9 = vld [vmem:[#allocation15 + $0x318] ss:$28 sps:$4 sm:$0xff]  }
 0x42f   :  { %5882 = vmatprep.subr.bf16.mxu1 %v7529_v10  ;;  %v7616_v10 = vld [vmem:[#allocation15 + $0x34c] ss:$28 sps:$4 sm:$0xff]  }
 0x430   :  { %2751 = vmatmul.mubr.bf16.vlgmr.msra.gmra.mrb[8].mxu0 %v8678_v49 }
 0x431   :  { %2833 = vmatmul.mubr.bf16.vlgmr.msra.gmra.mrb[16].mxu1 %v8678_v49  ;;  %5719 = vmatpush1.bf16.msra.mxu0 %v7524_v11  ;;  %v7545_v49 = vld [vmem:[#allocation15 + $0xb0] ss:$28 sps:$4 sm:$0xff]  }
 0x432   :  { %5883 = vmatpush1.bf16.msra.mxu1 %v7527_v12  ;;  %5720 = vmatprep.subr.bf16.mxu0 %v7532_v22  ;;  %v7619_v11 = vld [vmem:[#allocation15 + $0x354] ss:$28 sps:$4 sm:$0xff]   ;;  %v7614_v12 = vld [vmem:[#allocation15 + $0x348] ss:$28 sps:$4 sm:$0xff]  }
 0x433   :  { %5884 = vmatprep.subr.bf16.mxu1 %v7535_v13  ;;  %v7617_v22 = vld [vmem:[#allocation15 + $0x350] ss:$28 sps:$4 sm:$0xff]   ;;  %v7622_v13 = vld [vmem:[#allocation15 + $0x384] ss:$28 sps:$4 sm:$0xff]  }
 0x435   :  { %5721 = vmatpush1.bf16.msra.mxu0 %v7530_v14  ;;  %v7625_v14 = vld [vmem:[#allocation15 + $0x38c] ss:$28 sps:$4 sm:$0xff]  }
 0x436   :  { %5885 = vmatpush1.bf16.msra.mxu1 %v7533_v15  ;;  %5722 = vmatprep.subr.bf16.mxu0 %v7538_v16  ;;  %v8692_v15 = vld [vmem:[#allocation13] sm:$0xff] }
 0x437   :  { %5886 = vmatprep.subr.bf16.mxu1 %v7541_v17  ;;  %v1196_v16 = vrot.slane %v8692_v15, %v8619_v57  ;;  %v1200_v17 = vrot.slane %v8692_v15, %v8622_v60 }
 0x439   :  { %5723 = vmatpush1.bf16.msra.mxu0 %v7536_v18  ;;  %v1208_v18 = vrot.slane %v8692_v15, %v8670_v6 }
 0x43a   :  { %5887 = vmatpush1.bf16.msra.mxu1 %v7539_v19  ;;  %5724 = vmatprep.subr.bf16.mxu0 %v7544_v20 }
 0x43b   :  { %5888 = vmatprep.subr.bf16.mxu1 %v7547_v21 }
 0x43d   :  { %5725 = vmatpush1.bf16.msra.mxu0 %v7542_v24 }
 0x43e   :  { %5889 = vmatpush1.bf16.msra.mxu1 %v7545_v49  ;;  %5726 = vmatprep.subr.bf16.mxu0 %v7550_v23 }
 0x43f   :  { %5890 = vmatprep.subr.bf16.mxu1 %v7553_v25 }
 0x441   :  { %5727 = vmatpush1.bf16.msra.mxu0 %v7548_v26 }
 0x442   :  { %5891 = vmatpush1.bf16.msra.mxu1 %v7551_v27  ;;  %5728 = vmatprep.subr.bf16.mxu0 %v7556_v28 }
 0x443   :  { %5892 = vmatprep.subr.bf16.mxu1 %v7559_v29 }
 0x445   :  { %5729 = vmatpush1.bf16.msra.mxu0 %v7554_v30 }
 0x446   :  { %5893 = vmatpush1.bf16.msra.mxu1 %v7557_v47  ;;  %5730 = vmatprep.subr.bf16.mxu0 %v7562_v34 }
 0x447   :  { %5894 = vmatprep.subr.bf16.mxu1 %v7565_v36 }
 0x449   :  { %5731 = vmatpush1.bf16.msra.mxu0 %v7560_v39 }
 0x44a   :  { %5895 = vmatpush1.bf16.msra.mxu1 %v7563_v5  ;;  %5732 = vmatprep.subr.bf16.mxu0 %v7568_v40 }
 0x44b   :  { %5896 = vmatprep.subr.bf16.mxu1 %v7571_v41  ;;  %v7620_v41 = vld [vmem:[#allocation15 + $0x380] ss:$28 sps:$4 sm:$0xff]  }
 0x44d   :  { %5733 = vmatpush1.bf16.msra.mxu0 %v7566_v42  ;;  %v7623_v42 = vld [vmem:[#allocation15 + $0x388] ss:$28 sps:$4 sm:$0xff]  }
 0x44e   :  { %5897 = vmatpush1.bf16.msra.mxu1 %v7569_v43  ;;  %5734 = vmatprep.subr.bf16.mxu0 %v7574_v44  ;;  %v7628_v44 = vld [vmem:[#allocation15 + $0x3bc] ss:$28 sps:$4 sm:$0xff]  }
 0x44f   :  { %5898 = vmatprep.subr.bf16.mxu1 %v7577_v45  ;;  %v7631_v45 = vld [vmem:[#allocation15 + $0x3c4] ss:$28 sps:$4 sm:$0xff]  }
 0x451   :  { %5735 = vmatpush1.bf16.msra.mxu0 %v7572_v31 }
 0x452   :  { %5899 = vmatpush1.bf16.msra.mxu1 %v7575_v32  ;;  %5736 = vmatprep.subr.bf16.mxu0 %v7580_v33  ;;  %v7626_v32 = vld [vmem:[#allocation15 + $0x3b8] ss:$28 sps:$4 sm:$0xff]   ;;  %v7629_v33 = vld [vmem:[#allocation15 + $0x3c0] ss:$28 sps:$4 sm:$0xff]  }
 0x453   :  { %5900 = vmatprep.subr.bf16.mxu1 %v7583_v35  ;;  %v7634_v35 = vld [vmem:[#allocation15 + $0x3f4] ss:$28 sps:$4 sm:$0xff]  }
 0x455   :  { %5737 = vmatpush1.bf16.msra.mxu0 %v7578_v37  ;;  %v7637_v37 = vld [vmem:[#allocation15 + $0x3fc] ss:$28 sps:$4 sm:$0xff]  }
 0x456   :  { %5901 = vmatpush1.bf16.msra.mxu1 %v7581_v38  ;;  %5738 = vmatprep.subr.bf16.mxu0 %v7586_v46  ;;  %v7632_v38 = vld [vmem:[#allocation15 + $0x3f0] ss:$28 sps:$4 sm:$0xff]   ;;  %v7635_v46 = vld [vmem:[#allocation15 + $0x3f8] ss:$28 sps:$4 sm:$0xff]  }
 0x457   :  { %5902 = vmatprep.subr.bf16.mxu1 %v7589_v48  ;;  %v7640_v48 = vld [vmem:[#allocation15 + $0x42c] ss:$28 sps:$4 sm:$0xff]  }
 0x459   :  { %5739 = vmatpush1.bf16.msra.mxu0 %v7584_v50  ;;  %v7643_v50 = vld [vmem:[#allocation15 + $0x434] ss:$28 sps:$4 sm:$0xff]  }
 0x45a   :  { %5903 = vmatpush1.bf16.msra.mxu1 %v7587_v51  ;;  %5740 = vmatprep.subr.bf16.mxu0 %v7592_v53  ;;  %v7638_v51 = vld [vmem:[#allocation15 + $0x428] ss:$28 sps:$4 sm:$0xff]   ;;  %v7641_v53 = vld [vmem:[#allocation15 + $0x430] ss:$28 sps:$4 sm:$0xff]  }
 0x45b   :  { %5904 = vmatprep.subr.bf16.mxu1 %v7595_v54  ;;  %v7646_v54 = vld [vmem:[#allocation15 + $0x464] ss:$28 sps:$4 sm:$0xff]  }
 0x45d   :  { %5741 = vmatpush1.bf16.msra.mxu0 %v7590_v55  ;;  %v7649_v55 = vld [vmem:[#allocation15 + $0x46c] ss:$28 sps:$4 sm:$0xff]  }
 0x45e   :  { %5905 = vmatpush1.bf16.msra.mxu1 %v7593_v56  ;;  %5742 = vmatprep.subr.bf16.mxu0 %v7598_v58  ;;  %v7644_v56 = vld [vmem:[#allocation15 + $0x460] ss:$28 sps:$4 sm:$0xff]   ;;  %v7647_v58 = vld [vmem:[#allocation15 + $0x468] ss:$28 sps:$4 sm:$0xff]  }
 0x45f   :  { %5906 = vmatprep.subr.bf16.mxu1 %v7601_v59  ;;  %v7652_v59 = vld [vmem:[#allocation15 + $0x49c] ss:$28 sps:$4 sm:$0xff]  }
 0x461   :  { %5743 = vmatpush1.bf16.msra.mxu0 %v7596_v61  ;;  %v7655_v61 = vld [vmem:[#allocation15 + $0x4a4] ss:$28 sps:$4 sm:$0xff]  }
 0x462   :  { %5907 = vmatpush1.bf16.msra.mxu1 %v7599_v62  ;;  %5744 = vmatprep.subr.bf16.mxu0 %v7604_v63  ;;  %v7650_v62 = vld [vmem:[#allocation15 + $0x498] ss:$28 sps:$4 sm:$0xff]   ;;  %v7653_v63 = vld [vmem:[#allocation15 + $0x4a0] ss:$28 sps:$4 sm:$0xff]  }
 0x463   :  { %5908 = vmatprep.subr.bf16.mxu1 %v7607_v0  ;;  %v7658_v0 = vld [vmem:[#allocation15 + $0x4d4] ss:$28 sps:$4 sm:$0xff]  }
 0x465   :  { %5745 = vmatpush1.bf16.msra.mxu0 %v7602_v1  ;;  %v7661_v1 = vld [vmem:[#allocation15 + $0x4dc] ss:$28 sps:$4 sm:$0xff]  }
 0x466   :  { %5909 = vmatpush1.bf16.msra.mxu1 %v7605_v2  ;;  %5746 = vmatprep.subr.bf16.mxu0 %v7610_v4  ;;  %v7656_v2 = vld [vmem:[#allocation15 + $0x4d0] ss:$28 sps:$4 sm:$0xff]   ;;  %v7659_v4 = vld [vmem:[#allocation15 + $0x4d8] ss:$28 sps:$4 sm:$0xff]  }
 0x467   :  { %5910 = vmatprep.subr.bf16.mxu1 %v7613_v7  ;;  %v7664_v7 = vld [vmem:[#allocation15 + $0x50c] ss:$28 sps:$4 sm:$0xff]  }
 0x469   :  { %5747 = vmatpush1.bf16.msra.mxu0 %v7608_v8  ;;  %v7667_v8 = vld [vmem:[#allocation15 + $0x514] ss:$28 sps:$4 sm:$0xff]  }
 0x46a   :  { %5911 = vmatpush1.bf16.msra.mxu1 %v7611_v9  ;;  %5748 = vmatprep.subr.bf16.mxu0 %v7616_v10  ;;  %v7662_v9 = vld [vmem:[#allocation15 + $0x508] ss:$28 sps:$4 sm:$0xff]   ;;  %v7665_v10 = vld [vmem:[#allocation15 + $0x510] ss:$28 sps:$4 sm:$0xff]  }
 0x46b   :  { %5912 = vmatprep.subr.bf16.mxu1 %v7619_v11  ;;  %v7670_v11 = vld [vmem:[#allocation15 + $0x544] ss:$28 sps:$4 sm:$0xff]  }
 0x46d   :  { %5749 = vmatpush1.bf16.msra.mxu0 %v7614_v12  ;;  %v7673_v12 = vld [vmem:[#allocation15 + $0x54c] ss:$28 sps:$4 sm:$0xff]  }
 0x46e   :  { %5913 = vmatpush1.bf16.msra.mxu1 %v7617_v22  ;;  %5759 = vmatprep.subr.bf16.mxu0 %v7622_v13  ;;  %v7668_v22 = vld [vmem:[#allocation15 + $0x540] ss:$28 sps:$4 sm:$0xff]   ;;  %v7671_v13 = vld [vmem:[#allocation15 + $0x548] ss:$28 sps:$4 sm:$0xff]  }
 0x46f   :  { %5923 = vmatprep.subr.bf16.mxu1 %v7625_v14  ;;  %v7676_v14 = vld [vmem:[#allocation15 + $0x57c] ss:$28 sps:$4 sm:$0xff]  }
 0x483   :  { %v2588_v19 = vpop.f32.mrb[4].mxu0  ;;  %v8700_v20 = vpop.f32.mrb[12].mxu1 }
 0x484   :  { %v7307_v21 = vadd.f32 %v2588_v19, %v1196_v16  ;;  %v2590_v24 = vpop.f32.mrb[5].mxu0  ;;  %v2672_v49 = vpop.f32.mrb[13].mxu1  ;;  %v7679_v16 = vld [vmem:[#allocation15 + $0x584] ss:$28 sps:$4 sm:$0xff]   ;;  %v7682_v19 = vld [vmem:[#allocation15 + $0x5b4] ss:$28 sps:$4 sm:$0xff]  }
 0x485   :  { %v7308_v23 = vadd.f32 %v2590_v24, %v1200_v17  ;;  %v7310_v25 = vadd.f32 %v2672_v49, %v1208_v18  ;;  %v2592_v26 = vpop.f32.mrb[6].mxu0  ;;  %v2674_v27 = vpop.f32.mrb[14].mxu1  ;;  %v7674_v17 = vld [vmem:[#allocation15 + $0x578] ss:$28 sps:$4 sm:$0xff]   ;;  %v7677_v18 = vld [vmem:[#allocation15 + $0x580] ss:$28 sps:$4 sm:$0xff]  }
 0x486   :  { %v2841_v28 = vmul.f32 0.2, %v7307_v21  ;;  %v2593_v29 = vpop.f32.mrb[7].mxu0  ;;  %v2675_v30 = vpop.f32.mrb[15].mxu1  ;;  %v7680_v24 = vld [vmem:[#allocation15 + $0x5b0] ss:$28 sps:$4 sm:$0xff]  }
 0x487   :  { %v2842_v47 = vmul.f32 0.2, %v7308_v23  ;;  %v2844_v34 = vmul.f32 0.2, %v7310_v25  ;;  %v7683_v49 = vld [vmem:[#allocation15 + $0x5b8] ss:$28 sps:$4 sm:$0xff]  }
 0x488   :  { %v2849_v36 = vmax.f32 %v7307_v21, %v2841_v28  ;;  %v7685_v21 = vld [vmem:[#allocation15 + $0x5bc] ss:$28 sps:$4 sm:$0xff]   ;;  %v7686_v26 = vld [vmem:[#allocation15 + $0x5e8] ss:$28 sps:$4 sm:$0xff]   ;;  %v7689_v27 = vld [vmem:[#allocation15 + $0x5f0] ss:$28 sps:$4 sm:$0xff]  }
 0x489   :  { %v2850_v39 = vmax.f32 %v7308_v23, %v2842_v47  ;;  %v2852_v5 = vmax.f32 %v7310_v25, %v2844_v34  ;;  %v7688_v23 = vld [vmem:[#allocation15 + $0x5ec] ss:$28 sps:$4 sm:$0xff]   ;;  %v7691_v25 = vld [vmem:[#allocation15 + $0x5f4] ss:$28 sps:$4 sm:$0xff]   ;;  %v7694_v28 = vld [vmem:[#allocation15 + $0x624] ss:$28 sps:$4 sm:$0xff]   ;;  %v1204_v34 = vrot.slane %v8692_v15, %v8667_v3 }
 0x48a   :  { %v8704_v43 = vpack.c.bf16 %v2849_v36, %v2849_v36  ;;  %v7697_v29 = vld [vmem:[#allocation15 + $0x62c] ss:$28 sps:$4 sm:$0xff]   ;;  %v7692_v30 = vld [vmem:[#allocation15 + $0x620] ss:$28 sps:$4 sm:$0xff]  }
 0x48b   :  { %v8702_v40 = vpack.c.bf16 %v2850_v39, %v2850_v39  ;;  %v8708_v31 = vpack.c.bf16 %v2852_v5, %v2852_v5  ;;  %v7695_v47 = vld [vmem:[#allocation15 + $0x628] ss:$28 sps:$4 sm:$0xff]   ;;  %v7700_v36 = vld [vmem:[#allocation15 + $0x65c] ss:$28 sps:$4 sm:$0xff]  }
 0x48c   :  { %v7703_v39 = vld [vmem:[#allocation15 + $0x664] ss:$28 sps:$4 sm:$0xff]   ;;  %v7698_v5 = vld [vmem:[#allocation15 + $0x658] ss:$28 sps:$4 sm:$0xff]  }
 0x48d   :  { %5750 = vmatprep.mubr.bf16.mxu0 %v8702_v40  ;;  %5914 = vmatprep.mubr.bf16.mxu1 %v8702_v40 }
 0x48e   :  { %5751 = vmatmul.mubr.bf16.vlgmr.msra.gmra.mrb[12].mxu0 %v8704_v43  ;;  %5915 = vmatmul.mubr.bf16.vlgmr.msra.gmra.mrb[20].mxu1 %v8704_v43 }
 0x48f   :  { %5760 = vmatpush1.bf16.msra.mxu0 %v7620_v41  ;;  %5924 = vmatpush1.bf16.msra.mxu1 %v7623_v42  ;;  %v7701_v41 = vld [vmem:[#allocation15 + $0x660] ss:$28 sps:$4 sm:$0xff]   ;;  %v7309_v42 = vadd.f32 %v8700_v20, %v1204_v34  ;;  %v7770_v34 = vld [vmem:[#allocation15 + $0x8f8] ss:$28 sps:$4 sm:$0xff]  }
 0x490   :  { %5791 = vmatprep.mubr.bf16.mxu0 %v8708_v31  ;;  %5955 = vmatprep.mubr.bf16.mxu1 %v8708_v31  ;;  %v7718_v20 = vld [vmem:[#allocation15 + $0x704] ss:$28 sps:$4 sm:$0xff]  }
 0x491   :  { %5761 = vmatprep.subr.bf16.mxu0 %v7628_v44  ;;  %5925 = vmatprep.subr.bf16.mxu1 %v7631_v45  ;;  %v7706_v44 = vld [vmem:[#allocation15 + $0x694] ss:$28 sps:$4 sm:$0xff]   ;;  %v7709_v45 = vld [vmem:[#allocation15 + $0x69c] ss:$28 sps:$4 sm:$0xff]  }
 0x493   :  { %5762 = vmatpush1.bf16.msra.mxu0 %v7626_v32  ;;  %5926 = vmatpush1.bf16.msra.mxu1 %v7629_v33  ;;  %v7704_v32 = vld [vmem:[#allocation15 + $0x690] ss:$28 sps:$4 sm:$0xff]   ;;  %v7707_v33 = vld [vmem:[#allocation15 + $0x698] ss:$28 sps:$4 sm:$0xff]  }
 0x494   :  { %5763 = vmatprep.subr.bf16.mxu0 %v7634_v35  ;;  %5927 = vmatprep.subr.bf16.mxu1 %v7637_v37  ;;  %v2843_v35 = vmul.f32 0.2, %v7309_v42  ;;  %v7712_v37 = vld [vmem:[#allocation15 + $0x6cc] ss:$28 sps:$4 sm:$0xff]  }
 0x497   :  { %5764 = vmatpush1.bf16.msra.mxu0 %v7632_v38  ;;  %5928 = vmatpush1.bf16.msra.mxu1 %v7635_v46  ;;  %v7715_v38 = vld [vmem:[#allocation15 + $0x6d4] ss:$28 sps:$4 sm:$0xff]   ;;  %v7710_v46 = vld [vmem:[#allocation15 + $0x6c8] ss:$28 sps:$4 sm:$0xff]  }
 0x498   :  { %5765 = vmatprep.subr.bf16.mxu0 %v7640_v48  ;;  %5929 = vmatprep.subr.bf16.mxu1 %v7643_v50  ;;  %v7713_v48 = vld [vmem:[#allocation15 + $0x6d0] ss:$28 sps:$4 sm:$0xff]   ;;  %v2851_v50 = vmax.f32 %v7309_v42, %v2843_v35  ;;  %v7779_v42 = vld [vmem:[#allocation15 + $0x938] ss:$28 sps:$4 sm:$0xff]   ;;  %v7790_v35 = vld [vmem:[#allocation15 + $0x9a4] ss:$28 sps:$4 sm:$0xff]  }
 0x49b   :  { %5766 = vmatpush1.bf16.msra.mxu0 %v7638_v51  ;;  %5930 = vmatpush1.bf16.msra.mxu1 %v7641_v53  ;;  %v7721_v51 = vld [vmem:[#allocation15 + $0x70c] ss:$28 sps:$4 sm:$0xff]   ;;  %v7716_v53 = vld [vmem:[#allocation15 + $0x700] ss:$28 sps:$4 sm:$0xff]  }
 0x49c   :  { %5767 = vmatprep.subr.bf16.mxu0 %v7646_v54  ;;  %5931 = vmatprep.subr.bf16.mxu1 %v7649_v55  ;;  %v7719_v54 = vld [vmem:[#allocation15 + $0x708] ss:$28 sps:$4 sm:$0xff]   ;;  %v8717_v55 = vpack.c.bf16 %v2851_v50, %v2851_v50 }
 0x49d   :  { %v7799_v50 = vld [vmem:[#allocation15 + $0x9e4] ss:$28 sps:$4 sm:$0xff]  }
 0x49f   :  { %5768 = vmatpush1.bf16.msra.mxu0 %v7644_v56  ;;  %5932 = vmatpush1.bf16.msra.mxu1 %v7647_v58  ;;  %v7724_v56 = vld [vmem:[#allocation15 + $0x73c] ss:$28 sps:$4 sm:$0xff]   ;;  %v7727_v58 = vld [vmem:[#allocation15 + $0x744] ss:$28 sps:$4 sm:$0xff]  }
 0x4a0   :  { %5769 = vmatprep.subr.bf16.mxu0 %v7652_v59  ;;  %5933 = vmatprep.subr.bf16.mxu1 %v7655_v61  ;;  %v7722_v59 = vld [vmem:[#allocation15 + $0x738] ss:$28 sps:$4 sm:$0xff]   ;;  %v7725_v61 = vld [vmem:[#allocation15 + $0x740] ss:$28 sps:$4 sm:$0xff]  }
 0x4a3   :  { %5770 = vmatpush1.bf16.msra.mxu0 %v7650_v62  ;;  %5934 = vmatpush1.bf16.msra.mxu1 %v7653_v63  ;;  %v7730_v62 = vld [vmem:[#allocation15 + $0x774] ss:$28 sps:$4 sm:$0xff]   ;;  %v7733_v63 = vld [vmem:[#allocation15 + $0x77c] ss:$28 sps:$4 sm:$0xff]  }
 0x4a4   :  { %5771 = vmatprep.subr.bf16.mxu0 %v7658_v0  ;;  %5935 = vmatprep.subr.bf16.mxu1 %v7661_v1  ;;  %v7728_v0 = vld [vmem:[#allocation15 + $0x770] ss:$28 sps:$4 sm:$0xff]   ;;  %v7731_v1 = vld [vmem:[#allocation15 + $0x778] ss:$28 sps:$4 sm:$0xff]  }
 0x4a7   :  { %5772 = vmatpush1.bf16.msra.mxu0 %v7656_v2  ;;  %5936 = vmatpush1.bf16.msra.mxu1 %v7659_v4  ;;  %v7736_v2 = vld [vmem:[#allocation15 + $0x7ac] ss:$28 sps:$4 sm:$0xff]   ;;  %v7739_v4 = vld [vmem:[#allocation15 + $0x7b4] ss:$28 sps:$4 sm:$0xff]  }
 0x4a8   :  { %5773 = vmatprep.subr.bf16.mxu0 %v7664_v7  ;;  %5937 = vmatprep.subr.bf16.mxu1 %v7667_v8  ;;  %v7734_v7 = vld [vmem:[#allocation15 + $0x7a8] ss:$28 sps:$4 sm:$0xff]   ;;  %v7737_v8 = vld [vmem:[#allocation15 + $0x7b0] ss:$28 sps:$4 sm:$0xff]  }
 0x4ab   :  { %5774 = vmatpush1.bf16.msra.mxu0 %v7662_v9  ;;  %5938 = vmatpush1.bf16.msra.mxu1 %v7665_v10  ;;  %v7742_v9 = vld [vmem:[#allocation15 + $0x7e4] ss:$28 sps:$4 sm:$0xff]   ;;  %v7745_v10 = vld [vmem:[#allocation15 + $0x7ec] ss:$28 sps:$4 sm:$0xff]  }
 0x4ac   :  { %5775 = vmatprep.subr.bf16.mxu0 %v7670_v11  ;;  %5939 = vmatprep.subr.bf16.mxu1 %v7673_v12  ;;  %v7740_v11 = vld [vmem:[#allocation15 + $0x7e0] ss:$28 sps:$4 sm:$0xff]   ;;  %v7743_v12 = vld [vmem:[#allocation15 + $0x7e8] ss:$28 sps:$4 sm:$0xff]  }
 0x4af   :  { %5776 = vmatpush1.bf16.msra.mxu0 %v7668_v22  ;;  %5940 = vmatpush1.bf16.msra.mxu1 %v7671_v13  ;;  %v7748_v22 = vld [vmem:[#allocation15 + $0x81c] ss:$28 sps:$4 sm:$0xff]   ;;  %v7751_v13 = vld [vmem:[#allocation15 + $0x824] ss:$28 sps:$4 sm:$0xff]  }
 0x4b0   :  { %5777 = vmatprep.subr.bf16.mxu0 %v7676_v14  ;;  %5941 = vmatprep.subr.bf16.mxu1 %v7679_v16  ;;  %v7746_v14 = vld [vmem:[#allocation15 + $0x818] ss:$28 sps:$4 sm:$0xff]   ;;  %v7749_v16 = vld [vmem:[#allocation15 + $0x820] ss:$28 sps:$4 sm:$0xff]  }
 0x4b3   :  { %5778 = vmatpush1.bf16.msra.mxu0 %v7674_v17  ;;  %5942 = vmatpush1.bf16.msra.mxu1 %v7677_v18  ;;  %v7754_v17 = vld [vmem:[#allocation15 + $0x854] ss:$28 sps:$4 sm:$0xff]   ;;  %v7757_v18 = vld [vmem:[#allocation15 + $0x85c] ss:$28 sps:$4 sm:$0xff]  }
 0x4b4   :  { %5779 = vmatprep.subr.bf16.mxu0 %v7682_v19  ;;  %5943 = vmatprep.subr.bf16.mxu1 %v7685_v21  ;;  %v7752_v19 = vld [vmem:[#allocation15 + $0x850] ss:$28 sps:$4 sm:$0xff]   ;;  %v7755_v21 = vld [vmem:[#allocation15 + $0x858] ss:$28 sps:$4 sm:$0xff]  }
 0x4b7   :  { %5780 = vmatpush1.bf16.msra.mxu0 %v7680_v24  ;;  %5944 = vmatpush1.bf16.msra.mxu1 %v7683_v49  ;;  %v7760_v24 = vld [vmem:[#allocation15 + $0x88c] ss:$28 sps:$4 sm:$0xff]   ;;  %v7763_v49 = vld [vmem:[#allocation15 + $0x894] ss:$28 sps:$4 sm:$0xff]  }
 0x4b8   :  { %5781 = vmatprep.subr.bf16.mxu0 %v7688_v23  ;;  %5945 = vmatprep.subr.bf16.mxu1 %v7691_v25  ;;  %v7758_v23 = vld [vmem:[#allocation15 + $0x888] ss:$28 sps:$4 sm:$0xff]   ;;  %v7761_v25 = vld [vmem:[#allocation15 + $0x890] ss:$28 sps:$4 sm:$0xff]  }
 0x4bb   :  { %5782 = vmatpush1.bf16.msra.mxu0 %v7686_v26  ;;  %5946 = vmatpush1.bf16.msra.mxu1 %v7689_v27  ;;  %v7766_v26 = vld [vmem:[#allocation15 + $0x8c4] ss:$28 sps:$4 sm:$0xff]   ;;  %v7769_v27 = vld [vmem:[#allocation15 + $0x8cc] ss:$28 sps:$4 sm:$0xff]  }
 0x4bc   :  { %5783 = vmatprep.subr.bf16.mxu0 %v7694_v28  ;;  %5947 = vmatprep.subr.bf16.mxu1 %v7697_v29  ;;  %v7764_v28 = vld [vmem:[#allocation15 + $0x8c0] ss:$28 sps:$4 sm:$0xff]   ;;  %v7767_v29 = vld [vmem:[#allocation15 + $0x8c8] ss:$28 sps:$4 sm:$0xff]  }
 0x4bf   :  { %5784 = vmatpush1.bf16.msra.mxu0 %v7692_v30  ;;  %5948 = vmatpush1.bf16.msra.mxu1 %v7695_v47  ;;  %v7772_v30 = vld [vmem:[#allocation15 + $0x8fc] ss:$28 sps:$4 sm:$0xff]   ;;  %v7775_v47 = vld [vmem:[#allocation15 + $0x904] ss:$28 sps:$4 sm:$0xff]  }
 0x4c0   :  { %5785 = vmatprep.subr.bf16.mxu0 %v7700_v36  ;;  %5949 = vmatprep.subr.bf16.mxu1 %v7703_v39  ;;  %v7773_v36 = vld [vmem:[#allocation15 + $0x900] ss:$28 sps:$4 sm:$0xff]   ;;  %v7778_v39 = vld [vmem:[#allocation15 + $0x934] ss:$28 sps:$4 sm:$0xff]  }
 0x4c3   :  { %5786 = vmatpush1.bf16.msra.mxu0 %v7698_v5  ;;  %5950 = vmatpush1.bf16.msra.mxu1 %v7701_v41  ;;  %v7781_v5 = vld [vmem:[#allocation15 + $0x93c] ss:$28 sps:$4 sm:$0xff]   ;;  %v7776_v41 = vld [vmem:[#allocation15 + $0x930] ss:$28 sps:$4 sm:$0xff]  }
 0x4c4   :  { %5787 = vmatprep.subr.bf16.mxu0 %v7706_v44  ;;  %5951 = vmatprep.subr.bf16.mxu1 %v7709_v45  ;;  %v7784_v44 = vld [vmem:[#allocation15 + $0x96c] ss:$28 sps:$4 sm:$0xff]   ;;  %v7787_v45 = vld [vmem:[#allocation15 + $0x974] ss:$28 sps:$4 sm:$0xff]  }
 0x4c7   :  { %5788 = vmatpush1.bf16.msra.mxu0 %v7704_v32  ;;  %5952 = vmatpush1.bf16.msra.mxu1 %v7707_v33  ;;  %v7782_v32 = vld [vmem:[#allocation15 + $0x968] ss:$28 sps:$4 sm:$0xff]   ;;  %v7785_v33 = vld [vmem:[#allocation15 + $0x970] ss:$28 sps:$4 sm:$0xff]  }
 0x4c8   :  { %5789 = vmatprep.subr.bf16.mxu0 %v7712_v37  ;;  %5953 = vmatprep.subr.bf16.mxu1 %v7715_v38  ;;  %v7793_v37 = vld [vmem:[#allocation15 + $0x9ac] ss:$28 sps:$4 sm:$0xff]   ;;  %v7788_v38 = vld [vmem:[#allocation15 + $0x9a0] ss:$28 sps:$4 sm:$0xff]  }
 0x4cb   :  { %5790 = vmatpush1.bf16.msra.mxu0 %v7710_v46  ;;  %5954 = vmatpush1.bf16.msra.mxu1 %v7713_v48  ;;  %v7791_v46 = vld [vmem:[#allocation15 + $0x9a8] ss:$28 sps:$4 sm:$0xff]   ;;  %v7796_v48 = vld [vmem:[#allocation15 + $0x9dc] ss:$28 sps:$4 sm:$0xff]  }
 0x4cc   :  { %5800 = vmatprep.subr.bf16.mxu0 %v7718_v20  ;;  %5964 = vmatprep.subr.bf16.mxu1 %v7721_v51  ;;  %v1211_v20 = vsub.s32 4, %v8616_v52  ;;  %v1215_v51 = vsub.s32 5, %v8616_v52 }
 0x4ce   :  { %5792 = vmatmul.mubr.bf16.vlgmr.msra.gmra.mrb[12].mxu0 %v8717_v55  ;;  %5956 = vmatmul.mubr.bf16.vlgmr.msra.gmra.mrb[20].mxu1 %v8717_v55 }
 0x4cf   :  { %5801 = vmatpush1.bf16.msra.mxu0 %v7716_v53  ;;  %5965 = vmatpush1.bf16.msra.mxu1 %v7719_v54  ;;  %v1223_v53 = vsub.s32 7, %v8616_v52  ;;  %v7794_v54 = vld [vmem:[#allocation15 + $0x9d8] ss:$28 sps:$4 sm:$0xff]  }
 0x4d0   :  { %5802 = vmatprep.subr.bf16.mxu0 %v7724_v56  ;;  %5966 = vmatprep.subr.bf16.mxu1 %v7727_v58  ;;  %v7797_v56 = vld [vmem:[#allocation15 + $0x9e0] ss:$28 sps:$4 sm:$0xff]   ;;  %v1212_v58 = vrot.slane %v8692_v15, %v1211_v20 }
 0x4d3   :  { %5803 = vmatpush1.bf16.msra.mxu0 %v7722_v59  ;;  %5967 = vmatpush1.bf16.msra.mxu1 %v7725_v61  ;;  %v7802_v59 = vld [vmem:[#allocation15 + $0xa14] ss:$28 sps:$4 sm:$0xff]   ;;  %v7805_v61 = vld [vmem:[#allocation15 + $0xa1c] ss:$28 sps:$4 sm:$0xff]  }
 0x4d4   :  { %5804 = vmatprep.subr.bf16.mxu0 %v7730_v62  ;;  %5968 = vmatprep.subr.bf16.mxu1 %v7733_v63  ;;  %v1216_v62 = vrot.slane %v8692_v15, %v1215_v51  ;;  %v1224_v63 = vrot.slane %v8692_v15, %v1223_v53  ;;  %v7836_v53 = vld [vmem:[#allocation15 + $0xb60] ss:$28 sps:$4 sm:$0xff]  }
 0x4d7   :  { %5805 = vmatpush1.bf16.msra.mxu0 %v7728_v0  ;;  %5969 = vmatpush1.bf16.msra.mxu1 %v7731_v1  ;;  %v7800_v1 = vld [vmem:[#allocation15 + $0xa10] ss:$28 sps:$4 sm:$0xff]  }
 0x4d8   :  { %5806 = vmatprep.subr.bf16.mxu0 %v7736_v2  ;;  %5970 = vmatprep.subr.bf16.mxu1 %v7739_v4  ;;  %v7803_v2 = vld [vmem:[#allocation15 + $0xa18] ss:$28 sps:$4 sm:$0xff]  }
 0x4db   :  { %5807 = vmatpush1.bf16.msra.mxu0 %v7734_v7  ;;  %5971 = vmatpush1.bf16.msra.mxu1 %v7737_v8 }
 0x4dc   :  { %5808 = vmatprep.subr.bf16.mxu0 %v7742_v9  ;;  %5972 = vmatprep.subr.bf16.mxu1 %v7745_v10  ;;  %v7808_v9 = vld [vmem:[#allocation15 + $0xa4c] ss:$28 sps:$4 sm:$0xff]   ;;  %v7811_v10 = vld [vmem:[#allocation15 + $0xa54] ss:$28 sps:$4 sm:$0xff]  }
 0x4df   :  { %5809 = vmatpush1.bf16.msra.mxu0 %v7740_v11  ;;  %5973 = vmatpush1.bf16.msra.mxu1 %v7743_v12 }
 0x4e0   :  { %5810 = vmatprep.subr.bf16.mxu0 %v7748_v22  ;;  %5974 = vmatprep.subr.bf16.mxu1 %v7751_v13 }
 0x4e3   :  { %5811 = vmatpush1.bf16.msra.mxu0 %v7746_v14  ;;  %5975 = vmatpush1.bf16.msra.mxu1 %v7749_v16 }
 0x4e4   :  { %5812 = vmatprep.subr.bf16.mxu0 %v7754_v17  ;;  %5976 = vmatprep.subr.bf16.mxu1 %v7757_v18  ;;  %v7806_v18 = vld [vmem:[#allocation15 + $0xa48] ss:$28 sps:$4 sm:$0xff]  }
 0x4e7   :  { %5813 = vmatpush1.bf16.msra.mxu0 %v7752_v19  ;;  %5977 = vmatpush1.bf16.msra.mxu1 %v7755_v21 }
 0x4e8   :  { %5814 = vmatprep.subr.bf16.mxu0 %v7760_v24  ;;  %5978 = vmatprep.subr.bf16.mxu1 %v7763_v49  ;;  %v7809_v24 = vld [vmem:[#allocation15 + $0xa50] ss:$28 sps:$4 sm:$0xff]  }
 0x4eb   :  { %5815 = vmatpush1.bf16.msra.mxu0 %v7758_v23  ;;  %5979 = vmatpush1.bf16.msra.mxu1 %v7761_v25  ;;  %v7814_v25 = vld [vmem:[#allocation15 + $0xa84] ss:$28 sps:$4 sm:$0xff]  }
 0x4ec   :  { %5816 = vmatprep.subr.bf16.mxu0 %v7766_v26  ;;  %5980 = vmatprep.subr.bf16.mxu1 %v7769_v27  ;;  %v7817_v26 = vld [vmem:[#allocation15 + $0xa8c] ss:$28 sps:$4 sm:$0xff]  }
 0x4ef   :  { %5817 = vmatpush1.bf16.msra.mxu0 %v7764_v28  ;;  %5981 = vmatpush1.bf16.msra.mxu1 %v7767_v29 }
 0x4f0   :  { %5818 = vmatprep.subr.bf16.mxu0 %v7772_v30  ;;  %5982 = vmatprep.subr.bf16.mxu1 %v7775_v47  ;;  %v7812_v30 = vld [vmem:[#allocation15 + $0xa80] ss:$28 sps:$4 sm:$0xff]   ;;  %v7815_v47 = vld [vmem:[#allocation15 + $0xa88] ss:$28 sps:$4 sm:$0xff]  }
 0x4f3   :  { %5819 = vmatpush1.bf16.msra.mxu0 %v7770_v34  ;;  %5983 = vmatpush1.bf16.msra.mxu1 %v7773_v36  ;;  %v7820_v36 = vld [vmem:[#allocation15 + $0xabc] ss:$28 sps:$4 sm:$0xff]  }
 0x4f4   :  { %5820 = vmatprep.subr.bf16.mxu0 %v7778_v39  ;;  %5984 = vmatprep.subr.bf16.mxu1 %v7781_v5  ;;  %v7823_v39 = vld [vmem:[#allocation15 + $0xac4] ss:$28 sps:$4 sm:$0xff]  }
 0x4f7   :  { %5821 = vmatpush1.bf16.msra.mxu0 %v7776_v41  ;;  %5985 = vmatpush1.bf16.msra.mxu1 %v7779_v42  ;;  %v7818_v41 = vld [vmem:[#allocation15 + $0xab8] ss:$28 sps:$4 sm:$0xff]   ;;  %v7821_v42 = vld [vmem:[#allocation15 + $0xac0] ss:$28 sps:$4 sm:$0xff]  }
 0x4f8   :  { %5822 = vmatprep.subr.bf16.mxu0 %v7784_v44  ;;  %5986 = vmatprep.subr.bf16.mxu1 %v7787_v45  ;;  %v7826_v44 = vld [vmem:[#allocation15 + $0xaf4] ss:$28 sps:$4 sm:$0xff]   ;;  %v7829_v45 = vld [vmem:[#allocation15 + $0xafc] ss:$28 sps:$4 sm:$0xff]  }
 0x4fb   :  { %5823 = vmatpush1.bf16.msra.mxu0 %v7782_v32  ;;  %5987 = vmatpush1.bf16.msra.mxu1 %v7785_v33  ;;  %v7824_v32 = vld [vmem:[#allocation15 + $0xaf0] ss:$28 sps:$4 sm:$0xff]   ;;  %v7827_v33 = vld [vmem:[#allocation15 + $0xaf8] ss:$28 sps:$4 sm:$0xff]  }
 0x4fc   :  { %5824 = vmatprep.subr.bf16.mxu0 %v7790_v35  ;;  %5988 = vmatprep.subr.bf16.mxu1 %v7793_v37  ;;  %v7832_v35 = vld [vmem:[#allocation15 + $0xb2c] ss:$28 sps:$4 sm:$0xff]   ;;  %v7835_v37 = vld [vmem:[#allocation15 + $0xb34] ss:$28 sps:$4 sm:$0xff]  }
 0x4ff   :  { %5825 = vmatpush1.bf16.msra.mxu0 %v7788_v38  ;;  %5989 = vmatpush1.bf16.msra.mxu1 %v7791_v46  ;;  %v7830_v38 = vld [vmem:[#allocation15 + $0xb28] ss:$28 sps:$4 sm:$0xff]   ;;  %v7833_v46 = vld [vmem:[#allocation15 + $0xb30] ss:$28 sps:$4 sm:$0xff]  }
 0x500   :  { %5826 = vmatprep.subr.bf16.mxu0 %v7796_v48  ;;  %5990 = vmatprep.subr.bf16.mxu1 %v7799_v50  ;;  %v7838_v48 = vld [vmem:[#allocation15 + $0xb64] ss:$28 sps:$4 sm:$0xff]   ;;  %v7841_v50 = vld [vmem:[#allocation15 + $0xb6c] ss:$28 sps:$4 sm:$0xff]  }
 0x503   :  { %5827 = vmatpush1.bf16.msra.mxu0 %v7794_v54  ;;  %5991 = vmatpush1.bf16.msra.mxu1 %v7797_v56  ;;  %v2752_v0 = vpop.f32.mrb[8].mxu0  ;;  %v7839_v54 = vld [vmem:[#allocation15 + $0xb68] ss:$28 sps:$4 sm:$0xff]   ;;  %v7844_v56 = vld [vmem:[#allocation15 + $0xb9c] ss:$28 sps:$4 sm:$0xff]  }
 0x504   :  { %v7311_v4 = vadd.f32 %v2752_v0, %v1212_v58  ;;  %v8731_v7 = vpop.f32.mrb[16].mxu1  ;;  %v2754_v8 = vpop.f32.mrb[9].mxu0  ;;  %5828 = vmatprep.subr.bf16.mxu0 %v7802_v59  ;;  %5992 = vmatprep.subr.bf16.mxu1 %v7805_v61  ;;  %v7847_v58 = vld [vmem:[#allocation15 + $0xba4] ss:$28 sps:$4 sm:$0xff]   ;;  %v7842_v59 = vld [vmem:[#allocation15 + $0xb98] ss:$28 sps:$4 sm:$0xff]  }
 0x505   :  { %v7312_v11 = vadd.f32 %v2754_v8, %v1216_v62  ;;  %v2836_v12 = vpop.f32.mrb[17].mxu1  ;;  %v2756_v22 = vpop.f32.mrb[10].mxu0  ;;  %v7845_v61 = vld [vmem:[#allocation15 + $0xba0] ss:$28 sps:$4 sm:$0xff]   ;;  %v7850_v62 = vld [vmem:[#allocation15 + $0xbd4] ss:$28 sps:$4 sm:$0xff]  }
 0x506   :  { %v2845_v13 = vmul.f32 0.2, %v7311_v4  ;;  %v7314_v14 = vadd.f32 %v2836_v12, %v1224_v63  ;;  %v2838_v16 = vpop.f32.mrb[18].mxu1  ;;  %v2757_v17 = vpop.f32.mrb[11].mxu0  ;;  %v7853_v63 = vld [vmem:[#allocation15 + $0xbdc] ss:$28 sps:$4 sm:$0xff]  }
 0x507   :  { %v2846_v19 = vmul.f32 0.2, %v7312_v11  ;;  %v2839_v21 = vpop.f32.mrb[19].mxu1  ;;  %5829 = vmatpush1.bf16.msra.mxu0 %v7800_v1  ;;  %5993 = vmatpush1.bf16.msra.mxu1 %v7803_v2  ;;  %v7848_v0 = vld [vmem:[#allocation15 + $0xbd0] ss:$28 sps:$4 sm:$0xff]  }
 0x508   :  { %v2853_v49 = vmax.f32 %v7311_v4, %v2845_v13  ;;  %v2848_v23 = vmul.f32 0.2, %v7314_v14  ;;  %5830 = vmatprep.subr.bf16.mxu0 %v7808_v9  ;;  %5994 = vmatprep.subr.bf16.mxu1 %v7811_v10  ;;  %v7851_v1 = vld [vmem:[#allocation15 + $0xbd8] ss:$28 sps:$4 sm:$0xff]   ;;  %v7856_v2 = vld [vmem:[#allocation15 + $0xc0c] ss:$28 sps:$4 sm:$0xff]  }
 0x509   :  { %v2854_v27 = vmax.f32 %v7312_v11, %v2846_v19  ;;  %v7859_v4 = vld [vmem:[#allocation15 + $0xc14] ss:$28 sps:$4 sm:$0xff]   ;;  %v7854_v8 = vld [vmem:[#allocation15 + $0xc08] ss:$28 sps:$4 sm:$0xff]   ;;  %v7860_v12 = vld [vmem:[#allocation15 + $0xc40] ss:$28 sps:$4 sm:$0xff]  }
 0x50a   :  { %v2856_v28 = vmax.f32 %v7314_v14, %v2848_v23  ;;  %v8735_v34 = vpack.c.bf16 %v2853_v49, %v2853_v49  ;;  %v7857_v9 = vld [vmem:[#allocation15 + $0xc10] ss:$28 sps:$4 sm:$0xff]   ;;  %v7862_v10 = vld [vmem:[#allocation15 + $0xc44] ss:$28 sps:$4 sm:$0xff]   ;;  %v7868_v13 = vld [vmem:[#allocation15 + $0xc7c] ss:$28 sps:$4 sm:$0xff]  }
 0x50b   :  { %v8733_v29 = vpack.c.bf16 %v2854_v27, %v2854_v27  ;;  %5831 = vmatpush1.bf16.msra.mxu0 %v7806_v18  ;;  %5995 = vmatpush1.bf16.msra.mxu1 %v7809_v24  ;;  %v7865_v11 = vld [vmem:[#allocation15 + $0xc4c] ss:$28 sps:$4 sm:$0xff]   ;;  %v7871_v14 = vld [vmem:[#allocation15 + $0xc84] ss:$28 sps:$4 sm:$0xff]   ;;  %v7866_v16 = vld [vmem:[#allocation15 + $0xc78] ss:$28 sps:$4 sm:$0xff]  }
 0x50c   :  { %5841 = vmatprep.subr.bf16.mxu0 %v7814_v25  ;;  %6005 = vmatprep.subr.bf16.mxu1 %v7817_v26  ;;  %v8739_v5 = vpack.c.bf16 %v2856_v28, %v2856_v28  ;;  %v7863_v22 = vld [vmem:[#allocation15 + $0xc48] ss:$28 sps:$4 sm:$0xff]   ;;  %v7869_v17 = vld [vmem:[#allocation15 + $0xc80] ss:$28 sps:$4 sm:$0xff]   ;;  %v7874_v18 = vld [vmem:[#allocation15 + $0xcb4] ss:$28 sps:$4 sm:$0xff]  }
 0x50d   :  { %5832 = vmatprep.mubr.bf16.mxu0 %v8733_v29  ;;  %5996 = vmatprep.mubr.bf16.mxu1 %v8733_v29  ;;  %v7877_v19 = vld [vmem:[#allocation15 + $0xcbc] ss:$28 sps:$4 sm:$0xff]   ;;  %v7872_v21 = vld [vmem:[#allocation15 + $0xcb0] ss:$28 sps:$4 sm:$0xff]   ;;  %v7878_v25 = vld [vmem:[#allocation15 + $0xce8] ss:$28 sps:$4 sm:$0xff]  }
 0x50e   :  { %5833 = vmatmul.mubr.bf16.vlgmr.msra.gmra.mrb[12].mxu0 %v8735_v34  ;;  %5997 = vmatmul.mubr.bf16.vlgmr.msra.gmra.mrb[20].mxu1 %v8735_v34  ;;  %v7875_v24 = vld [vmem:[#allocation15 + $0xcb8] ss:$28 sps:$4 sm:$0xff]   ;;  %v7880_v49 = vld [vmem:[#allocation15 + $0xcec] ss:$28 sps:$4 sm:$0xff]   ;;  %v1219_v27 = vsub.s32 6, %v8616_v52 }
 0x50f   :  { %5842 = vmatpush1.bf16.msra.mxu0 %v7812_v30  ;;  %6006 = vmatpush1.bf16.msra.mxu1 %v7815_v47  ;;  %v7883_v23 = vld [vmem:[#allocation15 + $0xcf4] ss:$28 sps:$4 sm:$0xff]   ;;  %v7886_v28 = vld [vmem:[#allocation15 + $0xd24] ss:$28 sps:$4 sm:$0xff]   ;;  %v7889_v30 = vld [vmem:[#allocation15 + $0xd2c] ss:$28 sps:$4 sm:$0xff]  }
 0x510   :  { %5873 = vmatprep.mubr.bf16.mxu0 %v8739_v5  ;;  %6037 = vmatprep.mubr.bf16.mxu1 %v8739_v5  ;;  %v7881_v26 = vld [vmem:[#allocation15 + $0xcf0] ss:$28 sps:$4 sm:$0xff]   ;;  %v7884_v47 = vld [vmem:[#allocation15 + $0xd20] ss:$28 sps:$4 sm:$0xff]  }
 0x511   :  { %5843 = vmatprep.subr.bf16.mxu0 %v7820_v36  ;;  %6007 = vmatprep.subr.bf16.mxu1 %v7823_v39  ;;  %v7887_v36 = vld [vmem:[#allocation15 + $0xd28] ss:$28 sps:$4 sm:$0xff]   ;;  %v1220_v39 = vrot.slane %v8692_v15, %v1219_v27 }
 0x512   :  { %v7904_v15 = vld [vmem:[#allocation15 + $0xdcc] ss:$28 sps:$4 sm:$0xff]  }
 0x513   :  { %5844 = vmatpush1.bf16.msra.mxu0 %v7818_v41  ;;  %6008 = vmatpush1.bf16.msra.mxu1 %v7821_v42  ;;  %v7892_v41 = vld [vmem:[#allocation15 + $0xd5c] ss:$28 sps:$4 sm:$0xff]   ;;  %v7895_v42 = vld [vmem:[#allocation15 + $0xd64] ss:$28 sps:$4 sm:$0xff]  }
 0x514   :  { %5845 = vmatprep.subr.bf16.mxu0 %v7826_v44  ;;  %6009 = vmatprep.subr.bf16.mxu1 %v7829_v45  ;;  %v7890_v44 = vld [vmem:[#allocation15 + $0xd58] ss:$28 sps:$4 sm:$0xff]   ;;  %v7893_v45 = vld [vmem:[#allocation15 + $0xd60] ss:$28 sps:$4 sm:$0xff]  }
 0x517   :  { %5846 = vmatpush1.bf16.msra.mxu0 %v7824_v32  ;;  %6010 = vmatpush1.bf16.msra.mxu1 %v7827_v33  ;;  %v7313_v32 = vadd.f32 %v8731_v7, %v1220_v39  ;;  %v7898_v33 = vld [vmem:[#allocation15 + $0xd94] ss:$28 sps:$4 sm:$0xff]  }
 0x518   :  { %5847 = vmatprep.subr.bf16.mxu0 %v7832_v35  ;;  %6011 = vmatprep.subr.bf16.mxu1 %v7835_v37  ;;  %v7901_v35 = vld [vmem:[#allocation15 + $0xd9c] ss:$28 sps:$4 sm:$0xff]   ;;  %v7896_v37 = vld [vmem:[#allocation15 + $0xd90] ss:$28 sps:$4 sm:$0xff]  }
 0x519   :  { %v7910_v7 = vld [vmem:[#allocation15 + $0x14] ss:$28 sps:$4 sm:$0xff]  }
 0x51a   :  { %v7951_v39 = vld [vmem:[#allocation15 + $0x558] ss:$28 sps:$4 sm:$0xff]  }
 0x51b   :  { %5848 = vmatpush1.bf16.msra.mxu0 %v7830_v38  ;;  %6012 = vmatpush1.bf16.msra.mxu1 %v7833_v46  ;;  %v7899_v38 = vld [vmem:[#allocation15 + $0xd98] ss:$28 sps:$4 sm:$0xff]   ;;  %v2847_v46 = vmul.f32 0.2, %v7313_v32 }
 0x51c   :  { %5849 = vmatprep.subr.bf16.mxu0 %v7838_v48  ;;  %6013 = vmatprep.subr.bf16.mxu1 %v7841_v50  ;;  %v7907_v48 = vld [vmem:[#allocation15 + $0xdd4] ss:$28 sps:$4 sm:$0xff]   ;;  %v7902_v50 = vld [vmem:[#allocation15 + $0xdc8] ss:$28 sps:$4 sm:$0xff]  }
 0x51f   :  { %5850 = vmatpush1.bf16.msra.mxu0 %v7836_v53  ;;  %6014 = vmatpush1.bf16.msra.mxu1 %v7839_v54  ;;  %v7905_v53 = vld [vmem:[#allocation15 + $0xdd0] ss:$28 sps:$4 sm:$0xff]   ;;  %v2855_v54 = vmax.f32 %v7313_v32, %v2847_v46  ;;  %v7953_v32 = vld [vmem:[#allocation15 + $0x208] ss:$28 sps:$4 sm:$0xff]  }
 0x520   :  { %5851 = vmatprep.subr.bf16.mxu0 %v7844_v56  ;;  %6015 = vmatprep.subr.bf16.mxu1 %v7847_v58  ;;  %v7911_v56 = vld [vmem:[#allocation15 + $0x1d8] ss:$28 sps:$4 sm:$0xff]   ;;  %v7908_v58 = vld [vmem:[#allocation15 + $0x10] ss:$28 sps:$4 sm:$0xff]   ;;  %v7962_v46 = vld [vmem:[#allocation15 + $0x408] ss:$28 sps:$4 sm:$0xff]  }
 0x523   :  { %5852 = vmatpush1.bf16.msra.mxu0 %v7842_v59  ;;  %6016 = vmatpush1.bf16.msra.mxu1 %v7845_v61  ;;  %v8750_v59 = vpack.c.bf16 %v2855_v54, %v2855_v54  ;;  %v7912_v61 = vld [vmem:[#allocation15 + $0x18] ss:$28 sps:$4 sm:$0xff]  }
 0x524   :  { %5853 = vmatprep.subr.bf16.mxu0 %v7850_v62  ;;  %6017 = vmatprep.subr.bf16.mxu1 %v7853_v63  ;;  %v7915_v62 = vld [vmem:[#allocation15 + $0x4c] ss:$28 sps:$4 sm:$0xff]   ;;  %v7970_v54 = vld [vmem:[#allocation15 + $0x2b4] ss:$28 sps:$4 sm:$0xff]  }
 0x525   :  { %v7916_v63 = vld [vmem:[#allocation15 + $0x210] ss:$28 sps:$4 sm:$0xff]  }
 0x527   :  { %5854 = vmatpush1.bf16.msra.mxu0 %v7848_v0  ;;  %6018 = vmatpush1.bf16.msra.mxu1 %v7851_v1  ;;  %v7913_v0 = vld [vmem:[#allocation15 + $0x48] ss:$28 sps:$4 sm:$0xff]   ;;  %v7917_v1 = vld [vmem:[#allocation15 + $0x50] ss:$28 sps:$4 sm:$0xff]  }
 0x528   :  { %5855 = vmatprep.subr.bf16.mxu0 %v7856_v2  ;;  %6019 = vmatprep.subr.bf16.mxu1 %v7859_v4  ;;  %v7920_v2 = vld [vmem:[#allocation15 + $0x84] ss:$28 sps:$4 sm:$0xff]  }
 0x529   :  { %v7921_v4 = vld [vmem:[#allocation15 + $0x248] ss:$28 sps:$4 sm:$0xff]  }
 0x52b   :  { %5856 = vmatpush1.bf16.msra.mxu0 %v7854_v8  ;;  %6020 = vmatpush1.bf16.msra.mxu1 %v7857_v9  ;;  %v7918_v8 = vld [vmem:[#allocation15 + $0x80] ss:$28 sps:$4 sm:$0xff]   ;;  %v7922_v9 = vld [vmem:[#allocation15 + $0x88] ss:$28 sps:$4 sm:$0xff]  }
 0x52c   :  { %5857 = vmatprep.subr.bf16.mxu0 %v7862_v10  ;;  %6021 = vmatprep.subr.bf16.mxu1 %v7865_v11  ;;  %v7925_v10 = vld [vmem:[#allocation15 + $0xbc] ss:$28 sps:$4 sm:$0xff]  }
 0x52d   :  { %v7926_v11 = vld [vmem:[#allocation15 + $0x280] ss:$28 sps:$4 sm:$0xff]  }
 0x52f   :  { %5858 = vmatpush1.bf16.msra.mxu0 %v7860_v12  ;;  %6022 = vmatpush1.bf16.msra.mxu1 %v7863_v22  ;;  %v7923_v12 = vld [vmem:[#allocation15 + $0xb8] ss:$28 sps:$4 sm:$0xff]   ;;  %v7927_v22 = vld [vmem:[#allocation15 + $0xc0] ss:$28 sps:$4 sm:$0xff]  }
 0x530   :  { %5859 = vmatprep.subr.bf16.mxu0 %v7868_v13  ;;  %6023 = vmatprep.subr.bf16.mxu1 %v7871_v14  ;;  %v7930_v13 = vld [vmem:[#allocation15 + $0xf4] ss:$28 sps:$4 sm:$0xff]  }
 0x531   :  { %v7928_v14 = vld [vmem:[#allocation15 + $0xf0] ss:$28 sps:$4 sm:$0xff]  }
 0x533   :  { %5860 = vmatpush1.bf16.msra.mxu0 %v7866_v16  ;;  %6024 = vmatpush1.bf16.msra.mxu1 %v7869_v17  ;;  %v7932_v16 = vld [vmem:[#allocation15 + $0xf8] ss:$28 sps:$4 sm:$0xff]   ;;  %v7935_v17 = vld [vmem:[#allocation15 + $0x12c] ss:$28 sps:$4 sm:$0xff]  }
 0x534   :  { %5861 = vmatprep.subr.bf16.mxu0 %v7874_v18  ;;  %6025 = vmatprep.subr.bf16.mxu1 %v7877_v19  ;;  %v7936_v18 = vld [vmem:[#allocation15 + $0x2f0] ss:$28 sps:$4 sm:$0xff]   ;;  %v7933_v19 = vld [vmem:[#allocation15 + $0x128] ss:$28 sps:$4 sm:$0xff]  }
 0x537   :  { %5862 = vmatpush1.bf16.msra.mxu0 %v7872_v21  ;;  %6026 = vmatpush1.bf16.msra.mxu1 %v7875_v24  ;;  %v7937_v21 = vld [vmem:[#allocation15 + $0x130] ss:$28 sps:$4 sm:$0xff]   ;;  %v7940_v24 = vld [vmem:[#allocation15 + $0x164] ss:$28 sps:$4 sm:$0xff]  }
 0x538   :  { %5863 = vmatprep.subr.bf16.mxu0 %v7880_v49  ;;  %6027 = vmatprep.subr.bf16.mxu1 %v7883_v23  ;;  %v7941_v49 = vld [vmem:[#allocation15 + $0x328] ss:$28 sps:$4 sm:$0xff]   ;;  %v7938_v23 = vld [vmem:[#allocation15 + $0x160] ss:$28 sps:$4 sm:$0xff]  }
 0x53b   :  { %5864 = vmatpush1.bf16.msra.mxu0 %v7878_v25  ;;  %6028 = vmatpush1.bf16.msra.mxu1 %v7881_v26  ;;  %v7942_v25 = vld [vmem:[#allocation15 + $0x168] ss:$28 sps:$4 sm:$0xff]   ;;  %v7945_v26 = vld [vmem:[#allocation15 + $0x19c] ss:$28 sps:$4 sm:$0xff]  }
 0x53c   :  { %5865 = vmatprep.subr.bf16.mxu0 %v7886_v28  ;;  %6029 = vmatprep.subr.bf16.mxu1 %v7889_v30  ;;  %v7946_v28 = vld [vmem:[#allocation15 + $0x360] ss:$28 sps:$4 sm:$0xff]   ;;  %v7943_v30 = vld [vmem:[#allocation15 + $0x198] ss:$28 sps:$4 sm:$0xff]  }
 0x53f   :  { %5866 = vmatpush1.bf16.msra.mxu0 %v7884_v47  ;;  %6030 = vmatpush1.bf16.msra.mxu1 %v7887_v36  ;;  %v7947_v47 = vld [vmem:[#allocation15 + $0x1a0] ss:$28 sps:$4 sm:$0xff]   ;;  %v7950_v36 = vld [vmem:[#allocation15 + $0x1d4] ss:$28 sps:$4 sm:$0xff]  }
 0x540   :  { %5867 = vmatprep.subr.bf16.mxu0 %v7892_v41  ;;  %6031 = vmatprep.subr.bf16.mxu1 %v7895_v42  ;;  %v7948_v41 = vld [vmem:[#allocation15 + $0x1d0] ss:$28 sps:$4 sm:$0xff]   ;;  %v7952_v42 = vld [vmem:[#allocation15 + $0x398] ss:$28 sps:$4 sm:$0xff]  }
 0x543   :  { %5868 = vmatpush1.bf16.msra.mxu0 %v7890_v44  ;;  %6032 = vmatpush1.bf16.msra.mxu1 %v7893_v45  ;;  %v7955_v44 = vld [vmem:[#allocation15 + $0x20c] ss:$28 sps:$4 sm:$0xff]  }
 0x544   :  { %5869 = vmatprep.subr.bf16.mxu0 %v7898_v33  ;;  %6033 = vmatprep.subr.bf16.mxu1 %v7901_v35  ;;  %v7956_v45 = vld [vmem:[#allocation15 + $0x590] ss:$28 sps:$4 sm:$0xff]   ;;  %v7960_v35 = vld [vmem:[#allocation15 + $0x244] ss:$28 sps:$4 sm:$0xff]  }
 0x545   :  { %v7957_v33 = vld [vmem:[#allocation15 + $0x3d0] ss:$28 sps:$4 sm:$0xff]  }
 0x547   :  { %5870 = vmatpush1.bf16.msra.mxu0 %v7896_v37  ;;  %6034 = vmatpush1.bf16.msra.mxu1 %v7899_v38  ;;  %v7961_v37 = vld [vmem:[#allocation15 + $0x5c8] ss:$28 sps:$4 sm:$0xff]   ;;  %v7958_v38 = vld [vmem:[#allocation15 + $0x240] ss:$28 sps:$4 sm:$0xff]  }
 0x548   :  { %5871 = vmatprep.subr.bf16.mxu0 %v7904_v15  ;;  %6035 = vmatprep.subr.bf16.mxu1 %v7907_v48  ;;  %v7965_v15 = vld [vmem:[#allocation15 + $0x27c] ss:$28 sps:$4 sm:$0xff]  }
 0x549   :  { %v7966_v48 = vld [vmem:[#allocation15 + $0x600] ss:$28 sps:$4 sm:$0xff]  }
 0x54b   :  { %5872 = vmatpush1.bf16.msra.mxu0 %v7902_v50  ;;  %6036 = vmatpush1.bf16.msra.mxu1 %v7905_v53  ;;  %v7963_v50 = vld [vmem:[#allocation15 + $0x278] ss:$28 sps:$4 sm:$0xff]   ;;  %v7967_v53 = vld [vmem:[#allocation15 + $0x440] ss:$28 sps:$4 sm:$0xff]  }
 0x54c   :  { %6046 = vmatprep.subr.bf16.mxu0 %v7910_v7  ;;  %7199 = vmatprep.subr.bf16.mxu1 %v7911_v56  ;;  %v7971_v7 = vld [vmem:[#allocation15 + $0x638] ss:$28 sps:$4 sm:$0xff]   ;;  %v7968_v56 = vld [vmem:[#allocation15 + $0x2b0] ss:$28 sps:$4 sm:$0xff]  }
 0x54e   :  { %5874 = vmatmul.mubr.bf16.vlgmr.msra.gmra.mrb[12].mxu0 %v8750_v59  ;;  %6038 = vmatmul.mubr.bf16.vlgmr.msra.gmra.mrb[20].mxu1 %v8750_v59 }
 0x54f   :  { %6047 = vmatpush1.bf16.msra.mxu0 %v7908_v58  ;;  %6078 = vmatprep.mubr.bf16.mxu0 %v8702_v40  ;;  %v7972_v58 = vld [vmem:[#allocation15 + $0x478] ss:$28 sps:$4 sm:$0xff]  }
 0x550   :  { %7200 = vmatpush3.bf16.msra.mxu1 %v7912_v61  ;;  %6242 = vmatprep.mubr.bf16.mxu1 %v8702_v40  ;;  %v7931_v40 = vld [vmem:[#allocation15 + $0x2b8] ss:$28 sps:$4 sm:$0xff]   ;;  %v7975_v61 = vld [vmem:[#allocation15 + $0x2ec] ss:$28 sps:$4 sm:$0xff]  }
 0x551   :  { %6048 = vmatprep.subr.bf16.mxu0 %v7915_v62  ;;  %7201 = vmatprep.subr.bf16.mxu1 %v7916_v63  ;;  %v7976_v62 = vld [vmem:[#allocation15 + $0x670] ss:$28 sps:$4 sm:$0xff]   ;;  %v7973_v63 = vld [vmem:[#allocation15 + $0x2e8] ss:$28 sps:$4 sm:$0xff]  }
 0x553   :  { %6049 = vmatpush1.bf16.msra.mxu0 %v7913_v0  ;;  %v7977_v0 = vld [vmem:[#allocation15 + $0x4b0] ss:$28 sps:$4 sm:$0xff]  }
 0x554   :  { %7202 = vmatpush3.bf16.msra.mxu1 %v7917_v1  ;;  %6050 = vmatprep.subr.bf16.mxu0 %v7920_v2  ;;  %v7980_v1 = vld [vmem:[#allocation15 + $0x324] ss:$28 sps:$4 sm:$0xff]  }
 0x555   :  { %7203 = vmatprep.subr.bf16.mxu1 %v7921_v4  ;;  %v7981_v2 = vld [vmem:[#allocation15 + $0x6a8] ss:$28 sps:$4 sm:$0xff]   ;;  %v7978_v4 = vld [vmem:[#allocation15 + $0x320] ss:$28 sps:$4 sm:$0xff]  }
 0x557   :  { %6051 = vmatpush1.bf16.msra.mxu0 %v7918_v8  ;;  %v7982_v8 = vld [vmem:[#allocation15 + $0x4e8] ss:$28 sps:$4 sm:$0xff]  }
 0x558   :  { %7204 = vmatpush3.bf16.msra.mxu1 %v7922_v9  ;;  %6052 = vmatprep.subr.bf16.mxu0 %v7925_v10  ;;  %v7985_v9 = vld [vmem:[#allocation15 + $0x35c] ss:$28 sps:$4 sm:$0xff]  }
 0x559   :  { %7205 = vmatprep.subr.bf16.mxu1 %v7926_v11  ;;  %v7986_v10 = vld [vmem:[#allocation15 + $0x6e0] ss:$28 sps:$4 sm:$0xff]   ;;  %v7983_v11 = vld [vmem:[#allocation15 + $0x358] ss:$28 sps:$4 sm:$0xff]  }
 0x55b   :  { %6053 = vmatpush1.bf16.msra.mxu0 %v7923_v12  ;;  %v7987_v12 = vld [vmem:[#allocation15 + $0x520] ss:$28 sps:$4 sm:$0xff]  }
 0x55c   :  { %7206 = vmatpush3.bf16.msra.mxu1 %v7927_v22  ;;  %6054 = vmatprep.subr.bf16.mxu0 %v7930_v13  ;;  %v7990_v22 = vld [vmem:[#allocation15 + $0x394] ss:$28 sps:$4 sm:$0xff]  }
 0x55d   :  { %7207 = vmatprep.subr.bf16.mxu1 %v7931_v40  ;;  %v7991_v13 = vld [vmem:[#allocation15 + $0x8d8] ss:$28 sps:$4 sm:$0xff]   ;;  %v7988_v40 = vld [vmem:[#allocation15 + $0x390] ss:$28 sps:$4 sm:$0xff]  }
 0x55f   :  { %6055 = vmatpush1.bf16.msra.mxu0 %v7928_v14  ;;  %v7992_v14 = vld [vmem:[#allocation15 + $0x718] ss:$28 sps:$4 sm:$0xff]  }
 0x560   :  { %7208 = vmatpush3.bf16.msra.mxu1 %v7932_v16  ;;  %6056 = vmatprep.subr.bf16.mxu0 %v7935_v17  ;;  %v7995_v16 = vld [vmem:[#allocation15 + $0x3cc] ss:$28 sps:$4 sm:$0xff]  }
 0x561   :  { %7209 = vmatprep.subr.bf16.mxu1 %v7936_v18  ;;  %v7996_v17 = vld [vmem:[#allocation15 + $0x910] ss:$28 sps:$4 sm:$0xff]   ;;  %v7993_v18 = vld [vmem:[#allocation15 + $0x3c8] ss:$28 sps:$4 sm:$0xff]  }
 0x563   :  { %6057 = vmatpush1.bf16.msra.mxu0 %v7933_v19  ;;  %v7997_v19 = vld [vmem:[#allocation15 + $0x750] ss:$28 sps:$4 sm:$0xff]  }
 0x564   :  { %7210 = vmatpush3.bf16.msra.mxu1 %v7937_v21  ;;  %6058 = vmatprep.subr.bf16.mxu0 %v7940_v24  ;;  %v8000_v21 = vld [vmem:[#allocation15 + $0x404] ss:$28 sps:$4 sm:$0xff]  }
 0x565   :  { %7211 = vmatprep.subr.bf16.mxu1 %v7941_v49  ;;  %v8001_v24 = vld [vmem:[#allocation15 + $0x948] ss:$28 sps:$4 sm:$0xff]   ;;  %v7998_v49 = vld [vmem:[#allocation15 + $0x400] ss:$28 sps:$4 sm:$0xff]  }
 0x567   :  { %6059 = vmatpush1.bf16.msra.mxu0 %v7938_v23  ;;  %v8005_v23 = vld [vmem:[#allocation15 + $0x43c] ss:$28 sps:$4 sm:$0xff]  }
 0x568   :  { %7212 = vmatpush3.bf16.msra.mxu1 %v7942_v25  ;;  %6060 = vmatprep.subr.bf16.mxu0 %v7945_v26  ;;  %v8006_v25 = vld [vmem:[#allocation15 + $0x980] ss:$28 sps:$4 sm:$0xff]   ;;  %v8003_v26 = vld [vmem:[#allocation15 + $0x438] ss:$28 sps:$4 sm:$0xff]  }
 0x569   :  { %7213 = vmatprep.subr.bf16.mxu1 %v7946_v28  ;;  %v8010_v28 = vld [vmem:[#allocation15 + $0x474] ss:$28 sps:$4 sm:$0xff]  }
 0x56b   :  { %6061 = vmatpush1.bf16.msra.mxu0 %v7943_v30  ;;  %v8011_v30 = vld [vmem:[#allocation15 + $0x9b8] ss:$28 sps:$4 sm:$0xff]  }
 0x56c   :  { %7214 = vmatpush3.bf16.msra.mxu1 %v7947_v47  ;;  %6062 = vmatprep.subr.bf16.mxu0 %v7950_v36  ;;  %v8008_v47 = vld [vmem:[#allocation15 + $0x470] ss:$28 sps:$4 sm:$0xff]   ;;  %v8012_v36 = vld [vmem:[#allocation15 + $0x7f8] ss:$28 sps:$4 sm:$0xff]  }
 0x56d   :  { %7221 = vmatprep.subr.bf16.mxu1 %v7951_v39  ;;  %v8015_v39 = vld [vmem:[#allocation15 + $0x4ac] ss:$28 sps:$4 sm:$0xff]  }
 0x56f   :  { %6243 = vmatmul.mubr.bf16.vlgmr.msra.gmra.mrb[24].mxu1 %v8704_v43  ;;  %6063 = vmatpush1.bf16.msra.mxu0 %v7948_v41  ;;  %v8016_v41 = vld [vmem:[#allocation15 + $0x9f0] ss:$28 sps:$4 sm:$0xff]  }
 0x570   :  { %7222 = vmatpush3.bf16.msra.mxu1 %v7952_v42  ;;  %6282 = vmatprep.mubr.bf16.mxu1 %v8708_v31  ;;  %v8013_v42 = vld [vmem:[#allocation15 + $0x4a8] ss:$28 sps:$4 sm:$0xff]  }
 0x571   :  { %6064 = vmatprep.subr.bf16.mxu0 %v7955_v44  ;;  %7223 = vmatprep.subr.bf16.mxu1 %v7956_v45  ;;  %v8017_v44 = vld [vmem:[#allocation15 + $0x830] ss:$28 sps:$4 sm:$0xff]   ;;  %v8020_v45 = vld [vmem:[#allocation15 + $0x4e4] ss:$28 sps:$4 sm:$0xff]  }
 0x573   :  { %6065 = vmatpush1.bf16.msra.mxu0 %v7953_v32  ;;  %v8021_v32 = vld [vmem:[#allocation15 + $0xa28] ss:$28 sps:$4 sm:$0xff]  }
 0x574   :  { %7224 = vmatpush3.bf16.msra.mxu1 %v7957_v33  ;;  %6066 = vmatprep.subr.bf16.mxu0 %v7960_v35  ;;  %v8018_v33 = vld [vmem:[#allocation15 + $0x4e0] ss:$28 sps:$4 sm:$0xff]   ;;  %v8022_v35 = vld [vmem:[#allocation15 + $0x868] ss:$28 sps:$4 sm:$0xff]  }
 0x575   :  { %7225 = vmatprep.subr.bf16.mxu1 %v7961_v37  ;;  %v8025_v37 = vld [vmem:[#allocation15 + $0x51c] ss:$28 sps:$4 sm:$0xff]  }
 0x577   :  { %6067 = vmatpush1.bf16.msra.mxu0 %v7958_v38  ;;  %v8026_v38 = vld [vmem:[#allocation15 + $0xa60] ss:$28 sps:$4 sm:$0xff]  }
 0x578   :  { %7226 = vmatpush3.bf16.msra.mxu1 %v7962_v46  ;;  %6068 = vmatprep.subr.bf16.mxu0 %v7965_v15  ;;  %v8023_v46 = vld [vmem:[#allocation15 + $0x518] ss:$28 sps:$4 sm:$0xff]   ;;  %v8027_v15 = vld [vmem:[#allocation15 + $0x8a0] ss:$28 sps:$4 sm:$0xff]  }
 0x579   :  { %7227 = vmatprep.subr.bf16.mxu1 %v7966_v48  ;;  %v8030_v48 = vld [vmem:[#allocation15 + $0x554] ss:$28 sps:$4 sm:$0xff]  }
 0x57b   :  { %6069 = vmatpush1.bf16.msra.mxu0 %v7963_v50  ;;  %v8031_v50 = vld [vmem:[#allocation15 + $0xc58] ss:$28 sps:$4 sm:$0xff]  }
 0x57c   :  { %7228 = vmatpush3.bf16.msra.mxu1 %v7967_v53  ;;  %6070 = vmatprep.subr.bf16.mxu0 %v7970_v54  ;;  %v8028_v53 = vld [vmem:[#allocation15 + $0x550] ss:$28 sps:$4 sm:$0xff]   ;;  %v8032_v54 = vld [vmem:[#allocation15 + $0xa98] ss:$28 sps:$4 sm:$0xff]  }
 0x57d   :  { %7229 = vmatprep.subr.bf16.mxu1 %v7971_v7  ;;  %v8035_v7 = vld [vmem:[#allocation15 + $0x58c] ss:$28 sps:$4 sm:$0xff]  }
 0x57f   :  { %6071 = vmatpush1.bf16.msra.mxu0 %v7968_v56  ;;  %v8036_v56 = vld [vmem:[#allocation15 + $0xc90] ss:$28 sps:$4 sm:$0xff]  }
 0x580   :  { %7230 = vmatpush3.bf16.msra.mxu1 %v7972_v58  ;;  %6072 = vmatprep.subr.bf16.mxu0 %v7975_v61  ;;  %v8033_v58 = vld [vmem:[#allocation15 + $0x588] ss:$28 sps:$4 sm:$0xff]   ;;  %v8037_v61 = vld [vmem:[#allocation15 + $0xad0] ss:$28 sps:$4 sm:$0xff]  }
 0x581   :  { %7231 = vmatprep.subr.bf16.mxu1 %v7976_v62  ;;  %v8040_v62 = vld [vmem:[#allocation15 + $0x5c4] ss:$28 sps:$4 sm:$0xff]  }
 0x583   :  { %6073 = vmatpush1.bf16.msra.mxu0 %v7973_v63  ;;  %v8041_v63 = vld [vmem:[#allocation15 + $0xcc8] ss:$28 sps:$4 sm:$0xff]  }
 0x584   :  { %7232 = vmatpush3.bf16.msra.mxu1 %v7977_v0  ;;  %6074 = vmatprep.subr.bf16.mxu0 %v7980_v1  ;;  %v8038_v0 = vld [vmem:[#allocation15 + $0x5c0] ss:$28 sps:$4 sm:$0xff]   ;;  %v8042_v1 = vld [vmem:[#allocation15 + $0xb08] ss:$28 sps:$4 sm:$0xff]  }
 0x585   :  { %7233 = vmatprep.subr.bf16.mxu1 %v7981_v2  ;;  %v8045_v2 = vld [vmem:[#allocation15 + $0x5fc] ss:$28 sps:$4 sm:$0xff]  }
 0x587   :  { %6075 = vmatpush1.bf16.msra.mxu0 %v7978_v4  ;;  %v8046_v4 = vld [vmem:[#allocation15 + $0xd00] ss:$28 sps:$4 sm:$0xff]  }
 0x588   :  { %7234 = vmatpush3.bf16.msra.mxu1 %v7982_v8  ;;  %6076 = vmatprep.subr.bf16.mxu0 %v7985_v9  ;;  %v8043_v8 = vld [vmem:[#allocation15 + $0x5f8] ss:$28 sps:$4 sm:$0xff]   ;;  %v8047_v9 = vld [vmem:[#allocation15 + $0xb40] ss:$28 sps:$4 sm:$0xff]  }
 0x589   :  { %7235 = vmatprep.subr.bf16.mxu1 %v7986_v10  ;;  %v8050_v10 = vld [vmem:[#allocation15 + $0x634] ss:$28 sps:$4 sm:$0xff]  }
 0x58b   :  { %6077 = vmatpush1.bf16.msra.mxu0 %v7983_v11  ;;  %v8051_v11 = vld [vmem:[#allocation15 + $0xd38] ss:$28 sps:$4 sm:$0xff]  }
 0x58c   :  { %7236 = vmatpush3.bf16.msra.mxu1 %v7987_v12  ;;  %6087 = vmatprep.subr.bf16.mxu0 %v7990_v22  ;;  %v8048_v12 = vld [vmem:[#allocation15 + $0x630] ss:$28 sps:$4 sm:$0xff]   ;;  %v8052_v22 = vld [vmem:[#allocation15 + $0xb78] ss:$28 sps:$4 sm:$0xff]  }
 0x58d   :  { %7243 = vmatprep.subr.bf16.mxu1 %v7991_v13  ;;  %v8055_v13 = vld [vmem:[#allocation15 + $0x66c] ss:$28 sps:$4 sm:$0xff]  }
 0x58e   :  { %6079 = vmatmul.mubr.bf16.vlgmr.msra.gmra.mrb[16].mxu0 %v8704_v43  ;;  %v8002_v43 = vld [vmem:[#allocation15 + $0x788] ss:$28 sps:$4 sm:$0xff]  }
 0x58f   :  { %6283 = vmatmul.mubr.bf16.vlgmr.msra.gmra.mrb[28].mxu1 %v8717_v55  ;;  %6088 = vmatpush1.bf16.msra.mxu0 %v7988_v40  ;;  %v8056_v40 = vld [vmem:[#allocation15 + $0xd70] ss:$28 sps:$4 sm:$0xff]  }
 0x590   :  { %6119 = vmatprep.mubr.bf16.mxu0 %v8708_v31  ;;  %7244 = vmatpush3.bf16.msra.mxu1 %v7992_v14  ;;  %v8007_v31 = vld [vmem:[#allocation15 + $0x7c0] ss:$28 sps:$4 sm:$0xff]   ;;  %v8053_v14 = vld [vmem:[#allocation15 + $0x668] ss:$28 sps:$4 sm:$0xff]  }
 0x591   :  { %6322 = vmatprep.mubr.bf16.mxu1 %v8733_v29  ;;  %6089 = vmatprep.subr.bf16.mxu0 %v7995_v16  ;;  %v8057_v16 = vld [vmem:[#allocation15 + $0xbb0] ss:$28 sps:$4 sm:$0xff]  }
 0x592   :  { %7245 = vmatprep.subr.bf16.mxu1 %v7996_v17  ;;  %v8060_v17 = vld [vmem:[#allocation15 + $0x6a4] ss:$28 sps:$4 sm:$0xff]  }
 0x593   :  { %6090 = vmatpush1.bf16.msra.mxu0 %v7993_v18  ;;  %v8061_v18 = vld [vmem:[#allocation15 + $0xda8] ss:$28 sps:$4 sm:$0xff]  }
 0x594   :  { %7246 = vmatpush3.bf16.msra.mxu1 %v7997_v19  ;;  %6091 = vmatprep.subr.bf16.mxu0 %v8000_v21  ;;  %v8058_v19 = vld [vmem:[#allocation15 + $0x6a0] ss:$28 sps:$4 sm:$0xff]   ;;  %v8062_v21 = vld [vmem:[#allocation15 + $0xbe8] ss:$28 sps:$4 sm:$0xff]  }
 0x595   :  { %7247 = vmatprep.subr.bf16.mxu1 %v8001_v24  ;;  %v8065_v24 = vld [vmem:[#allocation15 + $0x6dc] ss:$28 sps:$4 sm:$0xff]  }
 0x597   :  { %6092 = vmatpush1.bf16.msra.mxu0 %v7998_v49  ;;  %v8066_v49 = vld [vmem:[#allocation15 + $0xde0] ss:$28 sps:$4 sm:$0xff]  }
 0x598   :  { %7248 = vmatpush3.bf16.msra.mxu1 %v8002_v43  ;;  %6093 = vmatprep.subr.bf16.mxu0 %v8005_v23  ;;  %v8063_v43 = vld [vmem:[#allocation15 + $0x6d8] ss:$28 sps:$4 sm:$0xff]   ;;  %v8067_v23 = vld [vmem:[#allocation15 + $0xc20] ss:$28 sps:$4 sm:$0xff]  }
 0x599   :  { %7249 = vmatprep.subr.bf16.mxu1 %v8006_v25  ;;  %v8070_v25 = vld [vmem:[#allocation15 + $0x714] ss:$28 sps:$4 sm:$0xff]  }
 0x59b   :  { %6094 = vmatpush1.bf16.msra.mxu0 %v8003_v26  ;;  %v8068_v26 = vld [vmem:[#allocation15 + $0x710] ss:$28 sps:$4 sm:$0xff]  }
 0x59c   :  { %7250 = vmatpush3.bf16.msra.mxu1 %v8007_v31  ;;  %6095 = vmatprep.subr.bf16.mxu0 %v8010_v28  ;;  %v8073_v31 = vld [vmem:[#allocation15 + $0x74c] ss:$28 sps:$4 sm:$0xff]  }
 0x59d   :  { %7251 = vmatprep.subr.bf16.mxu1 %v8011_v30  ;;  %v8071_v28 = vld [vmem:[#allocation15 + $0x748] ss:$28 sps:$4 sm:$0xff]  }
 0x59e   :  { %v8076_v30 = vld [vmem:[#allocation15 + $0x784] ss:$28 sps:$4 sm:$0xff]  }
 0x59f   :  { %6096 = vmatpush1.bf16.msra.mxu0 %v8008_v47  ;;  %v8074_v47 = vld [vmem:[#allocation15 + $0x780] ss:$28 sps:$4 sm:$0xff]  }
 0x5a0   :  { %7252 = vmatpush3.bf16.msra.mxu1 %v8012_v36  ;;  %6097 = vmatprep.subr.bf16.mxu0 %v8015_v39  ;;  %v8079_v36 = vld [vmem:[#allocation15 + $0x7bc] ss:$28 sps:$4 sm:$0xff]  }
 0x5a1   :  { %7253 = vmatprep.subr.bf16.mxu1 %v8016_v41  ;;  %v8077_v39 = vld [vmem:[#allocation15 + $0x7b8] ss:$28 sps:$4 sm:$0xff]  }
 0x5a2   :  { %v8082_v41 = vld [vmem:[#allocation15 + $0x7f4] ss:$28 sps:$4 sm:$0xff]  }
 0x5a3   :  { %6098 = vmatpush1.bf16.msra.mxu0 %v8013_v42  ;;  %v8080_v42 = vld [vmem:[#allocation15 + $0x7f0] ss:$28 sps:$4 sm:$0xff]  }
 0x5a4   :  { %7254 = vmatpush3.bf16.msra.mxu1 %v8017_v44  ;;  %6099 = vmatprep.subr.bf16.mxu0 %v8020_v45  ;;  %v8083_v44 = vld [vmem:[#allocation15 + $0x828] ss:$28 sps:$4 sm:$0xff]  }
 0x5a5   :  { %7255 = vmatprep.subr.bf16.mxu1 %v8021_v32  ;;  %v8088_v45 = vld [vmem:[#allocation15 + $0x864] ss:$28 sps:$4 sm:$0xff]   ;;  %v8091_v32 = vld [vmem:[#allocation15 + $0x89c] ss:$28 sps:$4 sm:$0xff]  }
 0x5a7   :  { %6100 = vmatpush1.bf16.msra.mxu0 %v8018_v33  ;;  %v8089_v33 = vld [vmem:[#allocation15 + $0x898] ss:$28 sps:$4 sm:$0xff]  }
 0x5a8   :  { %7256 = vmatpush3.bf16.msra.mxu1 %v8022_v35  ;;  %6101 = vmatprep.subr.bf16.mxu0 %v8025_v37  ;;  %v8094_v35 = vld [vmem:[#allocation15 + $0x8d4] ss:$28 sps:$4 sm:$0xff]  }
 0x5a9   :  { %7257 = vmatprep.subr.bf16.mxu1 %v8026_v38  ;;  %v8092_v37 = vld [vmem:[#allocation15 + $0x8d0] ss:$28 sps:$4 sm:$0xff]  }
 0x5aa   :  { %v8097_v38 = vld [vmem:[#allocation15 + $0x90c] ss:$28 sps:$4 sm:$0xff]  }
 0x5ab   :  { %6102 = vmatpush1.bf16.msra.mxu0 %v8023_v46  ;;  %v8095_v46 = vld [vmem:[#allocation15 + $0x908] ss:$28 sps:$4 sm:$0xff]  }
 0x5ac   :  { %7258 = vmatpush3.bf16.msra.mxu1 %v8027_v15  ;;  %6103 = vmatprep.subr.bf16.mxu0 %v8030_v48  ;;  %v8100_v15 = vld [vmem:[#allocation15 + $0x944] ss:$28 sps:$4 sm:$0xff]  }
 0x5ad   :  { %7265 = vmatprep.subr.bf16.mxu1 %v8031_v50  ;;  %v8098_v48 = vld [vmem:[#allocation15 + $0x940] ss:$28 sps:$4 sm:$0xff]  }
 0x5ae   :  { %v8103_v50 = vld [vmem:[#allocation15 + $0x97c] ss:$28 sps:$4 sm:$0xff]  }
 0x5af   :  { %6323 = vmatmul.mubr.bf16.vlgmr.msra.gmra.mrb[32].mxu1 %v8735_v34  ;;  %6104 = vmatpush1.bf16.msra.mxu0 %v8028_v53  ;;  %v8101_v53 = vld [vmem:[#allocation15 + $0x978] ss:$28 sps:$4 sm:$0xff]  }
 0x5b0   :  { %7266 = vmatpush3.bf16.msra.mxu1 %v8032_v54  ;;  %6362 = vmatprep.mubr.bf16.mxu1 %v8739_v5  ;;  %v8106_v54 = vld [vmem:[#allocation15 + $0x9b4] ss:$28 sps:$4 sm:$0xff]  }
 0x5b1   :  { %6105 = vmatprep.subr.bf16.mxu0 %v8035_v7  ;;  %7267 = vmatprep.subr.bf16.mxu1 %v8036_v56  ;;  %v8104_v7 = vld [vmem:[#allocation15 + $0x9b0] ss:$28 sps:$4 sm:$0xff]  }
 0x5b2   :  { %v8109_v56 = vld [vmem:[#allocation15 + $0x9ec] ss:$28 sps:$4 sm:$0xff]  }
 0x5b3   :  { %6106 = vmatpush1.bf16.msra.mxu0 %v8033_v58  ;;  %v8107_v58 = vld [vmem:[#allocation15 + $0x9e8] ss:$28 sps:$4 sm:$0xff]  }
 0x5b4   :  { %7268 = vmatpush3.bf16.msra.mxu1 %v8037_v61  ;;  %6107 = vmatprep.subr.bf16.mxu0 %v8040_v62  ;;  %v8112_v61 = vld [vmem:[#allocation15 + $0xa24] ss:$28 sps:$4 sm:$0xff]  }
 0x5b5   :  { %7269 = vmatprep.subr.bf16.mxu1 %v8041_v63  ;;  %v8110_v62 = vld [vmem:[#allocation15 + $0xa20] ss:$28 sps:$4 sm:$0xff]  }
 0x5b6   :  { %v8115_v63 = vld [vmem:[#allocation15 + $0xa5c] ss:$28 sps:$4 sm:$0xff]  }
 0x5b7   :  { %6108 = vmatpush1.bf16.msra.mxu0 %v8038_v0  ;;  %v8113_v0 = vld [vmem:[#allocation15 + $0xa58] ss:$28 sps:$4 sm:$0xff]  }
 0x5b8   :  { %7270 = vmatpush3.bf16.msra.mxu1 %v8042_v1  ;;  %6109 = vmatprep.subr.bf16.mxu0 %v8045_v2  ;;  %v8118_v1 = vld [vmem:[#allocation15 + $0xa94] ss:$28 sps:$4 sm:$0xff]  }
 0x5b9   :  { %7271 = vmatprep.subr.bf16.mxu1 %v8046_v4  ;;  %v8116_v2 = vld [vmem:[#allocation15 + $0xa90] ss:$28 sps:$4 sm:$0xff]  }
 0x5ba   :  { %v8121_v4 = vld [vmem:[#allocation15 + $0xacc] ss:$28 sps:$4 sm:$0xff]  }
 0x5bb   :  { %6110 = vmatpush1.bf16.msra.mxu0 %v8043_v8  ;;  %v8119_v8 = vld [vmem:[#allocation15 + $0xac8] ss:$28 sps:$4 sm:$0xff]  }
 0x5bc   :  { %7272 = vmatpush3.bf16.msra.mxu1 %v8047_v9  ;;  %6111 = vmatprep.subr.bf16.mxu0 %v8050_v10  ;;  %v8124_v9 = vld [vmem:[#allocation15 + $0xb04] ss:$28 sps:$4 sm:$0xff]  }
 0x5bd   :  { %7273 = vmatprep.subr.bf16.mxu1 %v8051_v11  ;;  %v8122_v10 = vld [vmem:[#allocation15 + $0xb00] ss:$28 sps:$4 sm:$0xff]  }
 0x5be   :  { %v8127_v11 = vld [vmem:[#allocation15 + $0xb3c] ss:$28 sps:$4 sm:$0xff]  }
 0x5bf   :  { %6112 = vmatpush1.bf16.msra.mxu0 %v8048_v12  ;;  %v8125_v12 = vld [vmem:[#allocation15 + $0xb38] ss:$28 sps:$4 sm:$0xff]  }
 0x5c0   :  { %7274 = vmatpush3.bf16.msra.mxu1 %v8052_v22  ;;  %6113 = vmatprep.subr.bf16.mxu0 %v8055_v13  ;;  %v8130_v22 = vld [vmem:[#allocation15 + $0xb74] ss:$28 sps:$4 sm:$0xff]  }
 0x5c1   :  { %7275 = vmatprep.subr.bf16.mxu1 %v8056_v40  ;;  %v8128_v13 = vld [vmem:[#allocation15 + $0xb70] ss:$28 sps:$4 sm:$0xff]   ;;  %v8769_v40 = vld [vmem:[#allocation16] sm:$0xff] }
 0x5c3   :  { %6114 = vmatpush1.bf16.msra.mxu0 %v8053_v14  ;;  %v3390_v14 = vrot.slane %v8769_v40, %v8667_v3 }
 0x5c4   :  { %7276 = vmatpush3.bf16.msra.mxu1 %v8057_v16  ;;  %6115 = vmatprep.subr.bf16.mxu0 %v8060_v17  ;;  %v3386_v16 = vrot.slane %v8769_v40, %v8622_v60  ;;  %v3394_v17 = vrot.slane %v8769_v40, %v8670_v6  ;;  %v8139_v6 = vld [vmem:[#allocation15 + $0xc1c] ss:$28 sps:$4 sm:$0xff]  }
 0x5c5   :  { %7277 = vmatprep.subr.bf16.mxu1 %v8061_v18  ;;  %v8131_v18 = vld [vmem:[#allocation15 + $0xba8] ss:$28 sps:$4 sm:$0xff]  }
 0x5c7   :  { %6116 = vmatpush1.bf16.msra.mxu0 %v8058_v19  ;;  %v8136_v19 = vld [vmem:[#allocation15 + $0xbe4] ss:$28 sps:$4 sm:$0xff]  }
 0x5c8   :  { %7278 = vmatpush3.bf16.msra.mxu1 %v8062_v21  ;;  %6117 = vmatprep.subr.bf16.mxu0 %v8065_v24 }
 0x5c9   :  { %7279 = vmatprep.subr.bf16.mxu1 %v8066_v49 }
 0x5cb   :  { %6118 = vmatpush1.bf16.msra.mxu0 %v8063_v43 }
 0x5cc   :  { %7280 = vmatpush3.bf16.msra.mxu1 %v8067_v23  ;;  %6128 = vmatprep.subr.bf16.mxu0 %v8070_v25 }
 0x5ce   :  { %6120 = vmatmul.mubr.bf16.vlgmr.msra.gmra.mrb[16].mxu0 %v8717_v55  ;;  %v8085_v55 = vld [vmem:[#allocation15 + $0x82c] ss:$28 sps:$4 sm:$0xff]  }
 0x5cf   :  { %6363 = vmatmul.mubr.bf16.vlgmr.msra.gmra.mrb[36].mxu1 %v8750_v59  ;;  %6129 = vmatpush1.bf16.msra.mxu0 %v8068_v26 }
 0x5d0   :  { %6160 = vmatprep.mubr.bf16.mxu0 %v8733_v29  ;;  %6130 = vmatprep.subr.bf16.mxu0 %v8073_v31  ;;  %v8086_v29 = vld [vmem:[#allocation15 + $0x860] ss:$28 sps:$4 sm:$0xff]  }
 0x5d3   :  { %6131 = vmatpush1.bf16.msra.mxu0 %v8071_v28  ;;  %v8134_v28 = vld [vmem:[#allocation15 + $0xbe0] ss:$28 sps:$4 sm:$0xff]  }
 0x5d4   :  { %6132 = vmatprep.subr.bf16.mxu0 %v8076_v30 }
 0x5d7   :  { %6133 = vmatpush1.bf16.msra.mxu0 %v8074_v47  ;;  %v8137_v47 = vld [vmem:[#allocation15 + $0xc18] ss:$28 sps:$4 sm:$0xff]  }
 0x5d8   :  { %6134 = vmatprep.subr.bf16.mxu0 %v8079_v36  ;;  %v8142_v36 = vld [vmem:[#allocation15 + $0xc54] ss:$28 sps:$4 sm:$0xff]  }
 0x5db   :  { %6135 = vmatpush1.bf16.msra.mxu0 %v8077_v39  ;;  %v8140_v39 = vld [vmem:[#allocation15 + $0xc50] ss:$28 sps:$4 sm:$0xff]  }
 0x5dc   :  { %6136 = vmatprep.subr.bf16.mxu0 %v8082_v41  ;;  %v8145_v41 = vld [vmem:[#allocation15 + $0xc8c] ss:$28 sps:$4 sm:$0xff]  }
 0x5df   :  { %6137 = vmatpush1.bf16.msra.mxu0 %v8080_v42 }
 0x5e0   :  { %6138 = vmatprep.subr.bf16.mxu0 %v8085_v55 }
 0x5e3   :  { %6139 = vmatpush1.bf16.msra.mxu0 %v8083_v44  ;;  %v8143_v44 = vld [vmem:[#allocation15 + $0xc88] ss:$28 sps:$4 sm:$0xff]  }
 0x5e4   :  { %6140 = vmatprep.subr.bf16.mxu0 %v8088_v45 }
 0x5e7   :  { %6141 = vmatpush1.bf16.msra.mxu0 %v8086_v29  ;;  %v8148_v29 = vld [vmem:[#allocation15 + $0xcc4] ss:$28 sps:$4 sm:$0xff]  }
 0x5e8   :  { %6142 = vmatprep.subr.bf16.mxu0 %v8091_v32 }
 0x5eb   :  { %6143 = vmatpush1.bf16.msra.mxu0 %v8089_v33  ;;  %v8146_v33 = vld [vmem:[#allocation15 + $0xcc0] ss:$28 sps:$4 sm:$0xff]  }
 0x5ec   :  { %6144 = vmatprep.subr.bf16.mxu0 %v8094_v35  ;;  %v8151_v35 = vld [vmem:[#allocation15 + $0xcfc] ss:$28 sps:$4 sm:$0xff]  }
 0x5ef   :  { %6145 = vmatpush1.bf16.msra.mxu0 %v8092_v37  ;;  %v8149_v37 = vld [vmem:[#allocation15 + $0xcf8] ss:$28 sps:$4 sm:$0xff]  }
 0x5f0   :  { %6146 = vmatprep.subr.bf16.mxu0 %v8097_v38  ;;  %v8154_v38 = vld [vmem:[#allocation15 + $0xd34] ss:$28 sps:$4 sm:$0xff]  }
 0x5f3   :  { %6147 = vmatpush1.bf16.msra.mxu0 %v8095_v46  ;;  %v8152_v46 = vld [vmem:[#allocation15 + $0xd30] ss:$28 sps:$4 sm:$0xff]  }
 0x5f4   :  { %6148 = vmatprep.subr.bf16.mxu0 %v8100_v15  ;;  %v8157_v15 = vld [vmem:[#allocation15 + $0xd6c] ss:$28 sps:$4 sm:$0xff]  }
 0x5f7   :  { %6149 = vmatpush1.bf16.msra.mxu0 %v8098_v48  ;;  %v8155_v48 = vld [vmem:[#allocation15 + $0xd68] ss:$28 sps:$4 sm:$0xff]  }
 0x5f8   :  { %6150 = vmatprep.subr.bf16.mxu0 %v8103_v50  ;;  %v8160_v50 = vld [vmem:[#allocation15 + $0xda4] ss:$28 sps:$4 sm:$0xff]  }
 0x5fb   :  { %6151 = vmatpush1.bf16.msra.mxu0 %v8101_v53 }
 0x5fc   :  { %6152 = vmatprep.subr.bf16.mxu0 %v8106_v54 }
 0x5ff   :  { %6153 = vmatpush1.bf16.msra.mxu0 %v8104_v7  ;;  %v8158_v7 = vld [vmem:[#allocation15 + $0xda0] ss:$28 sps:$4 sm:$0xff]  }
 0x600   :  { %6154 = vmatprep.subr.bf16.mxu0 %v8109_v56 }
 0x603   :  { %6155 = vmatpush1.bf16.msra.mxu0 %v8107_v58 }
 0x604   :  { %6156 = vmatprep.subr.bf16.mxu0 %v8112_v61  ;;  %v8163_v61 = vld [vmem:[#allocation15 + $0xddc] ss:$28 sps:$4 sm:$0xff]  }
 0x607   :  { %6157 = vmatpush1.bf16.msra.mxu0 %v8110_v62 }
 0x608   :  { %6158 = vmatprep.subr.bf16.mxu0 %v8115_v63  ;;  %v8161_v63 = vld [vmem:[#allocation15 + $0xdd8] ss:$28 sps:$4 sm:$0xff]  }
 0x60b   :  { %6159 = vmatpush1.bf16.msra.mxu0 %v8113_v0  ;;  %v3406_v0 = vrot.slane %v8769_v40, %v1219_v27 }
 0x60c   :  { %6169 = vmatprep.subr.bf16.mxu0 %v8118_v1 }
 0x60e   :  { %6161 = vmatmul.mubr.bf16.vlgmr.msra.gmra.mrb[16].mxu0 %v8735_v34  ;;  %v8133_v34 = vld [vmem:[#allocation15 + $0xbac] ss:$28 sps:$4 sm:$0xff]  }
 0x60f   :  { %6170 = vmatpush1.bf16.msra.mxu0 %v8116_v2  ;;  %6201 = vmatprep.mubr.bf16.mxu0 %v8739_v5  ;;  %v3382_v5 = vrot.slane %v8769_v40, %v8619_v57 }
 0x610   :  { %6171 = vmatprep.subr.bf16.mxu0 %v8121_v4 }
 0x613   :  { %6172 = vmatpush1.bf16.msra.mxu0 %v8119_v8 }
 0x614   :  { %6173 = vmatprep.subr.bf16.mxu0 %v8124_v9 }
 0x617   :  { %6174 = vmatpush1.bf16.msra.mxu0 %v8122_v10 }
 0x618   :  { %6175 = vmatprep.subr.bf16.mxu0 %v8127_v11 }
 0x61b   :  { %6176 = vmatpush1.bf16.msra.mxu0 %v8125_v12 }
 0x61c   :  { %6177 = vmatprep.subr.bf16.mxu0 %v8130_v22 }
 0x61f   :  { %6178 = vmatpush1.bf16.msra.mxu0 %v8128_v13 }
 0x620   :  { %6179 = vmatprep.subr.bf16.mxu0 %v8133_v34 }
 0x621   :  { %v5875_v21 = vpop.f32.mrb[12].mxu0  ;;  %v6039_v24 = vpop.f32.mrb[20].mxu1 }
 0x622   :  { %v7315_v49 = vadd.f32 %v5875_v21, %v3382_v5  ;;  %v7317_v43 = vadd.f32 %v6039_v24, %v3390_v14  ;;  %v5877_v23 = vpop.f32.mrb[13].mxu0  ;;  %v6041_v25 = vpop.f32.mrb[21].mxu1  ;;  %v3398_v24 = vrot.slane %v8769_v40, %v1211_v20 }
 0x623   :  { %v7316_v57 = vadd.f32 %v5877_v23, %v3386_v16  ;;  %v7318_v26 = vadd.f32 %v6041_v25, %v3394_v17  ;;  %v5879_v31 = vpop.f32.mrb[14].mxu0  ;;  %v6043_v3 = vpop.f32.mrb[22].mxu1  ;;  %6180 = vmatpush1.bf16.msra.mxu0 %v8131_v18 }
 0x624   :  { %8164 = vtanh.f32 %v7315_v49  ;;  %v5880_v60 = vpop.f32.mrb[15].mxu0  ;;  %v6044_v30 = vpop.f32.mrb[23].mxu1  ;;  %6181 = vmatprep.subr.bf16.mxu0 %v8136_v19  ;;  %v3402_v49 = vrot.slane %v8769_v40, %v1215_v51 }
 0x625   :  { %8166 = vtanh.f32 %v7317_v43 }
 0x626   :  { %8168 = vtanh.f32 %v7316_v57 }
 0x627   :  { %8170 = vtanh.f32 %v7318_v26  ;;  %6182 = vmatpush1.bf16.msra.mxu0 %v8134_v28 }
 0x628   :  { %6183 = vmatprep.subr.bf16.mxu0 %v8139_v6 }
 0x62b   :  { %6184 = vmatpush1.bf16.msra.mxu0 %v8137_v47 }
 0x62c   :  { %6185 = vmatprep.subr.bf16.mxu0 %v8142_v36 }
 0x62e   :  { %v8165_v42 = vpop.eup %8164 }
 0x62f   :  { %v8167_v55 = vpop.eup %8166  ;;  %6380 = vst [vmem:[%s8821_s11] sm:$0xff] %v8165_v42  ;;  %6186 = vmatpush1.bf16.msra.mxu0 %v8140_v39 }
 0x630   :  { %v8169_v45 = vpop.eup %8168  ;;  %6382 = vst [vmem:[%s8821_s11 + $0x10] sm:$0xff] %v8167_v55  ;;  %6187 = vmatprep.subr.bf16.mxu0 %v8145_v41 }
 0x631   :  { %v8171_v32 = vpop.eup %8170  ;;  %6381 = vst [vmem:[%s8821_s11 + $0x8] sm:$0xff] %v8169_v45 }
 0x632   :  { %6383 = vst [vmem:[%s8821_s11 + $0x18] sm:$0xff] %v8171_v32 }
 0x633   :  { %6188 = vmatpush1.bf16.msra.mxu0 %v8143_v44 }
 0x634   :  { %6189 = vmatprep.subr.bf16.mxu0 %v8148_v29 }
 0x637   :  { %6190 = vmatpush1.bf16.msra.mxu0 %v8146_v33 }
 0x638   :  { %6191 = vmatprep.subr.bf16.mxu0 %v8151_v35 }
 0x63b   :  { %6192 = vmatpush1.bf16.msra.mxu0 %v8149_v37 }
 0x63c   :  { %6193 = vmatprep.subr.bf16.mxu0 %v8154_v38 }
 0x63f   :  { %6194 = vmatpush1.bf16.msra.mxu0 %v8152_v46 }
 0x640   :  { %6195 = vmatprep.subr.bf16.mxu0 %v8157_v15 }
 0x642   :  { %v7215_v53 = vpop.f32.mrb[24].mxu1 }
 0x643   :  { %v7216_v54 = vpop.f32.mrb[25].mxu1  ;;  %6196 = vmatpush1.bf16.msra.mxu0 %v8155_v48 }
 0x644   :  { %v7217_v56 = vadd.f32 %v7216_v54, %v7215_v53  ;;  %v7218_v58 = vpop.f32.mrb[26].mxu1  ;;  %6197 = vmatprep.subr.bf16.mxu0 %v8160_v50 }
 0x645   :  { %v7219_v62 = vpop.f32.mrb[27].mxu1 }
 0x646   :  { %v6245_v4 = vadd.f32 %v7217_v56, %v3406_v0 }
 0x647   :  { %6198 = vmatpush1.bf16.msra.mxu0 %v8158_v7 }
 0x648   :  { %6199 = vmatprep.subr.bf16.mxu0 %v8163_v61 }
 0x64b   :  { %6200 = vmatpush1.bf16.msra.mxu0 %v8161_v63 }
 0x64e   :  { %6202 = vmatmul.mubr.bf16.vlgmr.msra.gmra.mrb[16].mxu0 %v8750_v59 }
 0x662   :  { %v7237_v1 = vpop.f32.mrb[28].mxu1 }
 0x663   :  { %v7238_v2 = vpop.f32.mrb[29].mxu1 }
 0x664   :  { %v7239_v8 = vadd.f32 %v7238_v2, %v7237_v1  ;;  %v7240_v9 = vpop.f32.mrb[30].mxu1 }
 0x665   :  { %v7241_v10 = vpop.f32.mrb[31].mxu1 }
 0x666   :  { %v6285_v11 = vadd.f32 %v7239_v8, %v6245_v4 }
 0x682   :  { %v7259_v12 = vpop.f32.mrb[32].mxu1 }
 0x683   :  { %v7260_v22 = vpop.f32.mrb[33].mxu1 }
 0x684   :  { %v7261_v13 = vadd.f32 %v7260_v22, %v7259_v12  ;;  %v7262_v34 = vpop.f32.mrb[34].mxu1 }
 0x685   :  { %v7263_v5 = vpop.f32.mrb[35].mxu1 }
 0x686   :  { %v6325_v14 = vadd.f32 %v7261_v13, %v6285_v11 }
 0x6a2   :  { %v7281_v16 = vpop.f32.mrb[36].mxu1 }
 0x6a3   :  { %v7282_v17 = vpop.f32.mrb[37].mxu1 }
 0x6a4   :  { %v7283_v59 = vadd.f32 %v7282_v17, %v7281_v16  ;;  %v7284_v18 = vpop.f32.mrb[38].mxu1 }
 0x6a5   :  { %v7285_v19 = vpop.f32.mrb[39].mxu1 }
 0x6a6   :  { %v6365_v21 = vadd.f32 %v7283_v59, %v6325_v14 }
 0x6a8   :  { %8172 = vtanh.f32 %v6365_v21 }
 0x6b2   :  { %v8173_v27 = vpop.eup %8172 }
 0x6b3   :  { %6386 = vst [vmem:[%s8821_s11 + $0x30] sm:$0xff] %v8173_v27 }
 0x721   :  { %v6203_v43 = vpop.f32.mrb[16].mxu0 }
 0x722   :  { %v7319_v23 = vadd.f32 %v6203_v43, %v3398_v24  ;;  %v6205_v25 = vpop.f32.mrb[17].mxu0 }
 0x723   :  { %v7320_v57 = vadd.f32 %v6205_v25, %v3402_v49  ;;  %v6207_v26 = vpop.f32.mrb[18].mxu0 }
 0x724   :  { %8174 = vtanh.f32 %v7319_v23  ;;  %v6208_v31 = vpop.f32.mrb[19].mxu0 }
 0x725   :  { %8176 = vtanh.f32 %v7320_v57 }
 0x72e   :  { %v8175_v3 = vpop.eup %8174 }
 0x72f   :  { %v8177_v28 = vpop.eup %8176  ;;  %6384 = vst [vmem:[%s8821_s11 + $0x20] sm:$0xff] %v8175_v3 }
 0x730   :  { %6385 = vst [vmem:[%s8821_s11 + $0x28] sm:$0xff] %v8177_v28 }
 0x731   :  { %6391 = vsyncpa [#allocation3], 1 }
 0x732   :  { %6392 = vsyncpa [#allocation5], 1 }
 0x733   :  { %6393 = vsyncpa [#allocation8], 1 }
 0x734   :  { %6394 = vsyncpa [#allocation11], 1 }
 0x735   :  { %6395 = vsyncpa [#allocation14], 1 }
 0x736   :  { %6396 = vsyncpa [#allocation17], 1 }

</bundles_post_ra>
